<compile_context>
chip_gen: v5e
topology: v5e:2x2
jax: 0.10.0
libtpu: 0.0.40
codegen_flags: <defaults>
</compile_context>

<pallas_src>
import jax
import jax.numpy as jnp
from jax.experimental import pallas as pl
from jax.experimental.pallas import tpu as pltpu


def _vmem_limit_bytes():
    """Generation-gated VMEM limit: ~3/4 of physical capacity.

    v7x (64 MiB physical) -> 48 MiB; v5e/v6e (128 MiB) -> 96 MiB.
    Falls back to 48 MiB, which is safe on every generation.
    """
    try:
        cap = pltpu.get_tpu_info().vmem_capacity_bytes
        return int(min(96 * 1024 * 1024, (cap * 3) // 4))
    except Exception:
        return 48 * 1024 * 1024


def _pick_tile(total, preferred):
    """Largest divisor of `total` that is <= `preferred` and a multiple of 8
    (sublane alignment for (1, tn, C) blocks).  Falls back to the full extent
    (always layout-legal) only when no 8-aligned divisor exists."""
    preferred = max(8, min(preferred, total))
    for t in range(preferred, 7, -1):
        if total % t == 0 and t % 8 == 0:
            return t
    return total


def _fold_bn(sum_, sumsq, count, gamma, beta, eps=1e-5):
    """Fold training-mode BatchNorm1d (batch statistics) into scale/shift."""
    mean = sum_ / count
    # TODO(synk): E[y^2]-E[y]^2 in f32 can cancel for very large activations;
    # a shifted / Welford-style accumulation would be more robust.
    var = jnp.maximum(sumsq / count - mean * mean, 0.0)   # biased variance
    scale = gamma * jax.lax.rsqrt(var + eps)
    shift = beta - mean * scale
    return scale, shift


# ----------------------------------------------------------------------------
# Kernels
# ----------------------------------------------------------------------------
def _conv1_kernel(x_ref, w1_ref, s1_ref, t1_ref, w2_ref, b2_ref, w3loc_ref,
                  feat_ref, fg_ref, sv_ref, sv2_ref):
    """first_conv (3->128 VPU conv + folded BN1 + ReLU + 128->256 conv),
    per-batch running max pool, and BN2 local moments (SUM v, SUM v^2)."""
    n = pl.program_id(1)

    x = x_ref[0]                                               # (tn, 3) f32
    w1 = w1_ref[...]                                           # (3, 128) f32
    # 3-wide conv as three VPU broadcast-FMAs (keeps the MXU free and matches
    # the analytic f32 BN1 statistics exactly).
    y1 = (x[:, 0:1] * w1[0:1, :]
          + x[:, 1:2] * w1[1:2, :]
          + x[:, 2:3] * w1[2:3, :])                            # (tn, 128) f32
    h1 = jnp.maximum(y1 * s1_ref[...] + t1_ref[...], 0.0)      # BN1 + ReLU
    f = jnp.dot(h1.astype(jnp.bfloat16), w2_ref[...],
                preferred_element_type=jnp.float32) + b2_ref[...]   # (tn, 256)
    f_bf = f.astype(jnp.bfloat16)
    feat_ref[0] = f_bf

    # Local half of second_conv, only for BN2 statistics (the hot pass-A step
    # is write/MXU-bound on the 128->256 matmul, so this extra matmul rides in
    # the slack and saves a full HBM re-read of `feature` later).
    v = jnp.dot(f_bf, w3loc_ref[...],
                preferred_element_type=jnp.float32)            # (tn, 512)

    tile_max = jnp.max(f, axis=0, keepdims=True)               # (1, 256)
    tile_sv = jnp.sum(v, axis=0, keepdims=True)                # (1, 512)
    tile_sv2 = jnp.sum(v * v, axis=0, keepdims=True)           # (1, 512)

    @pl.when(n == 0)
    def _():
        fg_ref[0] = tile_max
        sv_ref[0] = tile_sv
        sv2_ref[0] = tile_sv2

    @pl.when(n > 0)
    def _():
        fg_ref[0] = jnp.maximum(fg_ref[0], tile_max)
        sv_ref[0] = sv_ref[0] + tile_sv
        sv2_ref[0] = sv2_ref[0] + tile_sv2


def _conv2_pool_kernel(feat_ref, w3loc_ref, s2_ref, t2_ref, w4_ref, b4_ref,
                       pooled_ref):
    """second_conv local half (+BN2 with the per-batch global-feature
    contribution pre-folded into the shift) + ReLU + 512->L conv + max pool."""
    n = pl.program_id(1)

    f = feat_ref[0]                                            # (tn, 256) bf16
    v = jnp.dot(f, w3loc_ref[...],
                preferred_element_type=jnp.float32)            # (tn, 512)
    h2 = jnp.maximum(v * s2_ref[...] + t2_ref[0], 0.0)         # BN2(+fg)+ReLU
    o = jnp.dot(h2.astype(jnp.bfloat16), w4_ref[...],
                preferred_element_type=jnp.float32) + b4_ref[...]   # (tn, L)

    tile_max = jnp.max(o, axis=0, keepdims=True)               # (1, L)

    @pl.when(n == 0)
    def _():
        pooled_ref[0] = tile_max

    @pl.when(n > 0)
    def _():
        pooled_ref[0] = jnp.maximum(pooled_ref[0], tile_max)


def _heads_kernel(e_ref, wmu_ref, bmu_ref, wv_ref, bv_ref, mu_ref, var_ref):
    """mu / var Linear heads on the pooled (B, L) feature (tiny)."""
    e = e_ref[...].astype(jnp.bfloat16)
    mu = jnp.dot(e, wmu_ref[...], preferred_element_type=jnp.float32)
    vr = jnp.dot(e, wv_ref[...], preferred_element_type=jnp.float32)
    mu_ref[...] = (mu + bmu_ref[...]).astype(mu_ref.dtype)
    var_ref[...] = (vr + bv_ref[...]).astype(var_ref.dtype)


# ----------------------------------------------------------------------------
# Forward
# ----------------------------------------------------------------------------
def pcn_encoder_muvar_forward(params, xyz, *, tile_n=256):
    B, N, _ = xyz.shape
    M = B * N
    f32, bf16 = jnp.float32, jnp.bfloat16
    L = params["w4"].shape[1]
    vmem_limit = _vmem_limit_bytes()

    # bf16 weight copies for the MXU (cast once; halves weight DMA bytes).
    w1 = params["w1"].astype(f32)              # tiny, stays f32 (VPU path)
    w2 = params["w2"].astype(bf16)
    w3_loc = params["w3_loc"].astype(bf16)
    w4 = params["w4"].astype(bf16)
    wmu = params["wmu"].astype(bf16)
    wvar = params["wvar"].astype(bf16)

    # Point-axis tile (raise tile_n to 512 at production N on v6e/v7x).
    tn = _pick_tile(N, tile_n)

    # ---- BN1 statistics, analytically from 3-wide moments (tiny XLA) -------
    x2d = xyz.reshape(M, 3).astype(f32)
    sx = jnp.sum(x2d, axis=0, keepdims=True)                        # (1, 3)
    G = jnp.einsum("mc,md->cd", x2d, x2d,
                   preferred_element_type=f32)                      # (3, 3)
    sum1 = sx @ w1                                                  # (1, 128)
    sumsq1 = jnp.sum((G @ w1) * w1, axis=0, keepdims=True)          # (1, 128)
    scale1, shift1 = _fold_bn(sum1, sumsq1, M,
                              params["bn1_g"], params["bn1_b"])

    # ---- pass A: first_conv fused + per-batch max + BN2 local moments ------
    feature, fg, sv, sv2 = pl.pallas_call(
        _conv1_kernel,
        out_shape=(jax.ShapeDtypeStruct((B, N, 256), bf16),
                   jax.ShapeDtypeStruct((B, 1, 256), f32),
                   jax.ShapeDtypeStruct((B, 1, 512), f32),
                   jax.ShapeDtypeStruct((B, 1, 512), f32)),
        grid=(B, N // tn),
        in_specs=[pl.BlockSpec((1, tn, 3), lambda b, n: (b, n, 0)),
                  pl.BlockSpec((3, 128), lambda b, n: (0, 0)),
                  pl.BlockSpec((1, 128), lambda b, n: (0, 0)),
                  pl.BlockSpec((1, 128), lambda b, n: (0, 0)),
                  pl.BlockSpec((128, 256), lambda b, n: (0, 0)),
                  pl.BlockSpec((1, 256), lambda b, n: (0, 0)),
                  pl.BlockSpec((256, 512), lambda b, n: (0, 0))],
        out_specs=(pl.BlockSpec((1, tn, 256), lambda b, n: (b, n, 0)),
                   pl.BlockSpec((1, 1, 256), lambda b, n: (b, 0, 0)),
                   pl.BlockSpec((1, 1, 512), lambda b, n: (b, 0, 0)),
                   pl.BlockSpec((1, 1, 512), lambda b, n: (b, 0, 0))),
        compiler_params=pltpu.CompilerParams(
            dimension_semantics=("parallel", "arbitrary"),
            vmem_limit_bytes=vmem_limit),
    )(xyz, w1, scale1, shift1, w2, params["b2"], w3_loc)

    # ---- BN2 statistics combine + fold; hoist fg contribution (tiny XLA) ---
    fg2d = fg[:, 0, :]                                              # (B, 256)
    u = fg2d @ params["w3_fg"]                                      # (B, 512)
    sv2d, sv22d = sv[:, 0, :], sv2[:, 0, :]                         # (B, 512)
    # y = v + u  =>  SUM y = SUM v + N*u ; SUM y^2 = SUM v^2 + 2 u*SUM v + N*u^2
    sum2 = jnp.sum(sv2d + N * u, axis=0, keepdims=True)             # (1, 512)
    sumsq2 = jnp.sum(sv22d + 2.0 * u * sv2d + N * (u * u),
                     axis=0, keepdims=True)                         # (1, 512)
    scale2, shift2 = _fold_bn(sum2, sumsq2, M,
                              params["bn2_g"], params["bn2_b"])
    shift2b = (u * scale2 + shift2)[:, None, :]                     # (B, 1, 512)

    # ---- pass B: second_conv fused + per-batch max pool ---------------------
    pooled = pl.pallas_call(
        _conv2_pool_kernel,
        out_shape=jax.ShapeDtypeStruct((B, 1, L), f32),
        grid=(B, N // tn),
        in_specs=[pl.BlockSpec((1, tn, 256), lambda b, n: (b, n, 0)),
                  pl.BlockSpec((256, 512), lambda b, n: (0, 0)),
                  pl.BlockSpec((1, 512), lambda b, n: (0, 0)),
                  pl.BlockSpec((1, 1, 512), lambda b, n: (b, 0, 0)),
                  pl.BlockSpec((512, L), lambda b, n: (0, 0)),
                  pl.BlockSpec((1, L), lambda b, n: (0, 0))],
        out_specs=pl.BlockSpec((1, 1, L), lambda b, n: (b, 0, 0)),
        compiler_params=pltpu.CompilerParams(
            dimension_semantics=("parallel", "arbitrary"),
            vmem_limit_bytes=vmem_limit),
    )(feature, w3_loc, scale2, shift2b, w4, params["b4"])

    # ---- mu / var heads (de-fused from pass B; tiny single-step kernel) -----
    e = pooled[:, 0, :]                                             # (B, L)
    mu, var = pl.pallas_call(
        _heads_kernel,
        out_shape=(jax.ShapeDtypeStruct((B, L), f32),
                   jax.ShapeDtypeStruct((B, L), f32)),
        grid=(1,),
        in_specs=[pl.BlockSpec((B, L), lambda i: (0, 0)),
                  pl.BlockSpec((L, L), lambda i: (0, 0)),
                  pl.BlockSpec((1, L), lambda i: (0, 0)),
                  pl.BlockSpec((L, L), lambda i: (0, 0)),
                  pl.BlockSpec((1, L), lambda i: (0, 0))],
        out_specs=(pl.BlockSpec((B, L), lambda i: (0, 0)),
                   pl.BlockSpec((B, L), lambda i: (0, 0))),
        compiler_params=pltpu.CompilerParams(
            dimension_semantics=("arbitrary",),
            vmem_limit_bytes=vmem_limit),
    )(e, wmu, params["bmu"], wvar, params["bvar"])

    return mu, var


# ----------------------------------------------------------------------------
# Deterministic synthetic parameters (shapes follow the PyTorch module)
# ----------------------------------------------------------------------------
def init_params(key, *, latent_dim):
    ks = jax.random.split(key, 7)
    f32 = jnp.float32
    L = latent_dim

    def w(k, shape, scale=0.02):
        return scale * jax.random.normal(k, shape, dtype=f32)

    return {
        # first_conv: Conv1d(3,128) [bias omitted: cancelled by BN1],
        #             BatchNorm1d(128), ReLU, Conv1d(128,256)
        "w1": w(ks[0], (3, 128)),
        "bn1_g": jnp.ones((1, 128), f32), "bn1_b": jnp.zeros((1, 128), f32),
        "w2": w(ks[1], (128, 256)), "b2": jnp.zeros((1, 256), f32),
        # second_conv: Conv1d(512,512) split into global-feature rows (first
        # 256 input channels) and local-feature rows (last 256); bias omitted
        # (cancelled by BN2).  Then BatchNorm1d(512), ReLU, Conv1d(512, L).
        "w3_fg": w(ks[2], (256, 512)), "w3_loc": w(ks[3], (256, 512)),
        "bn2_g": jnp.ones((1, 512), f32), "bn2_b": jnp.zeros((1, 512), f32),
        "w4": w(ks[4], (512, L)), "b4": jnp.zeros((1, L), f32),
        # mu / var Linear heads (stored (in, out))
        "wmu": w(ks[5], (L, L)), "bmu": jnp.zeros((1, L), f32),
        "wvar": w(ks[6], (L, L)), "bvar": jnp.zeros((1, L), f32),
    }


# ----------------------------------------------------------------------------
if __name__ == "__main__":
    B, N, latent_dim = 2, 512, 128     # small stand-in for N=2048+, latent=1024

    key = jax.random.PRNGKey(0)
    k_x, k_p = jax.random.split(key)
    xyz = jax.random.normal(k_x, (B, N, 3), dtype=jnp.float32)
    params = init_params(k_p, latent_dim=latent_dim)

    fwd = jax.jit(pcn_encoder_muvar_forward)
    mu, var = fwd(params, xyz)
    jax.block_until_ready((mu, var))

    assert mu.shape == (B, latent_dim), mu.shape
    assert var.shape == (B, latent_dim), var.shape
    assert mu.dtype == jnp.float32 and var.dtype == jnp.float32
    assert bool(jnp.all(jnp.isfinite(mu)))
    assert bool(jnp.all(jnp.isfinite(var)))
    print("KERNEL_OK")
</pallas_src>

<mosaic_0001>
module attributes {stable_mosaic.version = 11 : i64} {
  func.func @_conv1_kernel(%arg0: i32, %arg1: i32, %arg2: memref<1x256x3xf32, #tpu.memory_space<vmem>>, %arg3: memref<3x128xf32, #tpu.memory_space<vmem>>, %arg4: memref<1x128xf32, #tpu.memory_space<vmem>>, %arg5: memref<1x128xf32, #tpu.memory_space<vmem>>, %arg6: memref<128x256xbf16, #tpu.memory_space<vmem>>, %arg7: memref<1x256xf32, #tpu.memory_space<vmem>>, %arg8: memref<256x512xbf16, #tpu.memory_space<vmem>>, %arg9: memref<1x256x256xbf16, #tpu.memory_space<vmem>>, %arg10: memref<1x1x256xf32, #tpu.memory_space<vmem>>, %arg11: memref<1x1x512xf32, #tpu.memory_space<vmem>>, %arg12: memref<1x1x512xf32, #tpu.memory_space<vmem>>) attributes {dimension_semantics = [#tpu.dimension_semantics<parallel>, #tpu.dimension_semantics<arbitrary>], iteration_bounds = array<i64: 2, 2>, scalar_prefetch = 0 : i64, scratch_operands = 0 : i64, tpu.core_type = #tpu.core_type<tc>, window_params = [{transform_indices = @transform_0, window_bounds = array<i64: 1, 256, 3>}, {pipeline_mode = #tpu.pipeline_mode<synchronous>, transform_indices = @transform_1, window_bounds = array<i64: 3, 128>}, {pipeline_mode = #tpu.pipeline_mode<synchronous>, transform_indices = @transform_2, window_bounds = array<i64: 1, 128>}, {pipeline_mode = #tpu.pipeline_mode<synchronous>, transform_indices = @transform_3, window_bounds = array<i64: 1, 128>}, {pipeline_mode = #tpu.pipeline_mode<synchronous>, transform_indices = @transform_4, window_bounds = array<i64: 128, 256>}, {pipeline_mode = #tpu.pipeline_mode<synchronous>, transform_indices = @transform_5, window_bounds = array<i64: 1, 256>}, {pipeline_mode = #tpu.pipeline_mode<synchronous>, transform_indices = @transform_6, window_bounds = array<i64: 256, 512>}, {transform_indices = @transform_7, window_bounds = array<i64: 1, 256, 256>}, {transform_indices = @transform_8, window_bounds = array<i64: 1, 1, 256>}, {transform_indices = @transform_9, window_bounds = array<i64: 1, 1, 512>}, {transform_indices = @transform_10, window_bounds = array<i64: 1, 1, 512>}]} {
    %c0 = arith.constant 0 : index
    %c0_0 = arith.constant 0 : index
    %c0_1 = arith.constant 0 : index
    %0 = vector.load %arg2[%c0, %c0_0, %c0_1] : memref<1x256x3xf32, #tpu.memory_space<vmem>>, vector<1x256x3xf32>
    %1 = vector.shape_cast %0 : vector<1x256x3xf32> to vector<256x3xf32>
    %c0_2 = arith.constant 0 : index
    %c0_3 = arith.constant 0 : index
    %2 = vector.load %arg3[%c0_2, %c0_3] : memref<3x128xf32, #tpu.memory_space<vmem>>, vector<3x128xf32>
    %3 = vector.extract_strided_slice %1 {offsets = [0, 0], sizes = [256, 1], strides = [1, 1]} : vector<256x3xf32> to vector<256x1xf32>
    %4 = vector.extract_strided_slice %2 {offsets = [0, 0], sizes = [1, 128], strides = [1, 1]} : vector<3x128xf32> to vector<1x128xf32>
    %5 = vector.broadcast %3 : vector<256x1xf32> to vector<256x128xf32>
    %6 = vector.broadcast %4 : vector<1x128xf32> to vector<256x128xf32>
    %7 = arith.mulf %5, %6 : vector<256x128xf32>
    %8 = vector.extract_strided_slice %1 {offsets = [0, 1], sizes = [256, 1], strides = [1, 1]} : vector<256x3xf32> to vector<256x1xf32>
    %9 = vector.extract_strided_slice %2 {offsets = [1, 0], sizes = [1, 128], strides = [1, 1]} : vector<3x128xf32> to vector<1x128xf32>
    %10 = vector.broadcast %8 : vector<256x1xf32> to vector<256x128xf32>
    %11 = vector.broadcast %9 : vector<1x128xf32> to vector<256x128xf32>
    %12 = arith.mulf %10, %11 : vector<256x128xf32>
    %13 = arith.addf %7, %12 : vector<256x128xf32>
    %14 = vector.extract_strided_slice %1 {offsets = [0, 2], sizes = [256, 1], strides = [1, 1]} : vector<256x3xf32> to vector<256x1xf32>
    %15 = vector.extract_strided_slice %2 {offsets = [2, 0], sizes = [1, 128], strides = [1, 1]} : vector<3x128xf32> to vector<1x128xf32>
    %16 = vector.broadcast %14 : vector<256x1xf32> to vector<256x128xf32>
    %17 = vector.broadcast %15 : vector<1x128xf32> to vector<256x128xf32>
    %18 = arith.mulf %16, %17 : vector<256x128xf32>
    %19 = arith.addf %13, %18 : vector<256x128xf32>
    %c0_4 = arith.constant 0 : index
    %c0_5 = arith.constant 0 : index
    %20 = vector.load %arg4[%c0_4, %c0_5] : memref<1x128xf32, #tpu.memory_space<vmem>>, vector<1x128xf32>
    %21 = vector.broadcast %20 : vector<1x128xf32> to vector<256x128xf32>
    %22 = arith.mulf %19, %21 : vector<256x128xf32>
    %c0_6 = arith.constant 0 : index
    %c0_7 = arith.constant 0 : index
    %23 = vector.load %arg5[%c0_6, %c0_7] : memref<1x128xf32, #tpu.memory_space<vmem>>, vector<1x128xf32>
    %24 = vector.broadcast %23 : vector<1x128xf32> to vector<256x128xf32>
    %25 = arith.addf %22, %24 : vector<256x128xf32>
    %cst = arith.constant 0.000000e+00 : f32
    %26 = vector.broadcast %cst : f32 to vector<256x128xf32>
    %27 = arith.maximumf %25, %26 : vector<256x128xf32>
    %28 = arith.truncf %27 : vector<256x128xf32> to vector<256x128xbf16>
    %c0_8 = arith.constant 0 : index
    %c0_9 = arith.constant 0 : index
    %29 = vector.load %arg6[%c0_8, %c0_9] : memref<128x256xbf16, #tpu.memory_space<vmem>>, vector<128x256xbf16>
    %cst_10 = arith.constant dense<0.000000e+00> : vector<256x256xf32>
    %30 = tpu.matmul %28, %29, %cst_10 {dimension_numbers = #tpu.dot_dimension_numbers<[1], [0], [0], [1], [0, 0, 1, 1], [], []>} : vector<256x128xbf16>, vector<128x256xbf16>, vector<256x256xf32> -> vector<256x256xf32>
    %c0_11 = arith.constant 0 : index
    %c0_12 = arith.constant 0 : index
    %31 = vector.load %arg7[%c0_11, %c0_12] : memref<1x256xf32, #tpu.memory_space<vmem>>, vector<1x256xf32>
    %32 = vector.broadcast %31 : vector<1x256xf32> to vector<256x256xf32>
    %33 = arith.addf %30, %32 : vector<256x256xf32>
    %34 = arith.truncf %33 : vector<256x256xf32> to vector<256x256xbf16>
    %c0_13 = arith.constant 0 : index
    %c0_14 = arith.constant 0 : index
    %c0_15 = arith.constant 0 : index
    %35 = vector.load %arg9[%c0_13, %c0_14, %c0_15] : memref<1x256x256xbf16, #tpu.memory_space<vmem>>, vector<1x256x256xbf16>
    %36 = vector.shape_cast %35 : vector<1x256x256xbf16> to vector<256x256xbf16>
    %37 = vector.shape_cast %34 : vector<256x256xbf16> to vector<1x256x256xbf16>
    tpu.vector_store %arg9[%c0_13, %c0_14, %c0_15], %37 {strides = array<i32>} : memref<1x256x256xbf16, #tpu.memory_space<vmem>>, vector<1x256x256xbf16>,
    %c0_16 = arith.constant 0 : index
    %c0_17 = arith.constant 0 : index
    %38 = vector.load %arg8[%c0_16, %c0_17] : memref<256x512xbf16, #tpu.memory_space<vmem>>, vector<256x512xbf16>
    %cst_18 = arith.constant dense<0.000000e+00> : vector<256x512xf32>
    %39 = tpu.matmul %34, %38, %cst_18 {dimension_numbers = #tpu.dot_dimension_numbers<[1], [0], [0], [1], [0, 0, 1, 1], [], []>} : vector<256x256xbf16>, vector<256x512xbf16>, vector<256x512xf32> -> vector<256x512xf32>
    %cst_19 = arith.constant dense<0xFF800000> : vector<256xf32>
    %40 = vector.multi_reduction <maximumf>, %33, %cst_19 [0] : vector<256x256xf32> to vector<256xf32>
    %41 = vector.shape_cast %40 : vector<256xf32> to vector<1x256xf32>
    %cst_20 = arith.constant dense<0.000000e+00> : vector<512xf32>
    %42 = vector.multi_reduction <add>, %39, %cst_20 [0] : vector<256x512xf32> to vector<512xf32>
    %43 = vector.shape_cast %42 : vector<512xf32> to vector<1x512xf32>
    %44 = arith.mulf %39, %39 : vector<256x512xf32>
    %cst_21 = arith.constant dense<0.000000e+00> : vector<512xf32>
    %45 = vector.multi_reduction <add>, %44, %cst_21 [0] : vector<256x512xf32> to vector<512xf32>
    %46 = vector.shape_cast %45 : vector<512xf32> to vector<1x512xf32>
    %c0_i32 = arith.constant 0 : i32
    %47 = arith.cmpi eq, %arg1, %c0_i32 : i32
    %48 = arith.extui %47 : i1 to i32
    %c0_i32_22 = arith.constant 0 : i32
    %49 = arith.cmpi ne, %48, %c0_i32_22 : i32
    scf.if %49 {
      %c0_25 = arith.constant 0 : index
      %c0_26 = arith.constant 0 : index
      %c0_27 = arith.constant 0 : index
      %53 = vector.load %arg10[%c0_25, %c0_26, %c0_27] : memref<1x1x256xf32, #tpu.memory_space<vmem>>, vector<1x1x256xf32>
      %54 = vector.shape_cast %53 : vector<1x1x256xf32> to vector<1x256xf32>
      %55 = vector.shape_cast %41 : vector<1x256xf32> to vector<1x1x256xf32>
      tpu.vector_store %arg10[%c0_25, %c0_26, %c0_27], %55 {strides = array<i32>} : memref<1x1x256xf32, #tpu.memory_space<vmem>>, vector<1x1x256xf32>,
      %c0_28 = arith.constant 0 : index
      %c0_29 = arith.constant 0 : index
      %c0_30 = arith.constant 0 : index
      %56 = vector.load %arg11[%c0_28, %c0_29, %c0_30] : memref<1x1x512xf32, #tpu.memory_space<vmem>>, vector<1x1x512xf32>
      %57 = vector.shape_cast %56 : vector<1x1x512xf32> to vector<1x512xf32>
      %58 = vector.shape_cast %43 : vector<1x512xf32> to vector<1x1x512xf32>
      tpu.vector_store %arg11[%c0_28, %c0_29, %c0_30], %58 {strides = array<i32>} : memref<1x1x512xf32, #tpu.memory_space<vmem>>, vector<1x1x512xf32>,
      %c0_31 = arith.constant 0 : index
      %c0_32 = arith.constant 0 : index
      %c0_33 = arith.constant 0 : index
      %59 = vector.load %arg12[%c0_31, %c0_32, %c0_33] : memref<1x1x512xf32, #tpu.memory_space<vmem>>, vector<1x1x512xf32>
      %60 = vector.shape_cast %59 : vector<1x1x512xf32> to vector<1x512xf32>
      %61 = vector.shape_cast %46 : vector<1x512xf32> to vector<1x1x512xf32>
      tpu.vector_store %arg12[%c0_31, %c0_32, %c0_33], %61 {strides = array<i32>} : memref<1x1x512xf32, #tpu.memory_space<vmem>>, vector<1x1x512xf32>,
    } else {
    }
    %c0_i32_23 = arith.constant 0 : i32
    %50 = arith.cmpi sgt, %arg1, %c0_i32_23 : i32
    %51 = arith.extui %50 : i1 to i32
    %c0_i32_24 = arith.constant 0 : i32
    %52 = arith.cmpi ne, %51, %c0_i32_24 : i32
    scf.if %52 {
      %c0_25 = arith.constant 0 : index
      %c0_26 = arith.constant 0 : index
      %c0_27 = arith.constant 0 : index
      %53 = vector.load %arg10[%c0_25, %c0_26, %c0_27] : memref<1x1x256xf32, #tpu.memory_space<vmem>>, vector<1x1x256xf32>
      %54 = vector.shape_cast %53 : vector<1x1x256xf32> to vector<1x256xf32>
      %55 = arith.maximumf %54, %41 : vector<1x256xf32>
      %c0_28 = arith.constant 0 : index
      %c0_29 = arith.constant 0 : index
      %c0_30 = arith.constant 0 : index
      %56 = vector.load %arg10[%c0_28, %c0_29, %c0_30] : memref<1x1x256xf32, #tpu.memory_space<vmem>>, vector<1x1x256xf32>
      %57 = vector.shape_cast %56 : vector<1x1x256xf32> to vector<1x256xf32>
      %58 = vector.shape_cast %55 : vector<1x256xf32> to vector<1x1x256xf32>
      tpu.vector_store %arg10[%c0_28, %c0_29, %c0_30], %58 {strides = array<i32>} : memref<1x1x256xf32, #tpu.memory_space<vmem>>, vector<1x1x256xf32>,
      %c0_31 = arith.constant 0 : index
      %c0_32 = arith.constant 0 : index
      %c0_33 = arith.constant 0 : index
      %59 = vector.load %arg11[%c0_31, %c0_32, %c0_33] : memref<1x1x512xf32, #tpu.memory_space<vmem>>, vector<1x1x512xf32>
      %60 = vector.shape_cast %59 : vector<1x1x512xf32> to vector<1x512xf32>
      %61 = arith.addf %60, %43 : vector<1x512xf32>
      %c0_34 = arith.constant 0 : index
      %c0_35 = arith.constant 0 : index
      %c0_36 = arith.constant 0 : index
      %62 = vector.load %arg11[%c0_34, %c0_35, %c0_36] : memref<1x1x512xf32, #tpu.memory_space<vmem>>, vector<1x1x512xf32>
      %63 = vector.shape_cast %62 : vector<1x1x512xf32> to vector<1x512xf32>
      %64 = vector.shape_cast %61 : vector<1x512xf32> to vector<1x1x512xf32>
      tpu.vector_store %arg11[%c0_34, %c0_35, %c0_36], %64 {strides = array<i32>} : memref<1x1x512xf32, #tpu.memory_space<vmem>>, vector<1x1x512xf32>,
      %c0_37 = arith.constant 0 : index
      %c0_38 = arith.constant 0 : index
      %c0_39 = arith.constant 0 : index
      %65 = vector.load %arg12[%c0_37, %c0_38, %c0_39] : memref<1x1x512xf32, #tpu.memory_space<vmem>>, vector<1x1x512xf32>
      %66 = vector.shape_cast %65 : vector<1x1x512xf32> to vector<1x512xf32>
      %67 = arith.addf %66, %46 : vector<1x512xf32>
      %c0_40 = arith.constant 0 : index
      %c0_41 = arith.constant 0 : index
      %c0_42 = arith.constant 0 : index
      %68 = vector.load %arg12[%c0_40, %c0_41, %c0_42] : memref<1x1x512xf32, #tpu.memory_space<vmem>>, vector<1x1x512xf32>
      %69 = vector.shape_cast %68 : vector<1x1x512xf32> to vector<1x512xf32>
      %70 = vector.shape_cast %67 : vector<1x512xf32> to vector<1x1x512xf32>
      tpu.vector_store %arg12[%c0_40, %c0_41, %c0_42], %70 {strides = array<i32>} : memref<1x1x512xf32, #tpu.memory_space<vmem>>, vector<1x1x512xf32>,
    } else {
    }
    return
  }
  func.func @transform_0(%arg0: i32, %arg1: i32) -> (i32, i32, i32) {
    %c0_i32 = arith.constant 0 : i32
    %c0_i32_0 = arith.constant 0 : i32
    return %arg0, %arg1, %c0_i32 : i32, i32, i32
  }
  func.func @transform_1(%arg0: i32, %arg1: i32) -> (i32, i32) {
    %c0_i32 = arith.constant 0 : i32
    %c0_i32_0 = arith.constant 0 : i32
    %c0_i32_1 = arith.constant 0 : i32
    return %c0_i32, %c0_i32_0 : i32, i32
  }
  func.func @transform_2(%arg0: i32, %arg1: i32) -> (i32, i32) {
    %c0_i32 = arith.constant 0 : i32
    %c0_i32_0 = arith.constant 0 : i32
    %c0_i32_1 = arith.constant 0 : i32
    return %c0_i32, %c0_i32_0 : i32, i32
  }
  func.func @transform_3(%arg0: i32, %arg1: i32) -> (i32, i32) {
    %c0_i32 = arith.constant 0 : i32
    %c0_i32_0 = arith.constant 0 : i32
    %c0_i32_1 = arith.constant 0 : i32
    return %c0_i32, %c0_i32_0 : i32, i32
  }
  func.func @transform_4(%arg0: i32, %arg1: i32) -> (i32, i32) {
    %c0_i32 = arith.constant 0 : i32
    %c0_i32_0 = arith.constant 0 : i32
    %c0_i32_1 = arith.constant 0 : i32
    return %c0_i32, %c0_i32_0 : i32, i32
  }
  func.func @transform_5(%arg0: i32, %arg1: i32) -> (i32, i32) {
    %c0_i32 = arith.constant 0 : i32
    %c0_i32_0 = arith.constant 0 : i32
    %c0_i32_1 = arith.constant 0 : i32
    return %c0_i32, %c0_i32_0 : i32, i32
  }
  func.func @transform_6(%arg0: i32, %arg1: i32) -> (i32, i32) {
    %c0_i32 = arith.constant 0 : i32
    %c0_i32_0 = arith.constant 0 : i32
    %c0_i32_1 = arith.constant 0 : i32
    return %c0_i32, %c0_i32_0 : i32, i32
  }
  func.func @transform_7(%arg0: i32, %arg1: i32) -> (i32, i32, i32) {
    %c0_i32 = arith.constant 0 : i32
    %c0_i32_0 = arith.constant 0 : i32
    return %arg0, %arg1, %c0_i32 : i32, i32, i32
  }
  func.func @transform_8(%arg0: i32, %arg1: i32) -> (i32, i32, i32) {
    %c0_i32 = arith.constant 0 : i32
    %c0_i32_0 = arith.constant 0 : i32
    %c0_i32_1 = arith.constant 0 : i32
    return %arg0, %c0_i32, %c0_i32_0 : i32, i32, i32
  }
  func.func @transform_9(%arg0: i32, %arg1: i32) -> (i32, i32, i32) {
    %c0_i32 = arith.constant 0 : i32
    %c0_i32_0 = arith.constant 0 : i32
    %c0_i32_1 = arith.constant 0 : i32
    return %arg0, %c0_i32, %c0_i32_0 : i32, i32, i32
  }
  func.func @transform_10(%arg0: i32, %arg1: i32) -> (i32, i32, i32) {
    %c0_i32 = arith.constant 0 : i32
    %c0_i32_0 = arith.constant 0 : i32
    %c0_i32_1 = arith.constant 0 : i32
    return %arg0, %c0_i32, %c0_i32_0 : i32, i32, i32
  }
}

module attributes {stable_mosaic.version = 11 : i64} {
  func.func @_conv2_pool_kernel(%arg0: i32, %arg1: i32, %arg2: memref<1x256x256xbf16, #tpu.memory_space<vmem>>, %arg3: memref<256x512xbf16, #tpu.memory_space<vmem>>, %arg4: memref<1x512xf32, #tpu.memory_space<vmem>>, %arg5: memref<1x1x512xf32, #tpu.memory_space<vmem>>, %arg6: memref<512x128xbf16, #tpu.memory_space<vmem>>, %arg7: memref<1x128xf32, #tpu.memory_space<vmem>>, %arg8: memref<1x1x128xf32, #tpu.memory_space<vmem>>) attributes {dimension_semantics = [#tpu.dimension_semantics<parallel>, #tpu.dimension_semantics<arbitrary>], iteration_bounds = array<i64: 2, 2>, scalar_prefetch = 0 : i64, scratch_operands = 0 : i64, tpu.core_type = #tpu.core_type<tc>, window_params = [{transform_indices = @transform_0, window_bounds = array<i64: 1, 256, 256>}, {pipeline_mode = #tpu.pipeline_mode<synchronous>, transform_indices = @transform_1, window_bounds = array<i64: 256, 512>}, {pipeline_mode = #tpu.pipeline_mode<synchronous>, transform_indices = @transform_2, window_bounds = array<i64: 1, 512>}, {transform_indices = @transform_3, window_bounds = array<i64: 1, 1, 512>}, {pipeline_mode = #tpu.pipeline_mode<synchronous>, transform_indices = @transform_4, window_bounds = array<i64: 512, 128>}, {pipeline_mode = #tpu.pipeline_mode<synchronous>, transform_indices = @transform_5, window_bounds = array<i64: 1, 128>}, {transform_indices = @transform_6, window_bounds = array<i64: 1, 1, 128>}]} {
    %c0 = arith.constant 0 : index
    %c0_0 = arith.constant 0 : index
    %c0_1 = arith.constant 0 : index
    %0 = vector.load %arg2[%c0, %c0_0, %c0_1] : memref<1x256x256xbf16, #tpu.memory_space<vmem>>, vector<1x256x256xbf16>
    %1 = vector.shape_cast %0 : vector<1x256x256xbf16> to vector<256x256xbf16>
    %c0_2 = arith.constant 0 : index
    %c0_3 = arith.constant 0 : index
    %2 = vector.load %arg3[%c0_2, %c0_3] : memref<256x512xbf16, #tpu.memory_space<vmem>>, vector<256x512xbf16>
    %cst = arith.constant dense<0.000000e+00> : vector<256x512xf32>
    %3 = tpu.matmul %1, %2, %cst {dimension_numbers = #tpu.dot_dimension_numbers<[1], [0], [0], [1], [0, 0, 1, 1], [], []>} : vector<256x256xbf16>, vector<256x512xbf16>, vector<256x512xf32> -> vector<256x512xf32>
    %c0_4 = arith.constant 0 : index
    %c0_5 = arith.constant 0 : index
    %4 = vector.load %arg4[%c0_4, %c0_5] : memref<1x512xf32, #tpu.memory_space<vmem>>, vector<1x512xf32>
    %5 = vector.broadcast %4 : vector<1x512xf32> to vector<256x512xf32>
    %6 = arith.mulf %3, %5 : vector<256x512xf32>
    %c0_6 = arith.constant 0 : index
    %c0_7 = arith.constant 0 : index
    %c0_8 = arith.constant 0 : index
    %7 = vector.load %arg5[%c0_6, %c0_7, %c0_8] : memref<1x1x512xf32, #tpu.memory_space<vmem>>, vector<1x1x512xf32>
    %8 = vector.shape_cast %7 : vector<1x1x512xf32> to vector<1x512xf32>
    %9 = vector.broadcast %8 : vector<1x512xf32> to vector<256x512xf32>
    %10 = arith.addf %6, %9 : vector<256x512xf32>
    %cst_9 = arith.constant 0.000000e+00 : f32
    %11 = vector.broadcast %cst_9 : f32 to vector<256x512xf32>
    %12 = arith.maximumf %10, %11 : vector<256x512xf32>
    %13 = arith.truncf %12 : vector<256x512xf32> to vector<256x512xbf16>
    %c0_10 = arith.constant 0 : index
    %c0_11 = arith.constant 0 : index
    %14 = vector.load %arg6[%c0_10, %c0_11] : memref<512x128xbf16, #tpu.memory_space<vmem>>, vector<512x128xbf16>
    %cst_12 = arith.constant dense<0.000000e+00> : vector<256x128xf32>
    %15 = tpu.matmul %13, %14, %cst_12 {dimension_numbers = #tpu.dot_dimension_numbers<[1], [0], [0], [1], [0, 0, 1, 1], [], []>} : vector<256x512xbf16>, vector<512x128xbf16>, vector<256x128xf32> -> vector<256x128xf32>
    %c0_13 = arith.constant 0 : index
    %c0_14 = arith.constant 0 : index
    %16 = vector.load %arg7[%c0_13, %c0_14] : memref<1x128xf32, #tpu.memory_space<vmem>>, vector<1x128xf32>
    %17 = vector.broadcast %16 : vector<1x128xf32> to vector<256x128xf32>
    %18 = arith.addf %15, %17 : vector<256x128xf32>
    %cst_15 = arith.constant dense<0xFF800000> : vector<128xf32>
    %19 = vector.multi_reduction <maximumf>, %18, %cst_15 [0] : vector<256x128xf32> to vector<128xf32>
    %20 = vector.shape_cast %19 : vector<128xf32> to vector<1x128xf32>
    %c0_i32 = arith.constant 0 : i32
    %21 = arith.cmpi eq, %arg1, %c0_i32 : i32
    %22 = arith.extui %21 : i1 to i32
    %c0_i32_16 = arith.constant 0 : i32
    %23 = arith.cmpi ne, %22, %c0_i32_16 : i32
    scf.if %23 {
      %c0_19 = arith.constant 0 : index
      %c0_20 = arith.constant 0 : index
      %c0_21 = arith.constant 0 : index
      %27 = vector.load %arg8[%c0_19, %c0_20, %c0_21] : memref<1x1x128xf32, #tpu.memory_space<vmem>>, vector<1x1x128xf32>
      %28 = vector.shape_cast %27 : vector<1x1x128xf32> to vector<1x128xf32>
      %29 = vector.shape_cast %20 : vector<1x128xf32> to vector<1x1x128xf32>
      tpu.vector_store %arg8[%c0_19, %c0_20, %c0_21], %29 {strides = array<i32>} : memref<1x1x128xf32, #tpu.memory_space<vmem>>, vector<1x1x128xf32>,
    } else {
    }
    %c0_i32_17 = arith.constant 0 : i32
    %24 = arith.cmpi sgt, %arg1, %c0_i32_17 : i32
    %25 = arith.extui %24 : i1 to i32
    %c0_i32_18 = arith.constant 0 : i32
    %26 = arith.cmpi ne, %25, %c0_i32_18 : i32
    scf.if %26 {
      %c0_19 = arith.constant 0 : index
      %c0_20 = arith.constant 0 : index
      %c0_21 = arith.constant 0 : index
      %27 = vector.load %arg8[%c0_19, %c0_20, %c0_21] : memref<1x1x128xf32, #tpu.memory_space<vmem>>, vector<1x1x128xf32>
      %28 = vector.shape_cast %27 : vector<1x1x128xf32> to vector<1x128xf32>
      %29 = arith.maximumf %28, %20 : vector<1x128xf32>
      %c0_22 = arith.constant 0 : index
      %c0_23 = arith.constant 0 : index
      %c0_24 = arith.constant 0 : index
      %30 = vector.load %arg8[%c0_22, %c0_23, %c0_24] : memref<1x1x128xf32, #tpu.memory_space<vmem>>, vector<1x1x128xf32>
      %31 = vector.shape_cast %30 : vector<1x1x128xf32> to vector<1x128xf32>
      %32 = vector.shape_cast %29 : vector<1x128xf32> to vector<1x1x128xf32>
      tpu.vector_store %arg8[%c0_22, %c0_23, %c0_24], %32 {strides = array<i32>} : memref<1x1x128xf32, #tpu.memory_space<vmem>>, vector<1x1x128xf32>,
    } else {
    }
    return
  }
  func.func @transform_0(%arg0: i32, %arg1: i32) -> (i32, i32, i32) {
    %c0_i32 = arith.constant 0 : i32
    %c0_i32_0 = arith.constant 0 : i32
    return %arg0, %arg1, %c0_i32 : i32, i32, i32
  }
  func.func @transform_1(%arg0: i32, %arg1: i32) -> (i32, i32) {
    %c0_i32 = arith.constant 0 : i32
    %c0_i32_0 = arith.constant 0 : i32
    %c0_i32_1 = arith.constant 0 : i32
    return %c0_i32, %c0_i32_0 : i32, i32
  }
  func.func @transform_2(%arg0: i32, %arg1: i32) -> (i32, i32) {
    %c0_i32 = arith.constant 0 : i32
    %c0_i32_0 = arith.constant 0 : i32
    %c0_i32_1 = arith.constant 0 : i32
    return %c0_i32, %c0_i32_0 : i32, i32
  }
  func.func @transform_3(%arg0: i32, %arg1: i32) -> (i32, i32, i32) {
    %c0_i32 = arith.constant 0 : i32
    %c0_i32_0 = arith.constant 0 : i32
    %c0_i32_1 = arith.constant 0 : i32
    return %arg0, %c0_i32, %c0_i32_0 : i32, i32, i32
  }
  func.func @transform_4(%arg0: i32, %arg1: i32) -> (i32, i32) {
    %c0_i32 = arith.constant 0 : i32
    %c0_i32_0 = arith.constant 0 : i32
    %c0_i32_1 = arith.constant 0 : i32
    return %c0_i32, %c0_i32_0 : i32, i32
  }
  func.func @transform_5(%arg0: i32, %arg1: i32) -> (i32, i32) {
    %c0_i32 = arith.constant 0 : i32
    %c0_i32_0 = arith.constant 0 : i32
    %c0_i32_1 = arith.constant 0 : i32
    return %c0_i32, %c0_i32_0 : i32, i32
  }
  func.func @transform_6(%arg0: i32, %arg1: i32) -> (i32, i32, i32) {
    %c0_i32 = arith.constant 0 : i32
    %c0_i32_0 = arith.constant 0 : i32
    %c0_i32_1 = arith.constant 0 : i32
    return %arg0, %c0_i32, %c0_i32_0 : i32, i32, i32
  }
}

module attributes {stable_mosaic.version = 11 : i64} {
  func.func @_heads_kernel(%arg0: i32, %arg1: memref<2x128xf32, #tpu.memory_space<vmem>>, %arg2: memref<128x128xbf16, #tpu.memory_space<vmem>>, %arg3: memref<1x128xf32, #tpu.memory_space<vmem>>, %arg4: memref<128x128xbf16, #tpu.memory_space<vmem>>, %arg5: memref<1x128xf32, #tpu.memory_space<vmem>>, %arg6: memref<2x128xf32, #tpu.memory_space<vmem>>, %arg7: memref<2x128xf32, #tpu.memory_space<vmem>>) attributes {dimension_semantics = [#tpu.dimension_semantics<arbitrary>], iteration_bounds = array<i64: 1>, scalar_prefetch = 0 : i64, scratch_operands = 0 : i64, tpu.core_type = #tpu.core_type<tc>, window_params = [{pipeline_mode = #tpu.pipeline_mode<synchronous>, transform_indices = @transform_0, window_bounds = array<i64: 2, 128>}, {pipeline_mode = #tpu.pipeline_mode<synchronous>, transform_indices = @transform_1, window_bounds = array<i64: 128, 128>}, {pipeline_mode = #tpu.pipeline_mode<synchronous>, transform_indices = @transform_2, window_bounds = array<i64: 1, 128>}, {pipeline_mode = #tpu.pipeline_mode<synchronous>, transform_indices = @transform_3, window_bounds = array<i64: 128, 128>}, {pipeline_mode = #tpu.pipeline_mode<synchronous>, transform_indices = @transform_4, window_bounds = array<i64: 1, 128>}, {pipeline_mode = #tpu.pipeline_mode<synchronous>, transform_indices = @transform_5, window_bounds = array<i64: 2, 128>}, {pipeline_mode = #tpu.pipeline_mode<synchronous>, transform_indices = @transform_6, window_bounds = array<i64: 2, 128>}]} {
    %c0 = arith.constant 0 : index
    %c0_0 = arith.constant 0 : index
    %0 = vector.load %arg1[%c0, %c0_0] : memref<2x128xf32, #tpu.memory_space<vmem>>, vector<2x128xf32>
    %1 = arith.truncf %0 : vector<2x128xf32> to vector<2x128xbf16>
    %c0_1 = arith.constant 0 : index
    %c0_2 = arith.constant 0 : index
    %2 = vector.load %arg2[%c0_1, %c0_2] : memref<128x128xbf16, #tpu.memory_space<vmem>>, vector<128x128xbf16>
    %cst = arith.constant dense<0.000000e+00> : vector<2x128xf32>
    %3 = tpu.matmul %1, %2, %cst {dimension_numbers = #tpu.dot_dimension_numbers<[1], [0], [0], [1], [0, 0, 1, 1], [], []>} : vector<2x128xbf16>, vector<128x128xbf16>, vector<2x128xf32> -> vector<2x128xf32>
    %c0_3 = arith.constant 0 : index
    %c0_4 = arith.constant 0 : index
    %4 = vector.load %arg4[%c0_3, %c0_4] : memref<128x128xbf16, #tpu.memory_space<vmem>>, vector<128x128xbf16>
    %cst_5 = arith.constant dense<0.000000e+00> : vector<2x128xf32>
    %5 = tpu.matmul %1, %4, %cst_5 {dimension_numbers = #tpu.dot_dimension_numbers<[1], [0], [0], [1], [0, 0, 1, 1], [], []>} : vector<2x128xbf16>, vector<128x128xbf16>, vector<2x128xf32> -> vector<2x128xf32>
    %c0_6 = arith.constant 0 : index
    %c0_7 = arith.constant 0 : index
    %6 = vector.load %arg3[%c0_6, %c0_7] : memref<1x128xf32, #tpu.memory_space<vmem>>, vector<1x128xf32>
    %7 = vector.broadcast %6 : vector<1x128xf32> to vector<2x128xf32>
    %8 = arith.addf %3, %7 : vector<2x128xf32>
    %c0_8 = arith.constant 0 : index
    %c0_9 = arith.constant 0 : index
    %9 = vector.load %arg6[%c0_8, %c0_9] : memref<2x128xf32, #tpu.memory_space<vmem>>, vector<2x128xf32>
    tpu.vector_store %arg6[%c0_8, %c0_9], %8 {strides = array<i32>} : memref<2x128xf32, #tpu.memory_space<vmem>>, vector<2x128xf32>,
    %c0_10 = arith.constant 0 : index
    %c0_11 = arith.constant 0 : index
    %10 = vector.load %arg5[%c0_10, %c0_11] : memref<1x128xf32, #tpu.memory_space<vmem>>, vector<1x128xf32>
    %11 = vector.broadcast %10 : vector<1x128xf32> to vector<2x128xf32>
    %12 = arith.addf %5, %11 : vector<2x128xf32>
    %c0_12 = arith.constant 0 : index
    %c0_13 = arith.constant 0 : index
    %13 = vector.load %arg7[%c0_12, %c0_13] : memref<2x128xf32, #tpu.memory_space<vmem>>, vector<2x128xf32>
    tpu.vector_store %arg7[%c0_12, %c0_13], %12 {strides = array<i32>} : memref<2x128xf32, #tpu.memory_space<vmem>>, vector<2x128xf32>,
    return
  }
  func.func @transform_0(%arg0: i32) -> (i32, i32) {
    %c0_i32 = arith.constant 0 : i32
    %c0_i32_0 = arith.constant 0 : i32
    %c0_i32_1 = arith.constant 0 : i32
    return %c0_i32, %c0_i32_0 : i32, i32
  }
  func.func @transform_1(%arg0: i32) -> (i32, i32) {
    %c0_i32 = arith.constant 0 : i32
    %c0_i32_0 = arith.constant 0 : i32
    %c0_i32_1 = arith.constant 0 : i32
    return %c0_i32, %c0_i32_0 : i32, i32
  }
  func.func @transform_2(%arg0: i32) -> (i32, i32) {
    %c0_i32 = arith.constant 0 : i32
    %c0_i32_0 = arith.constant 0 : i32
    %c0_i32_1 = arith.constant 0 : i32
    return %c0_i32, %c0_i32_0 : i32, i32
  }
  func.func @transform_3(%arg0: i32) -> (i32, i32) {
    %c0_i32 = arith.constant 0 : i32
    %c0_i32_0 = arith.constant 0 : i32
    %c0_i32_1 = arith.constant 0 : i32
    return %c0_i32, %c0_i32_0 : i32, i32
  }
  func.func @transform_4(%arg0: i32) -> (i32, i32) {
    %c0_i32 = arith.constant 0 : i32
    %c0_i32_0 = arith.constant 0 : i32
    %c0_i32_1 = arith.constant 0 : i32
    return %c0_i32, %c0_i32_0 : i32, i32
  }
  func.func @transform_5(%arg0: i32) -> (i32, i32) {
    %c0_i32 = arith.constant 0 : i32
    %c0_i32_0 = arith.constant 0 : i32
    %c0_i32_1 = arith.constant 0 : i32
    return %c0_i32, %c0_i32_0 : i32, i32
  }
  func.func @transform_6(%arg0: i32) -> (i32, i32) {
    %c0_i32 = arith.constant 0 : i32
    %c0_i32_0 = arith.constant 0 : i32
    %c0_i32_1 = arith.constant 0 : i32
    return %c0_i32, %c0_i32_0 : i32, i32
  }
}

</mosaic_0001>

<bundles_post_ra>
// kernel: pcn_encoder_muvar_forward.5
= control target key start
LH: loop header
LB: loop body
LE: loop exit
PB: predicated region body
PF: predicated region fallthrough
CT: control target
= control target key end

     0   :  { %12 = vsyncpa [#allocation3], 0  ;;  %s458_s0 = inlined_call_operand.vmem [shape: f32[2,128], index: 0, kind: input, shape index: {}]   ;;  %s459_s1 = inlined_call_operand.vmem [shape: bf16[128,128], index: 1, kind: input, shape index: {}]   ;;  %s460_s2 = inlined_call_operand.vmem [shape: f32[1,128], index: 2, kind: input, shape index: {}]   ;;  %s461_s3 = inlined_call_operand.vmem [shape: bf16[128,128], index: 3, kind: input, shape index: {}]   ;;  %s462_s4 = inlined_call_operand.vmem [shape: f32[1,128], index: 4, kind: input, shape index: {}]   ;;  %s463_s5 = inlined_call_operand.hbm [shape: f32[2,128], index: 5, kind: output, shape index: {0}]   ;;  %s464_s6 = inlined_call_operand.hbm [shape: f32[2,128], index: 6, kind: output, shape index: {1}]  }
   0x1   :  { %v293_v0 = vld [vmem:[%s459_s1 + $0x38] sm:$0xff]  ;;  %v292_v2 = vld [vmem:[%s459_s1 + $0x30] sm:$0xff]  ;;  %v291_v4 = vld [vmem:[%s459_s1 + $0x28] sm:$0xff] }
   0x2   :  { %v301_v1 = vld [vmem:[%s461_s3 + $0x38] sm:$0xff]  ;;  %110 = vmatpush.bf16.msra.mxu0 %v293_v0  ;;  %v300_v3 = vld [vmem:[%s461_s3 + $0x30] sm:$0xff]  ;;  %v299_v5 = vld [vmem:[%s461_s3 + $0x28] sm:$0xff] }
   0x3   :  { %176 = vmatpush.bf16.msra.mxu1 %v301_v1 }
   0x6   :  { %111 = vmatpush.bf16.msra.mxu0 %v292_v2 }
   0x7   :  { %177 = vmatpush.bf16.msra.mxu1 %v300_v3 }
   0x8   :  { %13 = vsyncpa [#allocation5], 0  ;;  %v290_v6 = vld [vmem:[%s459_s1 + $0x20] sm:$0xff]  ;;  %v289_v8 = vld [vmem:[%s459_s1 + $0x18] sm:$0xff]  ;;  %s197_s13 = sshll.u32 %s463_s5, 4  ;;  %s208_s17 = sshll.u32 %s464_s6, 4  ;;  %s198_s13 = int_to_ptr.hbm [resolvable:$true] %s197_s13  ;;  %s209_s17 = int_to_ptr.hbm [resolvable:$true] %s208_s17 }
   0x9   :  { %v298_v7 = vld [vmem:[%s461_s3 + $0x20] sm:$0xff]  ;;  %v297_v9 = vld [vmem:[%s461_s3 + $0x18] sm:$0xff]  ;;  %v288_v10 = vld [vmem:[%s459_s1 + $0x10] sm:$0xff] }
   0xa   :  { %112 = vmatpush.bf16.msra.mxu0 %v291_v4  ;;  %v296_v11 = vld [vmem:[%s461_s3 + $0x10] sm:$0xff]  ;;  %v287_v12 = vld [vmem:[%s459_s1 + $0x8] sm:$0xff]  ;;  %v286_v14 = vld [vmem:[%s459_s1] sm:$0xff]  ;;  %s358_s1 = smov [#allocation2]  }
   0xb   :  { %178 = vmatpush.bf16.msra.mxu1 %v299_v5  ;;  %v295_v13 = vld [vmem:[%s461_s3 + $0x8] sm:$0xff]  ;;  %v294_v15 = vld [vmem:[%s461_s3] sm:$0xff]  ;;  %s195_s11 = sshll.u32 %s358_s1, 4  ;;  %s196_s11 = int_to_ptr.vmem [resolvable:$true] %s195_s11 }
   0xc   :  { %v24_v16 = vld [vmem:[%s458_s0] sm:$0x3]  ;;  %s359_s0 = smov [#allocation4]  }
   0xd   :  { %v25_v17 = vpack.c.bf16 %v24_v16, %v24_v16  ;;  %v304_v18 = vld [vmem:[%s460_s2] ss:$0 sm:$0xff]  ;;  %s206_s14 = sshll.u32 %s359_s0, 4  ;;  %s207_s14 = int_to_ptr.vmem [resolvable:$true] %s206_s14 }
   0xe   :  { %113 = vmatpush.bf16.msra.mxu0 %v290_v6  ;;  %v305_v19 = vld [vmem:[%s462_s4] ss:$0 sm:$0xff] }
   0xf   :  { %179 = vmatpush.bf16.msra.mxu1 %v298_v7 }
  0x12   :  { %114 = vmatpush.bf16.msra.mxu0 %v289_v8 }
  0x13   :  { %180 = vmatpush.bf16.msra.mxu1 %v297_v9 }
  0x16   :  { %115 = vmatpush.bf16.msra.mxu0 %v288_v10 }
  0x17   :  { %181 = vmatpush.bf16.msra.mxu1 %v296_v11 }
  0x1a   :  { %116 = vmatpush.bf16.msra.mxu0 %v287_v12 }
  0x1b   :  { %182 = vmatpush.bf16.msra.mxu1 %v295_v13 }
  0x1e   :  { %117 = vmatpush.bf16.msra.mxu0 %v286_v14 }
  0x1f   :  { %183 = vmatpush.bf16.msra.mxu1 %v294_v15 }
  0x21   :  { %118 = vmatmul.bf16.vlgmr.msra.gmra.mxu0 %v25_v17 }
  0x22   :  { %184 = vmatmul.bf16.vlgmr.msra.gmra.mxu1 %v25_v17 }
  0x9e   :  { %v119_v20 = vpop.f32.mrf.mxu0 }
  0x9f   :  { %v185_v21 = vpop.f32.mrf.mxu1  ;;  %v120_v22 = vadd.f32 %v304_v18, %v119_v20 }
  0xa0   :  { %v186_v23 = vadd.f32 %v305_v19, %v185_v21 }
  0xa1   :  { %123 = vst [vmem:[#allocation2] sm:$0x3] %v120_v22 }
  0xa2   :  { %189 = vst [vmem:[#allocation4] sm:$0x3] %v186_v23  ;;  %200 = dma.vmem_to_hbm [thread:$0]  %s196_s11, 32, %s198_s13, [#allocation3]  }
  0xa3   :  { %211 = dma.vmem_to_hbm [thread:$0]  %s207_s14, 32, %s209_s17, [#allocation5]  }
  0xa6   :  { %v121_v24 = vpop.f32.mrf.mxu0 }
  0xa7   :  { %v187_v25 = vpop.f32.mrf.mxu1 }
  0xa8   :  { %354 = dma.done.wait [#allocation3], 32  }
  0xa9   :  { %355 = vsyncadd [#allocation3], 4294967264 }
  0xaa   :  { %356 = dma.done.wait [#allocation5], 32  }
  0xab   :  { %357 = vsyncadd [#allocation5], 4294967264 }
  0xac   :  { %220 = vsyncpa [#allocation3], 1 }
  0xad   :  { %221 = vsyncpa [#allocation5], 1 }

// kernel: pcn_encoder_muvar_forward.3
= control target key start
LH: loop header
LB: loop body
LE: loop exit
PB: predicated region body
PF: predicated region fallthrough
CT: control target
= control target key end

     0   :  { %s4192_s13 = smov 0   ;;  %s4194_s14 = smov 0   ;;  %s5650_s0 = inlined_call_operand.vmem [shape: f32[2,512,3], index: 0, kind: input, shape index: {}]   ;;  %s5651_s1 = inlined_call_operand.vmem [shape: f32[3,128], index: 1, kind: input, shape index: {}]   ;;  %s5652_s2 = inlined_call_operand.vmem [shape: f32[1,128], index: 2, kind: input, shape index: {}]   ;;  %s5653_s3 = inlined_call_operand.vmem [shape: f32[1,128], index: 3, kind: input, shape index: {}]   ;;  %s5654_s4 = inlined_call_operand.vmem [shape: bf16[128,256], index: 4, kind: input, shape index: {}]   ;;  %s5655_s5 = inlined_call_operand.vmem [shape: f32[1,256], index: 5, kind: input, shape index: {}]   ;;  %s5656_s6 = inlined_call_operand.vmem [shape: bf16[256,512], index: 6, kind: input, shape index: {}]   ;;  %s5657_s7 = inlined_call_operand.vmem [shape: bf16[2,512,256], index: 7, kind: output, shape index: {0}]   ;;  %s5658_s8 = inlined_call_operand.vmem [shape: f32[2,1,256], index: 8, kind: output, shape index: {1}]   ;;  %s5659_s9 = inlined_call_operand.vmem [shape: f32[2,1,512], index: 9, kind: output, shape index: {2}]   ;;  %s5660_s10 = inlined_call_operand.vmem [shape: f32[2,1,512], index: 10, kind: output, shape index: {3}]  }
   0x1   :  { %s4196_s15 = smov 0   ;;  %s4198_s16 = smov 0  }
   0x2   :  { %s4200_s17 = smov 0  }
   0x3 LB: > { %s30_s18 = sadd.s32 1, %s4124_s15  ;;  %s33_s19 = sadd.s32 1, %s4128_s16  ;;  %s4132_s17 = sphi %s4200_s17, %s21_s17   ;;  %s4128_s16 = sphi %s4198_s16, %s5666_s16   ;;  %s4124_s15 = sphi %s4196_s15, %s5665_s15   ;;  %s4120_s14 = sphi %s4194_s14, %s5664_s14   ;;  %s4116_s13 = sphi %s4192_s13, %s5663_s13  }
   0x4   : > { %p31_p0 = scmp.ge.s32.totalorder %s30_s18, 2  ;;  %p3547_p1 = scmp.ge.s32.totalorder %s4132_s17, 1 }
   0x5   : > { %p340_p2 = scmp.lt.s32.totalorder %s4132_s17, 5 }
   0x6   : > { %s5668_s18 = smov (%p31_p0, %s30_s18), 0  ;;  %s5670_s19 = smov (!%p31_p0, %s33_s19), %s4128_s16 }
   0x7   : > { %p341_p3 = pnand %p3547_p1, %p340_p2  ;;  %p35_p4 = scmp.ge.s32.totalorder %s5670_s19, 2 }
   0x8   : > { %s3548_s20 = sshll.u32 (!%p341_p3), %s4116_s13, 5  ;;  %p400_p5 = scmp.lt.s32.totalorder (!%p341_p3), %s4120_s14, 1 }
   0x9   : > { %s5672_s19 = smov (%p35_p4, %s5670_s19), 0  ;;  %344 = sbr.rel (%p341_p3) target bundleno = 1170 (0x492), region = 48 }
   0xa   : > { %5661 = sst [smem:[#allocation2_spill]] %s5672_s19  ;;  %p402_p6 = scmp.lt.s32.totalorder (!%p341_p3), %s3548_s20, 63 }
   0xb   : > { %p3878_p7 = scmp.ne.s32.totalorder (!%p341_p3), %s4116_s13, 0 }
   0xe   : > { %v4134_v0 = vmov 2   ;;  %v4135_v1 = vmov 1   ;;  %s5674_s14 = smov (!%p400_p5, %s4120_s14), 1  ;;  %s5676_s20 = smov (!%p402_p6, %s3548_s20), 63  ;;  %v4136_v7 = vmov 0  }
   0xf   : > { %4028 = vset.pattern.permute.xlu0 %v4134_v0  ;;  %4021 = vset.pattern.permute.xlu1 %v4135_v1  ;;  %s3549_s21 = sshll.u32 %s5674_s14, 6  ;;  %s3553_s22 = sshll.u32 %s5674_s14, 7  ;;  %v3616_v17 = vld [vmem:[%s5654_s4 + $0x70] sm:$0xf]  ;;  %v3897_v18 = vld [vmem:[%s5654_s4 + $0x74] sm:$0xf0] }
  0x10   : > { %4022 = vset.pattern.permute.xlu2 %v4134_v0  ;;  %s405_s23 = sadd.s32 %s3549_s21, %s5676_s20  ;;  %s3552_s24 = sshll.u32 %s5676_s20, 1  ;;  %v3896_v19 = vld [vmem:[%s5654_s4 + $0x74] sm:$0xf]  ;;  %v3617_v20 = vor.u32 %v3897_v18, %v3616_v17  ;;  %v3618_v21 = vld [vmem:[%s5654_s4 + $0x78] sm:$0xf0] }
  0x11   : > { %s3550_s25 = sshll.u32 %s405_s23, 3  ;;  %s4228_s26 = sadd.s32 %s3553_s22, %s3552_s24  ;;  %v3621_v22 = vor.u32 %v3896_v19, %v3618_v21  ;;  %v3608_v24 = vld [vmem:[%s5654_s4 + $0x60] sm:$0xf]  ;;  %v3895_v25 = vld [vmem:[%s5654_s4 + $0x64] sm:$0xf0] }
  0x12   : > { %s4233_s29 = scalar_lea.vmem %s5650_s0, %s3550_s25  ;;  %s3555_s30 = sshll.u32 %s5674_s14, 1  ;;  %1266 = vmatpush.bf16.msra.mxu0 %v3617_v20  ;;  %v3894_v26 = vld [vmem:[%s5654_s4 + $0x64] sm:$0xf]  ;;  %3962 = vmatpush.bf16.msra.mxu2 %v3617_v20  ;;  %v3609_v28 = vor.u32 %v3895_v25, %v3608_v24  ;;  %v3610_v29 = vld [vmem:[%s5654_s4 + $0x68] sm:$0xf0] }
  0x13   : > { %s4238_s19 = scalar_lea.vmem %s5658_s8, %s3555_s30  ;;  %s3556_s20 = sshll.u32 %s5674_s14, 2  ;;  %v448_v2 = vld [vmem:[%s4233_s29 + $0x80] sm:$0xff]  ;;  %v437_v4 = vld [vmem:[%s4233_s29 + $0x28] sm:$0xff]  ;;  %v434_v8 = vld [vmem:[%s4233_s29 + $0x10] sm:$0xff]  ;;  %1355 = vmatpush.bf16.msra.mxu1 %v3621_v22  ;;  %3970 = vmatpush.bf16.msra.mxu3 %v3621_v22  ;;  %v3613_v30 = vor.u32 %v3894_v26, %v3610_v29 }
  0x14   : > { %v432_v3 = vld [vmem:[%s4233_s29] sm:$0xff]  ;;  %s4245_s23 = scalar_lea.vmem %s5659_s9, %s3556_s20  ;;  %s4250_s27 = scalar_lea.vmem %s5660_s10, %s3556_s20  ;;  %916 = vperm.xlu0 %4028, %v448_v2   ;;  %v433_v5 = vld [vmem:[%s4233_s29 + $0x8] sm:$0xff]  ;;  %v435_v9 = vld [vmem:[%s4233_s29 + $0x18] sm:$0xff] }
  0x15   : > { %659 = vperm.xlu1 %4021, %v432_v3   ;;  %852 = vperm.xlu2 %4022, %v432_v3   ;;  %v449_v6 = vld [vmem:[%s4233_s29 + $0x88] sm:$0xff]  ;;  %v451_v10 = vld [vmem:[%s4233_s29 + $0x98] sm:$0xff]  ;;  %v4267_v11 = vld [vmem:[%s4233_s29 + $0x30] sm:$0xff]  ;;  %s3554_s30 = sshll.u32 %s4228_s26, 2 }
  0x16   : > { %v450_v12 = vld [vmem:[%s4233_s29 + $0x90] sm:$0xff]  ;;  %v436_v13 = vld [vmem:[%s4233_s29 + $0x20] sm:$0xff]  ;;  %v4284_v15 = vld [vmem:[%s4233_s29 + $0x48] sm:$0xff]  ;;  %1267 = vmatpush.bf16.msra.mxu0 %v3609_v28  ;;  %3963 = vmatpush.bf16.msra.mxu2 %v3609_v28  ;;  %s4655_s20 = scalar_lea.vmem %s5657_s7, %s3554_s30 }
  0x17   : > { %v4278_v14 = vld [vmem:[%s4233_s29 + $0xb0] sm:$0xff]  ;;  %v4290_v16 = vld [vmem:[%s4233_s29 + $0xc8] sm:$0xff]  ;;  %v4317_v27 = vld [vmem:[%s4233_s29 + $0xa0] sm:$0xff]  ;;  %1356 = vmatpush.bf16.msra.mxu1 %v3613_v30  ;;  %3971 = vmatpush.bf16.msra.mxu3 %v3613_v30 }
  0x18   : > { %v3600_v31 = vld [vmem:[%s5654_s4 + $0x50] sm:$0xf]  ;;  %v3893_v32 = vld [vmem:[%s5654_s4 + $0x54] sm:$0xf0]  ;;  %v3892_v33 = vld [vmem:[%s5654_s4 + $0x54] sm:$0xf] }
  0x19   : > { %v3602_v34 = vld [vmem:[%s5654_s4 + $0x58] sm:$0xf0]  ;;  %v4336_v35 = vld [vmem:[%s4233_s29 + $0x60] sm:$0xff]  ;;  %v3601_v36 = vor.u32 %v3893_v32, %v3600_v31  ;;  %v453_v37 = vld [vmem:[%s4233_s29 + $0xa8] sm:$0xff] }
  0x1a   : > { %v3605_v38 = vor.u32 %v3892_v33, %v3602_v34  ;;  %v3592_v40 = vld [vmem:[%s5654_s4 + $0x40] sm:$0xf]  ;;  %v3891_v41 = vld [vmem:[%s5654_s4 + $0x44] sm:$0xf0]  ;;  %v3890_v42 = vld [vmem:[%s5654_s4 + $0x44] sm:$0xf] }
  0x1b   : > { %1268 = vmatpush.bf16.msra.mxu0 %v3601_v36  ;;  %v3593_v43 = vor.u32 %v3891_v41, %v3592_v40  ;;  %v3594_v44 = vld [vmem:[%s5654_s4 + $0x48] sm:$0xf0]  ;;  %3964 = vmatpush.bf16.msra.mxu2 %v3601_v36  ;;  %v3584_v46 = vld [vmem:[%s5654_s4 + $0x30] sm:$0xf]  ;;  %v3889_v47 = vld [vmem:[%s5654_s4 + $0x34] sm:$0xf0] }
  0x1c   : > { %872 = vperm.xlu0 %4028, %v437_v4   ;;  %1357 = vmatpush.bf16.msra.mxu1 %v3605_v38  ;;  %v3597_v45 = vor.u32 %v3890_v42, %v3594_v44  ;;  %v3888_v48 = vld [vmem:[%s5654_s4 + $0x34] sm:$0xf]  ;;  %v3585_v49 = vor.u32 %v3889_v47, %v3584_v46  ;;  %v3586_v50 = vld [vmem:[%s5654_s4 + $0x38] sm:$0xf0]  ;;  %v3576_v52 = vld [vmem:[%s5654_s4 + $0x20] sm:$0xf] }
  0x1d   : > { %663 = vperm.xlu1 %4021, %v433_v5   ;;  %856 = vperm.xlu2 %4022, %v433_v5   ;;  %v3589_v51 = vor.u32 %v3888_v48, %v3586_v50  ;;  %v3887_v53 = vld [vmem:[%s5654_s4 + $0x24] sm:$0xf0]  ;;  %v3886_v54 = vld [vmem:[%s5654_s4 + $0x24] sm:$0xf]  ;;  %v3578_v57 = vld [vmem:[%s5654_s4 + $0x28] sm:$0xf0] }
  0x1e   : > { %3972 = vmatpush.bf16.msra.mxu3 %v3605_v38  ;;  %v3577_v56 = vor.u32 %v3887_v53, %v3576_v52  ;;  %v3581_v58 = vor.u32 %v3886_v54, %v3578_v57  ;;  %v439_v59 = vld [vmem:[%s4233_s29 + $0x38] sm:$0xff]  ;;  %v3568_v60 = vld [vmem:[%s5654_s4 + $0x10] sm:$0xf]  ;;  %v3884_v62 = vld [vmem:[%s5654_s4 + $0x14] sm:$0xf] }
  0x1f   : > { %1269 = vmatpush.bf16.msra.mxu0 %v3593_v43  ;;  %3965 = vmatpush.bf16.msra.mxu2 %v3593_v43  ;;  %v3885_v61 = vld [vmem:[%s5654_s4 + $0x14] sm:$0xf0]  ;;  %v4418_v18 = vld [vmem:[%s4233_s29 + $0x40] sm:$0xff] }
  0x20   : > { %1358 = vmatpush.bf16.msra.mxu1 %v3597_v45  ;;  %v3569_v63 = vor.u32 %v3885_v61, %v3568_v60  ;;  %v464_v21 = vld [vmem:[%s5651_s1] sm:$0x7]  ;;  %v455_v40 = vld [vmem:[%s4233_s29 + $0xb8] sm:$0xff] }
  0x21   : > { %v4429_v24 = vperm.slane %v464_v21, 1  ;;  %v4431_v25 = vperm.slane %v464_v21, 0  ;;  %v4436_v29 = vperm.slane %v464_v21, 2  ;;  %v4446_v36 = vld [vmem:[%s5652_s2] ss:$0 sm:$0xff] }
  0x22   : > { %3973 = vmatpush.bf16.msra.mxu3 %v3597_v45  ;;  %v4460_v44 = vld [vmem:[%s5653_s3] ss:$0 sm:$0xff] }
  0x23   : > { %1270 = vmatpush.bf16.msra.mxu0 %v3585_v49  ;;  %3966 = vmatpush.bf16.msra.mxu2 %v3585_v49  ;;  %v4470_v53 = vld [vmem:[%s4233_s29 + $0xc0] sm:$0xff] }
  0x24   : > { %4039 = vset.pattern.permute.xlu0 %v4136_v7  ;;  %1359 = vmatpush.bf16.msra.mxu1 %v3589_v51 }
  0x25   : > { %4023 = vset.pattern.permute.xlu1 %v4136_v7  ;;  %467 = vperm.xlu0 %4039, %v432_v3  }
  0x26   : > { %552 = vperm.xlu1 %4023, %v449_v6   ;;  %4024 = vset.pattern.permute.xlu2 %v4135_v1 }
  0x27   : > { %723 = vperm.xlu2 %4024, %v448_v2   ;;  %3974 = vmatpush.bf16.msra.mxu3 %v3589_v51 }
  0x28   : > { %1271 = vmatpush.bf16.msra.mxu0 %v3577_v56  ;;  %1360 = vmatpush.bf16.msra.mxu1 %v3581_v58 }
  0x29   : > { %3967 = vmatpush.bf16.msra.mxu2 %v3577_v56 }
  0x2b   : > { %3975 = vmatpush.bf16.msra.mxu3 %v3581_v58 }
  0x2c   : > { %1272 = vmatpush.bf16.msra.mxu0 %v3569_v63 }
  0x2d   : > { %472 = vperm.xlu0 %4039, %v433_v5   ;;  %3968 = vmatpush.bf16.msra.mxu2 %v3569_v63 }
  0x2e   : > { %477 = vperm.xlu1 %4023, %v434_v8  }
  0x2f   : > { %4025 = vset.pattern.permute.xlu2 %v4136_v7 }
  0x30   : > { %482 = vperm.xlu2 %4025, %v435_v9  }
  0x35   : > { %547 = vperm.xlu0 %4039, %v448_v2   ;;  %v3570_v2 = vld [vmem:[%s5654_s4 + $0x18] sm:$0xf0] }
  0x36   : > { %4026 = vset.pattern.permute.xlu1 %v4135_v1  ;;  %v3573_v5 = vor.u32 %v3884_v62, %v3570_v2 }
  0x37   : > { %667 = vperm.xlu1 %4026, %v434_v8  }
  0x38   : > { %4027 = vset.pattern.permute.xlu2 %v4135_v1  ;;  %1361 = vmatpush.bf16.msra.mxu1 %v3573_v5 }
  0x39   : > { %671 = vperm.xlu2 %4027, %v435_v9   ;;  %3976 = vmatpush.bf16.msra.mxu3 %v3573_v5 }
  0x3d   : > { %562 = vperm.xlu0 %4039, %v451_v10  }
  0x3f   : > { %4029 = vset.pattern.permute.xlu1 %v4134_v0 }
  0x40   : > { %920 = vperm.xlu1 %4029, %v449_v6  }
  0x41   : > { %4030 = vset.pattern.permute.xlu2 %v4134_v0 }
  0x42   : > { %860 = vperm.xlu2 %4030, %v434_v8   ;;  %v3883_v8 = vld [vmem:[%s5654_s4 + $0x4] sm:$0xf0] }
  0x45   : > { %497 = vperm.xlu0 %4039, %v4267_v11  }
  0x48   : > { %864 = vperm.xlu1 %4029, %v435_v9   ;;  %v3882_v9 = vld [vmem:[%s5654_s4 + $0x4] sm:$0xf] }
  0x4a   : > { %4031 = vset.pattern.permute.xlu2 %v4136_v7 }
  0x4b   : > { %557 = vperm.xlu2 %4031, %v450_v12  }
  0x4d   : > { %4044 = vset.pattern.permute.xlu0 %v4135_v1 }
  0x4e   : > { %727 = vperm.xlu0 %4044, %v449_v6   ;;  %v3560_v6 = vld [vmem:[%s5654_s4] sm:$0xf] }
  0x50   : > { %4032 = vset.pattern.permute.xlu1 %v4135_v1 }
  0x51   : > { %731 = vperm.xlu1 %4032, %v450_v12  }
  0x53   : > { %4033 = vset.pattern.permute.xlu2 %v4135_v1 }
  0x54   : > { %735 = vperm.xlu2 %4033, %v451_v10  }
  0x56   : > { %675 = vperm.xlu0 %4044, %v436_v13  }
  0x59   : > { %4034 = vset.pattern.permute.xlu1 %v4136_v7 }
  0x5a   : > { %487 = vperm.xlu1 %4034, %v436_v13  }
  0x5c   : > { %4035 = vset.pattern.permute.xlu2 %v4136_v7 }
  0x5d   : > { %492 = vperm.xlu2 %4035, %v437_v4  }
  0x5e   : > { %747 = vperm.xlu0 %4044, %v4278_v14  }
  0x62   : > { %4036 = vset.pattern.permute.xlu1 %v4135_v1 }
  0x63   : > { %679 = vperm.xlu1 %4036, %v437_v4  }
  0x65   : > { %4037 = vset.pattern.permute.xlu2 %v4134_v0 }
  0x66   : > { %695 = vperm.xlu0 %4044, %v4284_v15   ;;  %924 = vperm.xlu2 %4037, %v450_v12   ;;  %v3562_v12 = vld [vmem:[%s5654_s4 + $0x8] sm:$0xf0] }
  0x67   : > { %v3565_v17 = vor.u32 %v3882_v9, %v3562_v12 }
  0x69   : > { %1362 = vmatpush.bf16.msra.mxu1 %v3565_v17  ;;  %3977 = vmatpush.bf16.msra.mxu3 %v3565_v17 }
  0x6b   : > { %4038 = vset.pattern.permute.xlu1 %v4134_v0 }
  0x6c   : > { %928 = vperm.xlu1 %4038, %v451_v10   ;;  %v3561_v10 = vor.u32 %v3883_v8, %v3560_v6 }
  0x6e   : > { %759 = vperm.xlu0 %4044, %v4290_v16   ;;  %868 = vperm.xlu2 %4037, %v436_v13  }
  0x6f   : > { %v4305_v23 = vpop.permute.xlu2 %852  ;;  %1273 = vmatpush.bf16.msra.mxu0 %v3561_v10  ;;  %3969 = vmatpush.bf16.msra.mxu2 %v3561_v10 }
  0x70   : > { %v980_v32 = vmul.f32 %v4436_v29, %v4305_v23 }
  0x74   : > { %4040 = vset.pattern.permute.xlu1 %v4136_v7 }
  0x75   : > { %567 = vperm.xlu1 %4040, %v4317_v27  }
  0x76   : > { %707 = vperm.xlu0 %4044, %v4336_v35   ;;  %4041 = vset.pattern.permute.xlu2 %v4136_v7 }
  0x77   : > { %572 = vperm.xlu2 %4041, %v453_v37   ;;  %v4342_v39 = vpop.permute.xlu2 %856 }
  0x7d   : > { %4042 = vset.pattern.permute.xlu1 %v4135_v1 }
  0x7e   : > { %739 = vperm.xlu1 %4042, %v4317_v27   ;;  %4069 = vset.pattern.permute.xlu0 %v4134_v0 }
  0x7f   : > { %936 = vperm.xlu0 %4069, %v453_v37   ;;  %4043 = vset.pattern.permute.xlu2 %v4135_v1 }
  0x80   : > { %743 = vperm.xlu2 %4043, %v453_v37  }
  0x81   : > { %v4381_v55 = vpop.permute.xlu2 %723 }
  0x82   : > { %v803_v9 = vmul.f32 %v4429_v24, %v4381_v55 }
  0x86   : > { %4045 = vset.pattern.permute.xlu1 %v4136_v7  ;;  %v4400_v4 = vpop.permute.xlu0 %916 }
  0x87   : > { %502 = vperm.xlu1 %4045, %v439_v59   ;;  %v660_v3 = vpop.permute.xlu1 %659  ;;  %884 = vperm.xlu0 %4069, %v4418_v18  }
  0x88   : > { %683 = vperm.xlu2 %4043, %v4267_v11   ;;  %v787_v30 = vmul.f32 %v4429_v24, %v660_v3 }
  0x8a   : > { %v4415_v13 = vpop.permute.xlu2 %482 }
  0x8b   : > { %v629_v63 = vmul.f32 %v4431_v25, %v4415_v13  ;;  %v996_v13 = vmul.f32 %v4436_v29, %v4400_v4 }
  0x8e   : > { %v4422_v20 = vpop.permute.xlu0 %872 }
  0x8f   : > { %4046 = vset.pattern.permute.xlu1 %v4135_v1  ;;  %v664_v19 = vpop.permute.xlu1 %663  ;;  %948 = vperm.xlu0 %4069, %v4470_v53  }
  0x90   : > { %687 = vperm.xlu1 %4046, %v439_v59   ;;  %4047 = vset.pattern.permute.xlu2 %v4134_v0  ;;  %v788_v41 = vmul.f32 %v4429_v24, %v664_v19 }
  0x91   : > { %932 = vperm.xlu2 %4047, %v4317_v27  }
  0x93   : > { %v672_v22 = vpop.permute.xlu2 %671 }
  0x94   : > { %v790_v2 = vmul.f32 %v4429_v24, %v672_v22 }
  0x96   : > { %v822_v12 = vadd.f32 %v790_v2, %v629_v63 }
  0x97   : > { %v468_v26 = vpop.permute.xlu0 %467 }
  0x98   : > { %4048 = vset.pattern.permute.xlu1 %v4134_v0  ;;  %v4434_v28 = vpop.permute.xlu1 %552  ;;  %v626_v31 = vmul.f32 %v4431_v25, %v468_v26 }
  0x99   : > { %876 = vperm.xlu1 %4048, %v4267_v11   ;;  %880 = vperm.xlu2 %4047, %v439_v59   ;;  %v981_v11 = vmul.f32 %v4436_v29, %v4342_v39  ;;  %v643_v4 = vmul.f32 %v4431_v25, %v4434_v28 }
  0x9a   : > { %v819_v27 = vadd.f32 %v787_v30, %v626_v31 }
  0x9c   : > { %v861_v33 = vpop.permute.xlu2 %860  ;;  %v1012_v34 = vadd.f32 %v980_v32, %v819_v27 }
  0x9d   : > { %v982_v61 = vmul.f32 %v4436_v29, %v861_v33 }
  0x9e   : > { %v1048_v43 = vmul.f32 %v4446_v36, %v1012_v34 }
  0x9f   : > { %v473_v37 = vpop.permute.xlu0 %472 }
  0xa0   : > { %v478_v38 = vpop.permute.xlu1 %477  ;;  %v627_v42 = vmul.f32 %v4431_v25, %v473_v37  ;;  %v1084_v48 = vadd.f32 %v4460_v44, %v1048_v43 }
  0xa1   : > { %4049 = vset.pattern.permute.xlu1 %v4136_v7  ;;  %4050 = vset.pattern.permute.xlu2 %v4136_v7  ;;  %v628_v59 = vmul.f32 %v4431_v25, %v478_v38 }
  0xa2   : > { %577 = vperm.xlu1 %4049, %v4278_v14   ;;  %v820_v23 = vadd.f32 %v788_v41, %v627_v42  ;;  %582 = vperm.xlu2 %4050, %v455_v40   ;;  %v1116_v51 = vmax.f32 %v1084_v48, 0.0 }
  0xa4   : > { %v1013_v45 = vadd.f32 %v981_v11, %v820_v23 }
  0xa5   : > { %v4462_v46 = vpop.permute.xlu2 %557 }
  0xa6   : > { %v1049_v47 = vmul.f32 %v4446_v36, %v1013_v45 }
  0xa7   : > { %v548_v49 = vpop.permute.xlu0 %547 }
  0xa8   : > { %v1085_v39 = vadd.f32 %v4460_v44, %v1049_v47  ;;  %v642_v5 = vmul.f32 %v4431_v25, %v548_v49 }
  0xa9   : > { %v668_v50 = vpop.permute.xlu1 %667 }
  0xaa   : > { %4051 = vset.pattern.permute.xlu1 %v4135_v1  ;;  %v1117_v52 = vmax.f32 %v1085_v39, 0.0  ;;  %507 = vperm.xlu2 %4050, %v4418_v18   ;;  %v789_v56 = vmul.f32 %v4429_v24, %v668_v50  ;;  %v835_v19 = vadd.f32 %v803_v9, %v642_v5 }
  0xab   : > { %751 = vperm.xlu1 %4051, %v455_v40  }
  0xac   : > { %v1148_v54 = vpack.c.bf16 %v1117_v52, %v1116_v51  ;;  %v821_v62 = vadd.f32 %v789_v56, %v628_v59  ;;  %v1028_v26 = vadd.f32 %v996_v13, %v835_v19  ;;  %v644_v59 = vmul.f32 %v4431_v25, %v4462_v46 }
  0xae   : > { %1274 = vmatmul.bf16.vlgmr.msra.gmra.mxu0 %v1148_v54  ;;  %1363 = vmatmul.bf16.vlgmr.msra.gmra.mxu1 %v1148_v54  ;;  %v4474_v57 = vpop.permute.xlu2 %735  ;;  %v1014_v3 = vadd.f32 %v982_v61, %v821_v62  ;;  %v442_v61 = vld [vmem:[%s4233_s29 + $0x50] sm:$0xff] }
  0xaf   : > { %v4476_v58 = vpop.permute.xlu0 %562  ;;  %v806_v13 = vmul.f32 %v4429_v24, %v4474_v57 }
  0xb2   : > { %v921_v60 = vpop.permute.xlu1 %920  ;;  %4053 = vset.pattern.permute.xlu2 %v4135_v1 }
  0xb3   : > { %4052 = vset.pattern.permute.xlu1 %v4136_v7  ;;  %691 = vperm.xlu2 %4053, %v4418_v18   ;;  %v1050_v18 = vmul.f32 %v4446_v36, %v1014_v3  ;;  %v985_v3 = vmul.f32 %v4436_v29, %v4422_v20  ;;  %v645_v20 = vmul.f32 %v4431_v25, %v4476_v58 }
  0xb4   : > { %512 = vperm.xlu1 %4052, %v4284_v15  }
  0xb5   : > { %v1086_v22 = vadd.f32 %v4460_v44, %v1050_v18  ;;  %v4537_v18 = vld [vmem:[%s4233_s29 + $0x68] sm:$0xff] }
  0xb6   : > { %904 = vperm.xlu0 %4069, %v4537_v18  }
  0xb7   : > { %v4488_v6 = vpop.permute.xlu0 %497  ;;  %v493_v8 = vpop.permute.xlu2 %492  ;;  %v1118_v34 = vmax.f32 %v1086_v22, 0.0 }
  0xb8   : > { %v631_v62 = vmul.f32 %v4431_v25, %v493_v8 }
  0xba   : > { %v865_v10 = vpop.permute.xlu1 %864 }
  0xbb   : > { %v983_v17 = vmul.f32 %v4436_v29, %v865_v10  ;;  %4055 = vset.pattern.permute.xlu2 %v4134_v0 }
  0xbc   : > { %4054 = vset.pattern.permute.xlu1 %v4134_v0  ;;  %944 = vperm.xlu2 %4055, %v455_v40   ;;  %v1064_v40 = vmul.f32 %v4446_v36, %v1028_v26 }
  0xbd   : > { %v1015_v21 = vadd.f32 %v983_v17, %v822_v12  ;;  %940 = vperm.xlu1 %4054, %v4278_v14   ;;  %v997_v14 = vmul.f32 %v4436_v29, %v921_v60 }
  0xbe   : > { %v1100_v11 = vadd.f32 %v4460_v44, %v1064_v40  ;;  %4073 = vset.pattern.permute.xlu0 %v4136_v7  ;;  %v4559_v40 = vld [vmem:[%s4233_s29 + $0xd8] sm:$0xff] }
  0xbf   : > { %v1051_v55 = vmul.f32 %v4446_v36, %v1015_v21  ;;  %602 = vperm.xlu0 %4073, %v4559_v40  }
  0xc0   : > { %v728_v30 = vpop.permute.xlu0 %727  ;;  %v925_v31 = vpop.permute.xlu2 %924 }
  0xc1   : > { %v1087_v27 = vadd.f32 %v4460_v44, %v1051_v55  ;;  %v804_v32 = vmul.f32 %v4429_v24, %v728_v30  ;;  %v998_v10 = vmul.f32 %v4436_v29, %v925_v31  ;;  %v838_v31 = vadd.f32 %v806_v13, %v645_v20 }
  0xc3   : > { %v732_v33 = vpop.permute.xlu1 %731  ;;  %v1119_v37 = vmax.f32 %v1087_v27, 0.0  ;;  %v836_v38 = vadd.f32 %v804_v32, %v643_v4 }
  0xc4   : > { %4056 = vset.pattern.permute.xlu2 %v4136_v7  ;;  %v805_v60 = vmul.f32 %v4429_v24, %v732_v33 }
  0xc5   : > { %888 = vperm.xlu1 %4054, %v4284_v15   ;;  %v1149_v41 = vpack.c.bf16 %v1119_v37, %v1118_v34  ;;  %v1029_v42 = vadd.f32 %v997_v14, %v836_v38  ;;  %587 = vperm.xlu2 %4056, %v4470_v53   ;;  %v1132_v15 = vmax.f32 %v1100_v11, 0.0 }
  0xc6   : > { %v837_v9 = vadd.f32 %v805_v60, %v644_v59 }
  0xc7   : > { %1279 = vmatmul.bf16.gmra.mxu0 %v1149_v41  ;;  %1368 = vmatmul.bf16.gmra.mxu1 %v1149_v41  ;;  %v1065_v28 = vmul.f32 %v4446_v36, %v1029_v42 }
  0xc8   : > { %v676_v23 = vpop.permute.xlu0 %675  ;;  %v869_v43 = vpop.permute.xlu2 %868  ;;  %v1030_v19 = vadd.f32 %v998_v10, %v837_v9 }
  0xc9   : > { %v1101_v45 = vadd.f32 %v4460_v44, %v1065_v28  ;;  %v791_v47 = vmul.f32 %v4429_v24, %v676_v23  ;;  %v984_v52 = vmul.f32 %v4436_v29, %v869_v43 }
  0xca   : > { %v1066_v27 = vmul.f32 %v4446_v36, %v1030_v19 }
  0xcb   : > { %v1133_v49 = vmax.f32 %v1101_v45, 0.0 }
  0xcc   : > { %v488_v48 = vpop.permute.xlu1 %487  ;;  %v1102_v38 = vadd.f32 %v4460_v44, %v1066_v27  ;;  %v461_v27 = vld [vmem:[%s4233_s29 + $0xe8] sm:$0xff] }
  0xcd   : > { %v630_v50 = vmul.f32 %v4431_v25, %v488_v48  ;;  %4057 = vset.pattern.permute.xlu1 %v4136_v7  ;;  %v1156_v39 = vpack.c.bf16 %v1133_v49, %v1132_v15  ;;  %4058 = vset.pattern.permute.xlu2 %v4135_v1  ;;  %v458_v49 = vld [vmem:[%s4233_s29 + $0xd0] sm:$0xff] }
  0xce   : > { %592 = vperm.xlu1 %4057, %v4290_v16   ;;  %755 = vperm.xlu2 %4058, %v4470_v53   ;;  %v443_v53 = vld [vmem:[%s4233_s29 + $0x58] sm:$0xff]  ;;  %v1134_v28 = vmax.f32 %v1102_v38, 0.0 }
  0xcf   : > { %v823_v51 = vadd.f32 %v791_v47, %v630_v50  ;;  %1314 = vmatmul.bf16.vlgmr.msra.gmra.mxu2 %v1156_v39  ;;  %1403 = vmatmul.bf16.vlgmr.msra.gmra.mxu3 %v1156_v39 }
  0xd0   : > { %v4520_v54 = vpop.permute.xlu0 %747 }
  0xd1   : > { %v573_v56 = vpop.permute.xlu2 %572  ;;  %v1016_v63 = vadd.f32 %v984_v52, %v823_v51 }
  0xd2   : > { %v647_v47 = vmul.f32 %v4431_v25, %v573_v56 }
  0xd3   : > { %v1052_v46 = vmul.f32 %v4446_v36, %v1016_v63 }
  0xd5   : > { %v680_v2 = vpop.permute.xlu1 %679  ;;  %v1088_v22 = vadd.f32 %v4460_v44, %v1052_v46 }
  0xd6   : > { %v792_v5 = vmul.f32 %v4429_v24, %v680_v2  ;;  %517 = vperm.xlu1 %4057, %v442_v61   ;;  %4059 = vset.pattern.permute.xlu2 %v4136_v7 }
  0xd7   : > { %522 = vperm.xlu2 %4059, %v443_v53   ;;  %v1120_v57 = vmax.f32 %v1088_v22, 0.0 }
  0xd8   : > { %v824_v12 = vadd.f32 %v792_v5, %v631_v62  ;;  %v4534_v17 = vpop.permute.xlu0 %695 }
  0xda   : > { %v1017_v8 = vadd.f32 %v985_v3, %v824_v12  ;;  %v744_v21 = vpop.permute.xlu2 %743 }
  0xdb   : > { %v808_v48 = vmul.f32 %v4429_v24, %v744_v21 }
  0xdc   : > { %v1053_v55 = vmul.f32 %v4446_v36, %v1017_v8  ;;  %v4584_v8 = vld [vmem:[%s4233_s29 + $0x70] sm:$0xff] }
  0xdd   : > { %v840_v50 = vadd.f32 %v808_v48, %v647_v47  ;;  %537 = vperm.xlu0 %4073, %v4584_v8  }
  0xde   : > { %4060 = vset.pattern.permute.xlu1 %v4135_v1  ;;  %v929_v26 = vpop.permute.xlu1 %928  ;;  %v1089_v30 = vadd.f32 %v4460_v44, %v1053_v55 }
  0xdf   : > { %v999_v58 = vmul.f32 %v4436_v29, %v929_v26  ;;  %699 = vperm.xlu1 %4060, %v442_v61   ;;  %4061 = vset.pattern.permute.xlu2 %v4135_v1  ;;  %v632_v26 = vmul.f32 %v4431_v25, %v4488_v6 }
  0xe0   : > { %v1121_v4 = vmax.f32 %v1089_v30, 0.0  ;;  %v4551_v33 = vpop.permute.xlu0 %759  ;;  %703 = vperm.xlu2 %4061, %v443_v53  }
  0xe1   : > { %v1031_v32 = vadd.f32 %v999_v58, %v838_v31 }
  0xe2   : > { %v1150_v34 = vpack.c.bf16 %v1121_v4, %v1120_v57  ;;  %v4554_v14 = vpop.permute.xlu2 %683 }
  0xe3   : > { %v1067_v37 = vmul.f32 %v4446_v36, %v1031_v32  ;;  %v793_v30 = vmul.f32 %v4429_v24, %v4554_v14 }
  0xe4   : > { %1284 = vmatmul.bf16.gmra.mxu0 %v1150_v34  ;;  %1373 = vmatmul.bf16.gmra.mxu1 %v1150_v34 }
  0xe5   : > { %v1103_v41 = vadd.f32 %v4460_v44, %v1067_v37  ;;  %4081 = vset.pattern.permute.xlu0 %v4134_v0  ;;  %v825_v57 = vadd.f32 %v793_v30, %v632_v26  ;;  %v796_v26 = vmul.f32 %v4429_v24, %v4534_v17 }
  0xe6   : > { %968 = vperm.xlu0 %4081, %v461_v27  }
  0xe7   : > { %4062 = vset.pattern.permute.xlu1 %v4134_v0  ;;  %v568_v42 = vpop.permute.xlu1 %567  ;;  %v1135_v11 = vmax.f32 %v1103_v41, 0.0 }
  0xe8   : > { %952 = vperm.xlu1 %4062, %v4290_v16   ;;  %v4565_v23 = vpop.permute.xlu0 %707  ;;  %4063 = vset.pattern.permute.xlu2 %v4134_v0  ;;  %v646_v39 = vmul.f32 %v4431_v25, %v568_v42 }
  0xe9   : > { %v1157_v43 = vpack.c.bf16 %v1135_v11, %v1134_v28  ;;  %892 = vperm.xlu2 %4063, %v442_v61  }
  0xeb   : > { %1319 = vmatmul.bf16.gmra.mxu2 %v1157_v43  ;;  %1408 = vmatmul.bf16.gmra.mxu3 %v1157_v43  ;;  %v933_v45 = vpop.permute.xlu2 %932  ;;  %v4613_v43 = vld [vmem:[%s4233_s29 + $0xe0] sm:$0xff] }
  0xec   : > { %v1000_v51 = vmul.f32 %v4436_v29, %v933_v45 }
  0xee   : > { %4085 = vset.pattern.permute.xlu0 %v4135_v1 }
  0xf0   : > { %896 = vperm.xlu1 %4062, %v443_v53   ;;  %v740_v15 = vpop.permute.xlu1 %739 }
  0xf1   : > { %v807_v16 = vmul.f32 %v4429_v24, %v740_v15  ;;  %v937_v52 = vpop.permute.xlu0 %936  ;;  %4064 = vset.pattern.permute.xlu2 %v4136_v7  ;;  %v1180_v15 = vld [vmem:[%s5655_s5] sm:$0x3] }
  0xf2   : > { %v1001_v60 = vmul.f32 %v4436_v29, %v937_v52  ;;  %597 = vperm.xlu2 %4064, %v458_v49   ;;  %v4636_v52 = vld [vmem:[%s4233_s29 + $0xf0] sm:$0xff] }
  0xf3   : > { %v839_v59 = vadd.f32 %v807_v16, %v646_v39  ;;  %v881_v56 = vpop.permute.xlu2 %880  ;;  %v4629_v39 = vperm.slane %v1180_v15, 0  ;;  %v4631_v16 = vperm.slane %v1180_v15, 1  ;;  %779 = vperm.xlu0 %4085, %v4636_v52  }
  0xf4   : > { %v1033_v61 = vadd.f32 %v1001_v60, %v840_v50  ;;  %v987_v21 = vmul.f32 %v4436_v29, %v881_v56 }
  0xf5   : > { %v1032_v62 = vadd.f32 %v1000_v51, %v839_v59 }
  0xf6   : > { %v1069_v63 = vmul.f32 %v4446_v36, %v1033_v61  ;;  %v809_v61 = vmul.f32 %v4429_v24, %v4520_v54 }
  0xf7   : > { %v1068_v2 = vmul.f32 %v4446_v36, %v1032_v62 }
  0xf8   : > { %4065 = vset.pattern.permute.xlu1 %v4135_v1  ;;  %v1105_v5 = vadd.f32 %v4460_v44, %v1069_v63 }
  0xf9   : > { %763 = vperm.xlu1 %4065, %v458_v49   ;;  %v503_v53 = vpop.permute.xlu1 %502  ;;  %v1104_v3 = vadd.f32 %v4460_v44, %v1068_v2  ;;  %v885_v56 = vpop.permute.xlu0 %884 }
  0xfa   : > { %v1137_v10 = vmax.f32 %v1105_v5, 0.0  ;;  %4066 = vset.pattern.permute.xlu2 %v4135_v1  ;;  %v633_v13 = vmul.f32 %v4431_v25, %v503_v53 }
  0xfb   : > { %v1136_v9 = vmax.f32 %v1104_v3, 0.0  ;;  %767 = vperm.xlu2 %4066, %v4559_v40   ;;  %v447_v3 = vld [vmem:[%s4233_s29 + $0x78] sm:$0xff]  ;;  %4089 = vset.pattern.permute.xlu0 %v4134_v0 }
  0xfc   : > { %v583_v12 = vpop.permute.xlu2 %582 }
  0xfd   : > { %v1158_v46 = vpack.c.bf16 %v1137_v10, %v1136_v9  ;;  %v649_v47 = vmul.f32 %v4431_v25, %v583_v12  ;;  %v988_v10 = vmul.f32 %v4436_v29, %v885_v56 }
  0xff   : > { %1324 = vmatmul.bf16.gmra.mxu2 %v1158_v46  ;;  %1413 = vmatmul.bf16.gmra.mxu3 %v1158_v46 }
 0x101   : > { %4067 = vset.pattern.permute.xlu1 %v4136_v7 }
 0x102   : > { %527 = vperm.xlu1 %4067, %v4336_v35   ;;  %v688_v20 = vpop.permute.xlu1 %687 }
 0x103   : > { %v794_v19 = vmul.f32 %v4429_v24, %v688_v20  ;;  %4068 = vset.pattern.permute.xlu2 %v4136_v7 }
 0x104   : > { %532 = vperm.xlu2 %4068, %v4537_v18   ;;  %v508_v22 = vpop.permute.xlu2 %507 }
 0x105   : > { %v826_v55 = vadd.f32 %v794_v19, %v633_v13  ;;  %v634_v59 = vmul.f32 %v4431_v25, %v508_v22 }
 0x107   : > { %v1019_v31 = vadd.f32 %v987_v21, %v826_v55 }
 0x109   : > { %v1055_v32 = vmul.f32 %v4446_v36, %v1019_v31 }
 0x10a   : > { %4070 = vset.pattern.permute.xlu1 %v4135_v1 }
 0x10b   : > { %711 = vperm.xlu1 %4070, %v4537_v18   ;;  %v877_v58 = vpop.permute.xlu1 %876  ;;  %v1091_v14 = vadd.f32 %v4460_v44, %v1055_v32 }
 0x10c   : > { %v986_v4 = vmul.f32 %v4436_v29, %v877_v58  ;;  %4071 = vset.pattern.permute.xlu2 %v4134_v0 }
 0x10d   : > { %956 = vperm.xlu2 %4071, %v458_v49   ;;  %v692_v34 = vpop.permute.xlu2 %691  ;;  %v1123_v42 = vmax.f32 %v1091_v14, 0.0 }
 0x10e   : > { %v1018_v6 = vadd.f32 %v986_v4, %v825_v57  ;;  %v795_v60 = vmul.f32 %v4429_v24, %v692_v34 }
 0x110   : > { %v1054_v37 = vmul.f32 %v4446_v36, %v1018_v6  ;;  %v827_v54 = vadd.f32 %v795_v60, %v634_v59 }
 0x112   : > { %v1090_v18 = vadd.f32 %v4460_v44, %v1054_v37  ;;  %v1020_v22 = vadd.f32 %v988_v10, %v827_v54 }
 0x113   : > { %4072 = vset.pattern.permute.xlu1 %v4134_v0 }
 0x114   : > { %960 = vperm.xlu1 %4072, %v4559_v40   ;;  %v578_v38 = vpop.permute.xlu1 %577  ;;  %v1122_v41 = vmax.f32 %v1090_v18, 0.0  ;;  %v1056_v34 = vmul.f32 %v4446_v36, %v1020_v22 }
 0x115   : > { %900 = vperm.xlu2 %4071, %v4336_v35   ;;  %v648_v62 = vmul.f32 %v4431_v25, %v578_v38 }
 0x116   : > { %v1151_v28 = vpack.c.bf16 %v1123_v42, %v1122_v41  ;;  %v945_v11 = vpop.permute.xlu2 %944  ;;  %v1092_v59 = vadd.f32 %v4460_v44, %v1056_v34  ;;  %v3960_v34 = vld [vmem:[%s5656_s6 + $0x1ec] sm:$0xf0] }
 0x117   : > { %v1003_v50 = vmul.f32 %v4436_v29, %v945_v11  ;;  %v841_v20 = vadd.f32 %v809_v61, %v648_v62 }
 0x118   : > { %1289 = vmatmul.bf16.gmra.mxu0 %v1151_v28  ;;  %1378 = vmatmul.bf16.gmra.mxu1 %v1151_v28 }
 0x11c   : > { %4074 = vset.pattern.permute.xlu1 %v4136_v7 }
 0x11d   : > { %607 = vperm.xlu1 %4074, %v4613_v43   ;;  %v752_v45 = vpop.permute.xlu1 %751  ;;  %4075 = vset.pattern.permute.xlu2 %v4136_v7 }
 0x11e   : > { %612 = vperm.xlu2 %4075, %v461_v27   ;;  %v810_v35 = vmul.f32 %v4429_v24, %v752_v45 }
 0x11f   : > { %v4618_v40 = vpop.permute.xlu2 %587 }
 0x120   : > { %v842_v49 = vadd.f32 %v810_v35, %v649_v47 }
 0x122   : > { %v1035_v63 = vadd.f32 %v1003_v50, %v842_v49 }
 0x124   : > { %v1071_v13 = vmul.f32 %v4446_v36, %v1035_v63 }
 0x125   : > { %4076 = vset.pattern.permute.xlu1 %v4135_v1 }
 0x126   : > { %771 = vperm.xlu1 %4076, %v4613_v43   ;;  %v513_v48 = vpop.permute.xlu1 %512  ;;  %4077 = vset.pattern.permute.xlu2 %v4135_v1  ;;  %v1107_v57 = vadd.f32 %v4460_v44, %v1071_v13  ;;  %v4713_v13 = vld [vmem:[%s4233_s29 + $0xf8] sm:$0xff] }
 0x127   : > { %775 = vperm.xlu2 %4077, %v461_v27   ;;  %v635_v30 = vmul.f32 %v4431_v25, %v513_v48 }
 0x128   : > { %v4633_v51 = vpop.permute.xlu2 %755  ;;  %v1139_v41 = vmax.f32 %v1107_v57, 0.0 }
 0x129   : > { %v828_v14 = vadd.f32 %v796_v26, %v635_v30  ;;  %v949_v26 = vpop.permute.xlu0 %948 }
 0x12b   : > { %v1275_v2 = vpop.f32.mrf.mxu0  ;;  %v1364_v53 = vpop.f32.mrf.mxu1 }
 0x12c   : > { %v4647_v5 = vadd.f32 %v1275_v2, %v4629_v39  ;;  %v4650_v9 = vadd.f32 %v1364_v53, %v4631_v16 }
 0x12e   : > { %4078 = vset.pattern.permute.xlu1 %v4136_v7  ;;  %v1444_v46 = vpack.c.bf16 %v4650_v9, %v4647_v5 }
 0x12f   : > { %542 = vperm.xlu1 %4078, %v447_v3   ;;  %v941_v12 = vpop.permute.xlu1 %940  ;;  %715 = vperm.xlu2 %4077, %v4584_v8  }
 0x130   : > { %v1002_v19 = vmul.f32 %v4436_v29, %v941_v12  ;;  %1476 = vst [vmem:[%s4655_s20] sm:$0xff] %v1444_v46  ;;  %v1604_v42 = vunpack.c.l.b16 %v1444_v46  ;;  %v1605_v28 = vunpack.c.h.b16 %v1444_v46 }
 0x131   : > { %v4665_v55 = vpop.permute.xlu2 %522 }
 0x132   : > { %v1034_v21 = vadd.f32 %v1002_v19, %v841_v20  ;;  %v811_v19 = vmul.f32 %v4429_v24, %v4633_v51  ;;  %v3864_v51 = vld [vmem:[%s5656_s6 + $0x1e0] sm:$0xf] }
 0x133   : > { %v1277_v27 = vpop.f32.mrf.mxu0  ;;  %v1366_v58 = vpop.f32.mrf.mxu1 }
 0x134   : > { %v1070_v31 = vmul.f32 %v4446_v36, %v1034_v21  ;;  %v1278_v4 = vadd.f32 %v1277_v27, %v4629_v39  ;;  %v4675_v32 = vadd.f32 %v1366_v58, %v4631_v16 }
 0x136   : > { %v1106_v6 = vadd.f32 %v4460_v44, %v1070_v31  ;;  %v1445_v17 = vpack.c.bf16 %v4675_v32, %v1278_v4 }
 0x137   : > { %4079 = vset.pattern.permute.xlu1 %v4135_v1  ;;  %v889_v37 = vpop.permute.xlu1 %888  ;;  %4080 = vset.pattern.permute.xlu2 %v4134_v0 }
 0x138   : > { %v989_v18 = vmul.f32 %v4436_v29, %v889_v37  ;;  %719 = vperm.xlu1 %4079, %v447_v3   ;;  %v1138_v38 = vmax.f32 %v1106_v6, 0.0  ;;  %1477 = vst [vmem:[%s4655_s20 + $0x8] sm:$0xff] %v1445_v17  ;;  %v1606_v11 = vunpack.c.l.b16 %v1445_v17  ;;  %v1607_v45 = vunpack.c.h.b16 %v1445_v17  ;;  %964 = vperm.xlu2 %4080, %v4613_v43  }
 0x139   : > { %v1124_v43 = vmax.f32 %v1092_v59, 0.0  ;;  %v1004_v37 = vmul.f32 %v4436_v29, %v949_v26 }
 0x13a   : > { %v1021_v47 = vadd.f32 %v989_v18, %v828_v14  ;;  %v1159_v35 = vpack.c.bf16 %v1139_v41, %v1138_v38  ;;  %v4685_v48 = vpop.permute.xlu2 %703  ;;  %v4687_v15 = vpack.c.b16 %v1606_v11, %v1604_v42  ;;  %v4689_v49 = vpack.c.b16 %v1607_v45, %v1605_v28  ;;  %v3926_v45 = vld [vmem:[%s5656_s6 + $0xe4] sm:$0xf] }
 0x13b   : > { %v3865_v14 = vor.u32 %v3960_v34, %v3864_v51  ;;  %v3848_v51 = vld [vmem:[%s5656_s6 + $0x1c0] sm:$0xf]  ;;  %v798_v34 = vmul.f32 %v4429_v24, %v4685_v48 }
 0x13c   : > { %v1057_v50 = vmul.f32 %v4446_v36, %v1021_v47  ;;  %1329 = vmatmul.bf16.gmra.mxu2 %v1159_v35  ;;  %1418 = vmatmul.bf16.gmra.mxu3 %v1159_v35  ;;  %v3738_v47 = vld [vmem:[%s5656_s6 + $0xf0] sm:$0xf0] }
 0x13d   : > { %2141 = vmatpush.bf16.msrb.mxu3 %v3865_v14 }
 0x13e   : > { %v1093_v60 = vadd.f32 %v4460_v44, %v1057_v50 }
 0x140   : > { %4082 = vset.pattern.permute.xlu1 %v4134_v0  ;;  %v4695_v56 = vpop.permute.xlu1 %592  ;;  %v1125_v61 = vmax.f32 %v1093_v60, 0.0  ;;  %912 = vperm.xlu2 %4080, %v447_v3  }
 0x141   : > { %908 = vperm.xlu1 %4082, %v4584_v8  }
 0x142   : > { %v1152_v62 = vpack.c.bf16 %v1125_v61, %v1124_v43  ;;  %v3741_v43 = vor.u32 %v3926_v45, %v3738_v47  ;;  %v3866_v61 = vld [vmem:[%s5656_s6 + $0x1f0] sm:$0xf0] }
 0x143   : > { %v4702_v10 = vpop.permute.xlu2 %892 }
 0x144   : > { %v1280_v63 = vpop.f32.mrf.mxu0  ;;  %1294 = vmatmul.bf16.gmra.mxu0 %v1152_v62  ;;  %v1369_v2 = vpop.f32.mrf.mxu1  ;;  %1383 = vmatmul.bf16.gmra.mxu1 %v1152_v62 }
 0x145   : > { %v1281_v53 = vadd.f32 %v1280_v63, %v4629_v39  ;;  %v4700_v54 = vadd.f32 %v1369_v2, %v4631_v16  ;;  %2230 = vmatpush.bf16.msrb.mxu0 %v3741_v43 }
 0x147   : > { %v2764_v46 = vmax.f32 %v4647_v5, %v1281_v53  ;;  %v1446_v12 = vpack.c.bf16 %v4700_v54, %v1281_v53  ;;  %v2801_v8 = vmax.f32 %v4650_v9, %v4700_v54  ;;  %v650_v5 = vmul.f32 %v4431_v25, %v4618_v40  ;;  %v3928_v40 = vld [vmem:[%s5656_s6 + $0xec] sm:$0xf0] }
 0x148   : > { %v4708_v3 = vpop.permute.xlu1 %517  ;;  %4084 = vset.pattern.permute.xlu2 %v4136_v7 }
 0x149   : > { %v2765_v20 = vmax.f32 %v1278_v4, %v2764_v46  ;;  %1478 = vst [vmem:[%s4655_s20 + $0x10] sm:$0xff] %v1446_v12  ;;  %4083 = vset.pattern.permute.xlu1 %v4136_v7  ;;  %622 = vperm.xlu2 %4084, %v4713_v13   ;;  %v3736_v7 = vld [vmem:[%s5656_s6 + $0xe0] sm:$0xf]  ;;  %v843_v17 = vadd.f32 %v811_v19, %v650_v5  ;;  %v1608_v18 = vunpack.c.l.b16 %v1446_v12  ;;  %v1609_v38 = vunpack.c.h.b16 %v1446_v12 }
 0x14a   : > { %617 = vperm.xlu1 %4083, %v4636_v52   ;;  %v3737_v6 = vor.u32 %v3928_v40, %v3736_v7  ;;  %v812_v12 = vmul.f32 %v4429_v24, %v4551_v33  ;;  %v3720_v40 = vld [vmem:[%s5656_s6 + $0xc0] sm:$0xf] }
 0x14b   : > { %v1036_v59 = vadd.f32 %v1004_v37, %v843_v17 }
 0x14c   : > { %v1282_v21 = vpop.f32.mrf.mxu0  ;;  %v1371_v22 = vpop.f32.mrf.mxu1  ;;  %2052 = vmatpush.bf16.msrb.mxu2 %v3737_v6  ;;  %v637_v6 = vmul.f32 %v4431_v25, %v4665_v55 }
 0x14d   : > { %v1283_v30 = vadd.f32 %v1282_v21, %v4629_v39  ;;  %v1372_v31 = vadd.f32 %v1371_v22, %v4631_v16  ;;  %v4724_v27 = vpop.permute.xlu2 %597  ;;  %v1072_v19 = vmul.f32 %v4446_v36, %v1036_v59  ;;  %v636_v21 = vmul.f32 %v4431_v25, %v4708_v3  ;;  %v3924_v3 = vld [vmem:[%s5656_s6 + $0xcc] sm:$0xf0] }
 0x14e   : > { %v830_v48 = vadd.f32 %v798_v34, %v637_v6 }
 0x14f   : > { %v2766_v58 = vmax.f32 %v1283_v30, %v2765_v20  ;;  %v2802_v57 = vmax.f32 %v4675_v32, %v1372_v31  ;;  %v1447_v4 = vpack.c.bf16 %v1372_v31, %v1283_v30  ;;  %v651_v20 = vmul.f32 %v4431_v25, %v4695_v56 }
 0x150   : > { %v990_v30 = vmul.f32 %v4436_v29, %v4702_v10 }
 0x151   : > { %1479 = vst [vmem:[%s4655_s20 + $0x18] sm:$0xff] %v1447_v4  ;;  %v1610_v41 = vunpack.c.l.b16 %v1447_v4  ;;  %v1611_v42 = vunpack.c.h.b16 %v1447_v4  ;;  %v700_v28 = vpop.permute.xlu1 %699  ;;  %4087 = vset.pattern.permute.xlu2 %v4134_v0  ;;  %v844_v26 = vadd.f32 %v812_v12, %v651_v20  ;;  %v3956_v4 = vld [vmem:[%s5656_s6 + $0x1cc] sm:$0xf0] }
 0x152   : > { %4086 = vset.pattern.permute.xlu1 %v4135_v1  ;;  %v1315_v32 = vpop.f32.mrf.mxu2  ;;  %v1404_v11 = vpop.f32.mrf.mxu3  ;;  %972 = vperm.xlu2 %4087, %v4636_v52   ;;  %v3958_v1 = vld [vmem:[%s5656_s6 + $0x1e4] sm:$0xf]  ;;  %v797_v5 = vmul.f32 %v4429_v24, %v700_v28  ;;  %v3849_v37 = vor.u32 %v3956_v4, %v3848_v51 }
 0x153   : > { %783 = vperm.xlu1 %4086, %v4713_v13   ;;  %v4754_v35 = vpack.c.b16 %v1610_v41, %v1608_v18  ;;  %v4756_v50 = vpack.c.b16 %v1611_v42, %v1609_v38  ;;  %v1316_v60 = vadd.f32 %v1315_v32, %v4629_v39  ;;  %v1405_v52 = vadd.f32 %v1404_v11, %v4631_v16 }
 0x154   : > { %v3869_v62 = vor.u32 %v3958_v1, %v3866_v61  ;;  %v829_v31 = vadd.f32 %v797_v5, %v636_v21  ;;  %2142 = vmatpush.bf16.msrb.mxu3 %v3849_v37  ;;  %v3922_v61 = vld [vmem:[%s5656_s6 + $0xc4] sm:$0xf]  ;;  %v3850_v21 = vld [vmem:[%s5656_s6 + $0x1d0] sm:$0xf0] }
 0x155   : > { %v4763_v63 = vmax.f32 %v1316_v60, %v2766_v58  ;;  %v4765_v2 = vmax.f32 %v2802_v57, %v1405_v52  ;;  %v1460_v53 = vpack.c.bf16 %v1405_v52, %v1316_v60  ;;  %v4767_v46 = vpop.permute.xlu2 %767  ;;  %v3721_v57 = vor.u32 %v3924_v3, %v3720_v40 }
 0x156   : > { %2319 = vmatpush.bf16.msrb.mxu1 %v3869_v62  ;;  %v1022_v38 = vadd.f32 %v990_v30, %v829_v31  ;;  %v3722_v62 = vld [vmem:[%s5656_s6 + $0xd0] sm:$0xf0] }
 0x157   : > { %1492 = vst [vmem:[%s4655_s20 + $0x80] sm:$0xff] %v1460_v53  ;;  %2053 = vmatpush.bf16.msrb.mxu2 %v3721_v57  ;;  %v1636_v28 = vunpack.c.l.b16 %v1460_v53  ;;  %v1637_v32 = vunpack.c.h.b16 %v1460_v53 }
 0x158   : > { %v1058_v5 = vmul.f32 %v4446_v36, %v1022_v38 }
 0x15a   : > { %v953_v22 = vpop.permute.xlu1 %952  ;;  %v1317_v56 = vpop.f32.mrf.mxu2  ;;  %v1094_v3 = vadd.f32 %v4460_v44, %v1058_v5 }
 0x15b   : > { %v1005_v33 = vmul.f32 %v4436_v29, %v953_v22  ;;  %4088 = vset.pattern.permute.xlu1 %v4134_v0  ;;  %v1406_v7 = vpop.f32.mrf.mxu3  ;;  %v1318_v10 = vadd.f32 %v1317_v56, %v4629_v39  ;;  %v1108_v0 = vadd.f32 %v4460_v44, %v1072_v19  ;;  %v3725_v19 = vor.u32 %v3922_v61, %v3722_v62  ;;  %v905_v62 = vpop.permute.xlu0 %904 }
 0x15c   : > { %v1407_v58 = vadd.f32 %v1406_v7, %v4631_v16  ;;  %976 = vperm.xlu1 %4088, %v4713_v13   ;;  %v1126_v57 = vmax.f32 %v1094_v3, 0.0 }
 0x15d   : > { %v1037_v17 = vadd.f32 %v1005_v33, %v844_v26  ;;  %v2768_v14 = vmax.f32 %v1318_v10, %v4763_v63  ;;  %v1140_v59 = vmax.f32 %v1108_v0, 0.0  ;;  %v3954_v63 = vld [vmem:[%s5656_s6 + $0x1c4] sm:$0xf]  ;;  %2231 = vmatpush.bf16.msrb.mxu0 %v3725_v19 }
 0x15e   : > { %v2805_v13 = vmax.f32 %v1407_v58, %v4765_v2  ;;  %v1461_v18 = vpack.c.bf16 %v1407_v58, %v1318_v10  ;;  %v4805_v42 = vpop.permute.xlu2 %532  ;;  %v3853_v31 = vor.u32 %v3954_v63, %v3850_v21 }
 0x15f   : > { %v1073_v41 = vmul.f32 %v4446_v36, %v1037_v17 }
 0x160   : > { %1493 = vst [vmem:[%s4655_s20 + $0x88] sm:$0xff] %v1461_v18  ;;  %v1638_v55 = vunpack.c.l.b16 %v1461_v18  ;;  %v1639_v11 = vunpack.c.h.b16 %v1461_v18  ;;  %2320 = vmatpush.bf16.msrb.mxu1 %v3853_v31 }
 0x161   : > { %v1285_v45 = vpop.f32.mrf.mxu0  ;;  %v1374_v47 = vpop.f32.mrf.mxu1  ;;  %v1109_v1 = vadd.f32 %v4460_v44, %v1073_v41 }
 0x162   : > { %v1286_v60 = vadd.f32 %v1285_v45, %v4629_v39  ;;  %v1375_v52 = vadd.f32 %v1374_v47, %v4631_v16  ;;  %v897_v43 = vpop.permute.xlu1 %896  ;;  %v4820_v2 = vpack.c.b16 %v1638_v55, %v1636_v28  ;;  %v4822_v53 = vpack.c.b16 %v1639_v11, %v1637_v32  ;;  %v3704_v32 = vld [vmem:[%s5656_s6 + $0xa0] sm:$0xf]  ;;  %v3920_v55 = vld [vmem:[%s5656_s6 + $0xac] sm:$0xf0]  ;;  %v3918_v47 = vld [vmem:[%s5656_s6 + $0xa4] sm:$0xf] }
 0x163   : > { %v991_v12 = vmul.f32 %v4436_v29, %v897_v43  ;;  %v1141_v20 = vmax.f32 %v1109_v1, 0.0  ;;  %v3832_v11 = vld [vmem:[%s5656_s6 + $0x1a0] sm:$0xf]  ;;  %v3952_v45 = vld [vmem:[%s5656_s6 + $0x1ac] sm:$0xf0] }
 0x164   : > { %v2769_v22 = vmax.f32 %v1286_v60, %v2768_v14  ;;  %v1448_v26 = vpack.c.bf16 %v1375_v52, %v1286_v60  ;;  %v2803_v30 = vmax.f32 %v2801_v8, %v1375_v52  ;;  %v3706_v1 = vld [vmem:[%s5656_s6 + $0xb0] sm:$0xf0]  ;;  %v3833_v5 = vor.u32 %v3952_v45, %v3832_v11  ;;  %v3816_v11 = vld [vmem:[%s5656_s6 + $0x180] sm:$0xf] }
 0x165   : > { %v1023_v33 = vadd.f32 %v991_v12, %v830_v48  ;;  %v1160_v56 = vpack.c.bf16 %v1141_v20, %v1140_v59  ;;  %v3705_v48 = vor.u32 %v3920_v55, %v3704_v32  ;;  %v3950_v12 = vld [vmem:[%s5656_s6 + $0x1a4] sm:$0xf]  ;;  %v3834_v20 = vld [vmem:[%s5656_s6 + $0x1b0] sm:$0xf0]  ;;  %v3709_v19 = vor.u32 %v3918_v47, %v3706_v1 }
 0x166   : > { %1480 = vst [vmem:[%s4655_s20 + $0x20] sm:$0xff] %v1448_v26  ;;  %v2806_v7 = vmax.f32 %v2803_v30, %v2805_v13  ;;  %v1612_v37 = vunpack.c.l.b16 %v1448_v26  ;;  %v1613_v14 = vunpack.c.h.b16 %v1448_v26  ;;  %v3837_v21 = vor.u32 %v3950_v12, %v3834_v20  ;;  %2143 = vmatpush.bf16.msrb.mxu3 %v3833_v5  ;;  %v3946_v12 = vld [vmem:[%s5656_s6 + $0x184] sm:$0xf] }
 0x167   : > { %v1059_v40 = vmul.f32 %v4446_v36, %v1023_v33  ;;  %1334 = vmatmul.bf16.gmra.mxu2 %v1160_v56  ;;  %1423 = vmatmul.bf16.gmra.mxu3 %v1160_v56  ;;  %v4835_v51 = vpop.permute.xlu2 %956  ;;  %v799_v30 = vmul.f32 %v4429_v24, %v4565_v23  ;;  %v814_v47 = vmul.f32 %v4429_v24, %v4767_v46 }
 0x168   : > { %2054 = vmatpush.bf16.msrb.mxu2 %v3705_v48  ;;  %2232 = vmatpush.bf16.msrb.mxu0 %v3709_v19  ;;  %v3948_v48 = vld [vmem:[%s5656_s6 + $0x18c] sm:$0xf0] }
 0x169   : > { %v1287_v10 = vpop.f32.mrf.mxu0  ;;  %v1376_v58 = vpop.f32.mrf.mxu1  ;;  %v1095_v9 = vadd.f32 %v4460_v44, %v1059_v40  ;;  %2321 = vmatpush.bf16.msrb.mxu1 %v3837_v21  ;;  %v3817_v45 = vor.u32 %v3948_v48, %v3816_v11  ;;  %v3672_v48 = vld [vmem:[%s5656_s6 + $0x60] sm:$0xf] }
 0x16a   : > { %v1288_v54 = vadd.f32 %v1287_v10, %v4629_v39  ;;  %v1377_v8 = vadd.f32 %v1376_v58, %v4631_v16 }
 0x16b   : > { %v764_v0 = vpop.permute.xlu1 %763  ;;  %v1127_v4 = vmax.f32 %v1095_v9, 0.0  ;;  %2144 = vmatpush.bf16.msrb.mxu3 %v3817_v45  ;;  %v3800_v45 = vld [vmem:[%s5656_s6 + $0x160] sm:$0xf] }
 0x16c   : > { %v2770_v6 = vmax.f32 %v1288_v54, %v2769_v22  ;;  %v2807_v36 = vmax.f32 %v1377_v8, %v2806_v7  ;;  %v1449_v34 = vpack.c.bf16 %v1377_v8, %v1288_v54  ;;  %v652_v8 = vmul.f32 %v4431_v25, %v4724_v27 }
 0x16d   : > { %v1153_v17 = vpack.c.bf16 %v1127_v4, %v1126_v57  ;;  %v813_v23 = vmul.f32 %v4429_v24, %v764_v0  ;;  %v1006_v27 = vmul.f32 %v4436_v29, %v4835_v51  ;;  %v993_v0 = vmul.f32 %v4436_v29, %v905_v62  ;;  %v3914_v62 = vld [vmem:[%s5656_s6 + $0x84] sm:$0xf] }
 0x16e   : > { %1481 = vst [vmem:[%s4655_s20 + $0x28] sm:$0xff] %v1449_v34  ;;  %v1614_v13 = vunpack.c.l.b16 %v1449_v34  ;;  %v1615_v18 = vunpack.c.h.b16 %v1449_v34  ;;  %v1320_v38 = vpop.f32.mrf.mxu2  ;;  %v1409_v41 = vpop.f32.mrf.mxu3 }
 0x16f   : > { %v1321_v44 = vadd.f32 %v1320_v38, %v4629_v39  ;;  %v1410_v28 = vadd.f32 %v1409_v41, %v4631_v16  ;;  %1299 = vmatmul.bf16.gmra.mxu0 %v1153_v17  ;;  %1388 = vmatmul.bf16.gmra.mxu1 %v1153_v17  ;;  %v901_v63 = vpop.permute.xlu2 %900  ;;  %v603_v34 = vpop.permute.xlu0 %602  ;;  %v639_v17 = vmul.f32 %v4431_v25, %v4805_v42  ;;  %v3916_v42 = vld [vmem:[%s5656_s6 + $0x8c] sm:$0xf0] }
 0x170   : > { %v4861_v59 = vpack.c.b16 %v1614_v13, %v1612_v37  ;;  %v4863_v60 = vpack.c.b16 %v1615_v18, %v1613_v14  ;;  %v992_v3 = vmul.f32 %v4436_v29, %v901_v63  ;;  %v845_v38 = vadd.f32 %v813_v23, %v652_v8  ;;  %v3690_v63 = vld [vmem:[%s5656_s6 + $0x90] sm:$0xf0] }
 0x171   : > { %v4865_v52 = vmax.f32 %v1321_v44, %v2770_v6  ;;  %v4867_v43 = vmax.f32 %v1410_v28, %v2807_v36  ;;  %v1462_v61 = vpack.c.bf16 %v1410_v28, %v1321_v44  ;;  %v3688_v44 = vld [vmem:[%s5656_s6 + $0x80] sm:$0xf]  ;;  %v653_v20 = vmul.f32 %v4431_v25, %v603_v34 }
 0x172   : > { %v4909_v28 = vld [vmem:[%s5652_s2] ss:$0 sm:$0xff]  ;;  %v3689_v55 = vor.u32 %v3916_v42, %v3688_v44  ;;  %v1038_v1 = vadd.f32 %v1006_v27, %v845_v38 }
 0x173   : > { %1494 = vst [vmem:[%s4655_s20 + $0x90] sm:$0xff] %v1462_v61  ;;  %v1640_v57 = vunpack.c.l.b16 %v1462_v61  ;;  %v1641_v4 = vunpack.c.h.b16 %v1462_v61 }
 0x174   : > { %v528_v22 = vpop.permute.xlu1 %527  ;;  %2055 = vmatpush.bf16.msrb.mxu2 %v3689_v55 }
 0x175   : > { %v638_v26 = vmul.f32 %v4431_v25, %v528_v22  ;;  %v3693_v22 = vor.u32 %v3914_v62, %v3690_v63 }
 0x176   : > { %v1322_v31 = vpop.f32.mrf.mxu2  ;;  %v1411_v33 = vpop.f32.mrf.mxu3 }
 0x177   : > { %v1323_v56 = vadd.f32 %v1322_v31, %v4629_v39  ;;  %v1412_v7 = vadd.f32 %v1411_v33, %v4631_v16  ;;  %v831_v40 = vadd.f32 %v799_v30, %v638_v26  ;;  %v4932_v21 = vpop.permute.xlu0 %537  ;;  %v3818_v26 = vld [vmem:[%s5656_s6 + $0x190] sm:$0xf0]  ;;  %v4941_v31 = vld [vmem:[%s5653_s3] ss:$0 sm:$0xff]  ;;  %2233 = vmatpush.bf16.msrb.mxu0 %v3693_v22 }
 0x178   : > { %v4884_v54 = vpop.permute.xlu2 %612 }
 0x179   : > { %v2772_v10 = vmax.f32 %v1323_v56, %v4865_v52  ;;  %v2809_v58 = vmax.f32 %v1412_v7, %v4867_v43  ;;  %v1463_v9 = vpack.c.bf16 %v1412_v7, %v1323_v56  ;;  %v1024_v37 = vadd.f32 %v992_v3, %v831_v40 }
 0x17a   : > { %v3821_v56 = vor.u32 %v3946_v12, %v3818_v26  ;;  %v3910_v26 = vld [vmem:[%s5656_s6 + $0x64] sm:$0xf] }
 0x17b   : > { %1495 = vst [vmem:[%s4655_s20 + $0x98] sm:$0xff] %v1463_v9  ;;  %v1642_v6 = vunpack.c.l.b16 %v1463_v9  ;;  %v1643_v36 = vunpack.c.h.b16 %v1463_v9  ;;  %v1060_v32 = vmul.f32 %v4909_v28, %v1024_v37  ;;  %v1074_v9 = vmul.f32 %v4909_v28, %v1038_v1 }
 0x17c   : > { %2322 = vmatpush.bf16.msrb.mxu1 %v3821_v56 }
 0x17d   : > { %v712_v14 = vpop.permute.xlu1 %711  ;;  %v4892_v13 = vpack.c.b16 %v1642_v6, %v1640_v57  ;;  %v4894_v18 = vpack.c.b16 %v1643_v36, %v1641_v4  ;;  %v1096_v33 = vadd.f32 %v4941_v31, %v1060_v32  ;;  %v846_v57 = vadd.f32 %v814_v47, %v653_v20 }
 0x17e   : > { %v800_v41 = vmul.f32 %v4429_v24, %v712_v14 }
 0x17f   : > { %v1128_v6 = vmax.f32 %v1096_v33, 0.0  ;;  %v969_v11 = vpop.permute.xlu0 %968  ;;  %v3942_v33 = vld [vmem:[%s5656_s6 + $0x164] sm:$0xf] }
 0x180   : > { %v832_v51 = vadd.f32 %v800_v41, %v639_v17 }
 0x181   : > { %v776_v19 = vpop.permute.xlu2 %775 }
 0x182   : > { %v1025_v52 = vadd.f32 %v993_v0, %v832_v51  ;;  %v1325_v43 = vpop.f32.mrf.mxu2  ;;  %v1414_v61 = vpop.f32.mrf.mxu3  ;;  %v655_v0 = vmul.f32 %v4431_v25, %v4884_v54  ;;  %v816_v41 = vmul.f32 %v4429_v24, %v776_v19  ;;  %v3912_v54 = vld [vmem:[%s5656_s6 + $0x6c] sm:$0xf0]  ;;  %v1009_v19 = vmul.f32 %v4436_v29, %v969_v11 }
 0x183   : > { %v1326_v46 = vadd.f32 %v1325_v43, %v4629_v39  ;;  %v1415_v5 = vadd.f32 %v1414_v61, %v4631_v16  ;;  %v3673_v43 = vor.u32 %v3912_v54, %v3672_v48  ;;  %v3944_v61 = vld [vmem:[%s5656_s6 + $0x16c] sm:$0xf0] }
 0x184   : > { %v1061_v30 = vmul.f32 %v4909_v28, %v1025_v52 }
 0x185   : > { %v4944_v7 = vmax.f32 %v1326_v46, %v2772_v10  ;;  %v4946_v40 = vmax.f32 %v1415_v5, %v2809_v58  ;;  %v1464_v3 = vpack.c.bf16 %v1415_v5, %v1326_v46  ;;  %v1110_v58 = vadd.f32 %v4941_v31, %v1074_v9  ;;  %2056 = vmatpush.bf16.msrb.mxu2 %v3673_v43 }
 0x186   : > { %v961_v8 = vpop.permute.xlu1 %960  ;;  %v1097_v23 = vadd.f32 %v4941_v31, %v1061_v30  ;;  %v3801_v46 = vor.u32 %v3944_v61, %v3800_v45  ;;  %v848_v5 = vadd.f32 %v816_v41, %v655_v0  ;;  %v3674_v30 = vld [vmem:[%s5656_s6 + $0x70] sm:$0xf0] }
 0x187   : > { %1496 = vst [vmem:[%s4655_s20 + $0xa0] sm:$0xff] %v1464_v3  ;;  %v1007_v4 = vmul.f32 %v4436_v29, %v961_v8  ;;  %v1644_v47 = vunpack.c.l.b16 %v1464_v3  ;;  %v1645_v1 = vunpack.c.h.b16 %v1464_v3  ;;  %v1142_v52 = vmax.f32 %v1110_v58, 0.0  ;;  %v3802_v3 = vld [vmem:[%s5656_s6 + $0x170] sm:$0xf0] }
 0x188   : > { %v1129_v36 = vmax.f32 %v1097_v23, 0.0  ;;  %2145 = vmatpush.bf16.msrb.mxu3 %v3801_v46  ;;  %v3805_v9 = vor.u32 %v3942_v33, %v3802_v3  ;;  %v1041_v8 = vadd.f32 %v1009_v19, %v848_v5  ;;  %v3906_v33 = vld [vmem:[%s5656_s6 + $0x44] sm:$0xf] }
 0x189   : > { %v1039_v34 = vadd.f32 %v1007_v4, %v846_v57  ;;  %v4959_v44 = vpop.permute.xlu2 %715 }
 0x18a   : > { %v1327_v17 = vpop.f32.mrf.mxu2  ;;  %v1416_v10 = vpop.f32.mrf.mxu3  ;;  %v1154_v37 = vpack.c.bf16 %v1129_v36, %v1128_v6  ;;  %2323 = vmatpush.bf16.msrb.mxu1 %v3805_v9  ;;  %v1077_v58 = vmul.f32 %v4909_v28, %v1041_v8  ;;  %v3938_v9 = vld [vmem:[%s5656_s6 + $0x144] sm:$0xf]  ;;  %v3786_v8 = vld [vmem:[%s5656_s6 + $0x150] sm:$0xf0] }
 0x18b   : > { %v1075_v14 = vmul.f32 %v4909_v28, %v1039_v34  ;;  %v1328_v38 = vadd.f32 %v1327_v17, %v4629_v39  ;;  %v1417_v27 = vadd.f32 %v1416_v10, %v4631_v16 }
 0x18c   : > { %1304 = vmatmul.bf16.gmra.mxu0 %v1154_v37  ;;  %1393 = vmatmul.bf16.gmra.mxu1 %v1154_v37 }
 0x18d   : > { %v2774_v42 = vmax.f32 %v1328_v38, %v4944_v7  ;;  %v2811_v32 = vmax.f32 %v1417_v27, %v4946_v40  ;;  %v1465_v51 = vpack.c.bf16 %v1417_v27, %v1328_v38  ;;  %v1111_v55 = vadd.f32 %v4941_v31, %v1075_v14  ;;  %v3656_v14 = vld [vmem:[%s5656_s6 + $0x40] sm:$0xf]  ;;  %v3908_v38 = vld [vmem:[%s5656_s6 + $0x4c] sm:$0xf0] }
 0x18e   : > { %v3677_v40 = vor.u32 %v3910_v26, %v3674_v30  ;;  %v3784_v27 = vld [vmem:[%s5656_s6 + $0x140] sm:$0xf] }
 0x18f   : > { %1497 = vst [vmem:[%s4655_s20 + $0xa8] sm:$0xff] %v1465_v51  ;;  %v1646_v62 = vunpack.c.l.b16 %v1465_v51  ;;  %v1647_v63 = vunpack.c.h.b16 %v1465_v51  ;;  %v608_v12 = vpop.permute.xlu1 %607  ;;  %v1143_v20 = vmax.f32 %v1111_v55, 0.0  ;;  %v3940_v51 = vld [vmem:[%s5656_s6 + $0x14c] sm:$0xf0] }
 0x190   : > { %2234 = vmatpush.bf16.msrb.mxu0 %v3677_v40  ;;  %v654_v0 = vmul.f32 %v4431_v25, %v608_v12  ;;  %v3785_v55 = vor.u32 %v3940_v51, %v3784_v27  ;;  %v3658_v40 = vld [vmem:[%s5656_s6 + $0x50] sm:$0xf0] }
 0x191   : > { %v1161_v22 = vpack.c.bf16 %v1143_v20, %v1142_v52  ;;  %v4987_v56 = vpack.c.b16 %v1646_v62, %v1644_v47  ;;  %v4989_v7 = vpack.c.b16 %v1647_v63, %v1645_v1  ;;  %v1113_v47 = vadd.f32 %v4941_v31, %v1077_v58  ;;  %v3626_v51 = vld [vmem:[%s5656_s6 + $0x10] sm:$0xf0] }
 0x192   : > { %v965_v36 = vpop.permute.xlu2 %964  ;;  %2146 = vmatpush.bf16.msrb.mxu3 %v3785_v55  ;;  %v3661_v3 = vor.u32 %v3906_v33, %v3658_v40  ;;  %v3930_v55 = vld [vmem:[%s5656_s6 + $0x104] sm:$0xf] }
 0x193   : > { %1339 = vmatmul.bf16.gmra.mxu2 %v1161_v22  ;;  %1428 = vmatmul.bf16.gmra.mxu3 %v1161_v22  ;;  %v1145_v46 = vmax.f32 %v1113_v47, 0.0 }
 0x194   : > { %2235 = vmatpush.bf16.msrb.mxu0 %v3661_v3 }
 0x195   : > { %v1290_v23 = vpop.f32.mrf.mxu0  ;;  %v1379_v57 = vpop.f32.mrf.mxu1 }
 0x196   : > { %v1291_v4 = vadd.f32 %v1290_v23, %v4629_v39  ;;  %v1380_v6 = vadd.f32 %v1379_v57, %v4631_v16 }
 0x198   : > { %v4996_v34 = vmax.f32 %v1291_v4, %v2774_v42  ;;  %v4998_v17 = vmax.f32 %v1380_v6, %v2811_v32  ;;  %v1450_v10 = vpack.c.bf16 %v1380_v6, %v1291_v4  ;;  %v772_v37 = vpop.permute.xlu1 %771  ;;  %v1008_v42 = vmul.f32 %v4436_v29, %v965_v36  ;;  %v3902_v36 = vld [vmem:[%s5656_s6 + $0x24] sm:$0xf] }
 0x199   : > { %v815_v41 = vmul.f32 %v4429_v24, %v772_v37  ;;  %v3657_v32 = vor.u32 %v3908_v38, %v3656_v14  ;;  %v3789_v6 = vor.u32 %v3938_v9, %v3786_v8  ;;  %v3934_v37 = vld [vmem:[%s5656_s6 + $0x124] sm:$0xf]  ;;  %v3770_v14 = vld [vmem:[%s5656_s6 + $0x130] sm:$0xf0] }
 0x19a   : > { %1482 = vst [vmem:[%s4655_s20 + $0x30] sm:$0xff] %v1450_v10  ;;  %v1616_v5 = vunpack.c.l.b16 %v1450_v10  ;;  %v1617_v19 = vunpack.c.h.b16 %v1450_v10  ;;  %v3642_v10 = vld [vmem:[%s5656_s6 + $0x30] sm:$0xf0]  ;;  %v913_v38 = vpop.permute.xlu2 %912  ;;  %v3773_v27 = vor.u32 %v3934_v37, %v3770_v14 }
 0x19b   : > { %v847_v11 = vadd.f32 %v815_v41, %v654_v0  ;;  %2057 = vmatpush.bf16.msrb.mxu2 %v3657_v32  ;;  %2324 = vmatpush.bf16.msrb.mxu1 %v3789_v6  ;;  %v3645_v58 = vor.u32 %v3902_v36, %v3642_v10  ;;  %v3898_v32 = vld [vmem:[%s5656_s6 + $0x4] sm:$0xf]  ;;  %v3624_v6 = vld [vmem:[%s5656_s6] sm:$0xf]  ;;  %v3900_v36 = vld [vmem:[%s5656_s6 + $0xc] sm:$0xf0] }
 0x19c   : > { %v3752_v10 = vld [vmem:[%s5656_s6 + $0x100] sm:$0xf] }
 0x19d   : > { %v1040_v48 = vadd.f32 %v1008_v42, %v847_v11  ;;  %v1292_v54 = vpop.f32.mrf.mxu0  ;;  %v1381_v45 = vpop.f32.mrf.mxu1  ;;  %2236 = vmatpush.bf16.msrb.mxu0 %v3645_v58  ;;  %v995_v11 = vmul.f32 %v4436_v29, %v913_v38  ;;  %v3625_v38 = vor.u32 %v3900_v36, %v3624_v6 }
 0x19e   : > { %v5019_v1 = vadd.f32 %v1292_v54, %v4629_v39  ;;  %v5022_v52 = vadd.f32 %v1381_v45, %v4631_v16  ;;  %v3754_v54 = vld [vmem:[%s5656_s6 + $0x110] sm:$0xf0] }
 0x19f   : > { %v1076_v43 = vmul.f32 %v4909_v28, %v1040_v48  ;;  %2325 = vmatpush.bf16.msrb.mxu1 %v3773_v27  ;;  %v3629_v48 = vor.u32 %v3898_v32, %v3626_v51  ;;  %v3757_v47 = vor.u32 %v3930_v55, %v3754_v54  ;;  %v3932_v27 = vld [vmem:[%s5656_s6 + $0x10c] sm:$0xf0]  ;;  %v780_v51 = vpop.permute.xlu0 %779 }
 0x1a0   : > { %v2776_v61 = vmax.f32 %v5019_v1, %v4996_v34  ;;  %v2813_v62 = vmax.f32 %v5022_v52, %v4998_v17  ;;  %v1451_v63 = vpack.c.bf16 %v5022_v52, %v5019_v1 }
 0x1a1   : > { %v543_v12 = vpop.permute.xlu1 %542  ;;  %v1112_v20 = vadd.f32 %v4941_v31, %v1076_v43  ;;  %2237 = vmatpush.bf16.msrb.mxu0 %v3629_v48  ;;  %v3640_v43 = vld [vmem:[%s5656_s6 + $0x20] sm:$0xf] }
 0x1a2   : > { %1483 = vst [vmem:[%s4655_s20 + $0x38] sm:$0xff] %v1451_v63  ;;  %v1618_v22 = vunpack.c.l.b16 %v1451_v63  ;;  %v1619_v26 = vunpack.c.h.b16 %v1451_v63  ;;  %v641_v41 = vmul.f32 %v4431_v25, %v543_v12  ;;  %v3904_v63 = vld [vmem:[%s5656_s6 + $0x2c] sm:$0xf0]  ;;  %v3768_v12 = vld [vmem:[%s5656_s6 + $0x120] sm:$0xf] }
 0x1a3   : > { %v1144_v30 = vmax.f32 %v1112_v20, 0.0  ;;  %v640_v20 = vmul.f32 %v4431_v25, %v4932_v21  ;;  %2326 = vmatpush.bf16.msrb.mxu1 %v3757_v47  ;;  %v623_v8 = vpop.permute.xlu2 %622 }
 0x1a4   : > { %v5045_v23 = vpack.c.b16 %v1618_v22, %v1616_v5  ;;  %v5047_v57 = vpack.c.b16 %v1619_v26, %v1617_v19  ;;  %v3641_v19 = vor.u32 %v3904_v63, %v3640_v43  ;;  %v3936_v22 = vld [vmem:[%s5656_s6 + $0x12c] sm:$0xf0] }
 0x1a5   : > { %v1162_v4 = vpack.c.bf16 %v1145_v46, %v1144_v30  ;;  %v801_v46 = vmul.f32 %v4429_v24, %v4959_v44  ;;  %v3769_v26 = vor.u32 %v3936_v22, %v3768_v12  ;;  %v817_v12 = vmul.f32 %v4429_v24, %v780_v51 }
 0x1a6   : > { %2058 = vmatpush.bf16.msrb.mxu2 %v3641_v19 }
 0x1a7   : > { %1344 = vmatmul.bf16.gmra.mxu2 %v1162_v4  ;;  %1433 = vmatmul.bf16.gmra.mxu3 %v1162_v4  ;;  %v833_v33 = vadd.f32 %v801_v46, %v640_v20 }
 0x1a8   : > { %2147 = vmatpush.bf16.msrb.mxu3 %v3769_v26 }
 0x1aa   : > { %v720_v0 = vpop.permute.xlu1 %719  ;;  %2059 = vmatpush.bf16.msrb.mxu2 %v3625_v38 }
 0x1ab   : > { %v802_v42 = vmul.f32 %v4429_v24, %v720_v0  ;;  %v3753_v0 = vor.u32 %v3932_v27, %v3752_v10 }
 0x1ad   : > { %v834_v45 = vadd.f32 %v802_v42, %v641_v41  ;;  %2148 = vmatpush.bf16.msrb.mxu3 %v3753_v0 }
 0x1af   : > { %v1027_v5 = vadd.f32 %v995_v11, %v834_v45 }
 0x1b1   : > { %v1063_v40 = vmul.f32 %v4909_v28, %v1027_v5  ;;  %v973_v5 = vpop.permute.xlu2 %972 }
 0x1b2   : > { %v1010_v17 = vmul.f32 %v4436_v29, %v973_v5 }
 0x1b3   : > { %v909_v30 = vpop.permute.xlu1 %908  ;;  %v1099_v44 = vadd.f32 %v4941_v31, %v1063_v40 }
 0x1b4   : > { %v994_v3 = vmul.f32 %v4436_v29, %v909_v30 }
 0x1b5   : > { %v1131_v14 = vmax.f32 %v1099_v44, 0.0 }
 0x1b6   : > { %v1026_v21 = vadd.f32 %v994_v3, %v833_v33  ;;  %v657_v33 = vmul.f32 %v4431_v25, %v623_v8 }
 0x1b8   : > { %v1062_v9 = vmul.f32 %v4909_v28, %v1026_v21 }
 0x1ba   : > { %v1098_v4 = vadd.f32 %v4941_v31, %v1062_v9 }
 0x1bc   : > { %v618_v37 = vpop.permute.xlu1 %617  ;;  %v1130_v58 = vmax.f32 %v1098_v4, 0.0 }
 0x1bd   : > { %v656_v20 = vmul.f32 %v4431_v25, %v618_v37 }
 0x1be   : > { %v1155_v41 = vpack.c.bf16 %v1131_v14, %v1130_v58 }
 0x1bf   : > { %v1330_v42 = vpop.f32.mrf.mxu2  ;;  %v1419_v32 = vpop.f32.mrf.mxu3 }
 0x1c0   : > { %v1331_v55 = vadd.f32 %v1330_v42, %v4629_v39  ;;  %v1420_v11 = vadd.f32 %v1419_v32, %v4631_v16  ;;  %1309 = vmatmul.bf16.gmra.mxu0 %v1155_v41  ;;  %1398 = vmatmul.bf16.gmra.mxu1 %v1155_v41 }
 0x1c1   : > { %v1295_v48 = vpop.f32.mrf.mxu0  ;;  %v1384_v54 = vpop.f32.mrf.mxu1 }
 0x1c2   : > { %v2778_v45 = vmax.f32 %v2776_v61, %v1331_v55  ;;  %v2815_v47 = vmax.f32 %v2813_v62, %v1420_v11  ;;  %v1466_v43 = vpack.c.bf16 %v1420_v11, %v1331_v55  ;;  %v1296_v63 = vadd.f32 %v1295_v48, %v4629_v39  ;;  %v3744_v55 = vld [vmem:[%s5656_s6 + $0xe8] sm:$0xf]  ;;  %v3929_v11 = vld [vmem:[%s5656_s6 + $0xf4] sm:$0xf0] }
 0x1c3   : > { %v1385_v46 = vadd.f32 %v1384_v54, %v4631_v16  ;;  %v849_v61 = vadd.f32 %v817_v12, %v656_v20  ;;  %v3745_v48 = vor.u32 %v3929_v11, %v3744_v55  ;;  %v3872_v54 = vld [vmem:[%s5656_s6 + $0x1e8] sm:$0xf]  ;;  %v3959_v12 = vld [vmem:[%s5656_s6 + $0x1ec] sm:$0xf] }
 0x1c4   : > { %1498 = vst [vmem:[%s4655_s20 + $0xb0] sm:$0xff] %v1466_v43  ;;  %v2780_v19 = vmax.f32 %v2778_v45, %v1296_v63  ;;  %v1648_v36 = vunpack.c.l.b16 %v1466_v43  ;;  %v1649_v58 = vunpack.c.h.b16 %v1466_v43  ;;  %v3927_v43 = vld [vmem:[%s5656_s6 + $0xec] sm:$0xf] }
 0x1c5   : > { %v2817_v22 = vmax.f32 %v2815_v47, %v1385_v46  ;;  %v5122_v34 = vpack.c.bf16 %v1385_v46, %v1296_v63  ;;  %v784_v1 = vpop.permute.xlu1 %783  ;;  %v1042_v6 = vadd.f32 %v1010_v17, %v849_v61  ;;  %2408 = vmatpush.bf16.msra.mxu2 %v3745_v48  ;;  %v3746_v63 = vld [vmem:[%s5656_s6 + $0xf8] sm:$0xf0] }
 0x1c6   : > { %v818_v10 = vmul.f32 %v4429_v24, %v784_v1  ;;  %v3749_v5 = vor.u32 %v3927_v43, %v3746_v63  ;;  %v3923_v63 = vld [vmem:[%s5656_s6 + $0xcc] sm:$0xf] }
 0x1c7   : > { %1484 = vst [vmem:[%s4655_s20 + $0x40] sm:$0xff] %v5122_v34  ;;  %v1332_v52 = vpop.f32.mrf.mxu2  ;;  %v1421_v62 = vpop.f32.mrf.mxu3  ;;  %v1078_v32 = vmul.f32 %v4909_v28, %v1042_v6  ;;  %v3925_v6 = vld [vmem:[%s5656_s6 + $0xd4] sm:$0xf0] }
 0x1c8   : > { %v1333_v26 = vadd.f32 %v1332_v52, %v4629_v39  ;;  %v1422_v30 = vadd.f32 %v1421_v62, %v4631_v16  ;;  %v850_v51 = vadd.f32 %v818_v10, %v657_v33  ;;  %2586 = vmatpush.bf16.msra.mxu0 %v3749_v5 }
 0x1c9   : > { %v1297_v40 = vpop.f32.mrf.mxu0  ;;  %v1386_v3 = vpop.f32.mrf.mxu1  ;;  %v1114_v46 = vadd.f32 %v4941_v31, %v1078_v32 }
 0x1ca   : > { %v2782_v21 = vmax.f32 %v2780_v19, %v1333_v26  ;;  %v2819_v9 = vmax.f32 %v2817_v22, %v1422_v30  ;;  %v1467_v44 = vpack.c.bf16 %v1422_v30, %v1333_v26  ;;  %v1298_v4 = vadd.f32 %v1297_v40, %v4629_v39  ;;  %v3874_v19 = vld [vmem:[%s5656_s6 + $0x1f8] sm:$0xf0] }
 0x1cb   : > { %v1387_v37 = vadd.f32 %v1386_v3, %v4631_v16  ;;  %v3877_v22 = vor.u32 %v3959_v12, %v3874_v19  ;;  %v1146_v61 = vmax.f32 %v1114_v46, 0.0  ;;  %v3730_v12 = vld [vmem:[%s5656_s6 + $0xd8] sm:$0xf0] }
 0x1cc   : > { %1499 = vst [vmem:[%s4655_s20 + $0xb8] sm:$0xff] %v1467_v44  ;;  %v1650_v14 = vunpack.c.l.b16 %v1467_v44  ;;  %v1651_v38 = vunpack.c.h.b16 %v1467_v44  ;;  %v2777_v27 = vmax.f32 %v1298_v4, %v2782_v21 }
 0x1cd   : > { %v2814_v25 = vmax.f32 %v1387_v37, %v2819_v9  ;;  %v5134_v8 = vpack.c.bf16 %v1387_v37, %v1298_v4  ;;  %2675 = vmatpush.bf16.msra.mxu1 %v3877_v22  ;;  %v3728_v4 = vld [vmem:[%s5656_s6 + $0xc8] sm:$0xf]  ;;  %v3733_v22 = vor.u32 %v3923_v63, %v3730_v12 }
 0x1ce   : > { %v977_v0 = vpop.permute.xlu1 %976  ;;  %v5136_v41 = vpack.c.b16 %v1650_v14, %v1648_v36  ;;  %v5138_v42 = vpack.c.b16 %v1651_v38, %v1649_v58  ;;  %v3856_v36 = vld [vmem:[%s5656_s6 + $0x1c8] sm:$0xf]  ;;  %v3729_v37 = vor.u32 %v3925_v6, %v3728_v4  ;;  %v3957_v58 = vld [vmem:[%s5656_s6 + $0x1d4] sm:$0xf0] }
 0x1cf   : > { %1485 = vst [vmem:[%s4655_s20 + $0x48] sm:$0xff] %v5134_v8  ;;  %v1011_v24 = vmul.f32 %v4436_v29, %v977_v0  ;;  %v3961_v29 = vld [vmem:[%s5656_s6 + $0x1f4] sm:$0xf0]  ;;  %2587 = vmatpush.bf16.msra.mxu0 %v3733_v22 }
 0x1d0   : > { %2238 = vmatmul.bf16.vlgmr.msrb.gmra.mxu0 %v4687_v15  ;;  %2327 = vmatmul.bf16.vlgmr.msrb.gmra.mxu1 %v4689_v49  ;;  %v3873_v47 = vor.u32 %v3961_v29, %v3872_v54 }
 0x1d1   : > { %v1043_v45 = vadd.f32 %v1011_v24, %v850_v51  ;;  %2409 = vmatpush.bf16.msra.mxu2 %v3729_v37  ;;  %v3921_v37 = vld [vmem:[%s5656_s6 + $0xb4] sm:$0xf0] }
 0x1d2   : > { %2497 = vmatpush.bf16.msra.mxu3 %v3873_v47 }
 0x1d3   : > { %v1079_v20 = vmul.f32 %v4909_v28, %v1043_v45 }
 0x1d5   : > { %v1115_v1 = vadd.f32 %v4941_v31, %v1079_v20  ;;  %v3955_v20 = vld [vmem:[%s5656_s6 + $0x1cc] sm:$0xf] }
 0x1d7   : > { %v1147_v17 = vmax.f32 %v1115_v1, 0.0  ;;  %v3858_v1 = vld [vmem:[%s5656_s6 + $0x1d8] sm:$0xf0] }
 0x1d9   : > { %v1163_v52 = vpack.c.bf16 %v1147_v17, %v1146_v61 }
 0x1db   : > { %1349 = vmatmul.bf16.gmra.mxu2 %v1163_v52  ;;  %1438 = vmatmul.bf16.gmra.mxu3 %v1163_v52  ;;  %v3861_v52 = vor.u32 %v3955_v20, %v3858_v1 }
 0x1dd   : > { %2676 = vmatpush.bf16.msra.mxu1 %v3861_v52 }
 0x1e0   : > { %2243 = vmatmul.bf16.gmra.mxu0 %v4754_v35  ;;  %2332 = vmatmul.bf16.gmra.mxu1 %v4756_v50 }
 0x1ea   : > { %v1335_v28 = vpop.f32.mrf.mxu2  ;;  %v1424_v62 = vpop.f32.mrf.mxu3 }
 0x1eb   : > { %v1336_v26 = vadd.f32 %v1335_v28, %v4629_v39  ;;  %v1425_v30 = vadd.f32 %v1424_v62, %v4631_v16  ;;  %2060 = vmatmul.bf16.vlgmr.msrb.gmra.mxu2 %v4687_v15  ;;  %2149 = vmatmul.bf16.vlgmr.msrb.gmra.mxu3 %v4689_v49 }
 0x1ec   : > { %v1300_v31 = vpop.f32.mrf.mxu0  ;;  %v1389_v33 = vpop.f32.mrf.mxu1 }
 0x1ed   : > { %v2779_v40 = vmax.f32 %v2777_v27, %v1336_v26  ;;  %v2816_v3 = vmax.f32 %v2814_v25, %v1425_v30  ;;  %v1468_v21 = vpack.c.bf16 %v1425_v30, %v1336_v26  ;;  %v1301_v9 = vadd.f32 %v1300_v31, %v4629_v39 }
 0x1ee   : > { %v1390_v44 = vadd.f32 %v1389_v33, %v4631_v16  ;;  %v3857_v27 = vor.u32 %v3957_v58, %v3856_v36  ;;  %v1622_v31 = vunpack.c.l.b16 %v5134_v8  ;;  %v1623_v33 = vunpack.c.h.b16 %v5134_v8 }
 0x1ef   : > { %1500 = vst [vmem:[%s4655_s20 + $0xc0] sm:$0xff] %v1468_v21  ;;  %v2781_v10 = vmax.f32 %v2779_v40, %v1301_v9  ;;  %v1652_v45 = vunpack.c.l.b16 %v1468_v21  ;;  %v1653_v47 = vunpack.c.h.b16 %v1468_v21  ;;  %v1620_v21 = vunpack.c.l.b16 %v5122_v34 }
 0x1f0   : > { %v2818_v14 = vmax.f32 %v2816_v3, %v1390_v44  ;;  %v5194_v38 = vpack.c.bf16 %v1390_v44, %v1301_v9  ;;  %2248 = vmatmul.bf16.gmra.mxu0 %v4861_v59  ;;  %2337 = vmatmul.bf16.gmra.mxu1 %v4863_v60  ;;  %v1621_v9 = vunpack.c.h.b16 %v5122_v34  ;;  %v3840_v34 = vld [vmem:[%s5656_s6 + $0x1a8] sm:$0xf] }
 0x1f1   : > { %2498 = vmatpush.bf16.msra.mxu3 %v3857_v27  ;;  %v5241_v36 = vpack.c.b16 %v1622_v31, %v1620_v21  ;;  %v3919_v27 = vld [vmem:[%s5656_s6 + $0xac] sm:$0xf] }
 0x1f2   : > { %1486 = vst [vmem:[%s4655_s20 + $0x50] sm:$0xff] %v5194_v38  ;;  %v1337_v25 = vpop.f32.mrf.mxu2  ;;  %v1426_v0 = vpop.f32.mrf.mxu3  ;;  %v5243_v8 = vpack.c.b16 %v1623_v33, %v1621_v9  ;;  %v1624_v52 = vunpack.c.l.b16 %v5194_v38 }
 0x1f3   : > { %v1338_v32 = vadd.f32 %v1337_v25, %v4629_v39  ;;  %v1427_v51 = vadd.f32 %v1426_v0, %v4631_v16  ;;  %v3714_v25 = vld [vmem:[%s5656_s6 + $0xb8] sm:$0xf0] }
 0x1f4   : > { %v1302_v24 = vpop.f32.mrf.mxu0  ;;  %v1391_v55 = vpop.f32.mrf.mxu1 }
 0x1f5   : > { %v2783_v11 = vmax.f32 %v2781_v10, %v1338_v32  ;;  %v2820_v48 = vmax.f32 %v2818_v14, %v1427_v51  ;;  %v1469_v54 = vpack.c.bf16 %v1427_v51, %v1338_v32  ;;  %v1303_v29 = vadd.f32 %v1302_v24, %v4629_v39  ;;  %v3712_v10 = vld [vmem:[%s5656_s6 + $0xa8] sm:$0xf]  ;;  %v3953_v14 = vld [vmem:[%s5656_s6 + $0x1b4] sm:$0xf0] }
 0x1f6   : > { %v1392_v43 = vadd.f32 %v1391_v55, %v4631_v16  ;;  %v3713_v58 = vor.u32 %v3921_v37, %v3712_v10  ;;  %v3841_v51 = vor.u32 %v3953_v14, %v3840_v34  ;;  %v3717_v24 = vor.u32 %v3919_v27, %v3714_v25  ;;  %v3951_v55 = vld [vmem:[%s5656_s6 + $0x1ac] sm:$0xf] }
 0x1f7   : > { %1501 = vst [vmem:[%s4655_s20 + $0xc8] sm:$0xff] %v1469_v54  ;;  %v1654_v46 = vunpack.c.l.b16 %v1469_v54  ;;  %v1655_v5 = vunpack.c.h.b16 %v1469_v54  ;;  %v2784_v19 = vmax.f32 %v1303_v29, %v2783_v11  ;;  %v3842_v11 = vld [vmem:[%s5656_s6 + $0x1b8] sm:$0xf0] }
 0x1f8   : > { %v2821_v61 = vmax.f32 %v1392_v43, %v2820_v48  ;;  %v5217_v17 = vpack.c.bf16 %v1392_v43, %v1303_v29  ;;  %2410 = vmatpush.bf16.msra.mxu2 %v3713_v58  ;;  %v3845_v29 = vor.u32 %v3951_v55, %v3842_v11  ;;  %2499 = vmatpush.bf16.msra.mxu3 %v3841_v51  ;;  %v3917_v55 = vld [vmem:[%s5656_s6 + $0x94] sm:$0xf0]  ;;  %v3824_v11 = vld [vmem:[%s5656_s6 + $0x188] sm:$0xf] }
 0x1f9   : > { %v5219_v28 = vpack.c.b16 %v1654_v46, %v1652_v45  ;;  %v5221_v62 = vpack.c.b16 %v1655_v5, %v1653_v47  ;;  %2588 = vmatpush.bf16.msra.mxu0 %v3717_v24  ;;  %v3696_v24 = vld [vmem:[%s5656_s6 + $0x88] sm:$0xf] }
 0x1fa   : > { %1487 = vst [vmem:[%s4655_s20 + $0x58] sm:$0xff] %v5217_v17  ;;  %2677 = vmatpush.bf16.msra.mxu1 %v3845_v29  ;;  %v1626_v1 = vunpack.c.l.b16 %v5217_v17  ;;  %v3697_v29 = vor.u32 %v3917_v55, %v3696_v24 }
 0x1fb   : > { %2065 = vmatmul.bf16.gmra.mxu2 %v4754_v35  ;;  %2154 = vmatmul.bf16.gmra.mxu3 %v4756_v50 }
 0x1fc   : > { %v5283_v33 = vpack.c.b16 %v1626_v1, %v1624_v52  ;;  %2411 = vmatpush.bf16.msra.mxu2 %v3697_v29  ;;  %v3826_v1 = vld [vmem:[%s5656_s6 + $0x198] sm:$0xf0] }
 0x200   : > { %2253 = vmatmul.bf16.gmra.mxu0 %v5045_v23  ;;  %2342 = vmatmul.bf16.gmra.mxu1 %v5047_v57 }
 0x209   : > { %v1305_v26 = vpop.f32.mrf.mxu0  ;;  %v1394_v30 = vpop.f32.mrf.mxu1 }
 0x20a   : > { %v1306_v40 = vadd.f32 %v1305_v26, %v4629_v39  ;;  %v1395_v3 = vadd.f32 %v1394_v30, %v4631_v16  ;;  %v1625_v26 = vunpack.c.h.b16 %v5194_v38 }
 0x20b   : > { %2070 = vmatmul.bf16.gmra.mxu2 %v4861_v59  ;;  %2159 = vmatmul.bf16.gmra.mxu3 %v4863_v60 }
 0x20c   : > { %v2786_v44 = vmax.f32 %v2784_v19, %v1306_v40  ;;  %v2823_v4 = vmax.f32 %v2821_v61, %v1395_v3  ;;  %v5237_v6 = vpack.c.bf16 %v1395_v3, %v1306_v40  ;;  %v1627_v61 = vunpack.c.h.b16 %v5217_v17 }
 0x20e   : > { %1488 = vst [vmem:[%s4655_s20 + $0x60] sm:$0xff] %v5237_v6  ;;  %v5285_v40 = vpack.c.b16 %v1627_v61, %v1625_v26 }
 0x210   : > { %2258 = vmatmul.bf16.gmra.mxu0 %v5241_v36  ;;  %2347 = vmatmul.bf16.gmra.mxu1 %v5243_v8 }
 0x211   : > { %v1307_v0 = vpop.f32.mrf.mxu0  ;;  %v1396_v32 = vpop.f32.mrf.mxu1 }
 0x212   : > { %v1308_v48 = vadd.f32 %v1307_v0, %v4629_v39  ;;  %v1397_v54 = vadd.f32 %v1396_v32, %v4631_v16 }
 0x214   : > { %v2788_v45 = vmax.f32 %v2786_v44, %v1308_v48  ;;  %v2825_v47 = vmax.f32 %v2823_v4, %v1397_v54  ;;  %v1457_v43 = vpack.c.bf16 %v1397_v54, %v1308_v48  ;;  %v1628_v48 = vunpack.c.l.b16 %v5237_v6 }
 0x215   : > { %v1629_v54 = vunpack.c.h.b16 %v5237_v6  ;;  %v3915_v6 = vld [vmem:[%s5656_s6 + $0x8c] sm:$0xf] }
 0x216   : > { %1489 = vst [vmem:[%s4655_s20 + $0x68] sm:$0xff] %v1457_v43  ;;  %v1340_v63 = vpop.f32.mrf.mxu2  ;;  %v1429_v12 = vpop.f32.mrf.mxu3  ;;  %v1630_v14 = vunpack.c.l.b16 %v1457_v43  ;;  %v1631_v27 = vunpack.c.h.b16 %v1457_v43 }
 0x217   : > { %v1341_v20 = vadd.f32 %v1340_v63, %v4629_v39  ;;  %v1430_v46 = vadd.f32 %v1429_v12, %v4631_v16 }
 0x219   : > { %v2790_v5 = vmax.f32 %v2788_v45, %v1341_v20  ;;  %v2827_v19 = vmax.f32 %v2825_v47, %v1430_v46  ;;  %v1470_v22 = vpack.c.bf16 %v1430_v46, %v1341_v20  ;;  %v3949_v45 = vld [vmem:[%s5656_s6 + $0x194] sm:$0xf0]  ;;  %v5314_v20 = vpack.c.b16 %v1630_v14, %v1628_v48 }
 0x21a   : > { %v3825_v12 = vor.u32 %v3949_v45, %v3824_v11  ;;  %v5316_v46 = vpack.c.b16 %v1631_v27, %v1629_v54 }
 0x21b   : > { %1502 = vst [vmem:[%s4655_s20 + $0xd0] sm:$0xff] %v1470_v22  ;;  %2075 = vmatmul.bf16.gmra.mxu2 %v5045_v23  ;;  %2164 = vmatmul.bf16.gmra.mxu3 %v5047_v57  ;;  %v1656_v4 = vunpack.c.l.b16 %v1470_v22  ;;  %v1657_v10 = vunpack.c.h.b16 %v1470_v22 }
 0x21c   : > { %2500 = vmatpush.bf16.msra.mxu3 %v3825_v12 }
 0x21e   : > { %v1342_v30 = vpop.f32.mrf.mxu2  ;;  %v1431_v31 = vpop.f32.mrf.mxu3 }
 0x21f   : > { %v1343_v3 = vadd.f32 %v1342_v30, %v4629_v39  ;;  %v1432_v17 = vadd.f32 %v1431_v31, %v4631_v16 }
 0x220   : > { %2263 = vmatmul.bf16.gmra.mxu0 %v5283_v33  ;;  %2352 = vmatmul.bf16.gmra.mxu1 %v5285_v40 }
 0x221   : > { %v2792_v21 = vmax.f32 %v2790_v5, %v1343_v3  ;;  %v2829_v9 = vmax.f32 %v2827_v19, %v1432_v17  ;;  %v1471_v44 = vpack.c.bf16 %v1432_v17, %v1343_v3  ;;  %v3698_v5 = vld [vmem:[%s5656_s6 + $0x98] sm:$0xf0]  ;;  %v3947_v19 = vld [vmem:[%s5656_s6 + $0x18c] sm:$0xf] }
 0x222   : > { %v3701_v22 = vor.u32 %v3915_v6, %v3698_v5  ;;  %v3829_v26 = vor.u32 %v3947_v19, %v3826_v1 }
 0x223   : > { %1503 = vst [vmem:[%s4655_s20 + $0xd8] sm:$0xff] %v1471_v44  ;;  %v1658_v38 = vunpack.c.l.b16 %v1471_v44  ;;  %v1659_v37 = vunpack.c.h.b16 %v1471_v44 }
 0x224   : > { %2589 = vmatpush.bf16.msra.mxu0 %v3701_v22  ;;  %2678 = vmatpush.bf16.msra.mxu1 %v3829_v26 }
 0x225   : > { %v5292_v34 = vpack.c.b16 %v1658_v38, %v1656_v4  ;;  %v5294_v58 = vpack.c.b16 %v1659_v37, %v1657_v10 }
 0x22a   : > { %v1345_v25 = vpop.f32.mrf.mxu2  ;;  %v1434_v0 = vpop.f32.mrf.mxu3 }
 0x22b   : > { %v1346_v32 = vadd.f32 %v1345_v25, %v4629_v39  ;;  %v1435_v51 = vadd.f32 %v1434_v0, %v4631_v16  ;;  %2080 = vmatmul.bf16.gmra.mxu2 %v5241_v36  ;;  %2169 = vmatmul.bf16.gmra.mxu3 %v5243_v8 }
 0x22d   : > { %v2785_v47 = vmax.f32 %v1346_v32, %v2792_v21  ;;  %v2822_v43 = vmax.f32 %v1435_v51, %v2829_v9  ;;  %v1472_v63 = vpack.c.bf16 %v1435_v51, %v1346_v32 }
 0x22f   : > { %1504 = vst [vmem:[%s4655_s20 + $0xe0] sm:$0xff] %v1472_v63  ;;  %v1660_v9 = vunpack.c.l.b16 %v1472_v63  ;;  %v1661_v44 = vunpack.c.h.b16 %v1472_v63 }
 0x230   : > { %2268 = vmatmul.bf16.gmra.mxu0 %v5314_v20  ;;  %2357 = vmatmul.bf16.gmra.mxu1 %v5316_v46 }
 0x232   : > { %v1347_v61 = vpop.f32.mrf.mxu2  ;;  %v1436_v52 = vpop.f32.mrf.mxu3 }
 0x233   : > { %v1348_v30 = vadd.f32 %v1347_v61, %v4629_v39  ;;  %v1437_v31 = vadd.f32 %v1436_v52, %v4631_v16 }
 0x235   : > { %v2787_v3 = vmax.f32 %v2785_v47, %v1348_v30  ;;  %v2824_v17 = vmax.f32 %v2822_v43, %v1437_v31  ;;  %v1473_v21 = vpack.c.bf16 %v1437_v31, %v1348_v30  ;;  %v3680_v30 = vld [vmem:[%s5656_s6 + $0x68] sm:$0xf]  ;;  %v3913_v31 = vld [vmem:[%s5656_s6 + $0x74] sm:$0xf0] }
 0x237   : > { %1505 = vst [vmem:[%s4655_s20 + $0xe8] sm:$0xff] %v1473_v21  ;;  %v1662_v4 = vunpack.c.l.b16 %v1473_v21  ;;  %v1663_v10 = vunpack.c.h.b16 %v1473_v21  ;;  %v3945_v21 = vld [vmem:[%s5656_s6 + $0x174] sm:$0xf0] }
 0x239   : > { %v5336_v38 = vpack.c.b16 %v1662_v4, %v1660_v9  ;;  %v5338_v37 = vpack.c.b16 %v1663_v10, %v1661_v44  ;;  %v3911_v9 = vld [vmem:[%s5656_s6 + $0x6c] sm:$0xf]  ;;  %v3682_v44 = vld [vmem:[%s5656_s6 + $0x78] sm:$0xf0] }
 0x23a   : > { %v3685_v10 = vor.u32 %v3911_v9, %v3682_v44 }
 0x23b   : > { %2085 = vmatmul.bf16.gmra.mxu2 %v5283_v33  ;;  %2174 = vmatmul.bf16.gmra.mxu3 %v5285_v40 }
 0x23c   : > { %2590 = vmatpush.bf16.msra.mxu0 %v3685_v10 }
 0x23d   : > { %v1310_v14 = vpop.f32.mrf.mxu0  ;;  %v1399_v27 = vpop.f32.mrf.mxu1 }
 0x23e   : > { %v1311_v25 = vadd.f32 %v1310_v14, %v4629_v39  ;;  %v1400_v0 = vadd.f32 %v1399_v27, %v4631_v16  ;;  %v3943_v14 = vld [vmem:[%s5656_s6 + $0x16c] sm:$0xf]  ;;  %v3810_v27 = vld [vmem:[%s5656_s6 + $0x178] sm:$0xf0] }
 0x240   : > { %v2789_v32 = vmax.f32 %v2787_v3, %v1311_v25  ;;  %v2826_v51 = vmax.f32 %v2824_v17, %v1400_v0  ;;  %v1458_v24 = vpack.c.bf16 %v1400_v0, %v1311_v25  ;;  %v3808_v3 = vld [vmem:[%s5656_s6 + $0x168] sm:$0xf]  ;;  %v3681_v17 = vor.u32 %v3913_v31, %v3680_v30 }
 0x241   : > { %v3809_v4 = vor.u32 %v3945_v21, %v3808_v3  ;;  %v3813_v0 = vor.u32 %v3943_v14, %v3810_v27 }
 0x242   : > { %1490 = vst [vmem:[%s4655_s20 + $0x70] sm:$0xff] %v1458_v24  ;;  %v1632_v43 = vunpack.c.l.b16 %v1458_v24  ;;  %v1633_v63 = vunpack.c.h.b16 %v1458_v24  ;;  %2412 = vmatpush.bf16.msra.mxu2 %v3681_v17 }
 0x243   : > { %2501 = vmatpush.bf16.msra.mxu3 %v3809_v4  ;;  %2679 = vmatpush.bf16.msra.mxu1 %v3813_v0  ;;  %v3664_v0 = vld [vmem:[%s5656_s6 + $0x48] sm:$0xf] }
 0x245   : > { %v1312_v55 = vpop.f32.mrf.mxu0  ;;  %v1401_v11 = vpop.f32.mrf.mxu1 }
 0x246   : > { %v1313_v48 = vadd.f32 %v1312_v55, %v4629_v39  ;;  %v1402_v54 = vadd.f32 %v1401_v11, %v4631_v16 }
 0x248   : > { %v2791_v29 = vmax.f32 %v2789_v32, %v1313_v48  ;;  %v2828_v45 = vmax.f32 %v2826_v51, %v1402_v54  ;;  %v1459_v47 = vpack.c.bf16 %v1402_v54, %v1313_v48 }
 0x24a   : > { %1491 = vst [vmem:[%s4655_s20 + $0x78] sm:$0xff] %v1459_v47  ;;  %v1634_v12 = vunpack.c.l.b16 %v1459_v47  ;;  %v1635_v6 = vunpack.c.h.b16 %v1459_v47 }
 0x24b   : > { %2090 = vmatmul.bf16.gmra.mxu2 %v5314_v20  ;;  %2179 = vmatmul.bf16.gmra.mxu3 %v5316_v46 }
 0x24c   : > { %v5350_v5 = vpack.c.b16 %v1634_v12, %v1632_v43  ;;  %v5352_v19 = vpack.c.b16 %v1635_v6, %v1633_v63 }
 0x24d   : > { %v2239_v22 = vpop.f32.mrf.mxu0  ;;  %v2328_v1 = vpop.f32.mrf.mxu1 }
 0x24e   : > { %v2329_v61 = vadd.f32 %v2328_v1, %v2239_v22  ;;  %2273 = vmatmul.bf16.gmra.mxu0 %v5350_v5  ;;  %2362 = vmatmul.bf16.gmra.mxu1 %v5352_v19 }
 0x250   : > { %v2987_v55 = vmul.f32 %v2329_v61, %v2329_v61 }
 0x255   : > { %v2241_v52 = vpop.f32.mrf.mxu0  ;;  %v2330_v26 = vpop.f32.mrf.mxu1 }
 0x256   : > { %v2331_v25 = vadd.f32 %v2330_v26, %v2241_v52 }
 0x258   : > { %v2991_v32 = vmul.f32 %v2331_v25, %v2331_v25  ;;  %v2875_v11 = vadd.f32 %v2331_v25, %v2329_v61 }
 0x25a   : > { %v3151_v12 = vadd.f32 %v2991_v32, %v2987_v55  ;;  %v3792_v55 = vld [vmem:[%s5656_s6 + $0x148] sm:$0xf] }
 0x25b   : > { %2095 = vmatmul.bf16.gmra.mxu2 %v5350_v5  ;;  %2184 = vmatmul.bf16.gmra.mxu3 %v5352_v19 }
 0x25d   : > { %v2244_v51 = vpop.f32.mrf.mxu0  ;;  %v2333_v24 = vpop.f32.mrf.mxu1 }
 0x25e   : > { %v2334_v48 = vadd.f32 %v2333_v24, %v2244_v51  ;;  %v1350_v54 = vpop.f32.mrf.mxu2  ;;  %v1439_v47 = vpop.f32.mrf.mxu3  ;;  %2278 = vmatmul.bf16.gmra.mxu0 %v4820_v2  ;;  %2367 = vmatmul.bf16.gmra.mxu1 %v4822_v53  ;;  %v3909_v24 = vld [vmem:[%s5656_s6 + $0x54] sm:$0xf0] }
 0x25f   : > { %v1351_v43 = vadd.f32 %v1350_v54, %v4629_v39  ;;  %v1440_v63 = vadd.f32 %v1439_v47, %v4631_v16 }
 0x260   : > { %v2876_v6 = vadd.f32 %v2875_v11, %v2334_v48  ;;  %v2995_v22 = vmul.f32 %v2334_v48, %v2334_v48  ;;  %v3941_v11 = vld [vmem:[%s5656_s6 + $0x154] sm:$0xf0] }
 0x261   : > { %v2793_v1 = vmax.f32 %v2791_v29, %v1351_v43  ;;  %v2830_v52 = vmax.f32 %v2828_v45, %v1440_v63  ;;  %v1474_v26 = vpack.c.bf16 %v1440_v63, %v1351_v43  ;;  %v3665_v63 = vor.u32 %v3909_v24, %v3664_v0  ;;  %v3794_v0 = vld [vmem:[%s5656_s6 + $0x158] sm:$0xf0] }
 0x262   : > { %v3152_v30 = vadd.f32 %v3151_v12, %v2995_v22  ;;  %v3793_v12 = vor.u32 %v3941_v11, %v3792_v55 }
 0x263   : > { %1506 = vst [vmem:[%s4655_s20 + $0xf0] sm:$0xff] %v1474_v26  ;;  %v1665_v32 = vunpack.c.h.b16 %v1474_v26  ;;  %2413 = vmatpush.bf16.msra.mxu2 %v3665_v63 }
 0x264   : > { %2502 = vmatpush.bf16.msra.mxu3 %v3793_v12 }
 0x265   : > { %v2246_v61 = vpop.f32.mrf.mxu0  ;;  %v2335_v31 = vpop.f32.mrf.mxu1 }
 0x266   : > { %v1352_v3 = vpop.f32.mrf.mxu2  ;;  %v1441_v17 = vpop.f32.mrf.mxu3  ;;  %v2336_v44 = vadd.f32 %v2335_v31, %v2246_v61 }
 0x267   : > { %v1353_v21 = vadd.f32 %v1352_v3, %v4629_v39  ;;  %v1442_v9 = vadd.f32 %v1441_v17, %v4631_v16  ;;  %v1664_v39 = vunpack.c.l.b16 %v1474_v26 }
 0x268   : > { %v2877_v16 = vadd.f32 %v2876_v6, %v2336_v44  ;;  %v2999_v51 = vmul.f32 %v2336_v44, %v2336_v44 }
 0x269   : > { %v2794_v4 = vmax.f32 %v1353_v21, %v2793_v1  ;;  %v2831_v10 = vmax.f32 %v1442_v9, %v2830_v52  ;;  %v1475_v14 = vpack.c.bf16 %v1442_v9, %v1353_v21 }
 0x26a   : > { %v3153_v17 = vadd.f32 %v3152_v30, %v2999_v51  ;;  %v3939_v30 = vld [vmem:[%s5656_s6 + $0x14c] sm:$0xf] }
 0x26b   : > { %v2795_v27 = vrot.slane %v2794_v4, 4  ;;  %1507 = vst [vmem:[%s4655_s20 + $0xf8] sm:$0xff] %v1475_v14  ;;  %v1666_v29 = vunpack.c.l.b16 %v1475_v14  ;;  %v1667_v25 = vunpack.c.h.b16 %v1475_v14  ;;  %v2832_v45 = vrot.slane %v2831_v10, 4  ;;  %2100 = vmatmul.bf16.gmra.mxu2 %v4820_v2  ;;  %2189 = vmatmul.bf16.gmra.mxu3 %v4822_v53 }
 0x26c   : > { %v3797_v24 = vor.u32 %v3939_v30, %v3794_v0 }
 0x26d   : > { %v2796_v48 = vmax.f32 %v2794_v4, %v2795_v27  ;;  %v2833_v54 = vmax.f32 %v2831_v10, %v2832_v45  ;;  %v2249_v47 = vpop.f32.mrf.mxu0  ;;  %v2338_v43 = vpop.f32.mrf.mxu1  ;;  %v5406_v52 = vpack.c.b16 %v1666_v29, %v1664_v39  ;;  %v5408_v26 = vpack.c.b16 %v1667_v25, %v1665_v32  ;;  %v3907_v29 = vld [vmem:[%s5656_s6 + $0x4c] sm:$0xf]  ;;  %v3666_v25 = vld [vmem:[%s5656_s6 + $0x58] sm:$0xf0] }
 0x26e   : > { %v2339_v6 = vadd.f32 %v2338_v43, %v2249_v47  ;;  %v2061_v22 = vpop.f32.mrf.mxu2  ;;  %v2150_v1 = vpop.f32.mrf.mxu3  ;;  %2283 = vmatmul.bf16.gmra.mxu0 %v4892_v13  ;;  %2372 = vmatmul.bf16.gmra.mxu1 %v4894_v18  ;;  %v3669_v45 = vor.u32 %v3907_v29, %v3666_v25 }
 0x26f   : > { %v2797_v61 = vrot.slane %v2796_v48, 2  ;;  %v2834_v31 = vrot.slane %v2833_v54, 2  ;;  %v2151_v3 = vadd.f32 %v2150_v1, %v2061_v22  ;;  %2680 = vmatpush.bf16.msra.mxu1 %v3797_v24 }
 0x270   : > { %v2878_v21 = vadd.f32 %v2877_v16, %v2339_v6  ;;  %v3003_v9 = vmul.f32 %v2339_v6, %v2339_v6  ;;  %2591 = vmatpush.bf16.msra.mxu0 %v3669_v45 }
 0x271   : > { %v2798_v44 = vmax.f32 %v2796_v48, %v2797_v61  ;;  %v2835_v4 = vmax.f32 %v2833_v54, %v2834_v31  ;;  %v2986_v47 = vmul.f32 %v2151_v3, %v2151_v3 }
 0x272   : > { %v3154_v10 = vadd.f32 %v3153_v17, %v3003_v9 }
 0x273   : > { %v2799_v14 = vrot.slane %v2798_v44, 1  ;;  %v2836_v27 = vrot.slane %v2835_v4, 1 }
 0x275   : > { %v5422_v39 = vmax.f32 %v2798_v44, %v2799_v14  ;;  %v5424_v32 = vmax.f32 %v2835_v4, %v2836_v27  ;;  %v2251_v16 = vpop.f32.mrf.mxu0  ;;  %v2340_v51 = vpop.f32.mrf.mxu1 }
 0x276   : > { %v2063_v55 = vpop.f32.mrf.mxu2  ;;  %v2152_v11 = vpop.f32.mrf.mxu3  ;;  %v2341_v54 = vadd.f32 %v2340_v51, %v2251_v16 }
 0x277   : > { %v2153_v48 = vadd.f32 %v2152_v11, %v2063_v55 }
 0x278   : > { %v3007_v6 = vmul.f32 %v2341_v54, %v2341_v54  ;;  %v2879_v61 = vadd.f32 %v2878_v21, %v2341_v54  ;;  %v3905_v54 = vld [vmem:[%s5656_s6 + $0x34] sm:$0xf0] }
 0x279   : > { %v2838_v43 = vadd.f32 %v2153_v48, %v2151_v3  ;;  %v2990_v63 = vmul.f32 %v2153_v48, %v2153_v48 }
 0x27a   : > { %v3155_v4 = vadd.f32 %v3154_v10, %v3007_v6  ;;  %v3648_v10 = vld [vmem:[%s5656_s6 + $0x28] sm:$0xf] }
 0x27b   : > { %v3114_v12 = vadd.f32 %v2990_v63, %v2986_v47  ;;  %2105 = vmatmul.bf16.gmra.mxu2 %v4892_v13  ;;  %2194 = vmatmul.bf16.gmra.mxu3 %v4894_v18  ;;  %v3776_v47 = vld [vmem:[%s5656_s6 + $0x128] sm:$0xf]  ;;  %v3649_v63 = vor.u32 %v3905_v54, %v3648_v10 }
 0x27d   : > { %v2254_v22 = vpop.f32.mrf.mxu0  ;;  %v2343_v1 = vpop.f32.mrf.mxu1  ;;  %2414 = vmatpush.bf16.msra.mxu2 %v3649_v63 }
 0x27e   : > { %v2344_v31 = vadd.f32 %v2343_v1, %v2254_v22  ;;  %v2066_v17 = vpop.f32.mrf.mxu2  ;;  %v2155_v9 = vpop.f32.mrf.mxu3  ;;  %2288 = vmatmul.bf16.gmra.mxu0 %v4987_v56  ;;  %2377 = vmatmul.bf16.gmra.mxu1 %v4989_v7 }
 0x27f   : > { %v2156_v44 = vadd.f32 %v2155_v9, %v2066_v17 }
 0x280   : > { %v2880_v3 = vadd.f32 %v2879_v61, %v2344_v31  ;;  %v3011_v14 = vmul.f32 %v2344_v31, %v2344_v31 }
 0x281   : > { %v2839_v27 = vadd.f32 %v2838_v43, %v2156_v44  ;;  %v2994_v29 = vmul.f32 %v2156_v44, %v2156_v44 }
 0x282   : > { %v3156_v25 = vadd.f32 %v3155_v4, %v3011_v14 }
 0x283   : > { %v3115_v45 = vadd.f32 %v3114_v12, %v2994_v29  ;;  %v3937_v12 = vld [vmem:[%s5656_s6 + $0x134] sm:$0xf0] }
 0x284   : > { %v3777_v1 = vor.u32 %v3937_v12, %v3776_v47 }
 0x285   : > { %v2256_v30 = vpop.f32.mrf.mxu0  ;;  %v2345_v0 = vpop.f32.mrf.mxu1 }
 0x286   : > { %v2068_v16 = vpop.f32.mrf.mxu2  ;;  %v2157_v51 = vpop.f32.mrf.mxu3  ;;  %v2346_v24 = vadd.f32 %v2345_v0, %v2256_v30  ;;  %2503 = vmatpush.bf16.msra.mxu3 %v3777_v1 }
 0x287   : > { %v2158_v21 = vadd.f32 %v2157_v51, %v2068_v16  ;;  %v3650_v16 = vld [vmem:[%s5656_s6 + $0x38] sm:$0xf0]  ;;  %v3935_v51 = vld [vmem:[%s5656_s6 + $0x12c] sm:$0xf] }
 0x288   : > { %v3015_v43 = vmul.f32 %v2346_v24, %v2346_v24  ;;  %v2881_v61 = vadd.f32 %v2880_v3, %v2346_v24  ;;  %v3903_v3 = vld [vmem:[%s5656_s6 + $0x2c] sm:$0xf] }
 0x289   : > { %v2840_v55 = vadd.f32 %v2839_v27, %v2158_v21  ;;  %v2998_v11 = vmul.f32 %v2158_v21, %v2158_v21  ;;  %v3653_v21 = vor.u32 %v3903_v3, %v3650_v16 }
 0x28a   : > { %v3157_v4 = vadd.f32 %v3156_v25, %v3015_v43  ;;  %v3778_v25 = vld [vmem:[%s5656_s6 + $0x138] sm:$0xf0] }
 0x28b   : > { %v3116_v48 = vadd.f32 %v3115_v45, %v2998_v11  ;;  %2110 = vmatmul.bf16.gmra.mxu2 %v4987_v56  ;;  %2199 = vmatmul.bf16.gmra.mxu3 %v4989_v7  ;;  %v3781_v11 = vor.u32 %v3935_v51, %v3778_v25 }
 0x28c   : > { %2592 = vmatpush.bf16.msra.mxu0 %v3653_v21 }
 0x28d   : > { %v2259_v6 = vpop.f32.mrf.mxu0  ;;  %v2348_v22 = vpop.f32.mrf.mxu1  ;;  %2681 = vmatpush.bf16.msra.mxu1 %v3781_v11 }
 0x28e   : > { %v2349_v31 = vadd.f32 %v2348_v22, %v2259_v6  ;;  %v2071_v17 = vpop.f32.mrf.mxu2  ;;  %v2160_v9 = vpop.f32.mrf.mxu3  ;;  %2293 = vmatmul.bf16.gmra.mxu0 %v5136_v41  ;;  %2382 = vmatmul.bf16.gmra.mxu1 %v5138_v42 }
 0x28f   : > { %v2161_v44 = vadd.f32 %v2160_v9, %v2071_v17 }
 0x290   : > { %v2882_v14 = vadd.f32 %v2881_v61, %v2349_v31  ;;  %v3019_v27 = vmul.f32 %v2349_v31, %v2349_v31 }
 0x291   : > { %v2841_v29 = vadd.f32 %v2840_v55, %v2161_v44  ;;  %v3002_v45 = vmul.f32 %v2161_v44, %v2161_v44 }
 0x292   : > { %v3158_v30 = vadd.f32 %v3157_v4, %v3019_v27 }
 0x293   : > { %v3117_v0 = vadd.f32 %v3116_v48, %v3002_v45 }
 0x295   : > { %v2261_v24 = vpop.f32.mrf.mxu0  ;;  %v2350_v55 = vpop.f32.mrf.mxu1 }
 0x296   : > { %v2073_v48 = vpop.f32.mrf.mxu2  ;;  %v2162_v10 = vpop.f32.mrf.mxu3  ;;  %v2351_v47 = vadd.f32 %v2350_v55, %v2261_v24 }
 0x297   : > { %v2163_v54 = vadd.f32 %v2162_v10, %v2073_v48 }
 0x298   : > { %v3023_v6 = vmul.f32 %v2351_v47, %v2351_v47  ;;  %v2883_v61 = vadd.f32 %v2882_v14, %v2351_v47 }
 0x299   : > { %v2842_v43 = vadd.f32 %v2841_v29, %v2163_v54  ;;  %v3006_v63 = vmul.f32 %v2163_v54, %v2163_v54 }
 0x29a   : > { %v3159_v4 = vadd.f32 %v3158_v30, %v3023_v6 }
 0x29b   : > { %v3118_v12 = vadd.f32 %v3117_v0, %v3006_v63  ;;  %2115 = vmatmul.bf16.gmra.mxu2 %v5136_v41  ;;  %2204 = vmatmul.bf16.gmra.mxu3 %v5138_v42 }
 0x29d   : > { %v2264_v22 = vpop.f32.mrf.mxu0  ;;  %v2353_v1 = vpop.f32.mrf.mxu1 }
 0x29e   : > { %v2354_v31 = vadd.f32 %v2353_v1, %v2264_v22  ;;  %v2076_v17 = vpop.f32.mrf.mxu2  ;;  %v2165_v9 = vpop.f32.mrf.mxu3  ;;  %2298 = vmatmul.bf16.gmra.mxu0 %v5219_v28  ;;  %2387 = vmatmul.bf16.gmra.mxu1 %v5221_v62 }
 0x29f   : > { %v2166_v44 = vadd.f32 %v2165_v9, %v2076_v17  ;;  %v3632_v17 = vld [vmem:[%s5656_s6 + $0x8] sm:$0xf]  ;;  %v3901_v9 = vld [vmem:[%s5656_s6 + $0x14] sm:$0xf0] }
 0x2a0   : > { %v2884_v27 = vadd.f32 %v2883_v61, %v2354_v31  ;;  %v3027_v29 = vmul.f32 %v2354_v31, %v2354_v31 }
 0x2a1   : > { %v2843_v45 = vadd.f32 %v2842_v43, %v2166_v44  ;;  %v3010_v0 = vmul.f32 %v2166_v44, %v2166_v44  ;;  %v3760_v44 = vld [vmem:[%s5656_s6 + $0x108] sm:$0xf] }
 0x2a2   : > { %v3160_v3 = vadd.f32 %v3159_v4, %v3027_v29  ;;  %v3633_v29 = vor.u32 %v3901_v9, %v3632_v17 }
 0x2a3   : > { %v3119_v16 = vadd.f32 %v3118_v12, %v3010_v0 }
 0x2a4   : > { %2415 = vmatpush.bf16.msra.mxu2 %v3633_v29 }
 0x2a5   : > { %v2266_v51 = vpop.f32.mrf.mxu0  ;;  %v2355_v21 = vpop.f32.mrf.mxu1 }
 0x2a6   : > { %v2078_v25 = vpop.f32.mrf.mxu2  ;;  %v2167_v24 = vpop.f32.mrf.mxu3  ;;  %v2356_v55 = vadd.f32 %v2355_v21, %v2266_v51  ;;  %v3899_v51 = vld [vmem:[%s5656_s6 + $0xc] sm:$0xf]  ;;  %v3634_v21 = vld [vmem:[%s5656_s6 + $0x18] sm:$0xf0] }
 0x2a7   : > { %v2168_v14 = vadd.f32 %v2167_v24, %v2078_v25  ;;  %v3931_v25 = vld [vmem:[%s5656_s6 + $0x10c] sm:$0xf]  ;;  %v3637_v24 = vor.u32 %v3899_v51, %v3634_v21 }
 0x2a8   : > { %v3031_v30 = vmul.f32 %v2356_v55, %v2356_v55  ;;  %v2885_v43 = vadd.f32 %v2884_v27, %v2356_v55 }
 0x2a9   : > { %v2844_v11 = vadd.f32 %v2843_v45, %v2168_v14  ;;  %v3014_v48 = vmul.f32 %v2168_v14, %v2168_v14  ;;  %v3933_v45 = vld [vmem:[%s5656_s6 + $0x114] sm:$0xf0]  ;;  %v3762_v14 = vld [vmem:[%s5656_s6 + $0x118] sm:$0xf0]  ;;  %2593 = vmatpush.bf16.msra.mxu0 %v3637_v24 }
 0x2aa   : > { %v3161_v1 = vadd.f32 %v3160_v3, %v3031_v30  ;;  %v3761_v3 = vor.u32 %v3933_v45, %v3760_v44  ;;  %v3765_v55 = vor.u32 %v3931_v25, %v3762_v14 }
 0x2ab   : > { %v3120_v10 = vadd.f32 %v3119_v16, %v3014_v48  ;;  %2120 = vmatmul.bf16.gmra.mxu2 %v5219_v28  ;;  %2209 = vmatmul.bf16.gmra.mxu3 %v5221_v62 }
 0x2ac   : > { %2504 = vmatpush.bf16.msra.mxu3 %v3761_v3  ;;  %2682 = vmatpush.bf16.msra.mxu1 %v3765_v55 }
 0x2ad   : > { %v2269_v54 = vpop.f32.mrf.mxu0  ;;  %v2358_v47 = vpop.f32.mrf.mxu1 }
 0x2ae   : > { %v2359_v63 = vadd.f32 %v2358_v47, %v2269_v54  ;;  %v2081_v6 = vpop.f32.mrf.mxu2  ;;  %v2170_v12 = vpop.f32.mrf.mxu3  ;;  %2303 = vmatmul.bf16.gmra.mxu0 %v5292_v34  ;;  %2392 = vmatmul.bf16.gmra.mxu1 %v5294_v58 }
 0x2af   : > { %v2171_v22 = vadd.f32 %v2170_v12, %v2081_v6 }
 0x2b0   : > { %v2886_v61 = vadd.f32 %v2885_v43, %v2359_v63  ;;  %v3035_v31 = vmul.f32 %v2359_v63, %v2359_v63 }
 0x2b1   : > { %v2845_v4 = vadd.f32 %v2844_v11, %v2171_v22  ;;  %v3018_v27 = vmul.f32 %v2171_v22, %v2171_v22 }
 0x2b2   : > { %v3162_v0 = vadd.f32 %v3161_v1, %v3035_v31 }
 0x2b3   : > { %v3121_v16 = vadd.f32 %v3120_v10, %v3018_v27 }
 0x2b5   : > { %v2271_v1 = vpop.f32.mrf.mxu0  ;;  %v2360_v31 = vpop.f32.mrf.mxu1 }
 0x2b6   : > { %v2083_v11 = vpop.f32.mrf.mxu2  ;;  %v2172_v48 = vpop.f32.mrf.mxu3  ;;  %v2361_v9 = vadd.f32 %v2360_v31, %v2271_v1 }
 0x2b7   : > { %v2173_v10 = vadd.f32 %v2172_v48, %v2083_v11 }
 0x2b8   : > { %v3039_v3 = vmul.f32 %v2361_v9, %v2361_v9  ;;  %v2887_v25 = vadd.f32 %v2886_v61, %v2361_v9 }
 0x2b9   : > { %v2846_v30 = vadd.f32 %v2845_v4, %v2173_v10  ;;  %v3022_v54 = vmul.f32 %v2173_v10, %v2173_v10 }
 0x2ba   : > { %v3163_v14 = vadd.f32 %v3162_v0, %v3039_v3 }
 0x2bb   : > { %v3122_v47 = vadd.f32 %v3121_v16, %v3022_v54  ;;  %2125 = vmatmul.bf16.gmra.mxu2 %v5292_v34  ;;  %2214 = vmatmul.bf16.gmra.mxu3 %v5294_v58 }
 0x2be   : > { %v2086_v43 = vpop.f32.mrf.mxu2  ;;  %v2175_v63 = vpop.f32.mrf.mxu3  ;;  %2308 = vmatmul.bf16.gmra.mxu0 %v5336_v38  ;;  %2397 = vmatmul.bf16.gmra.mxu1 %v5338_v37 }
 0x2bf   : > { %v2176_v6 = vadd.f32 %v2175_v63, %v2086_v43 }
 0x2c1   : > { %v2847_v12 = vadd.f32 %v2846_v30, %v2176_v6  ;;  %v3026_v22 = vmul.f32 %v2176_v6, %v2176_v6 }
 0x2c3   : > { %v3123_v17 = vadd.f32 %v3122_v47, %v3026_v22 }
 0x2c6   : > { %v2088_v44 = vpop.f32.mrf.mxu2  ;;  %v2177_v4 = vpop.f32.mrf.mxu3 }
 0x2c7   : > { %v2178_v27 = vadd.f32 %v2177_v4, %v2088_v44 }
 0x2c9   : > { %v2848_v29 = vadd.f32 %v2847_v12, %v2178_v27  ;;  %v3030_v45 = vmul.f32 %v2178_v27, %v2178_v27 }
 0x2cb   : > { %v3124_v16 = vadd.f32 %v3123_v17, %v3030_v45  ;;  %2130 = vmatmul.bf16.gmra.mxu2 %v5336_v38  ;;  %2219 = vmatmul.bf16.gmra.mxu3 %v5338_v37  ;;  %v2274_v51 = vpop.f32.mrf.mxu0  ;;  %v2363_v21 = vpop.f32.mrf.mxu1 }
 0x2cc   : > { %v2364_v24 = vadd.f32 %v2363_v21, %v2274_v51 }
 0x2ce   : > { %v2888_v55 = vadd.f32 %v2887_v25, %v2364_v24  ;;  %v3043_v11 = vmul.f32 %v2364_v24, %v2364_v24  ;;  %v2091_v48 = vpop.f32.mrf.mxu2  ;;  %v2180_v10 = vpop.f32.mrf.mxu3  ;;  %2313 = vmatmul.bf16.gmra.mxu0 %v5406_v52  ;;  %2402 = vmatmul.bf16.gmra.mxu1 %v5408_v26 }
 0x2cf   : > { %v2181_v30 = vadd.f32 %v2180_v10, %v2091_v48 }
 0x2d0   : > { %v3164_v54 = vadd.f32 %v3163_v14, %v3043_v11 }
 0x2d1   : > { %v2849_v47 = vadd.f32 %v2848_v29, %v2181_v30  ;;  %v3034_v43 = vmul.f32 %v2181_v30, %v2181_v30 }
 0x2d3   : > { %v3125_v63 = vadd.f32 %v3124_v16, %v3034_v43  ;;  %v2276_v6 = vpop.f32.mrf.mxu0  ;;  %v2365_v12 = vpop.f32.mrf.mxu1 }
 0x2d4   : > { %v2366_v22 = vadd.f32 %v2365_v12, %v2276_v6 }
 0x2d6   : > { %v2889_v1 = vadd.f32 %v2888_v55, %v2366_v22  ;;  %v3047_v61 = vmul.f32 %v2366_v22, %v2366_v22  ;;  %v2093_v31 = vpop.f32.mrf.mxu2  ;;  %v2182_v0 = vpop.f32.mrf.mxu3 }
 0x2d7   : > { %v2183_v17 = vadd.f32 %v2182_v0, %v2093_v31 }
 0x2d8   : > { %v3165_v9 = vadd.f32 %v3164_v54, %v3047_v61 }
 0x2d9   : > { %v2850_v44 = vadd.f32 %v2849_v47, %v2183_v17  ;;  %v3038_v4 = vmul.f32 %v2183_v17, %v2183_v17 }
 0x2db   : > { %v3126_v27 = vadd.f32 %v3125_v63, %v3038_v4  ;;  %2135 = vmatmul.bf16.gmra.mxu2 %v5406_v52  ;;  %2224 = vmatmul.bf16.gmra.mxu3 %v5408_v26  ;;  %v2279_v45 = vpop.f32.mrf.mxu0  ;;  %v2368_v29 = vpop.f32.mrf.mxu1 }
 0x2dc   : > { %v2369_v3 = vadd.f32 %v2368_v29, %v2279_v45 }
 0x2de   : > { %v2890_v16 = vadd.f32 %v2889_v1, %v2369_v3  ;;  %v3051_v51 = vmul.f32 %v2369_v3, %v2369_v3  ;;  %v2096_v21 = vpop.f32.mrf.mxu2  ;;  %v2185_v25 = vpop.f32.mrf.mxu3  ;;  %2594 = vmatmul.bf16.vlgmr.msra.gmra.mxu0 %v4687_v15  ;;  %2683 = vmatmul.bf16.vlgmr.msra.gmra.mxu1 %v4689_v49 }
 0x2df   : > { %v2186_v24 = vadd.f32 %v2185_v25, %v2096_v21 }
 0x2e0   : > { %v3166_v14 = vadd.f32 %v3165_v9, %v3051_v51 }
 0x2e1   : > { %v2851_v55 = vadd.f32 %v2850_v44, %v2186_v24  ;;  %v3042_v11 = vmul.f32 %v2186_v24, %v2186_v24 }
 0x2e3   : > { %v3127_v48 = vadd.f32 %v3126_v27, %v3042_v11  ;;  %v2281_v10 = vpop.f32.mrf.mxu0  ;;  %v2370_v30 = vpop.f32.mrf.mxu1 }
 0x2e4   : > { %v2371_v54 = vadd.f32 %v2370_v30, %v2281_v10 }
 0x2e6   : > { %v2891_v47 = vadd.f32 %v2890_v16, %v2371_v54  ;;  %v3055_v43 = vmul.f32 %v2371_v54, %v2371_v54  ;;  %v2098_v63 = vpop.f32.mrf.mxu2  ;;  %v2187_v6 = vpop.f32.mrf.mxu3 }
 0x2e7   : > { %v2188_v12 = vadd.f32 %v2187_v6, %v2098_v63 }
 0x2e8   : > { %v3167_v22 = vadd.f32 %v3166_v14, %v3055_v43 }
 0x2e9   : > { %v2852_v1 = vadd.f32 %v2851_v55, %v2188_v12  ;;  %v3046_v61 = vmul.f32 %v2188_v12, %v2188_v12 }
 0x2eb   : > { %v3128_v31 = vadd.f32 %v3127_v48, %v3046_v61  ;;  %v2284_v0 = vpop.f32.mrf.mxu0  ;;  %v2373_v17 = vpop.f32.mrf.mxu1  ;;  %2416 = vmatmul.bf16.vlgmr.msra.gmra.mxu2 %v4687_v15  ;;  %2505 = vmatmul.bf16.vlgmr.msra.gmra.mxu3 %v4689_v49 }
 0x2ec   : > { %v2374_v9 = vadd.f32 %v2373_v17, %v2284_v0 }
 0x2ee   : > { %v2892_v44 = vadd.f32 %v2891_v47, %v2374_v9  ;;  %v3059_v4 = vmul.f32 %v2374_v9, %v2374_v9  ;;  %v2101_v27 = vpop.f32.mrf.mxu2  ;;  %v2190_v45 = vpop.f32.mrf.mxu3  ;;  %2599 = vmatmul.bf16.gmra.mxu0 %v4754_v35  ;;  %2688 = vmatmul.bf16.gmra.mxu1 %v4756_v50 }
 0x2ef   : > { %v2191_v29 = vadd.f32 %v2190_v45, %v2101_v27 }
 0x2f0   : > { %v3168_v3 = vadd.f32 %v3167_v22, %v3059_v4 }
 0x2f1   : > { %v2853_v16 = vadd.f32 %v2852_v1, %v2191_v29  ;;  %v3050_v51 = vmul.f32 %v2191_v29, %v2191_v29 }
 0x2f3   : > { %v3129_v21 = vadd.f32 %v3128_v31, %v3050_v51  ;;  %v2286_v25 = vpop.f32.mrf.mxu0  ;;  %v2375_v24 = vpop.f32.mrf.mxu1 }
 0x2f4   : > { %v2376_v14 = vadd.f32 %v2375_v24, %v2286_v25 }
 0x2f6   : > { %v2893_v15 = vadd.f32 %v2892_v44, %v2376_v14  ;;  %v3063_v55 = vmul.f32 %v2376_v14, %v2376_v14  ;;  %v2103_v49 = vpop.f32.mrf.mxu2  ;;  %v2192_v11 = vpop.f32.mrf.mxu3 }
 0x2f7   : > { %v2193_v48 = vadd.f32 %v2192_v11, %v2103_v49 }
 0x2f8   : > { %v3169_v10 = vadd.f32 %v3168_v3, %v3063_v55 }
 0x2f9   : > { %v2854_v30 = vadd.f32 %v2853_v16, %v2193_v48  ;;  %v3054_v54 = vmul.f32 %v2193_v48, %v2193_v48 }
 0x2fb   : > { %v3130_v47 = vadd.f32 %v3129_v21, %v3054_v54  ;;  %v2289_v43 = vpop.f32.mrf.mxu0  ;;  %v2378_v63 = vpop.f32.mrf.mxu1  ;;  %2421 = vmatmul.bf16.gmra.mxu2 %v4754_v35  ;;  %2510 = vmatmul.bf16.gmra.mxu3 %v4756_v50 }
 0x2fc   : > { %v2379_v6 = vadd.f32 %v2378_v63, %v2289_v43 }
 0x2fe   : > { %v2894_v12 = vadd.f32 %v2893_v15, %v2379_v6  ;;  %v3067_v22 = vmul.f32 %v2379_v6, %v2379_v6  ;;  %v2106_v1 = vpop.f32.mrf.mxu2  ;;  %v2195_v61 = vpop.f32.mrf.mxu3  ;;  %2604 = vmatmul.bf16.gmra.mxu0 %v4861_v59  ;;  %2693 = vmatmul.bf16.gmra.mxu1 %v4863_v60 }
 0x2ff   : > { %v2196_v31 = vadd.f32 %v2195_v61, %v2106_v1 }
 0x300   : > { %v3170_v0 = vadd.f32 %v3169_v10, %v3067_v22 }
 0x301   : > { %v2855_v17 = vadd.f32 %v2854_v30, %v2196_v31  ;;  %v3058_v9 = vmul.f32 %v2196_v31, %v2196_v31 }
 0x303   : > { %v3131_v44 = vadd.f32 %v3130_v47, %v3058_v9  ;;  %v2291_v4 = vpop.f32.mrf.mxu0  ;;  %v2380_v27 = vpop.f32.mrf.mxu1 }
 0x304   : > { %v2381_v45 = vadd.f32 %v2380_v27, %v2291_v4 }
 0x306   : > { %v2895_v35 = vadd.f32 %v2894_v12, %v2381_v45  ;;  %v3071_v29 = vmul.f32 %v2381_v45, %v2381_v45  ;;  %v2108_v50 = vpop.f32.mrf.mxu2  ;;  %v2197_v3 = vpop.f32.mrf.mxu3 }
 0x307   : > { %v2198_v16 = vadd.f32 %v2197_v3, %v2108_v50 }
 0x308   : > { %v3171_v51 = vadd.f32 %v3170_v0, %v3071_v29 }
 0x309   : > { %v2856_v21 = vadd.f32 %v2855_v17, %v2198_v16  ;;  %v3062_v25 = vmul.f32 %v2198_v16, %v2198_v16 }
 0x30b   : > { %v3132_v24 = vadd.f32 %v3131_v44, %v3062_v25  ;;  %v2294_v14 = vpop.f32.mrf.mxu0  ;;  %v2383_v15 = vpop.f32.mrf.mxu1  ;;  %2426 = vmatmul.bf16.gmra.mxu2 %v4861_v59  ;;  %2515 = vmatmul.bf16.gmra.mxu3 %v4863_v60 }
 0x30c   : > { %v2384_v55 = vadd.f32 %v2383_v15, %v2294_v14 }
 0x30e   : > { %v2896_v49 = vadd.f32 %v2895_v35, %v2384_v55  ;;  %v3075_v11 = vmul.f32 %v2384_v55, %v2384_v55  ;;  %v2111_v48 = vpop.f32.mrf.mxu2  ;;  %v2200_v10 = vpop.f32.mrf.mxu3  ;;  %2609 = vmatmul.bf16.gmra.mxu0 %v5045_v23  ;;  %2698 = vmatmul.bf16.gmra.mxu1 %v5047_v57 }
 0x30f   : > { %v2201_v30 = vadd.f32 %v2200_v10, %v2111_v48 }
 0x310   : > { %v3172_v54 = vadd.f32 %v3171_v51, %v3075_v11 }
 0x311   : > { %v2857_v47 = vadd.f32 %v2856_v21, %v2201_v30  ;;  %v3066_v43 = vmul.f32 %v2201_v30, %v2201_v30 }
 0x313   : > { %v3133_v63 = vadd.f32 %v3132_v24, %v3066_v43  ;;  %v2296_v6 = vpop.f32.mrf.mxu0  ;;  %v2385_v12 = vpop.f32.mrf.mxu1 }
 0x314   : > { %v2386_v22 = vadd.f32 %v2385_v12, %v2296_v6 }
 0x316   : > { %v2897_v59 = vadd.f32 %v2896_v49, %v2386_v22  ;;  %v3079_v1 = vmul.f32 %v2386_v22, %v2386_v22  ;;  %v2113_v60 = vpop.f32.mrf.mxu2  ;;  %v2202_v61 = vpop.f32.mrf.mxu3 }
 0x317   : > { %v2203_v31 = vadd.f32 %v2202_v61, %v2113_v60 }
 0x318   : > { %v3173_v0 = vadd.f32 %v3172_v54, %v3079_v1 }
 0x319   : > { %v2858_v17 = vadd.f32 %v2857_v47, %v2203_v31  ;;  %v3070_v9 = vmul.f32 %v2203_v31, %v2203_v31 }
 0x31b   : > { %v3134_v44 = vadd.f32 %v3133_v63, %v3070_v9  ;;  %v2299_v4 = vpop.f32.mrf.mxu0  ;;  %v2388_v27 = vpop.f32.mrf.mxu1  ;;  %2431 = vmatmul.bf16.gmra.mxu2 %v5045_v23  ;;  %2520 = vmatmul.bf16.gmra.mxu3 %v5047_v57 }
 0x31c   : > { %v2389_v45 = vadd.f32 %v2388_v27, %v2299_v4 }
 0x31e   : > { %v2898_v35 = vadd.f32 %v2897_v59, %v2389_v45  ;;  %v3083_v29 = vmul.f32 %v2389_v45, %v2389_v45  ;;  %v2116_v50 = vpop.f32.mrf.mxu2  ;;  %v2205_v3 = vpop.f32.mrf.mxu3  ;;  %2614 = vmatmul.bf16.gmra.mxu0 %v5241_v36  ;;  %2703 = vmatmul.bf16.gmra.mxu1 %v5243_v8 }
 0x31f   : > { %v2206_v16 = vadd.f32 %v2205_v3, %v2116_v50 }
 0x320   : > { %v3174_v51 = vadd.f32 %v3173_v0, %v3083_v29 }
 0x321   : > { %v2859_v21 = vadd.f32 %v2858_v17, %v2206_v16  ;;  %v3074_v25 = vmul.f32 %v2206_v16, %v2206_v16 }
 0x323   : > { %v3135_v24 = vadd.f32 %v3134_v44, %v3074_v25  ;;  %v2301_v14 = vpop.f32.mrf.mxu0  ;;  %v2390_v15 = vpop.f32.mrf.mxu1 }
 0x324   : > { %v2391_v55 = vadd.f32 %v2390_v15, %v2301_v14 }
 0x326   : > { %v2899_v23 = vadd.f32 %v2898_v35, %v2391_v55  ;;  %v3087_v49 = vmul.f32 %v2391_v55, %v2391_v55  ;;  %v2118_v57 = vpop.f32.mrf.mxu2  ;;  %v2207_v11 = vpop.f32.mrf.mxu3 }
 0x327   : > { %v2208_v48 = vadd.f32 %v2207_v11, %v2118_v57 }
 0x328   : > { %v3175_v10 = vadd.f32 %v3174_v51, %v3087_v49 }
 0x329   : > { %v2860_v30 = vadd.f32 %v2859_v21, %v2208_v48  ;;  %v3078_v54 = vmul.f32 %v2208_v48, %v2208_v48 }
 0x32b   : > { %v3136_v47 = vadd.f32 %v3135_v24, %v3078_v54  ;;  %v2304_v43 = vpop.f32.mrf.mxu0  ;;  %v2393_v63 = vpop.f32.mrf.mxu1  ;;  %2436 = vmatmul.bf16.gmra.mxu2 %v5241_v36  ;;  %2525 = vmatmul.bf16.gmra.mxu3 %v5243_v8 }
 0x32c   : > { %v2394_v6 = vadd.f32 %v2393_v63, %v2304_v43 }
 0x32e   : > { %v2900_v12 = vadd.f32 %v2899_v23, %v2394_v6  ;;  %v3091_v22 = vmul.f32 %v2394_v6, %v2394_v6  ;;  %v2121_v59 = vpop.f32.mrf.mxu2  ;;  %v2210_v1 = vpop.f32.mrf.mxu3  ;;  %2619 = vmatmul.bf16.gmra.mxu0 %v5283_v33  ;;  %2708 = vmatmul.bf16.gmra.mxu1 %v5285_v40 }
 0x32f   : > { %v2211_v60 = vadd.f32 %v2210_v1, %v2121_v59 }
 0x330   : > { %v3176_v61 = vadd.f32 %v3175_v10, %v3091_v22 }
 0x331   : > { %v2861_v31 = vadd.f32 %v2860_v30, %v2211_v60  ;;  %v3082_v0 = vmul.f32 %v2211_v60, %v2211_v60 }
 0x333   : > { %v3137_v17 = vadd.f32 %v3136_v47, %v3082_v0  ;;  %v2306_v9 = vpop.f32.mrf.mxu0  ;;  %v2395_v44 = vpop.f32.mrf.mxu1 }
 0x334   : > { %v2396_v4 = vadd.f32 %v2395_v44, %v2306_v9 }
 0x336   : > { %v2901_v36 = vadd.f32 %v2900_v12, %v2396_v4  ;;  %v3095_v27 = vmul.f32 %v2396_v4, %v2396_v4  ;;  %v2123_v8 = vpop.f32.mrf.mxu2  ;;  %v2212_v45 = vpop.f32.mrf.mxu3 }
 0x337   : > { %v2213_v35 = vadd.f32 %v2212_v45, %v2123_v8 }
 0x338   : > { %v3177_v29 = vadd.f32 %v3176_v61, %v3095_v27 }
 0x339   : > { %v2862_v50 = vadd.f32 %v2861_v31, %v2213_v35  ;;  %v3086_v3 = vmul.f32 %v2213_v35, %v2213_v35 }
 0x33b   : > { %v3138_v16 = vadd.f32 %v3137_v17, %v3086_v3  ;;  %v2309_v51 = vpop.f32.mrf.mxu0  ;;  %v2398_v21 = vpop.f32.mrf.mxu1  ;;  %2441 = vmatmul.bf16.gmra.mxu2 %v5283_v33  ;;  %2530 = vmatmul.bf16.gmra.mxu3 %v5285_v40 }
 0x33c   : > { %v2399_v25 = vadd.f32 %v2398_v21, %v2309_v51 }
 0x33e   : > { %v2902_v24 = vadd.f32 %v2901_v36, %v2399_v25  ;;  %v3099_v14 = vmul.f32 %v2399_v25, %v2399_v25  ;;  %v2126_v15 = vpop.f32.mrf.mxu2  ;;  %v2215_v55 = vpop.f32.mrf.mxu3  ;;  %2624 = vmatmul.bf16.gmra.mxu0 %v5314_v20  ;;  %2713 = vmatmul.bf16.gmra.mxu1 %v5316_v46 }
 0x33f   : > { %v2216_v23 = vadd.f32 %v2215_v55, %v2126_v15 }
 0x340   : > { %v3178_v49 = vadd.f32 %v3177_v29, %v3099_v14 }
 0x341   : > { %v2863_v57 = vadd.f32 %v2862_v50, %v2216_v23  ;;  %v3090_v11 = vmul.f32 %v2216_v23, %v2216_v23 }
 0x343   : > { %v3139_v48 = vadd.f32 %v3138_v16, %v3090_v11  ;;  %v2311_v10 = vpop.f32.mrf.mxu0  ;;  %v2400_v30 = vpop.f32.mrf.mxu1 }
 0x344   : > { %v2401_v54 = vadd.f32 %v2400_v30, %v2311_v10 }
 0x346   : > { %v2903_v33 = vadd.f32 %v2902_v24, %v2401_v54  ;;  %v3103_v47 = vmul.f32 %v2401_v54, %v2401_v54  ;;  %v2128_v40 = vpop.f32.mrf.mxu2  ;;  %v2217_v43 = vpop.f32.mrf.mxu3 }
 0x347   : > { %v2218_v63 = vadd.f32 %v2217_v43, %v2128_v40 }
 0x348   : > { %v3179_v6 = vadd.f32 %v3178_v49, %v3103_v47 }
 0x349   : > { %v2864_v12 = vadd.f32 %v2863_v57, %v2218_v63  ;;  %v3094_v22 = vmul.f32 %v2218_v63, %v2218_v63 }
 0x34b   : > { %v3140_v59 = vadd.f32 %v3139_v48, %v3094_v22  ;;  %v2314_v1 = vpop.f32.mrf.mxu0  ;;  %v2403_v60 = vpop.f32.mrf.mxu1  ;;  %2446 = vmatmul.bf16.gmra.mxu2 %v5314_v20  ;;  %2535 = vmatmul.bf16.gmra.mxu3 %v5316_v46 }
 0x34c   : > { %v2404_v61 = vadd.f32 %v2403_v60, %v2314_v1 }
 0x34e   : > { %v2904_v31 = vadd.f32 %v2903_v33, %v2404_v61  ;;  %v3107_v0 = vmul.f32 %v2404_v61, %v2404_v61  ;;  %v2131_v17 = vpop.f32.mrf.mxu2  ;;  %v2220_v9 = vpop.f32.mrf.mxu3  ;;  %2629 = vmatmul.bf16.gmra.mxu0 %v5350_v5  ;;  %2718 = vmatmul.bf16.gmra.mxu1 %v5352_v19 }
 0x34f   : > { %v2221_v44 = vadd.f32 %v2220_v9, %v2131_v17 }
 0x350   : > { %v3180_v4 = vadd.f32 %v3179_v6, %v3107_v0 }
 0x351   : > { %v2865_v36 = vadd.f32 %v2864_v12, %v2221_v44  ;;  %v3098_v27 = vmul.f32 %v2221_v44, %v2221_v44 }
 0x353   : > { %v3141_v8 = vadd.f32 %v3140_v59, %v3098_v27  ;;  %v2316_v45 = vpop.f32.mrf.mxu0  ;;  %v2405_v35 = vpop.f32.mrf.mxu1 }
 0x354   : > { %v2406_v29 = vadd.f32 %v2405_v35, %v2316_v45 }
 0x356   : > { %v2905_v20 = vadd.f32 %v2904_v31, %v2406_v29  ;;  %v3111_v50 = vmul.f32 %v2406_v29, %v2406_v29  ;;  %v2133_v46 = vpop.f32.mrf.mxu2  ;;  %v2222_v3 = vpop.f32.mrf.mxu3 }
 0x357   : > { %v2223_v16 = vadd.f32 %v2222_v3, %v2133_v46 }
 0x358   : > { %v2906_v51 = vrot.slane %v2905_v20, 4  ;;  %v3181_v21 = vadd.f32 %v3180_v4, %v3111_v50 }
 0x359   : > { %v2866_v25 = vadd.f32 %v2865_v36, %v2223_v16  ;;  %v3102_v24 = vmul.f32 %v2223_v16, %v2223_v16 }
 0x35a   : > { %v2907_v14 = vadd.f32 %v2906_v51, %v2905_v20  ;;  %v3182_v15 = vrot.slane %v3181_v21, 4 }
 0x35b   : > { %v3142_v55 = vadd.f32 %v3141_v8, %v3102_v24  ;;  %2451 = vmatmul.bf16.gmra.mxu2 %v5350_v5  ;;  %2540 = vmatmul.bf16.gmra.mxu3 %v5352_v19  ;;  %v2595_v23 = vpop.f32.mrf.mxu0  ;;  %v2684_v49 = vpop.f32.mrf.mxu1 }
 0x35c   : > { %v2908_v57 = vrot.slane %v2907_v14, 2  ;;  %v3183_v11 = vadd.f32 %v3182_v15, %v3181_v21  ;;  %v2685_v48 = vadd.f32 %v2684_v49, %v2595_v23 }
 0x35e   : > { %v2909_v10 = vadd.f32 %v2908_v57, %v2907_v14  ;;  %v3184_v30 = vrot.slane %v3183_v11, 2  ;;  %v2136_v54 = vpop.f32.mrf.mxu2  ;;  %v2225_v33 = vpop.f32.mrf.mxu3  ;;  %2634 = vmatmul.bf16.gmra.mxu0 %v4820_v2  ;;  %2723 = vmatmul.bf16.gmra.mxu1 %v4822_v53  ;;  %v2989_v61 = vmul.f32 %v2685_v48, %v2685_v48 }
 0x35f   : > { %v2226_v47 = vadd.f32 %v2225_v33, %v2136_v54 }
 0x360   : > { %v2910_v40 = vrot.slane %v2909_v10, 1  ;;  %v3185_v43 = vadd.f32 %v3184_v30, %v3183_v11 }
 0x361   : > { %v2867_v63 = vadd.f32 %v2866_v25, %v2226_v47  ;;  %v3106_v5 = vmul.f32 %v2226_v47, %v2226_v47 }
 0x362   : > { %v5534_v6 = vadd.f32 %v2910_v40, %v2909_v10  ;;  %v3186_v19 = vrot.slane %v3185_v43, 1 }
 0x363   : > { %v3143_v12 = vadd.f32 %v3142_v55, %v3106_v5  ;;  %v2597_v22 = vpop.f32.mrf.mxu0  ;;  %v2686_v59 = vpop.f32.mrf.mxu1 }
 0x364   : > { %v5536_v1 = vadd.f32 %v3186_v19, %v3185_v43  ;;  %v2687_v60 = vadd.f32 %v2686_v59, %v2597_v22 }
 0x366   : > { %v2949_v31 = vadd.f32 %v2687_v60, %v2685_v48  ;;  %v2993_v0 = vmul.f32 %v2687_v60, %v2687_v60  ;;  %v2138_v17 = vpop.f32.mrf.mxu2  ;;  %v2227_v9 = vpop.f32.mrf.mxu3 }
 0x367   : > { %v2228_v44 = vadd.f32 %v2227_v9, %v2138_v17 }
 0x368   : > { %v3225_v4 = vadd.f32 %v2993_v0, %v2989_v61 }
 0x369   : > { %v2868_v36 = vadd.f32 %v2867_v63, %v2228_v44  ;;  %v3110_v27 = vmul.f32 %v2228_v44, %v2228_v44 }
 0x36b   : > { %v2869_v8 = vrot.slane %v2868_v36, 4  ;;  %v3144_v45 = vadd.f32 %v3143_v12, %v3110_v27  ;;  %2456 = vmatmul.bf16.gmra.mxu2 %v4820_v2  ;;  %2545 = vmatmul.bf16.gmra.mxu3 %v4822_v53  ;;  %v2600_v35 = vpop.f32.mrf.mxu0  ;;  %v2689_v29 = vpop.f32.mrf.mxu1 }
 0x36c   : > { %v2690_v20 = vadd.f32 %v2689_v29, %v2600_v35 }
 0x36d   : > { %v2870_v50 = vadd.f32 %v2869_v8, %v2868_v36  ;;  %v3145_v46 = vrot.slane %v3144_v45, 4 }
 0x36e   : > { %v2950_v3 = vadd.f32 %v2949_v31, %v2690_v20  ;;  %v2997_v16 = vmul.f32 %v2690_v20, %v2690_v20  ;;  %v2417_v51 = vpop.f32.mrf.mxu2  ;;  %v2506_v21 = vpop.f32.mrf.mxu3  ;;  %2639 = vmatmul.bf16.gmra.mxu0 %v4892_v13  ;;  %2728 = vmatmul.bf16.gmra.mxu1 %v4894_v18 }
 0x36f   : > { %v2871_v25 = vrot.slane %v2870_v50, 2  ;;  %v3146_v24 = vadd.f32 %v3145_v46, %v3144_v45  ;;  %v2507_v14 = vadd.f32 %v2506_v21, %v2417_v51 }
 0x370   : > { %v3226_v15 = vadd.f32 %v3225_v4, %v2997_v16 }
 0x371   : > { %v2872_v2 = vadd.f32 %v2871_v25, %v2870_v50  ;;  %v3147_v55 = vrot.slane %v3146_v24, 2  ;;  %v2988_v5 = vmul.f32 %v2507_v14, %v2507_v14 }
 0x373   : > { %v2873_v53 = vrot.slane %v2872_v2, 1  ;;  %v3148_v23 = vadd.f32 %v3147_v55, %v3146_v24  ;;  %v2602_v49 = vpop.f32.mrf.mxu0  ;;  %v2691_v57 = vpop.f32.mrf.mxu1 }
 0x374   : > { %v2692_v11 = vadd.f32 %v2691_v57, %v2602_v49 }
 0x375   : > { %v5542_v48 = vadd.f32 %v2873_v53, %v2872_v2  ;;  %v3149_v10 = vrot.slane %v3148_v23, 1 }
 0x376   : > { %v2951_v30 = vadd.f32 %v2950_v3, %v2692_v11  ;;  %v3001_v54 = vmul.f32 %v2692_v11, %v2692_v11  ;;  %v2419_v33 = vpop.f32.mrf.mxu2  ;;  %v2508_v47 = vpop.f32.mrf.mxu3 }
 0x377   : > { %v5544_v40 = vadd.f32 %v3149_v10, %v3148_v23  ;;  %v2509_v43 = vadd.f32 %v2508_v47, %v2419_v33 }
 0x378   : > { %v3227_v63 = vadd.f32 %v3226_v15, %v3001_v54 }
 0x379   : > { %v2912_v19 = vadd.f32 %v2509_v43, %v2507_v14  ;;  %v2992_v12 = vmul.f32 %v2509_v43, %v2509_v43 }
 0x37b   : > { %v3188_v22 = vadd.f32 %v2992_v12, %v2988_v5  ;;  %2461 = vmatmul.bf16.gmra.mxu2 %v4892_v13  ;;  %2550 = vmatmul.bf16.gmra.mxu3 %v4894_v18  ;;  %v2605_v59 = vpop.f32.mrf.mxu0  ;;  %v2694_v60 = vpop.f32.mrf.mxu1 }
 0x37c   : > { %v2695_v61 = vadd.f32 %v2694_v60, %v2605_v59 }
 0x37e   : > { %v2952_v31 = vadd.f32 %v2951_v30, %v2695_v61  ;;  %v3005_v0 = vmul.f32 %v2695_v61, %v2695_v61  ;;  %v2422_v17 = vpop.f32.mrf.mxu2  ;;  %v2511_v9 = vpop.f32.mrf.mxu3  ;;  %2644 = vmatmul.bf16.gmra.mxu0 %v4987_v56  ;;  %2733 = vmatmul.bf16.gmra.mxu1 %v4989_v7 }
 0x37f   : > { %v2512_v44 = vadd.f32 %v2511_v9, %v2422_v17 }
 0x380   : > { %v3228_v4 = vadd.f32 %v3227_v63, %v3005_v0 }
 0x381   : > { %v2913_v36 = vadd.f32 %v2912_v19, %v2512_v44  ;;  %v2996_v27 = vmul.f32 %v2512_v44, %v2512_v44 }
 0x383   : > { %v3189_v8 = vadd.f32 %v3188_v22, %v2996_v27  ;;  %v2607_v45 = vpop.f32.mrf.mxu0  ;;  %v2696_v13 = vpop.f32.mrf.mxu1 }
 0x384   : > { %v2697_v35 = vadd.f32 %v2696_v13, %v2607_v45 }
 0x386   : > { %v2953_v18 = vadd.f32 %v2952_v31, %v2697_v35  ;;  %v3009_v29 = vmul.f32 %v2697_v35, %v2697_v35  ;;  %v2424_v20 = vpop.f32.mrf.mxu2  ;;  %v2513_v50 = vpop.f32.mrf.mxu3 }
 0x387   : > { %v2514_v46 = vadd.f32 %v2513_v50, %v2424_v20 }
 0x388   : > { %v3229_v3 = vadd.f32 %v3228_v4, %v3009_v29 }
 0x389   : > { %v2914_v16 = vadd.f32 %v2913_v36, %v2514_v46  ;;  %v3000_v51 = vmul.f32 %v2514_v46, %v2514_v46 }
 0x38b   : > { %v3190_v21 = vadd.f32 %v3189_v8, %v3000_v51  ;;  %2466 = vmatmul.bf16.gmra.mxu2 %v4987_v56  ;;  %2555 = vmatmul.bf16.gmra.mxu3 %v4989_v7  ;;  %v2610_v25 = vpop.f32.mrf.mxu0  ;;  %v2699_v24 = vpop.f32.mrf.mxu1 }
 0x38c   : > { %v2700_v14 = vadd.f32 %v2699_v24, %v2610_v25 }
 0x38e   : > { %v2954_v15 = vadd.f32 %v2953_v18, %v2700_v14  ;;  %v3013_v2 = vmul.f32 %v2700_v14, %v2700_v14  ;;  %v2427_v55 = vpop.f32.mrf.mxu2  ;;  %v2516_v53 = vpop.f32.mrf.mxu3  ;;  %2649 = vmatmul.bf16.gmra.mxu0 %v5136_v41  ;;  %2738 = vmatmul.bf16.gmra.mxu1 %v5138_v42 }
 0x38f   : > { %v2517_v23 = vadd.f32 %v2516_v53, %v2427_v55 }
 0x390   : > { %v3230_v49 = vadd.f32 %v3229_v3, %v3013_v2 }
 0x391   : > { %v2915_v57 = vadd.f32 %v2914_v16, %v2517_v23  ;;  %v3004_v11 = vmul.f32 %v2517_v23, %v2517_v23 }
 0x393   : > { %v3191_v10 = vadd.f32 %v3190_v21, %v3004_v11  ;;  %v2612_v30 = vpop.f32.mrf.mxu0  ;;  %v2701_v56 = vpop.f32.mrf.mxu1 }
 0x394   : > { %v2702_v54 = vadd.f32 %v2701_v56, %v2612_v30 }
 0x396   : > { %v2955_v7 = vadd.f32 %v2954_v15, %v2702_v54  ;;  %v3017_v33 = vmul.f32 %v2702_v54, %v2702_v54  ;;  %v2429_v47 = vpop.f32.mrf.mxu2  ;;  %v2518_v43 = vpop.f32.mrf.mxu3 }
 0x397   : > { %v2519_v63 = vadd.f32 %v2518_v43, %v2429_v47 }
 0x398   : > { %v3231_v5 = vadd.f32 %v3230_v49, %v3017_v33 }
 0x399   : > { %v2916_v19 = vadd.f32 %v2915_v57, %v2519_v63  ;;  %v3008_v12 = vmul.f32 %v2519_v63, %v2519_v63 }
 0x39b   : > { %v3192_v22 = vadd.f32 %v3191_v10, %v3008_v12  ;;  %2471 = vmatmul.bf16.gmra.mxu2 %v5136_v41  ;;  %2560 = vmatmul.bf16.gmra.mxu3 %v5138_v42  ;;  %v2615_v59 = vpop.f32.mrf.mxu0  ;;  %v2704_v60 = vpop.f32.mrf.mxu1 }
 0x39c   : > { %v2705_v61 = vadd.f32 %v2704_v60, %v2615_v59 }
 0x39e   : > { %v2956_v31 = vadd.f32 %v2955_v7, %v2705_v61  ;;  %v3021_v0 = vmul.f32 %v2705_v61, %v2705_v61  ;;  %v2432_v17 = vpop.f32.mrf.mxu2  ;;  %v2521_v9 = vpop.f32.mrf.mxu3  ;;  %2654 = vmatmul.bf16.gmra.mxu0 %v5219_v28  ;;  %2743 = vmatmul.bf16.gmra.mxu1 %v5221_v62 }
 0x39f   : > { %v2522_v44 = vadd.f32 %v2521_v9, %v2432_v17 }
 0x3a0   : > { %v3232_v4 = vadd.f32 %v3231_v5, %v3021_v0 }
 0x3a1   : > { %v2917_v36 = vadd.f32 %v2916_v19, %v2522_v44  ;;  %v3012_v27 = vmul.f32 %v2522_v44, %v2522_v44 }
 0x3a3   : > { %v3193_v8 = vadd.f32 %v3192_v22, %v3012_v27  ;;  %v2617_v45 = vpop.f32.mrf.mxu0  ;;  %v2706_v41 = vpop.f32.mrf.mxu1 }
 0x3a4   : > { %v2707_v13 = vadd.f32 %v2706_v41, %v2617_v45 }
 0x3a6   : > { %v2957_v42 = vadd.f32 %v2956_v31, %v2707_v13  ;;  %v3025_v35 = vmul.f32 %v2707_v13, %v2707_v13  ;;  %v2434_v18 = vpop.f32.mrf.mxu2  ;;  %v2523_v29 = vpop.f32.mrf.mxu3 }
 0x3a7   : > { %v2524_v20 = vadd.f32 %v2523_v29, %v2434_v18 }
 0x3a8   : > { %v3233_v50 = vadd.f32 %v3232_v4, %v3025_v35 }
 0x3a9   : > { %v2918_v46 = vadd.f32 %v2917_v36, %v2524_v20  ;;  %v3016_v3 = vmul.f32 %v2524_v20, %v2524_v20 }
 0x3ab   : > { %v3194_v16 = vadd.f32 %v3193_v8, %v3016_v3  ;;  %2476 = vmatmul.bf16.gmra.mxu2 %v5219_v28  ;;  %2565 = vmatmul.bf16.gmra.mxu3 %v5221_v62  ;;  %v2620_v51 = vpop.f32.mrf.mxu0  ;;  %v2709_v21 = vpop.f32.mrf.mxu1 }
 0x3ac   : > { %v2710_v25 = vadd.f32 %v2709_v21, %v2620_v51 }
 0x3ae   : > { %v2958_v24 = vadd.f32 %v2957_v42, %v2710_v25  ;;  %v3029_v14 = vmul.f32 %v2710_v25, %v2710_v25  ;;  %v2437_v15 = vpop.f32.mrf.mxu2  ;;  %v2526_v2 = vpop.f32.mrf.mxu3  ;;  %2659 = vmatmul.bf16.gmra.mxu0 %v5292_v34  ;;  %2748 = vmatmul.bf16.gmra.mxu1 %v5294_v58 }
 0x3af   : > { %v2527_v55 = vadd.f32 %v2526_v2, %v2437_v15 }
 0x3b0   : > { %v3234_v53 = vadd.f32 %v3233_v50, %v3029_v14 }
 0x3b1   : > { %v2919_v23 = vadd.f32 %v2918_v46, %v2527_v55  ;;  %v3020_v49 = vmul.f32 %v2527_v55, %v2527_v55 }
 0x3b3   : > { %v3195_v57 = vadd.f32 %v3194_v16, %v3020_v49  ;;  %v2622_v11 = vpop.f32.mrf.mxu0  ;;  %v2711_v28 = vpop.f32.mrf.mxu1 }
 0x3b4   : > { %v2712_v10 = vadd.f32 %v2711_v28, %v2622_v11 }
 0x3b6   : > { %v2959_v62 = vadd.f32 %v2958_v24, %v2712_v10  ;;  %v3033_v30 = vmul.f32 %v2712_v10, %v2712_v10  ;;  %v2439_v56 = vpop.f32.mrf.mxu2  ;;  %v2528_v54 = vpop.f32.mrf.mxu3 }
 0x3b7   : > { %v2529_v7 = vadd.f32 %v2528_v54, %v2439_v56 }
 0x3b8   : > { %v3235_v33 = vadd.f32 %v3234_v53, %v3033_v30 }
 0x3b9   : > { %v2920_v47 = vadd.f32 %v2919_v23, %v2529_v7  ;;  %v3024_v43 = vmul.f32 %v2529_v7, %v2529_v7 }
 0x3bb   : > { %v3196_v63 = vadd.f32 %v3195_v57, %v3024_v43  ;;  %2481 = vmatmul.bf16.gmra.mxu2 %v5292_v34  ;;  %2570 = vmatmul.bf16.gmra.mxu3 %v5294_v58  ;;  %v2625_v5 = vpop.f32.mrf.mxu0  ;;  %v2714_v19 = vpop.f32.mrf.mxu1 }
 0x3bc   : > { %v2715_v12 = vadd.f32 %v2714_v19, %v2625_v5 }
 0x3be   : > { %v2960_v22 = vadd.f32 %v2959_v62, %v2715_v12  ;;  %v3037_v59 = vmul.f32 %v2715_v12, %v2715_v12  ;;  %v2442_v60 = vpop.f32.mrf.mxu2  ;;  %v2531_v61 = vpop.f32.mrf.mxu3  ;;  %2664 = vmatmul.bf16.gmra.mxu0 %v5336_v38  ;;  %2753 = vmatmul.bf16.gmra.mxu1 %v5338_v37 }
 0x3bf   : > { %v2532_v31 = vadd.f32 %v2531_v61, %v2442_v60 }
 0x3c0   : > { %v3236_v0 = vadd.f32 %v3235_v33, %v3037_v59 }
 0x3c1   : > { %v2921_v17 = vadd.f32 %v2920_v47, %v2532_v31  ;;  %v3028_v9 = vmul.f32 %v2532_v31, %v2532_v31 }
 0x3c3   : > { %v3197_v44 = vadd.f32 %v3196_v63, %v3028_v9  ;;  %v2627_v4 = vpop.f32.mrf.mxu0  ;;  %v2716_v34 = vpop.f32.mrf.mxu1 }
 0x3c4   : > { %v2717_v36 = vadd.f32 %v2716_v34, %v2627_v4 }
 0x3c6   : > { %v2961_v58 = vadd.f32 %v2960_v22, %v2717_v36  ;;  %v3041_v27 = vmul.f32 %v2717_v36, %v2717_v36  ;;  %v2444_v8 = vpop.f32.mrf.mxu2  ;;  %v2533_v45 = vpop.f32.mrf.mxu3 }
 0x3c7   : > { %v2534_v41 = vadd.f32 %v2533_v45, %v2444_v8 }
 0x3c8   : > { %v3237_v13 = vadd.f32 %v3236_v0, %v3041_v27 }
 0x3c9   : > { %v2922_v42 = vadd.f32 %v2921_v17, %v2534_v41  ;;  %v3032_v35 = vmul.f32 %v2534_v41, %v2534_v41 }
 0x3cb   : > { %v3198_v18 = vadd.f32 %v3197_v44, %v3032_v35  ;;  %2486 = vmatmul.bf16.gmra.mxu2 %v5336_v38  ;;  %2575 = vmatmul.bf16.gmra.mxu3 %v5338_v37  ;;  %v2630_v29 = vpop.f32.mrf.mxu0  ;;  %v2719_v20 = vpop.f32.mrf.mxu1 }
 0x3cc   : > { %v2720_v50 = vadd.f32 %v2719_v20, %v2630_v29 }
 0x3ce   : > { %v2962_v46 = vadd.f32 %v2961_v58, %v2720_v50  ;;  %v3045_v3 = vmul.f32 %v2720_v50, %v2720_v50  ;;  %v2447_v16 = vpop.f32.mrf.mxu2  ;;  %v2536_v51 = vpop.f32.mrf.mxu3  ;;  %2669 = vmatmul.bf16.gmra.mxu0 %v5406_v52  ;;  %2758 = vmatmul.bf16.gmra.mxu1 %v5408_v26 }
 0x3cf   : > { %v2537_v21 = vadd.f32 %v2536_v51, %v2447_v16 }
 0x3d0   : > { %v3238_v25 = vadd.f32 %v3237_v13, %v3045_v3 }
 0x3d1   : > { %v2923_v24 = vadd.f32 %v2922_v42, %v2537_v21  ;;  %v3036_v14 = vmul.f32 %v2537_v21, %v2537_v21 }
 0x3d3   : > { %v3199_v15 = vadd.f32 %v3198_v18, %v3036_v14  ;;  %v2632_v2 = vpop.f32.mrf.mxu0  ;;  %v2721_v38 = vpop.f32.mrf.mxu1 }
 0x3d4   : > { %v2722_v55 = vadd.f32 %v2721_v38, %v2632_v2 }
 0x3d6   : > { %v2963_v37 = vadd.f32 %v2962_v46, %v2722_v55  ;;  %v3049_v53 = vmul.f32 %v2722_v55, %v2722_v55  ;;  %v2449_v23 = vpop.f32.mrf.mxu2  ;;  %v2538_v49 = vpop.f32.mrf.mxu3 }
 0x3d7   : > { %v2539_v57 = vadd.f32 %v2538_v49, %v2449_v23 }
 0x3d8   : > { %v3239_v11 = vadd.f32 %v3238_v25, %v3049_v53 }
 0x3d9   : > { %v2924_v28 = vadd.f32 %v2923_v24, %v2539_v57  ;;  %v3040_v10 = vmul.f32 %v2539_v57, %v2539_v57 }
 0x3db   : > { %v3200_v62 = vadd.f32 %v3199_v15, %v3040_v10  ;;  %2491 = vmatmul.bf16.gmra.mxu2 %v5406_v52  ;;  %2580 = vmatmul.bf16.gmra.mxu3 %v5408_v26  ;;  %v2635_v30 = vpop.f32.mrf.mxu0  ;;  %v2724_v56 = vpop.f32.mrf.mxu1 }
 0x3dc   : > { %v2725_v54 = vadd.f32 %v2724_v56, %v2635_v30 }
 0x3de   : > { %v2964_v7 = vadd.f32 %v2963_v37, %v2725_v54  ;;  %v3053_v33 = vmul.f32 %v2725_v54, %v2725_v54  ;;  %v2452_v47 = vpop.f32.mrf.mxu2  ;;  %v2541_v43 = vpop.f32.mrf.mxu3 }
 0x3df   : > { %v2542_v63 = vadd.f32 %v2541_v43, %v2452_v47 }
 0x3e0   : > { %v3240_v5 = vadd.f32 %v3239_v11, %v3053_v33 }
 0x3e1   : > { %v2925_v19 = vadd.f32 %v2924_v28, %v2542_v63  ;;  %v3044_v12 = vmul.f32 %v2542_v63, %v2542_v63 }
 0x3e3   : > { %v3201_v22 = vadd.f32 %v3200_v62, %v3044_v12  ;;  %v2637_v59 = vpop.f32.mrf.mxu0  ;;  %v2726_v60 = vpop.f32.mrf.mxu1 }
 0x3e4   : > { %v2727_v61 = vadd.f32 %v2726_v60, %v2637_v59 }
 0x3e6   : > { %v2965_v31 = vadd.f32 %v2964_v7, %v2727_v61  ;;  %v3057_v0 = vmul.f32 %v2727_v61, %v2727_v61  ;;  %v2454_v52 = vpop.f32.mrf.mxu2  ;;  %v2543_v17 = vpop.f32.mrf.mxu3 }
 0x3e7   : > { %v2544_v26 = vadd.f32 %v2543_v17, %v2454_v52 }
 0x3e8   : > { %v3241_v9 = vadd.f32 %v3240_v5, %v3057_v0 }
 0x3e9   : > { %v2926_v44 = vadd.f32 %v2925_v19, %v2544_v26  ;;  %v3048_v4 = vmul.f32 %v2544_v26, %v2544_v26 }
 0x3eb   : > { %v3202_v34 = vadd.f32 %v3201_v22, %v3048_v4  ;;  %v2640_v36 = vpop.f32.mrf.mxu0  ;;  %v2729_v58 = vpop.f32.mrf.mxu1 }
 0x3ec   : > { %v2730_v27 = vadd.f32 %v2729_v58, %v2640_v36 }
 0x3ee   : > { %v2966_v8 = vadd.f32 %v2965_v31, %v2730_v27  ;;  %v3061_v45 = vmul.f32 %v2730_v27, %v2730_v27  ;;  %v2457_v41 = vpop.f32.mrf.mxu2  ;;  %v2546_v13 = vpop.f32.mrf.mxu3 }
 0x3ef   : > { %v2547_v42 = vadd.f32 %v2546_v13, %v2457_v41 }
 0x3f0   : > { %v3242_v35 = vadd.f32 %v3241_v9, %v3061_v45 }
 0x3f1   : > { %v2927_v18 = vadd.f32 %v2926_v44, %v2547_v42  ;;  %v3052_v29 = vmul.f32 %v2547_v42, %v2547_v42 }
 0x3f3   : > { %v3203_v20 = vadd.f32 %v3202_v34, %v3052_v29  ;;  %v2642_v50 = vpop.f32.mrf.mxu0  ;;  %v2731_v46 = vpop.f32.mrf.mxu1 }
 0x3f4   : > { %v2732_v3 = vadd.f32 %v2731_v46, %v2642_v50 }
 0x3f6   : > { %v2967_v16 = vadd.f32 %v2966_v8, %v2732_v3  ;;  %v3065_v51 = vmul.f32 %v2732_v3, %v2732_v3  ;;  %v2459_v21 = vpop.f32.mrf.mxu2  ;;  %v2548_v25 = vpop.f32.mrf.mxu3 }
 0x3f7   : > { %v2549_v24 = vadd.f32 %v2548_v25, %v2459_v21 }
 0x3f8   : > { %v3243_v14 = vadd.f32 %v3242_v35, %v3065_v51 }
 0x3f9   : > { %v2928_v15 = vadd.f32 %v2927_v18, %v2549_v24  ;;  %v3056_v2 = vmul.f32 %v2549_v24, %v2549_v24 }
 0x3fb   : > { %v3204_v38 = vadd.f32 %v3203_v20, %v3056_v2  ;;  %v2645_v55 = vpop.f32.mrf.mxu0  ;;  %v2734_v37 = vpop.f32.mrf.mxu1 }
 0x3fc   : > { %v2735_v53 = vadd.f32 %v2734_v37, %v2645_v55 }
 0x3fe   : > { %v2968_v23 = vadd.f32 %v2967_v16, %v2735_v53  ;;  %v3069_v49 = vmul.f32 %v2735_v53, %v2735_v53  ;;  %v2462_v57 = vpop.f32.mrf.mxu2  ;;  %v2551_v11 = vpop.f32.mrf.mxu3 }
 0x3ff   : > { %v2552_v28 = vadd.f32 %v2551_v11, %v2462_v57 }
 0x400   : > { %v3244_v10 = vadd.f32 %v3243_v14, %v3069_v49 }
 0x401   : > { %v2929_v62 = vadd.f32 %v2928_v15, %v2552_v28  ;;  %v3060_v30 = vmul.f32 %v2552_v28, %v2552_v28 }
 0x403   : > { %v3205_v56 = vadd.f32 %v3204_v38, %v3060_v30  ;;  %v2647_v54 = vpop.f32.mrf.mxu0  ;;  %v2736_v7 = vpop.f32.mrf.mxu1 }
 0x404   : > { %v2737_v51 = vadd.f32 %v2736_v7, %v2647_v54 }
 0x406   : > { %v2464_v33 = vpop.f32.mrf.mxu2  ;;  %v2553_v47 = vpop.f32.mrf.mxu3  ;;  %v3073_v14 = vmul.f32 %v2737_v51, %v2737_v51  ;;  %v2969_v2 = vadd.f32 %v2968_v23, %v2737_v51 }
 0x407   : > { %v2554_v43 = vadd.f32 %v2553_v47, %v2464_v33 }
 0x408   : > { %v3245_v49 = vadd.f32 %v3244_v10, %v3073_v14 }
 0x409   : > { %v2930_v63 = vadd.f32 %v2929_v62, %v2554_v43  ;;  %v3064_v5 = vmul.f32 %v2554_v43, %v2554_v43 }
 0x40b   : > { %v3206_v19 = vadd.f32 %v3205_v56, %v3064_v5  ;;  %v2650_v12 = vpop.f32.mrf.mxu0  ;;  %v2739_v22 = vpop.f32.mrf.mxu1 }
 0x40c   : > { %v2740_v21 = vadd.f32 %v2739_v22, %v2650_v12 }
 0x40e   : > { %v2467_v59 = vpop.f32.mrf.mxu2  ;;  %v2556_v60 = vpop.f32.mrf.mxu3  ;;  %v3077_v38 = vmul.f32 %v2740_v21, %v2740_v21  ;;  %v2970_v57 = vadd.f32 %v2969_v2, %v2740_v21 }
 0x40f   : > { %v2557_v61 = vadd.f32 %v2556_v60, %v2467_v59 }
 0x410   : > { %v3246_v62 = vadd.f32 %v3245_v49, %v3077_v38 }
 0x411   : > { %v5572_v31 = vadd.f32 %v2930_v63, %v2557_v61  ;;  %v3068_v0 = vmul.f32 %v2557_v61, %v2557_v61 }
 0x413   : > { %v5574_v52 = vadd.f32 %v3206_v19, %v3068_v0  ;;  %v2652_v17 = vpop.f32.mrf.mxu0  ;;  %v2741_v26 = vpop.f32.mrf.mxu1 }
 0x414   : > { %v2742_v15 = vadd.f32 %v2741_v26, %v2652_v17 }
 0x416   : > { %v2469_v9 = vpop.f32.mrf.mxu2  ;;  %v2558_v44 = vpop.f32.mrf.mxu3  ;;  %v3081_v11 = vmul.f32 %v2742_v15, %v2742_v15  ;;  %v2971_v30 = vadd.f32 %v2970_v57, %v2742_v15 }
 0x418   : > { %v3247_v47 = vadd.f32 %v3246_v62, %v3081_v11 }
 0x41b   : > { %v2655_v4 = vpop.f32.mrf.mxu0  ;;  %v2744_v34 = vpop.f32.mrf.mxu1 }
 0x41c   : > { %v2745_v55 = vadd.f32 %v2744_v34, %v2655_v4 }
 0x41e   : > { %v2472_v36 = vpop.f32.mrf.mxu2  ;;  %v2561_v58 = vpop.f32.mrf.mxu3  ;;  %v3085_v56 = vmul.f32 %v2745_v55, %v2745_v55  ;;  %v2972_v43 = vadd.f32 %v2971_v30, %v2745_v55 }
 0x420   : > { %v3248_v19 = vadd.f32 %v3247_v47, %v3085_v56 }
 0x423   : > { %v2657_v27 = vpop.f32.mrf.mxu0  ;;  %v2746_v8 = vpop.f32.mrf.mxu1 }
 0x424   : > { %v2747_v28 = vadd.f32 %v2746_v8, %v2657_v27 }
 0x426   : > { %v2474_v45 = vpop.f32.mrf.mxu2  ;;  %v2563_v41 = vpop.f32.mrf.mxu3  ;;  %v3089_v63 = vmul.f32 %v2747_v28, %v2747_v28  ;;  %v2973_v23 = vadd.f32 %v2972_v43, %v2747_v28 }
 0x427   : > { %v2564_v2 = vadd.f32 %v2563_v41, %v2474_v45 }
 0x428   : > { %v3249_v10 = vadd.f32 %v3248_v19, %v3089_v63 }
 0x429   : > { %v3080_v45 = vmul.f32 %v2564_v2, %v2564_v2 }
 0x42b   : > { %v2660_v13 = vpop.f32.mrf.mxu0  ;;  %v2749_v42 = vpop.f32.mrf.mxu1 }
 0x42c   : > { %v2750_v54 = vadd.f32 %v2749_v42, %v2660_v13  ;;  %v2559_v42 = vadd.f32 %v2558_v44, %v2469_v9 }
 0x42e   : > { %v5576_v35 = vpop.f32.mrf.mxu2  ;;  %v5578_v18 = vpop.f32.mrf.mxu3  ;;  %v3093_v12 = vmul.f32 %v2750_v54, %v2750_v54  ;;  %v2974_v61 = vadd.f32 %v2973_v23, %v2750_v54  ;;  %v2932_v57 = vadd.f32 %v5572_v31, %v2559_v42 }
 0x42f   : > { %v2567_v9 = vadd.f32 %v5578_v18, %v5576_v35 }
 0x430   : > { %v3250_v26 = vadd.f32 %v3249_v10, %v3093_v12 }
 0x431   : > { %v3084_v63 = vmul.f32 %v2567_v9, %v2567_v9 }
 0x433   : > { %v2662_v29 = vpop.f32.mrf.mxu0  ;;  %v2751_v20 = vpop.f32.mrf.mxu1 }
 0x434   : > { %v2752_v5 = vadd.f32 %v2751_v20, %v2662_v29  ;;  %v2562_v20 = vadd.f32 %v2561_v58, %v2472_v36 }
 0x436   : > { %v5580_v50 = vpop.f32.mrf.mxu2  ;;  %v5582_v46 = vpop.f32.mrf.mxu3  ;;  %v3097_v0 = vmul.f32 %v2752_v5, %v2752_v5  ;;  %v2975_v4 = vadd.f32 %v2974_v61, %v2752_v5  ;;  %v3076_v11 = vmul.f32 %v2562_v20, %v2562_v20  ;;  %v2933_v56 = vadd.f32 %v2932_v57, %v2562_v20 }
 0x437   : > { %v2569_v41 = vadd.f32 %v5582_v46, %v5580_v50 }
 0x438   : > { %v3251_v51 = vadd.f32 %v3250_v26, %v3097_v0  ;;  %v2934_v31 = vadd.f32 %v2933_v56, %v2564_v2 }
 0x439   : > { %v3088_v12 = vmul.f32 %v2569_v41, %v2569_v41 }
 0x43a   : > { %v2935_v23 = vadd.f32 %v2934_v31, %v2567_v9 }
 0x43b   : > { %v2665_v3 = vpop.f32.mrf.mxu0  ;;  %v2754_v16 = vpop.f32.mrf.mxu1 }
 0x43c   : > { %v2755_v22 = vadd.f32 %v2754_v16, %v2665_v3  ;;  %v3072_v16 = vmul.f32 %v2559_v42, %v2559_v42  ;;  %v2936_v10 = vadd.f32 %v2935_v23, %v2569_v41 }
 0x43e   : > { %v5584_v25 = vpop.f32.mrf.mxu2  ;;  %v5586_v24 = vpop.f32.mrf.mxu3  ;;  %v3101_v34 = vmul.f32 %v2755_v22, %v2755_v22  ;;  %v2976_v21 = vadd.f32 %v2975_v4, %v2755_v22  ;;  %v3208_v30 = vadd.f32 %v5574_v52, %v3072_v16 }
 0x43f   : > { %v2572_v35 = vadd.f32 %v5586_v24, %v5584_v25 }
 0x440   : > { %v3252_v14 = vadd.f32 %v3251_v51, %v3101_v34  ;;  %v3209_v43 = vadd.f32 %v3208_v30, %v3076_v11 }
 0x441   : > { %v3092_v61 = vmul.f32 %v2572_v35, %v2572_v35  ;;  %v2937_v34 = vadd.f32 %v2936_v10, %v2572_v35 }
 0x442   : > { %v3210_v19 = vadd.f32 %v3209_v43, %v3080_v45 }
 0x443   : > { %v2667_v37 = vpop.f32.mrf.mxu0  ;;  %v2756_v53 = vpop.f32.mrf.mxu1 }
 0x444   : > { %v2757_v17 = vadd.f32 %v2756_v53, %v2667_v37 }
 0x446   : > { %v2484_v7 = vpop.f32.mrf.mxu2  ;;  %v2573_v33 = vpop.f32.mrf.mxu3  ;;  %v3105_v29 = vmul.f32 %v2757_v17, %v2757_v17  ;;  %v2977_v15 = vadd.f32 %v2976_v21, %v2757_v17 }
 0x447   : > { %v2574_v22 = vadd.f32 %v2573_v33, %v2484_v7 }
 0x448   : > { %v3253_v49 = vadd.f32 %v3252_v14, %v3105_v29 }
 0x449   : > { %v2938_v21 = vadd.f32 %v2937_v34, %v2574_v22 }
 0x44b   : > { %v2670_v59 = vpop.f32.mrf.mxu0  ;;  %v2759_v60 = vpop.f32.mrf.mxu1 }
 0x44c   : > { %v2760_v27 = vadd.f32 %v2759_v60, %v2670_v59  ;;  %v3211_v60 = vadd.f32 %v3210_v19, %v3084_v63 }
 0x44e   : > { %v2487_v8 = vpop.f32.mrf.mxu2  ;;  %v2576_v13 = vpop.f32.mrf.mxu3  ;;  %v3109_v3 = vmul.f32 %v2760_v27, %v2760_v27  ;;  %v2978_v37 = vadd.f32 %v2977_v15, %v2760_v27  ;;  %v3212_v4 = vadd.f32 %v3211_v60, %v3088_v12  ;;  %v3096_v27 = vmul.f32 %v2574_v22, %v2574_v22 }
 0x44f   : > { %v2577_v50 = vadd.f32 %v2576_v13, %v2487_v8 }
 0x450   : > { %v3254_v44 = vadd.f32 %v3253_v49, %v3109_v3  ;;  %v3213_v51 = vadd.f32 %v3212_v4, %v3092_v61 }
 0x451   : > { %v3100_v29 = vmul.f32 %v2577_v50, %v2577_v50  ;;  %v2939_v15 = vadd.f32 %v2938_v21, %v2577_v50 }
 0x452   : > { %v3214_v14 = vadd.f32 %v3213_v51, %v3096_v27 }
 0x453   : > { %v2672_v38 = vpop.f32.mrf.mxu0  ;;  %v2761_v55 = vpop.f32.mrf.mxu1 }
 0x454   : > { %v2762_v53 = vadd.f32 %v2761_v55, %v2672_v38  ;;  %v3215_v3 = vadd.f32 %v3214_v14, %v3100_v29 }
 0x456   : > { %v2979_v28 = vadd.f32 %v2978_v37, %v2762_v53  ;;  %v3113_v62 = vmul.f32 %v2762_v53, %v2762_v53  ;;  %v2489_v36 = vpop.f32.mrf.mxu2  ;;  %v2578_v58 = vpop.f32.mrf.mxu3 }
 0x457   : > { %v2579_v25 = vadd.f32 %v2578_v58, %v2489_v36 }
 0x458   : > { %v2980_v54 = vrot.slane %v2979_v28, 4  ;;  %v3255_v47 = vadd.f32 %v3254_v44, %v3113_v62 }
 0x459   : > { %v3104_v8 = vmul.f32 %v2579_v25, %v2579_v25  ;;  %v2940_v16 = vadd.f32 %v2939_v15, %v2579_v25 }
 0x45a   : > { %v2981_v18 = vadd.f32 %v2980_v54, %v2979_v28  ;;  %v3256_v5 = vrot.slane %v3255_v47, 4 }
 0x45b   : > { %v3216_v49 = vadd.f32 %v3215_v3, %v3104_v8 }
 0x45c   : > { %v2982_v52 = vrot.slane %v2981_v18, 2  ;;  %v3257_v59 = vadd.f32 %v3256_v5, %v3255_v47 }
 0x45e   : > { %v2983_v46 = vadd.f32 %v2982_v52, %v2981_v18  ;;  %v3258_v0 = vrot.slane %v3257_v59, 2  ;;  %v2492_v17 = vpop.f32.mrf.mxu2  ;;  %v2581_v26 = vpop.f32.mrf.mxu3 }
 0x45f   : > { %v2582_v7 = vadd.f32 %v2581_v26, %v2492_v17 }
 0x460   : > { %v2984_v24 = vrot.slane %v2983_v46, 1  ;;  %v3259_v42 = vadd.f32 %v3258_v0, %v3257_v59 }
 0x461   : > { %v3108_v2 = vmul.f32 %v2582_v7, %v2582_v7  ;;  %v2941_v37 = vadd.f32 %v2940_v16, %v2582_v7 }
 0x462   : > { %v5596_v33 = vadd.f32 %v2984_v24, %v2983_v46  ;;  %v3260_v20 = vrot.slane %v3259_v42, 1 }
 0x463   : > { %v3217_v57 = vadd.f32 %v3216_v49, %v3108_v2 }
 0x464   : > { %v5598_v13 = vadd.f32 %v3260_v20, %v3259_v42 }
 0x466   : > { %v2494_v38 = vpop.f32.mrf.mxu2  ;;  %v2583_v55 = vpop.f32.mrf.mxu3 }
 0x467   : > { %v2584_v53 = vadd.f32 %v2583_v55, %v2494_v38 }
 0x469   : > { %v2942_v11 = vadd.f32 %v2941_v37, %v2584_v53  ;;  %v3112_v9 = vmul.f32 %v2584_v53, %v2584_v53 }
 0x46b   : > { %v2943_v44 = vrot.slane %v2942_v11, 4  ;;  %v3218_v28 = vadd.f32 %v3217_v57, %v3112_v9 }
 0x46d   : > { %v2944_v62 = vadd.f32 %v2943_v44, %v2942_v11  ;;  %v3219_v36 = vrot.slane %v3218_v28, 4 }
 0x46f   : > { %v2945_v58 = vrot.slane %v2944_v62, 2  ;;  %v3220_v30 = vadd.f32 %v3219_v36, %v3218_v28 }
 0x471   : > { %v2946_v56 = vadd.f32 %v2945_v58, %v2944_v62  ;;  %v3221_v45 = vrot.slane %v3220_v30, 2 }
 0x473   : > { %v2947_v41 = vrot.slane %v2946_v56, 1  ;;  %v3222_v54 = vadd.f32 %v3221_v45, %v3220_v30  ;;  %3265 = sbr.rel (%p3878_p7) target bundleno = 1152 (0x480), region = 52 }
 0x475   : > { %v2948_v47 = vadd.f32 %v2947_v41, %v2946_v56  ;;  %v3223_v43 = vrot.slane %v3222_v54, 1 }
 0x477   : > { %v3224_v31 = vadd.f32 %v3223_v43, %v3222_v54 }
 0x478   : > { %v3268_v63 = vrot.slane %v5424_v32, 7  ;;  %vm3269_vm0 = vcmask 1040384   ;;  %v3272_v35 = vlaneseq  ;;  %v3281_v18 = vrot.slane %v5534_v6, 7 }
 0x479   : > { %v3282_v5 = vrot.slane %v2948_v47, 6  ;;  %v3283_v19 = vrot.slane %v5596_v33, 5  ;;  %vm3285_vm1 = vcmask 1042434   ;;  %vm3287_vm2 = vcmask 1041408  }
 0x47a   : > { %v3270_v23 = vsel %vm3269_vm0, %v5422_v39, %v3268_v63  ;;  %vm3274_vm3 = vcmp.lt.s32.totalorder %v3272_v35, 256  ;;  %v3284_v12 = vsel %vm3269_vm0, %v5542_v48, %v3281_v18  ;;  %vm3290_vm4 = vcmp.lt.s32.totalorder %v3272_v35, 512 }
 0x47b   : > { %3276 = vst.msk [vmem:[%s4238_s19] sm:$0x3] %vm3274_vm3, %v3270_v23  ;;  %v3286_v22 = vsel %vm3285_vm1, %v3282_v5, %v3283_v19  ;;  %v3297_v52 = vrot.slane %v5536_v1, 7  ;;  %v3298_v59 = vrot.slane %v3224_v31, 6  ;;  %v3299_v60 = vrot.slane %v5598_v13, 5 }
 0x47c   : > { %v3288_v10 = vsel %vm3287_vm2, %v3284_v12, %v3286_v22 }
 0x47d   : > { %3292 = vst.msk [vmem:[%s4245_s23] sm:$0xf] %vm3290_vm4, %v3288_v10  ;;  %v3300_v61 = vsel %vm3269_vm0, %v5544_v40, %v3297_v52  ;;  %v3301_v50 = vsel %vm3285_vm1, %v3298_v59, %v3299_v60 }
 0x47e   : > { %v3302_v46 = vsel %vm3287_vm2, %v3300_v61, %v3301_v50 }
 0x47f   : > { %3304 = vst.msk [vmem:[%s4250_s27] sm:$0xf] %vm3290_vm4, %v3302_v46 }
 0x480 PF: > { %p3879_p8 = scmp.le.s32.totalorder %s4116_s13, 0 }
 0x482   : > { %3308 = sbr.rel (%p3879_p8) target bundleno = 1170 (0x492), region = 56 }
 0x487   : > { %v3309_v0 = vld [vmem:[%s4238_s19] sm:$0x3]  ;;  %v3312_v17 = vrot.slane %v5424_v32, 7  ;;  %vm3313_vm5 = vcmask 1040384   ;;  %v3317_v26 = vlaneseq  ;;  %v3327_v4 = vrot.slane %v5534_v6, 7 }
 0x488   : > { %v3328_v34 = vrot.slane %v2948_v47, 6  ;;  %v3329_v27 = vrot.slane %v5596_v33, 5  ;;  %vm3331_vm6 = vcmask 1042434   ;;  %v3322_v24 = vld [vmem:[%s4245_s23] sm:$0xf]  ;;  %vm3333_vm8 = vcmask 1041408  }
 0x489   : > { %v3314_v25 = vsel %vm3313_vm5, %v5422_v39, %v3312_v17  ;;  %vm3319_vm7 = vcmp.lt.s32.totalorder %v3317_v26, 256  ;;  %v3330_v32 = vsel %vm3313_vm5, %v5542_v48, %v3327_v4  ;;  %v3345_v51 = vrot.slane %v5536_v1, 7  ;;  %v3340_v33 = vld [vmem:[%s4250_s27] sm:$0xf] }
 0x48a   : > { %v3316_v42 = vmax.f32 %v3309_v0, %v3314_v25  ;;  %v3332_v6 = vsel %vm3331_vm6, %v3328_v34, %v3329_v27  ;;  %vm3337_vm9 = vcmp.lt.s32.totalorder %v3317_v26, 512  ;;  %v3346_v29 = vrot.slane %v3224_v31, 6 }
 0x48b   : > { %v3334_v21 = vsel %vm3333_vm8, %v3330_v32, %v3332_v6  ;;  %v3347_v7 = vrot.slane %v5598_v13, 5  ;;  %v3348_v20 = vsel %vm3313_vm5, %v5544_v40, %v3345_v51 }
 0x48c   : > { %3321 = vst.msk [vmem:[%s4238_s19] sm:$0x3] %vm3319_vm7, %v3316_v42  ;;  %v3336_v39 = vadd.f32 %v3334_v21, %v3322_v24 }
 0x48d   : > { %v3349_v14 = vsel %vm3331_vm6, %v3346_v29, %v3347_v7 }
 0x48e   : > { %3339 = vst.msk [vmem:[%s4245_s23] sm:$0xf] %vm3337_vm9, %v3336_v39  ;;  %v3350_v15 = vsel %vm3333_vm8, %v3348_v20, %v3349_v14 }
 0x48f   : > { %v3352_v48 = vadd.f32 %v3350_v15, %v3340_v33 }
 0x491   : > { %3353 = vst.msk [vmem:[%s4250_s27] sm:$0xf] %vm3337_vm9, %v3352_v48 }
 0x492 PF: > { %s21_s17 = sadd.s32 1, %s4132_s17   ;;  %s5662_s19 = sld [smem:[#allocation2_spill]] }
 0x493   : > { %p18_p9 = scmp.ge.s32.totalorder %s21_s17, 6   ;;  %s5663_s13 = smov %s4124_s15 }
 0x494   : > { %s5664_s14 = smov %s4128_s16  ;;  %s5665_s15 = smov %s5668_s18 }
 0x495   :  { %20 = sbr.rel (!%p18_p9) target bundleno = 3 (0x3), region = 122 }
 0x498   : > { %s5666_s16 = smov %s5662_s19 }

// kernel: pcn_encoder_muvar_forward.4
= control target key start
LH: loop header
LB: loop body
LE: loop exit
PB: predicated region body
PF: predicated region fallthrough
CT: control target
= control target key end

     0   :  { %s3568_s21 = smov 0   ;;  %s3570_s22 = smov 0   ;;  %s4938_s0 = inlined_call_operand.vmem [shape: bf16[2,512,256], index: 0, kind: input, shape index: {}]   ;;  %s4939_s1 = inlined_call_operand.vmem [shape: bf16[256,512], index: 1, kind: input, shape index: {}]   ;;  %s4940_s2 = inlined_call_operand.vmem [shape: f32[1,512], index: 2, kind: input, shape index: {}]   ;;  %s4941_s3 = inlined_call_operand.vmem [shape: f32[2,1,512], index: 3, kind: input, shape index: {}]   ;;  %s4942_s4 = inlined_call_operand.vmem [shape: bf16[512,128], index: 4, kind: input, shape index: {}]   ;;  %s4943_s5 = inlined_call_operand.vmem [shape: f32[1,128], index: 5, kind: input, shape index: {}]   ;;  %s4944_s6 = inlined_call_operand.vmem [shape: f32[2,1,128], index: 6, kind: output, shape index: {}]  }
   0x1   :  { %s3572_s23 = smov 0   ;;  %s3574_s24 = smov 0  }
   0x2   :  { %s3576_s25 = smov 0  }
   0x3 LB: > { %s25_s26 = sadd.s32 1, %s3523_s23  ;;  %s28_s27 = sadd.s32 1, %s3527_s24  ;;  %s3531_s25 = sphi %s3576_s25, %s16_s25   ;;  %s3527_s24 = sphi %s3574_s24, %s4960_s24   ;;  %s3523_s23 = sphi %s3572_s23, %s4959_s23   ;;  %s3519_s22 = sphi %s3570_s22, %s4958_s22   ;;  %s3515_s21 = sphi %s3568_s21, %s4957_s21  }
   0x4   : > { %p26_p0 = scmp.ge.s32.totalorder %s25_s26, 2  ;;  %p2800_p1 = scmp.ge.s32.totalorder %s3531_s25, 1 }
   0x5   : > { %p241_p2 = scmp.lt.s32.totalorder %s3531_s25, 5 }
   0x6   : > { %s4962_s26 = smov (%p26_p0, %s25_s26), 0  ;;  %s4964_s27 = smov (!%p26_p0, %s28_s27), %s3527_s24 }
   0x7   : > { %p242_p3 = pnand %p2800_p1, %p241_p2  ;;  %p30_p4 = scmp.ge.s32.totalorder %s4964_s27, 2 }
   0x9   : > { %s4966_s27 = smov (%p30_p4, %s4964_s27), 0  ;;  %245 = sbr.rel (%p242_p3) target bundleno = 975 (0x3cf), region = 44 }
   0xe   : > { %v3048_v0 = vld [vmem:[%s4939_s1 + $0xe0] sm:$0xf]  ;;  %v3384_v1 = vld [vmem:[%s4939_s1 + $0xec] sm:$0xf0]  ;;  %v3382_v5 = vld [vmem:[%s4939_s1 + $0xe4] sm:$0xf] }
   0xf   : > { %v3176_v2 = vld [vmem:[%s4939_s1 + $0x1e0] sm:$0xf]  ;;  %v3049_v3 = vor.u32 %v3384_v1, %v3048_v0  ;;  %v3416_v4 = vld [vmem:[%s4939_s1 + $0x1ec] sm:$0xf0]  ;;  %v3050_v6 = vld [vmem:[%s4939_s1 + $0xf0] sm:$0xf0] }
  0x10   : > { %v3177_v7 = vor.u32 %v3416_v4, %v3176_v2  ;;  %v3053_v8 = vor.u32 %v3382_v5, %v3050_v6  ;;  %v3414_v9 = vld [vmem:[%s4939_s1 + $0x1e4] sm:$0xf]  ;;  %v3178_v10 = vld [vmem:[%s4939_s1 + $0x1f0] sm:$0xf0]  ;;  %v3032_v11 = vld [vmem:[%s4939_s1 + $0xc0] sm:$0xf] }
  0x11   : > { %872 = vmatpush.bf16.msra.mxu0 %v3049_v3  ;;  %v3181_v12 = vor.u32 %v3414_v9, %v3178_v10  ;;  %v3380_v13 = vld [vmem:[%s4939_s1 + $0xcc] sm:$0xf0]  ;;  %v3160_v14 = vld [vmem:[%s4939_s1 + $0x1c0] sm:$0xf]  ;;  %v3378_v18 = vld [vmem:[%s4939_s1 + $0xc4] sm:$0xf] }
  0x12   : > { %v3412_v15 = vld [vmem:[%s4939_s1 + $0x1cc] sm:$0xf0]  ;;  %961 = vmatpush.bf16.msra.mxu1 %v3177_v7  ;;  %1050 = vmatpush.bf16.msra.mxu2 %v3053_v8  ;;  %v3033_v16 = vor.u32 %v3380_v13, %v3032_v11  ;;  %v3034_v19 = vld [vmem:[%s4939_s1 + $0xd0] sm:$0xf0]  ;;  %v3410_v20 = vld [vmem:[%s4939_s1 + $0x1c4] sm:$0xf] }
  0x13   : > { %v3161_v17 = vor.u32 %v3412_v15, %v3160_v14  ;;  %1139 = vmatpush.bf16.msra.mxu3 %v3181_v12  ;;  %v3037_v21 = vor.u32 %v3378_v18, %v3034_v19  ;;  %v3162_v22 = vld [vmem:[%s4939_s1 + $0x1d0] sm:$0xf0]  ;;  %v3016_v23 = vld [vmem:[%s4939_s1 + $0xa0] sm:$0xf]  ;;  %v3376_v24 = vld [vmem:[%s4939_s1 + $0xac] sm:$0xf0] }
  0x14   : > { %v3165_v25 = vor.u32 %v3410_v20, %v3162_v22  ;;  %v3144_v26 = vld [vmem:[%s4939_s1 + $0x1a0] sm:$0xf]  ;;  %v3408_v27 = vld [vmem:[%s4939_s1 + $0x1ac] sm:$0xf0]  ;;  %v3374_v28 = vld [vmem:[%s4939_s1 + $0xa4] sm:$0xf]  ;;  %v3017_v29 = vor.u32 %v3376_v24, %v3016_v23 }
  0x15   : > { %873 = vmatpush.bf16.msra.mxu0 %v3033_v16  ;;  %v3018_v30 = vld [vmem:[%s4939_s1 + $0xb0] sm:$0xf0]  ;;  %v3406_v31 = vld [vmem:[%s4939_s1 + $0x1a4] sm:$0xf]  ;;  %v3145_v33 = vor.u32 %v3408_v27, %v3144_v26  ;;  %v3000_v35 = vld [vmem:[%s4939_s1 + $0x80] sm:$0xf] }
  0x16   : > { %v3146_v32 = vld [vmem:[%s4939_s1 + $0x1b0] sm:$0xf0]  ;;  %962 = vmatpush.bf16.msra.mxu1 %v3161_v17  ;;  %1051 = vmatpush.bf16.msra.mxu2 %v3037_v21  ;;  %v3021_v34 = vor.u32 %v3374_v28, %v3018_v30  ;;  %v3372_v36 = vld [vmem:[%s4939_s1 + $0x8c] sm:$0xf0]  ;;  %v3128_v37 = vld [vmem:[%s4939_s1 + $0x180] sm:$0xf] }
  0x17   : > { %1140 = vmatpush.bf16.msra.mxu3 %v3165_v25  ;;  %v3149_v38 = vor.u32 %v3406_v31, %v3146_v32  ;;  %v3404_v39 = vld [vmem:[%s4939_s1 + $0x18c] sm:$0xf0]  ;;  %v3370_v40 = vld [vmem:[%s4939_s1 + $0x84] sm:$0xf]  ;;  %v3002_v41 = vld [vmem:[%s4939_s1 + $0x90] sm:$0xf0]  ;;  %v3001_v44 = vor.u32 %v3372_v36, %v3000_v35 }
  0x18   : > { %v3402_v42 = vld [vmem:[%s4939_s1 + $0x184] sm:$0xf]  ;;  %v3130_v43 = vld [vmem:[%s4939_s1 + $0x190] sm:$0xf0]  ;;  %v3129_v45 = vor.u32 %v3404_v39, %v3128_v37  ;;  %v3005_v46 = vor.u32 %v3370_v40, %v3002_v41  ;;  %v2984_v47 = vld [vmem:[%s4939_s1 + $0x60] sm:$0xf] }
  0x19   : > { %874 = vmatpush.bf16.msra.mxu0 %v3017_v29  ;;  %v3368_v48 = vld [vmem:[%s4939_s1 + $0x6c] sm:$0xf0]  ;;  %v3112_v49 = vld [vmem:[%s4939_s1 + $0x160] sm:$0xf]  ;;  %v3133_v50 = vor.u32 %v3402_v42, %v3130_v43  ;;  %v3366_v52 = vld [vmem:[%s4939_s1 + $0x64] sm:$0xf] }
  0x1a   : > { %963 = vmatpush.bf16.msra.mxu1 %v3145_v33  ;;  %1052 = vmatpush.bf16.msra.mxu2 %v3021_v34  ;;  %v3400_v51 = vld [vmem:[%s4939_s1 + $0x16c] sm:$0xf0]  ;;  %v2986_v53 = vld [vmem:[%s4939_s1 + $0x70] sm:$0xf0]  ;;  %v3398_v54 = vld [vmem:[%s4939_s1 + $0x164] sm:$0xf]  ;;  %v2985_v56 = vor.u32 %v3368_v48, %v2984_v47 }
  0x1b   : > { %1141 = vmatpush.bf16.msra.mxu3 %v3149_v38  ;;  %v3114_v55 = vld [vmem:[%s4939_s1 + $0x170] sm:$0xf0]  ;;  %v3113_v57 = vor.u32 %v3400_v51, %v3112_v49  ;;  %v2989_v58 = vor.u32 %v3366_v52, %v2986_v53  ;;  %v2968_v59 = vld [vmem:[%s4939_s1 + $0x40] sm:$0xf]  ;;  %v3364_v60 = vld [vmem:[%s4939_s1 + $0x4c] sm:$0xf0] }
  0x1c   : > { %v3096_v61 = vld [vmem:[%s4939_s1 + $0x140] sm:$0xf]  ;;  %v3117_v62 = vor.u32 %v3398_v54, %v3114_v55  ;;  %v3396_v63 = vld [vmem:[%s4939_s1 + $0x14c] sm:$0xf0]  ;;  %v3362_v0 = vld [vmem:[%s4939_s1 + $0x44] sm:$0xf]  ;;  %v2969_v4 = vor.u32 %v3364_v60, %v2968_v59 }
  0x1d   : > { %875 = vmatpush.bf16.msra.mxu0 %v3001_v44  ;;  %v2970_v1 = vld [vmem:[%s4939_s1 + $0x50] sm:$0xf0]  ;;  %v3394_v2 = vld [vmem:[%s4939_s1 + $0x144] sm:$0xf]  ;;  %v2952_v5 = vld [vmem:[%s4939_s1 + $0x20] sm:$0xf]  ;;  %v3097_v8 = vor.u32 %v3396_v63, %v3096_v61 }
  0x1e   : > { %964 = vmatpush.bf16.msra.mxu1 %v3129_v45  ;;  %1053 = vmatpush.bf16.msra.mxu2 %v3005_v46  ;;  %v3098_v3 = vld [vmem:[%s4939_s1 + $0x150] sm:$0xf0]  ;;  %v3360_v6 = vld [vmem:[%s4939_s1 + $0x2c] sm:$0xf0]  ;;  %v3080_v7 = vld [vmem:[%s4939_s1 + $0x120] sm:$0xf]  ;;  %v2973_v9 = vor.u32 %v3362_v0, %v2970_v1 }
  0x1f   : > { %1142 = vmatpush.bf16.msra.mxu3 %v3133_v50  ;;  %v3392_v10 = vld [vmem:[%s4939_s1 + $0x12c] sm:$0xf0]  ;;  %v3358_v11 = vld [vmem:[%s4939_s1 + $0x24] sm:$0xf]  ;;  %v2954_v12 = vld [vmem:[%s4939_s1 + $0x30] sm:$0xf0]  ;;  %v3101_v13 = vor.u32 %v3394_v2, %v3098_v3  ;;  %v2953_v18 = vor.u32 %v3360_v6, %v2952_v5 }
  0x20   : > { %v3390_v14 = vld [vmem:[%s4939_s1 + $0x124] sm:$0xf]  ;;  %v3082_v15 = vld [vmem:[%s4939_s1 + $0x130] sm:$0xf0]  ;;  %s2801_s14 = sshll.u32 %s3515_s21, 5  ;;  %p279_p5 = scmp.lt.s32.totalorder %s3519_s22, 1  ;;  %v3081_v22 = vor.u32 %v3392_v10, %v3080_v7  ;;  %v2957_v23 = vor.u32 %v3358_v11, %v2954_v12 }
  0x21   : > { %876 = vmatpush.bf16.msra.mxu0 %v2985_v56  ;;  %v2936_v16 = vld [vmem:[%s4939_s1] sm:$0xf]  ;;  %v3356_v17 = vld [vmem:[%s4939_s1 + $0xc] sm:$0xf0]  ;;  %p281_p6 = scmp.lt.s32.totalorder %s2801_s14, 63  ;;  %v3085_v26 = vor.u32 %v3390_v14, %v3082_v15  ;;  %p3318_p7 = scmp.ne.s32.totalorder %s3515_s21, 0 }
  0x22   : > { %965 = vmatpush.bf16.msra.mxu1 %v3113_v57  ;;  %1054 = vmatpush.bf16.msra.mxu2 %v2989_v58  ;;  %v3064_v19 = vld [vmem:[%s4939_s1 + $0x100] sm:$0xf]  ;;  %v3388_v20 = vld [vmem:[%s4939_s1 + $0x10c] sm:$0xf0]  ;;  %v3354_v21 = vld [vmem:[%s4939_s1 + $0x4] sm:$0xf]  ;;  %v2937_v30 = vor.u32 %v3356_v17, %v2936_v16 }
  0x23   : > { %1143 = vmatpush.bf16.msra.mxu3 %v3117_v62  ;;  %s4968_s22 = smov (!%p279_p5, %s3519_s22), 1  ;;  %v2938_v24 = vld [vmem:[%s4939_s1 + $0x10] sm:$0xf0]  ;;  %v3386_v25 = vld [vmem:[%s4939_s1 + $0x104] sm:$0xf]  ;;  %s4970_s14 = smov (!%p281_p6, %s2801_s14), 63  ;;  %v3065_v33 = vor.u32 %v3388_v20, %v3064_v19 }
  0x24   : > { %v3066_v27 = vld [vmem:[%s4939_s1 + $0x110] sm:$0xf0]  ;;  %s2803_s15 = sshll.u32 %s4968_s22, 7  ;;  %s3804_s18 = scalar_lea.vmem %s4944_s6, %s4968_s22  ;;  %v3383_v28 = vld [vmem:[%s4939_s1 + $0xec] sm:$0xf]  ;;  %v2941_v34 = vor.u32 %v3354_v21, %v2938_v24 }
  0x25   : > { %877 = vmatpush.bf16.msra.mxu0 %v2969_v4  ;;  %s2802_s19 = sshll.u32 %s4970_s14, 1  ;;  %v3058_v29 = vld [vmem:[%s4939_s1 + $0xf8] sm:$0xf0]  ;;  %v3415_v31 = vld [vmem:[%s4939_s1 + $0x1ec] sm:$0xf]  ;;  %v3069_v36 = vor.u32 %v3386_v25, %v3066_v27 }
  0x26   : > { %966 = vmatpush.bf16.msra.mxu1 %v3097_v8  ;;  %1055 = vmatpush.bf16.msra.mxu2 %v2973_v9  ;;  %s285_s7 = sadd.s32 %s2803_s15, %s2802_s19  ;;  %v3186_v32 = vld [vmem:[%s4939_s1 + $0x1f8] sm:$0xf0]  ;;  %v3056_v35 = vld [vmem:[%s4939_s1 + $0xe8] sm:$0xf]  ;;  %v3061_v37 = vor.u32 %v3383_v28, %v3058_v29  ;;  %v3385_v38 = vld [vmem:[%s4939_s1 + $0xf4] sm:$0xf0] }
  0x27   : > { %1144 = vmatpush.bf16.msra.mxu3 %v3101_v13  ;;  %s2804_s14 = sshll.u32 %s285_s7, 2  ;;  %v3184_v39 = vld [vmem:[%s4939_s1 + $0x1e8] sm:$0xf]  ;;  %v3417_v40 = vld [vmem:[%s4939_s1 + $0x1f4] sm:$0xf0]  ;;  %v3189_v44 = vor.u32 %v3415_v31, %v3186_v32  ;;  %v3057_v48 = vor.u32 %v3385_v38, %v3056_v35 }
  0x28   : > { %s3824_s17 = scalar_lea.vmem %s4938_s0, %s2804_s14  ;;  %v3185_v49 = vor.u32 %v3417_v40, %v3184_v39  ;;  %v3379_v50 = vld [vmem:[%s4939_s1 + $0xcc] sm:$0xf]  ;;  %v3042_v51 = vld [vmem:[%s4939_s1 + $0xd8] sm:$0xf0]  ;;  %v3040_v52 = vld [vmem:[%s4939_s1 + $0xc8] sm:$0xf] }
  0x29   : > { %878 = vmatpush.bf16.msra.mxu0 %v2953_v18  ;;  %v2808_v41 = vld [vmem:[%s3824_s17] sm:$0xf]  ;;  %v3323_v42 = vld [vmem:[%s3824_s17 + $0x4] sm:$0xf0]  ;;  %v3322_v43 = vld [vmem:[%s3824_s17 + $0x4] sm:$0xf]  ;;  %v3045_v53 = vor.u32 %v3379_v50, %v3042_v51 }
  0x2a   : > { %967 = vmatpush.bf16.msra.mxu1 %v3081_v22  ;;  %1056 = vmatpush.bf16.msra.mxu2 %v2957_v23  ;;  %v3838_v45 = vor.u32 %v3323_v42, %v2808_v41  ;;  %v2810_v46 = vld [vmem:[%s3824_s17 + $0x8] sm:$0xf0]  ;;  %v3381_v54 = vld [vmem:[%s4939_s1 + $0xd4] sm:$0xf0]  ;;  %v3170_v56 = vld [vmem:[%s4939_s1 + $0x1d8] sm:$0xf0] }
  0x2b   : > { %1145 = vmatpush.bf16.msra.mxu3 %v3085_v26  ;;  %v3841_v47 = vor.u32 %v3322_v43, %v2810_v46  ;;  %v3411_v55 = vld [vmem:[%s4939_s1 + $0x1cc] sm:$0xf]  ;;  %v3041_v57 = vor.u32 %v3381_v54, %v3040_v52  ;;  %v3168_v59 = vld [vmem:[%s4939_s1 + $0x1c8] sm:$0xf]  ;;  %v3413_v60 = vld [vmem:[%s4939_s1 + $0x1d4] sm:$0xf0] }
  0x2c   : > { %v3173_v58 = vor.u32 %v3411_v55, %v3170_v56  ;;  %v3169_v61 = vor.u32 %v3413_v60, %v3168_v59  ;;  %v2816_v62 = vld [vmem:[%s3824_s17 + $0x10] sm:$0xf]  ;;  %v3325_v63 = vld [vmem:[%s3824_s17 + $0x14] sm:$0xf0]  ;;  %v3324_v0 = vld [vmem:[%s3824_s17 + $0x14] sm:$0xf] }
  0x2d   : > { %879 = vmatpush.bf16.msra.mxu0 %v2937_v30  ;;  %v2818_v1 = vld [vmem:[%s3824_s17 + $0x18] sm:$0xf0]  ;;  %v3875_v2 = vor.u32 %v3325_v63, %v2816_v62  ;;  %v2824_v4 = vld [vmem:[%s3824_s17 + $0x20] sm:$0xf]  ;;  %v3327_v5 = vld [vmem:[%s3824_s17 + $0x24] sm:$0xf0] }
  0x2e   : > { %968 = vmatpush.bf16.msra.mxu1 %v3065_v33  ;;  %1057 = vmatpush.bf16.msra.mxu2 %v2941_v34  ;;  %v3877_v3 = vor.u32 %v3324_v0, %v2818_v1  ;;  %v3326_v6 = vld [vmem:[%s3824_s17 + $0x24] sm:$0xf]  ;;  %v2826_v7 = vld [vmem:[%s3824_s17 + $0x28] sm:$0xf0]  ;;  %v3887_v8 = vor.u32 %v3327_v5, %v2824_v4  ;;  %v3026_v11 = vld [vmem:[%s4939_s1 + $0xb8] sm:$0xf0] }
  0x2f   : > { %1146 = vmatpush.bf16.msra.mxu3 %v3069_v36  ;;  %v3889_v9 = vor.u32 %v3326_v6, %v2826_v7  ;;  %v3375_v10 = vld [vmem:[%s4939_s1 + $0xac] sm:$0xf]  ;;  %v3024_v12 = vld [vmem:[%s4939_s1 + $0xa8] sm:$0xf]  ;;  %v3377_v14 = vld [vmem:[%s4939_s1 + $0xb4] sm:$0xf0] }
  0x30   : > { %880 = vmatmul.bf16.vlgmr.msra.gmra.mxu0 %v3838_v45  ;;  %v3029_v13 = vor.u32 %v3375_v10, %v3026_v11  ;;  %v3407_v15 = vld [vmem:[%s4939_s1 + $0x1ac] sm:$0xf]  ;;  %v3154_v16 = vld [vmem:[%s4939_s1 + $0x1b8] sm:$0xf0]  ;;  %v3025_v17 = vor.u32 %v3377_v14, %v3024_v12  ;;  %v3152_v19 = vld [vmem:[%s4939_s1 + $0x1a8] sm:$0xf] }
  0x31   : > { %969 = vmatmul.bf16.vlgmr.msra.gmra.mxu1 %v3841_v47  ;;  %1058 = vmatmul.bf16.vlgmr.msra.gmra.mxu2 %v3838_v45  ;;  %v3157_v18 = vor.u32 %v3407_v15, %v3154_v16  ;;  %v3409_v20 = vld [vmem:[%s4939_s1 + $0x1b4] sm:$0xf0]  ;;  %v2832_v22 = vld [vmem:[%s3824_s17 + $0x30] sm:$0xf]  ;;  %v3328_v24 = vld [vmem:[%s3824_s17 + $0x34] sm:$0xf] }
  0x32   : > { %1406 = vmatpush.bf16.msrb.mxu2 %v3061_v37  ;;  %1147 = vmatmul.bf16.vlgmr.msra.gmra.mxu3 %v3841_v47  ;;  %v3153_v21 = vor.u32 %v3409_v20, %v3152_v19  ;;  %v3329_v23 = vld [vmem:[%s3824_s17 + $0x34] sm:$0xf0]  ;;  %v2834_v25 = vld [vmem:[%s3824_s17 + $0x38] sm:$0xf0]  ;;  %v2840_v28 = vld [vmem:[%s3824_s17 + $0x40] sm:$0xf] }
  0x33   : > { %1495 = vmatpush.bf16.msrb.mxu3 %v3189_v44  ;;  %1228 = vmatpush.bf16.msrb.mxu0 %v3057_v48  ;;  %v3923_v26 = vor.u32 %v3329_v23, %v2832_v22  ;;  %v3925_v27 = vor.u32 %v3328_v24, %v2834_v25  ;;  %v3331_v29 = vld [vmem:[%s3824_s17 + $0x44] sm:$0xf0]  ;;  %v3330_v30 = vld [vmem:[%s3824_s17 + $0x44] sm:$0xf]  ;;  %v2842_v31 = vld [vmem:[%s3824_s17 + $0x48] sm:$0xf0] }
  0x34   : > { %1317 = vmatpush.bf16.msrb.mxu1 %v3185_v49  ;;  %v3935_v32 = vor.u32 %v3331_v29, %v2840_v28  ;;  %v3937_v33 = vor.u32 %v3330_v30, %v2842_v31  ;;  %v3371_v34 = vld [vmem:[%s4939_s1 + $0x8c] sm:$0xf]  ;;  %v3010_v35 = vld [vmem:[%s4939_s1 + $0x98] sm:$0xf0]  ;;  %v3008_v36 = vld [vmem:[%s4939_s1 + $0x88] sm:$0xf] }
  0x35   : > { %v3013_v37 = vor.u32 %v3371_v34, %v3010_v35  ;;  %v3373_v38 = vld [vmem:[%s4939_s1 + $0x94] sm:$0xf0]  ;;  %v3403_v39 = vld [vmem:[%s4939_s1 + $0x18c] sm:$0xf]  ;;  %v3138_v40 = vld [vmem:[%s4939_s1 + $0x198] sm:$0xf0] }
  0x36   : > { %1407 = vmatpush.bf16.msrb.mxu2 %v3045_v53  ;;  %v3009_v41 = vor.u32 %v3373_v38, %v3008_v36  ;;  %v3141_v42 = vor.u32 %v3403_v39, %v3138_v40  ;;  %v3136_v43 = vld [vmem:[%s4939_s1 + $0x188] sm:$0xf]  ;;  %v3405_v44 = vld [vmem:[%s4939_s1 + $0x194] sm:$0xf0]  ;;  %v2848_v48 = vld [vmem:[%s3824_s17 + $0x50] sm:$0xf] }
  0x37   : > { %1229 = vmatpush.bf16.msrb.mxu0 %v3041_v57  ;;  %1496 = vmatpush.bf16.msrb.mxu3 %v3173_v58  ;;  %v3137_v46 = vor.u32 %v3405_v44, %v3136_v43  ;;  %v3333_v49 = vld [vmem:[%s3824_s17 + $0x54] sm:$0xf0]  ;;  %v3332_v50 = vld [vmem:[%s3824_s17 + $0x54] sm:$0xf]  ;;  %v2850_v51 = vld [vmem:[%s3824_s17 + $0x58] sm:$0xf0] }
  0x38   : > { %1318 = vmatpush.bf16.msrb.mxu1 %v3169_v61  ;;  %v3971_v52 = vor.u32 %v3333_v49, %v2848_v48  ;;  %v3973_v53 = vor.u32 %v3332_v50, %v2850_v51  ;;  %v2856_v54 = vld [vmem:[%s3824_s17 + $0x60] sm:$0xf]  ;;  %v3335_v55 = vld [vmem:[%s3824_s17 + $0x64] sm:$0xf0]  ;;  %v3334_v56 = vld [vmem:[%s3824_s17 + $0x64] sm:$0xf] }
  0x39   : > { %v2858_v57 = vld [vmem:[%s3824_s17 + $0x68] sm:$0xf0]  ;;  %v3983_v58 = vor.u32 %v3335_v55, %v2856_v54  ;;  %v2994_v61 = vld [vmem:[%s4939_s1 + $0x78] sm:$0xf0]  ;;  %v2992_v62 = vld [vmem:[%s4939_s1 + $0x68] sm:$0xf] }
  0x3a   : > { %1408 = vmatpush.bf16.msrb.mxu2 %v3029_v13  ;;  %v3985_v59 = vor.u32 %v3334_v56, %v2858_v57  ;;  %v3367_v60 = vld [vmem:[%s4939_s1 + $0x6c] sm:$0xf]  ;;  %v3369_v0 = vld [vmem:[%s4939_s1 + $0x74] sm:$0xf0]  ;;  %v3122_v4 = vld [vmem:[%s4939_s1 + $0x178] sm:$0xf0] }
  0x3b   : > { %1230 = vmatpush.bf16.msrb.mxu0 %v3025_v17  ;;  %1497 = vmatpush.bf16.msrb.mxu3 %v3157_v18  ;;  %v2997_v63 = vor.u32 %v3367_v60, %v2994_v61  ;;  %v3399_v1 = vld [vmem:[%s4939_s1 + $0x16c] sm:$0xf]  ;;  %v2993_v5 = vor.u32 %v3369_v0, %v2992_v62  ;;  %v2864_v7 = vld [vmem:[%s3824_s17 + $0x70] sm:$0xf]  ;;  %v3337_v10 = vld [vmem:[%s3824_s17 + $0x74] sm:$0xf0] }
  0x3c   : > { %1319 = vmatpush.bf16.msrb.mxu1 %v3153_v21  ;;  %v3125_v6 = vor.u32 %v3399_v1, %v3122_v4  ;;  %v3336_v11 = vld [vmem:[%s3824_s17 + $0x74] sm:$0xf]  ;;  %v2866_v12 = vld [vmem:[%s3824_s17 + $0x78] sm:$0xf0]  ;;  %v4013_v13 = vor.u32 %v3337_v10, %v2864_v7  ;;  %v3120_v14 = vld [vmem:[%s4939_s1 + $0x168] sm:$0xf] }
  0x3d   : > { %v3401_v15 = vld [vmem:[%s4939_s1 + $0x174] sm:$0xf0]  ;;  %v4021_v16 = vor.u32 %v3336_v11, %v2866_v12  ;;  %v2872_v18 = vld [vmem:[%s3824_s17 + $0x80] sm:$0xf]  ;;  %v3339_v19 = vld [vmem:[%s3824_s17 + $0x84] sm:$0xf0] }
  0x3e   : > { %1409 = vmatpush.bf16.msrb.mxu2 %v3013_v37  ;;  %v3121_v17 = vor.u32 %v3401_v15, %v3120_v14  ;;  %v3338_v20 = vld [vmem:[%s3824_s17 + $0x84] sm:$0xf]  ;;  %v2874_v21 = vld [vmem:[%s3824_s17 + $0x88] sm:$0xf0]  ;;  %s2805_s14 = sshll.u32 %s4968_s22, 2  ;;  %v4032_v22 = vor.u32 %v3339_v19, %v2872_v18 }
  0x3f   : > { %1231 = vmatpush.bf16.msrb.mxu0 %v3009_v41  ;;  %1498 = vmatpush.bf16.msrb.mxu3 %v3141_v42  ;;  %v4034_v24 = vor.u32 %v3338_v20, %v2874_v21  ;;  %v1584_v28 = vld [vmem:[%s4940_s2] sm:$0xf]  ;;  %s4042_s19 = scalar_lea.vmem %s4941_s3, %s2805_s14  ;;  %v3363_v39 = vld [vmem:[%s4939_s1 + $0x4c] sm:$0xf]  ;;  %v2978_v40 = vld [vmem:[%s4939_s1 + $0x58] sm:$0xf0] }
  0x40   : > { %885 = vmatmul.bf16.gmra.mxu0 %v3875_v2  ;;  %1320 = vmatpush.bf16.msrb.mxu1 %v3137_v46  ;;  %v4045_v30 = vperm.slane %v1584_v28, 0  ;;  %v1722_v31 = vld [vmem:[%s4042_s19] sm:$0xf]  ;;  %v2981_v43 = vor.u32 %v3363_v39, %v2978_v40  ;;  %v2976_v44 = vld [vmem:[%s4939_s1 + $0x48] sm:$0xf]  ;;  %v4072_v54 = vperm.slane %v1584_v28, 1 }
  0x41   : > { %974 = vmatmul.bf16.gmra.mxu1 %v3877_v3  ;;  %1063 = vmatmul.bf16.gmra.mxu2 %v3875_v2  ;;  %v4052_v36 = vperm.slane %v1722_v31, 0  ;;  %v3365_v46 = vld [vmem:[%s4939_s1 + $0x54] sm:$0xf0]  ;;  %v3395_v48 = vld [vmem:[%s4939_s1 + $0x14c] sm:$0xf]  ;;  %v4082_v4 = vperm.slane %v1722_v31, 1 }
  0x42   : > { %1152 = vmatmul.bf16.gmra.mxu3 %v3877_v3  ;;  %1410 = vmatpush.bf16.msrb.mxu2 %v2997_v63  ;;  %v2977_v50 = vor.u32 %v3365_v46, %v2976_v44  ;;  %v3106_v51 = vld [vmem:[%s4939_s1 + $0x158] sm:$0xf0]  ;;  %v2880_v60 = vld [vmem:[%s3824_s17 + $0x90] sm:$0xf]  ;;  %v3341_v61 = vld [vmem:[%s3824_s17 + $0x94] sm:$0xf0] }
  0x43   : > { %1232 = vmatpush.bf16.msrb.mxu0 %v2993_v5  ;;  %1499 = vmatpush.bf16.msrb.mxu3 %v3125_v6  ;;  %v3109_v55 = vor.u32 %v3395_v48, %v3106_v51  ;;  %v3340_v62 = vld [vmem:[%s3824_s17 + $0x94] sm:$0xf]  ;;  %v2882_v63 = vld [vmem:[%s3824_s17 + $0x98] sm:$0xf0]  ;;  %v4084_v6 = vor.u32 %v3341_v61, %v2880_v60  ;;  %v3104_v7 = vld [vmem:[%s4939_s1 + $0x148] sm:$0xf] }
  0x44   : > { %1321 = vmatpush.bf16.msrb.mxu1 %v3121_v17  ;;  %v3397_v10 = vld [vmem:[%s4939_s1 + $0x154] sm:$0xf0]  ;;  %v4092_v17 = vor.u32 %v3340_v62, %v2882_v63  ;;  %v2888_v48 = vld [vmem:[%s3824_s17 + $0xa0] sm:$0xf]  ;;  %v2890_v51 = vld [vmem:[%s3824_s17 + $0xa8] sm:$0xf0] }
  0x45   : > { %v3105_v18 = vor.u32 %v3397_v10, %v3104_v7 }
  0x46   : > { %1411 = vmatpush.bf16.msrb.mxu2 %v2981_v43 }
  0x47   : > { %1233 = vmatpush.bf16.msrb.mxu0 %v2977_v50  ;;  %1500 = vmatpush.bf16.msrb.mxu3 %v3109_v55  ;;  %v3342_v50 = vld [vmem:[%s3824_s17 + $0xa4] sm:$0xf] }
  0x48   : > { %1322 = vmatpush.bf16.msrb.mxu1 %v3105_v18 }
  0x50   : > { %890 = vmatmul.bf16.gmra.mxu0 %v3887_v8 }
  0x51   : > { %979 = vmatmul.bf16.gmra.mxu1 %v3889_v9  ;;  %1068 = vmatmul.bf16.gmra.mxu2 %v3887_v8 }
  0x52   : > { %1157 = vmatmul.bf16.gmra.mxu3 %v3889_v9 }
  0x60   : > { %895 = vmatmul.bf16.gmra.mxu0 %v3923_v26 }
  0x61   : > { %984 = vmatmul.bf16.gmra.mxu1 %v3925_v27  ;;  %1073 = vmatmul.bf16.gmra.mxu2 %v3923_v26 }
  0x62   : > { %1162 = vmatmul.bf16.gmra.mxu3 %v3925_v27 }
  0x70   : > { %900 = vmatmul.bf16.gmra.mxu0 %v3935_v32 }
  0x71   : > { %989 = vmatmul.bf16.gmra.mxu1 %v3937_v33  ;;  %1078 = vmatmul.bf16.gmra.mxu2 %v3935_v32 }
  0x72   : > { %1167 = vmatmul.bf16.gmra.mxu3 %v3937_v33 }
  0x80   : > { %905 = vmatmul.bf16.gmra.mxu0 %v3971_v52 }
  0x81   : > { %994 = vmatmul.bf16.gmra.mxu1 %v3973_v53  ;;  %1083 = vmatmul.bf16.gmra.mxu2 %v3971_v52 }
  0x82   : > { %1172 = vmatmul.bf16.gmra.mxu3 %v3973_v53 }
  0x90   : > { %910 = vmatmul.bf16.gmra.mxu0 %v3983_v58 }
  0x91   : > { %999 = vmatmul.bf16.gmra.mxu1 %v3985_v59  ;;  %1088 = vmatmul.bf16.gmra.mxu2 %v3983_v58 }
  0x92   : > { %1177 = vmatmul.bf16.gmra.mxu3 %v3985_v59 }
  0xa0   : > { %915 = vmatmul.bf16.gmra.mxu0 %v4013_v13 }
  0xa1   : > { %1004 = vmatmul.bf16.gmra.mxu1 %v4021_v16  ;;  %1093 = vmatmul.bf16.gmra.mxu2 %v4013_v13 }
  0xa2   : > { %1182 = vmatmul.bf16.gmra.mxu3 %v4021_v16 }
  0xad   : > { %v881_v23 = vpop.f32.mrf.mxu0 }
  0xae   : > { %v970_v25 = vpop.f32.mrf.mxu1 }
  0xaf   : > { %v971_v29 = vadd.f32 %v970_v25, %v881_v23 }
  0xb0   : > { %920 = vmatmul.bf16.gmra.mxu0 %v4032_v22 }
  0xb1   : > { %1009 = vmatmul.bf16.gmra.mxu1 %v4034_v24  ;;  %1098 = vmatmul.bf16.gmra.mxu2 %v4032_v22  ;;  %v1594_v35 = vmul.f32 %v4045_v30, %v971_v29 }
  0xb2   : > { %1187 = vmatmul.bf16.gmra.mxu3 %v4034_v24 }
  0xb3   : > { %v1732_v56 = vadd.f32 %v4052_v36, %v1594_v35 }
  0xb4   : > { %v1059_v34 = vpop.f32.mrf.mxu2 }
  0xb5   : > { %v1148_v37 = vpop.f32.mrf.mxu3  ;;  %v883_v38 = vpop.f32.mrf.mxu0  ;;  %v1860_v11 = vmax.f32 %v1732_v56, 0.0 }
  0xb6   : > { %v1149_v41 = vadd.f32 %v1148_v37, %v1059_v34  ;;  %v972_v42 = vpop.f32.mrf.mxu1 }
  0xb7   : > { %v973_v49 = vadd.f32 %v972_v42, %v883_v38 }
  0xb8   : > { %v1595_v1 = vmul.f32 %v4072_v54, %v1149_v41 }
  0xb9   : > { %v1598_v57 = vmul.f32 %v4045_v30, %v973_v49  ;;  %v3343_v49 = vld [vmem:[%s3824_s17 + $0xa4] sm:$0xf0] }
  0xba   : > { %v1733_v25 = vadd.f32 %v4082_v4, %v1595_v1  ;;  %v4114_v60 = vor.u32 %v3343_v49, %v2888_v48 }
  0xbb   : > { %v1736_v0 = vadd.f32 %v4052_v36, %v1598_v57 }
  0xbc   : > { %v1061_v5 = vpop.f32.mrf.mxu2  ;;  %v1861_v31 = vmax.f32 %v1733_v25, 0.0 }
  0xbd   : > { %v1864_v12 = vmax.f32 %v1736_v0, 0.0  ;;  %v1150_v14 = vpop.f32.mrf.mxu3  ;;  %v886_v15 = vpop.f32.mrf.mxu0  ;;  %v4116_v0 = vor.u32 %v3342_v50, %v2890_v51  ;;  %v2896_v51 = vld [vmem:[%s3824_s17 + $0xb0] sm:$0xf] }
  0xbe   : > { %v1151_v19 = vadd.f32 %v1150_v14, %v1061_v5  ;;  %v975_v20 = vpop.f32.mrf.mxu1 }
  0xbf   : > { %v4094_v21 = vpack.c.bf16 %v1864_v12, %v1860_v11  ;;  %v976_v23 = vadd.f32 %v975_v20, %v886_v15 }
  0xc0   : > { %v1599_v28 = vmul.f32 %v4072_v54, %v1151_v19  ;;  %925 = vmatmul.bf16.gmra.mxu0 %v4084_v6 }
  0xc1   : > { %1014 = vmatmul.bf16.gmra.mxu1 %v4092_v17  ;;  %1103 = vmatmul.bf16.gmra.mxu2 %v4084_v6  ;;  %v1602_v37 = vmul.f32 %v4045_v30, %v976_v23 }
  0xc2   : > { %v1737_v29 = vadd.f32 %v4082_v4, %v1599_v28  ;;  %1192 = vmatmul.bf16.gmra.mxu3 %v4092_v17 }
  0xc3   : > { %v1740_v44 = vadd.f32 %v4052_v36, %v1602_v37 }
  0xc4   : > { %v1865_v34 = vmax.f32 %v1737_v29, 0.0  ;;  %v1064_v35 = vpop.f32.mrf.mxu2  ;;  %v3359_v29 = vld [vmem:[%s4939_s1 + $0x2c] sm:$0xf] }
  0xc5   : > { %v1153_v38 = vpop.f32.mrf.mxu3  ;;  %v888_v39 = vpop.f32.mrf.mxu0  ;;  %v1868_v61 = vmax.f32 %v1740_v44, 0.0 }
  0xc6   : > { %v4104_v40 = vpack.c.bf16 %v1865_v34, %v1861_v31  ;;  %v1154_v41 = vadd.f32 %v1153_v38, %v1064_v35  ;;  %v977_v42 = vpop.f32.mrf.mxu1  ;;  %v2962_v31 = vld [vmem:[%s4939_s1 + $0x38] sm:$0xf0]  ;;  %v2960_v38 = vld [vmem:[%s4939_s1 + $0x28] sm:$0xf] }
  0xc7   : > { %v978_v43 = vadd.f32 %v977_v42, %v888_v39  ;;  %v2965_v37 = vor.u32 %v3359_v29, %v2962_v31  ;;  %v3361_v39 = vld [vmem:[%s4939_s1 + $0x34] sm:$0xf0] }
  0xc8   : > { %v1603_v56 = vmul.f32 %v4072_v54, %v1154_v41  ;;  %v3391_v41 = vld [vmem:[%s4939_s1 + $0x12c] sm:$0xf]  ;;  %v2961_v44 = vor.u32 %v3361_v39, %v2960_v38 }
  0xc9   : > { %v1606_v46 = vmul.f32 %v4045_v30, %v978_v43  ;;  %1412 = vmatpush.bf16.msrb.mxu2 %v2965_v37 }
  0xca   : > { %v1741_v12 = vadd.f32 %v4082_v4, %v1603_v56  ;;  %1234 = vmatpush.bf16.msrb.mxu0 %v2961_v44  ;;  %v3344_v56 = vld [vmem:[%s3824_s17 + $0xb4] sm:$0xf] }
  0xcb   : > { %v1744_v55 = vadd.f32 %v4052_v36, %v1606_v46  ;;  %v3090_v46 = vld [vmem:[%s4939_s1 + $0x138] sm:$0xf0] }
  0xcc   : > { %v1066_v57 = vpop.f32.mrf.mxu2  ;;  %v1869_v18 = vmax.f32 %v1741_v12, 0.0  ;;  %v3093_v48 = vor.u32 %v3391_v41, %v3090_v46 }
  0xcd   : > { %v1155_v62 = vpop.f32.mrf.mxu3  ;;  %v891_v63 = vpop.f32.mrf.mxu0  ;;  %v1872_v1 = vmax.f32 %v1744_v55, 0.0  ;;  %v3345_v55 = vld [vmem:[%s3824_s17 + $0xb4] sm:$0xf0] }
  0xce   : > { %v1156_v5 = vadd.f32 %v1155_v62, %v1066_v57  ;;  %v980_v7 = vpop.f32.mrf.mxu1  ;;  %v2898_v57 = vld [vmem:[%s3824_s17 + $0xb8] sm:$0xf0]  ;;  %1501 = vmatpush.bf16.msrb.mxu3 %v3093_v48 }
  0xcf   : > { %v981_v10 = vadd.f32 %v980_v7, %v891_v63  ;;  %v4118_v11 = vpack.c.bf16 %v1872_v1, %v1868_v61  ;;  %v4156_v1 = vor.u32 %v3345_v55, %v2896_v51  ;;  %v3393_v7 = vld [vmem:[%s4939_s1 + $0x134] sm:$0xf0]  ;;  %v2904_v55 = vld [vmem:[%s3824_s17 + $0xc0] sm:$0xf] }
  0xd0   : > { %v1607_v14 = vmul.f32 %v4072_v54, %v1156_v5  ;;  %930 = vmatmul.bf16.gmra.mxu0 %v4114_v60  ;;  %v3088_v5 = vld [vmem:[%s4939_s1 + $0x128] sm:$0xf] }
  0xd1   : > { %1019 = vmatmul.bf16.gmra.mxu1 %v4116_v0  ;;  %1108 = vmatmul.bf16.gmra.mxu2 %v4114_v60  ;;  %v1610_v23 = vmul.f32 %v4045_v30, %v981_v10 }
  0xd2   : > { %v1745_v15 = vadd.f32 %v4082_v4, %v1607_v14  ;;  %1197 = vmatmul.bf16.gmra.mxu3 %v4116_v0 }
  0xd3   : > { %v1748_v49 = vadd.f32 %v4052_v36, %v1610_v23 }
  0xd4   : > { %v1069_v19 = vpop.f32.mrf.mxu2  ;;  %v1873_v20 = vmax.f32 %v1745_v15, 0.0  ;;  %v4164_v15 = vor.u32 %v3344_v56, %v2898_v57  ;;  %v3347_v56 = vld [vmem:[%s3824_s17 + $0xc4] sm:$0xf0]  ;;  %v3346_v57 = vld [vmem:[%s3824_s17 + $0xc4] sm:$0xf] }
  0xd5   : > { %v1158_v25 = vpop.f32.mrf.mxu3  ;;  %v893_v28 = vpop.f32.mrf.mxu0  ;;  %v1876_v10 = vmax.f32 %v1748_v49, 0.0 }
  0xd6   : > { %v1159_v34 = vadd.f32 %v1158_v25, %v1069_v19  ;;  %v982_v35 = vpop.f32.mrf.mxu1  ;;  %v4143_v42 = vpack.c.bf16 %v1873_v20, %v1869_v18  ;;  %v3089_v18 = vor.u32 %v3393_v7, %v3088_v5  ;;  %v4186_v7 = vor.u32 %v3347_v56, %v2904_v55  ;;  %v2944_v56 = vld [vmem:[%s4939_s1 + $0x8] sm:$0xf] }
  0xd7   : > { %v983_v43 = vadd.f32 %v982_v35, %v893_v28 }
  0xd8   : > { %v1611_v62 = vmul.f32 %v4072_v54, %v1159_v34  ;;  %1323 = vmatpush.bf16.msrb.mxu1 %v3089_v18 }
  0xd9   : > { %v1614_v50 = vmul.f32 %v4045_v30, %v983_v43 }
  0xda   : > { %v1749_v29 = vadd.f32 %v4082_v4, %v1611_v62 }
  0xdb   : > { %v1752_v61 = vadd.f32 %v4052_v36, %v1614_v50 }
  0xdc   : > { %v1071_v63 = vpop.f32.mrf.mxu2  ;;  %v1877_v35 = vmax.f32 %v1749_v29, 0.0 }
  0xdd   : > { %v1160_v12 = vpop.f32.mrf.mxu3  ;;  %v896_v14 = vpop.f32.mrf.mxu0  ;;  %v1880_v19 = vmax.f32 %v1752_v61, 0.0  ;;  %v2906_v61 = vld [vmem:[%s3824_s17 + $0xc8] sm:$0xf0] }
  0xde   : > { %v1161_v20 = vadd.f32 %v1160_v12, %v1071_v63  ;;  %v985_v23 = vpop.f32.mrf.mxu1  ;;  %v4188_v18 = vor.u32 %v3346_v57, %v2906_v61  ;;  %v3357_v57 = vld [vmem:[%s4939_s1 + $0x14] sm:$0xf0]  ;;  %v3387_v61 = vld [vmem:[%s4939_s1 + $0x10c] sm:$0xf] }
  0xdf   : > { %v986_v25 = vadd.f32 %v985_v23, %v896_v14  ;;  %v4166_v28 = vpack.c.bf16 %v1880_v19, %v1876_v10 }
  0xe0   : > { %v1615_v31 = vmul.f32 %v4072_v54, %v1161_v20  ;;  %935 = vmatmul.bf16.gmra.mxu0 %v4156_v1 }
  0xe1   : > { %1024 = vmatmul.bf16.gmra.mxu1 %v4164_v15  ;;  %1113 = vmatmul.bf16.gmra.mxu2 %v4156_v1  ;;  %v1618_v39 = vmul.f32 %v4045_v30, %v986_v25 }
  0xe2   : > { %v1753_v34 = vadd.f32 %v4082_v4, %v1615_v31  ;;  %1202 = vmatmul.bf16.gmra.mxu3 %v4164_v15 }
  0xe3   : > { %v1756_v50 = vadd.f32 %v4052_v36, %v1618_v39 }
  0xe4   : > { %v1074_v37 = vpop.f32.mrf.mxu2  ;;  %v1881_v38 = vmax.f32 %v1753_v34, 0.0 }
  0xe5   : > { %v1163_v41 = vpop.f32.mrf.mxu3  ;;  %v898_v43 = vpop.f32.mrf.mxu0  ;;  %v1884_v10 = vmax.f32 %v1756_v50, 0.0 }
  0xe6   : > { %v1164_v44 = vadd.f32 %v1163_v41, %v1074_v37  ;;  %v987_v46 = vpop.f32.mrf.mxu1  ;;  %v4176_v48 = vpack.c.bf16 %v1881_v38, %v1877_v35 }
  0xe7   : > { %v988_v49 = vadd.f32 %v987_v46, %v898_v43  ;;  %v3355_v46 = vld [vmem:[%s4939_s1 + $0xc] sm:$0xf] }
  0xe8   : > { %v1619_v63 = vmul.f32 %v4072_v54, %v1164_v44 }
  0xe9   : > { %v1622_v51 = vmul.f32 %v4045_v30, %v988_v49  ;;  %v2946_v49 = vld [vmem:[%s4939_s1 + $0x18] sm:$0xf0] }
  0xea   : > { %v1757_v31 = vadd.f32 %v4082_v4, %v1619_v63  ;;  %v2949_v55 = vor.u32 %v3355_v46, %v2946_v49 }
  0xeb   : > { %v1760_v62 = vadd.f32 %v4052_v36, %v1622_v51 }
  0xec   : > { %v1076_v5 = vpop.f32.mrf.mxu2  ;;  %v1885_v37 = vmax.f32 %v1757_v31, 0.0  ;;  %1413 = vmatpush.bf16.msrb.mxu2 %v2949_v55  ;;  %v2914_v31 = vld [vmem:[%s3824_s17 + $0xd8] sm:$0xf0] }
  0xed   : > { %v1165_v12 = vpop.f32.mrf.mxu3  ;;  %v901_v14 = vpop.f32.mrf.mxu0  ;;  %v1888_v19 = vmax.f32 %v1760_v62, 0.0 }
  0xee   : > { %v1166_v20 = vadd.f32 %v1165_v12, %v1076_v5  ;;  %v990_v23 = vpop.f32.mrf.mxu1  ;;  %v2945_v5 = vor.u32 %v3357_v57, %v2944_v56 }
  0xef   : > { %v991_v25 = vadd.f32 %v990_v23, %v901_v14  ;;  %v4190_v29 = vpack.c.bf16 %v1888_v19, %v1884_v10  ;;  %v3074_v10 = vld [vmem:[%s4939_s1 + $0x118] sm:$0xf0]  ;;  %v3349_v23 = vld [vmem:[%s3824_s17 + $0xd4] sm:$0xf0] }
  0xf0   : > { %v1623_v34 = vmul.f32 %v4072_v54, %v1166_v20  ;;  %940 = vmatmul.bf16.gmra.mxu0 %v4186_v7  ;;  %v3077_v12 = vor.u32 %v3387_v61, %v3074_v10  ;;  %v2912_v20 = vld [vmem:[%s3824_s17 + $0xd0] sm:$0xf] }
  0xf1   : > { %1029 = vmatmul.bf16.gmra.mxu1 %v4188_v18  ;;  %1118 = vmatmul.bf16.gmra.mxu2 %v4186_v7  ;;  %v1626_v41 = vmul.f32 %v4045_v30, %v991_v25  ;;  %v3348_v25 = vld [vmem:[%s3824_s17 + $0xd4] sm:$0xf] }
  0xf2   : > { %v1761_v35 = vadd.f32 %v4082_v4, %v1623_v34  ;;  %1207 = vmatmul.bf16.gmra.mxu3 %v4188_v18  ;;  %1235 = vmatpush.bf16.msrb.mxu0 %v2945_v5  ;;  %v4236_v49 = vor.u32 %v3348_v25, %v2914_v31 }
  0xf3   : > { %v1764_v14 = vadd.f32 %v4052_v36, %v1626_v41  ;;  %1502 = vmatpush.bf16.msrb.mxu3 %v3077_v12  ;;  %v3389_v41 = vld [vmem:[%s4939_s1 + $0x114] sm:$0xf0] }
  0xf4   : > { %v1079_v38 = vpop.f32.mrf.mxu2  ;;  %v1889_v39 = vmax.f32 %v1761_v35, 0.0 }
  0xf5   : > { %v1168_v43 = vpop.f32.mrf.mxu3  ;;  %v903_v44 = vpop.f32.mrf.mxu0 }
  0xf6   : > { %v1169_v50 = vadd.f32 %v1168_v43, %v1079_v38  ;;  %v992_v51 = vpop.f32.mrf.mxu1  ;;  %v4215_v62 = vpack.c.bf16 %v1889_v39, %v1885_v37  ;;  %v4228_v38 = vor.u32 %v3349_v23, %v2912_v20  ;;  %v3072_v39 = vld [vmem:[%s4939_s1 + $0x108] sm:$0xf]  ;;  %v1892_v43 = vmax.f32 %v1764_v14, 0.0 }
  0xf7   : > { %v993_v63 = vadd.f32 %v992_v51, %v903_v44  ;;  %v3073_v51 = vor.u32 %v3389_v41, %v3072_v39 }
  0xf8   : > { %4945 = vst [vmem:[#allocation2_spill] sm:$0xff] %v4215_v62  ;;  %v1627_v35 = vmul.f32 %v4072_v54, %v1169_v50 }
  0xf9   : > { %v1630_v19 = vmul.f32 %v4045_v30, %v993_v63  ;;  %1324 = vmatpush.bf16.msrb.mxu1 %v3073_v51  ;;  %v2922_v51 = vld [vmem:[%s3824_s17 + $0xe8] sm:$0xf0] }
  0xfa   : > { %v1765_v63 = vadd.f32 %v4082_v4, %v1627_v35 }
  0xfb   : > { %v1768_v34 = vadd.f32 %v4052_v36, %v1630_v19 }
  0xfc   : > { %v1081_v37 = vpop.f32.mrf.mxu2  ;;  %v1893_v12 = vmax.f32 %v1765_v63, 0.0 }
  0xfd   : > { %v1170_v44 = vpop.f32.mrf.mxu3  ;;  %v906_v46 = vpop.f32.mrf.mxu0  ;;  %v1896_v55 = vmax.f32 %v1768_v34, 0.0 }
  0xfe   : > { %v1171_v56 = vadd.f32 %v1170_v44, %v1081_v37  ;;  %v995_v50 = vpop.f32.mrf.mxu1  ;;  %v3351_v44 = vld [vmem:[%s3824_s17 + $0xe4] sm:$0xf0] }
  0xff   : > { %v996_v57 = vadd.f32 %v995_v50, %v906_v46  ;;  %v4238_v61 = vpack.c.bf16 %v1896_v55, %v1892_v43  ;;  %v2920_v43 = vld [vmem:[%s3824_s17 + $0xe0] sm:$0xf]  ;;  %v3350_v46 = vld [vmem:[%s3824_s17 + $0xe4] sm:$0xf] }
 0x100   : > { %v1631_v5 = vmul.f32 %v4072_v54, %v1171_v56  ;;  %945 = vmatmul.bf16.gmra.mxu0 %v4228_v38 }
 0x101   : > { %4946 = vst [vmem:[#allocation3_spill] sm:$0xff] %v4238_v61  ;;  %1034 = vmatmul.bf16.gmra.mxu1 %v4236_v49  ;;  %1123 = vmatmul.bf16.gmra.mxu2 %v4228_v38  ;;  %v1634_v20 = vmul.f32 %v4045_v30, %v996_v57  ;;  %v4258_v57 = vor.u32 %v3351_v44, %v2920_v43 }
 0x102   : > { %v1769_v10 = vadd.f32 %v4082_v4, %v1631_v5  ;;  %1212 = vmatmul.bf16.gmra.mxu3 %v4236_v49 }
 0x103   : > { %v1772_v39 = vadd.f32 %v4052_v36, %v1634_v20 }
 0x104   : > { %v1084_v14 = vpop.f32.mrf.mxu2  ;;  %v1897_v19 = vmax.f32 %v1769_v10, 0.0 }
 0x105   : > { %v1173_v23 = vpop.f32.mrf.mxu3  ;;  %v908_v25 = vpop.f32.mrf.mxu0  ;;  %v1900_v63 = vmax.f32 %v1772_v39, 0.0 }
 0x106   : > { %v1174_v31 = vadd.f32 %v1173_v23, %v1084_v14  ;;  %v997_v34 = vpop.f32.mrf.mxu1  ;;  %v4248_v35 = vpack.c.bf16 %v1897_v19, %v1893_v12  ;;  %v4260_v12 = vor.u32 %v3350_v46, %v2922_v51 }
 0x107   : > { %v998_v37 = vadd.f32 %v997_v34, %v908_v25 }
 0x108   : > { %4947 = vst [vmem:[#allocation4_spill] sm:$0xff] %v4248_v35  ;;  %v1635_v56 = vmul.f32 %v4072_v54, %v1174_v31 }
 0x109   : > { %v1638_v41 = vmul.f32 %v4045_v30, %v998_v37 }
 0x10a   : > { %v1773_v34 = vadd.f32 %v4082_v4, %v1635_v56  ;;  %v3425_v56 = vld [vmem:[%s4942_s4 + $0x38] sm:$0xff] }
 0x10b   : > { %v1776_v55 = vadd.f32 %v4052_v36, %v1638_v41  ;;  %2312 = vmatpush.bf16.msra.mxu0 %v3425_v56 }
 0x10c   : > { %v1086_v50 = vpop.f32.mrf.mxu2  ;;  %v1901_v39 = vmax.f32 %v1773_v34, 0.0  ;;  %v3353_v34 = vld [vmem:[%s3824_s17 + $0xf4] sm:$0xf0] }
 0x10d   : > { %v1175_v5 = vpop.f32.mrf.mxu3  ;;  %v911_v10 = vpop.f32.mrf.mxu0  ;;  %v1904_v14 = vmax.f32 %v1776_v55, 0.0  ;;  %v3441_v55 = vld [vmem:[%s4942_s4 + $0xb8] sm:$0xff] }
 0x10e   : > { %v1176_v19 = vadd.f32 %v1175_v5, %v1086_v50  ;;  %v1000_v20 = vpop.f32.mrf.mxu1  ;;  %v3449_v50 = vld [vmem:[%s4942_s4 + $0xf8] sm:$0xff]  ;;  %2490 = vmatpush.bf16.msra.mxu2 %v3441_v55 }
 0x10f   : > { %v1001_v23 = vadd.f32 %v1000_v20, %v911_v10  ;;  %v4262_v25 = vpack.c.bf16 %v1904_v14, %v1900_v63  ;;  %2579 = vmatpush.bf16.msra.mxu3 %v3449_v50 }
 0x110   : > { %v1639_v37 = vmul.f32 %v4072_v54, %v1176_v19  ;;  %950 = vmatmul.bf16.gmra.mxu0 %v4258_v57 }
 0x111   : > { %4948 = vst [vmem:[#allocation5_spill] sm:$0xff] %v4262_v25  ;;  %1039 = vmatmul.bf16.gmra.mxu1 %v4260_v12  ;;  %1128 = vmatmul.bf16.gmra.mxu2 %v4258_v57  ;;  %v1642_v44 = vmul.f32 %v4045_v30, %v1001_v23  ;;  %v2928_v23 = vld [vmem:[%s3824_s17 + $0xf0] sm:$0xf] }
 0x112   : > { %v1777_v31 = vadd.f32 %v4082_v4, %v1639_v37  ;;  %1217 = vmatmul.bf16.gmra.mxu3 %v4260_v12  ;;  %v3352_v37 = vld [vmem:[%s3824_s17 + $0xf4] sm:$0xf] }
 0x113   : > { %v1780_v19 = vadd.f32 %v4052_v36, %v1642_v44 }
 0x114   : > { %v1089_v41 = vpop.f32.mrf.mxu2  ;;  %v1905_v43 = vmax.f32 %v1777_v31, 0.0  ;;  %v2930_v31 = vld [vmem:[%s3824_s17 + $0xf8] sm:$0xf0] }
 0x115   : > { %v1178_v46 = vpop.f32.mrf.mxu3  ;;  %v913_v51 = vpop.f32.mrf.mxu0  ;;  %v4296_v55 = vor.u32 %v3352_v37, %v2930_v31 }
 0x116   : > { %v1179_v63 = vadd.f32 %v1178_v46, %v1089_v41  ;;  %v1002_v5 = vpop.f32.mrf.mxu1  ;;  %v4281_v10 = vpack.c.bf16 %v1905_v43, %v1901_v39  ;;  %v4291_v46 = vor.u32 %v3353_v34, %v2928_v23  ;;  %v3433_v39 = vld [vmem:[%s4942_s4 + $0x78] sm:$0xff]  ;;  %v1908_v43 = vmax.f32 %v1780_v19, 0.0 }
 0x117   : > { %v1003_v14 = vadd.f32 %v1002_v5, %v913_v51  ;;  %2401 = vmatpush.bf16.msra.mxu1 %v3433_v39 }
 0x118   : > { %4949 = vst [vmem:[#allocation6_spill] sm:$0xff] %v4281_v10  ;;  %v1643_v35 = vmul.f32 %v4072_v54, %v1179_v63 }
 0x119   : > { %v1646_v20 = vmul.f32 %v4045_v30, %v1003_v14 }
 0x11a   : > { %v1781_v63 = vadd.f32 %v4082_v4, %v1643_v35 }
 0x11b   : > { %v1784_v25 = vadd.f32 %v4052_v36, %v1646_v20 }
 0x11c   : > { %v1091_v41 = vpop.f32.mrf.mxu2 }
 0x11d   : > { %v1180_v51 = vpop.f32.mrf.mxu3  ;;  %v916_v44 = vpop.f32.mrf.mxu0  ;;  %v1912_v56 = vmax.f32 %v1784_v25, 0.0  ;;  %v1909_v25 = vmax.f32 %v1781_v63, 0.0 }
 0x11e   : > { %v1181_v50 = vadd.f32 %v1180_v51, %v1091_v41  ;;  %v1005_v5 = vpop.f32.mrf.mxu1 }
 0x11f   : > { %v1006_v14 = vadd.f32 %v1005_v5, %v916_v44  ;;  %v4298_v20 = vpack.c.bf16 %v1912_v56, %v1908_v43 }
 0x120   : > { %v1647_v23 = vmul.f32 %v4072_v54, %v1181_v50  ;;  %955 = vmatmul.bf16.gmra.mxu0 %v4291_v46 }
 0x121   : > { %4950 = vst [vmem:[#allocation7_spill] sm:$0xff] %v4298_v20  ;;  %1044 = vmatmul.bf16.gmra.mxu1 %v4296_v55  ;;  %1133 = vmatmul.bf16.gmra.mxu2 %v4291_v46  ;;  %v1650_v31 = vmul.f32 %v4045_v30, %v1006_v14 }
 0x122   : > { %v1785_v19 = vadd.f32 %v4082_v4, %v1647_v23  ;;  %1222 = vmatmul.bf16.gmra.mxu3 %v4296_v55 }
 0x123   : > { %v1788_v56 = vadd.f32 %v4052_v36, %v1650_v31 }
 0x124   : > { %v1094_v34 = vpop.f32.mrf.mxu2  ;;  %v1913_v37 = vmax.f32 %v1785_v19, 0.0 }
 0x125   : > { %v1183_v41 = vpop.f32.mrf.mxu3  ;;  %v918_v39 = vpop.f32.mrf.mxu0  ;;  %v1916_v20 = vmax.f32 %v1788_v56, 0.0 }
 0x126   : > { %v1184_v35 = vadd.f32 %v1183_v41, %v1094_v34  ;;  %v1007_v43 = vpop.f32.mrf.mxu1  ;;  %v4308_v51 = vpack.c.bf16 %v1913_v37, %v1909_v25 }
 0x127   : > { %v1008_v44 = vadd.f32 %v1007_v43, %v918_v39 }
 0x128   : > { %v1651_v23 = vmul.f32 %v4072_v54, %v1184_v35 }
 0x129   : > { %v1654_v50 = vmul.f32 %v4045_v30, %v1008_v44  ;;  %v3424_v44 = vld [vmem:[%s4942_s4 + $0x30] sm:$0xff] }
 0x12a   : > { %v1789_v25 = vadd.f32 %v4082_v4, %v1651_v23  ;;  %2313 = vmatpush.bf16.msra.mxu0 %v3424_v44 }
 0x12b   : > { %v1792_v5 = vadd.f32 %v4052_v36, %v1654_v50 }
 0x12c   : > { %v1096_v63 = vpop.f32.mrf.mxu2  ;;  %v1917_v39 = vmax.f32 %v1789_v25, 0.0  ;;  %v3432_v25 = vld [vmem:[%s4942_s4 + $0x70] sm:$0xff] }
 0x12d   : > { %v1185_v19 = vpop.f32.mrf.mxu3  ;;  %v921_v10 = vpop.f32.mrf.mxu0  ;;  %v1920_v14 = vmax.f32 %v1792_v5, 0.0  ;;  %2402 = vmatpush.bf16.msra.mxu1 %v3432_v25 }
 0x12e   : > { %v1186_v61 = vadd.f32 %v1185_v19, %v1096_v63  ;;  %v1010_v62 = vpop.f32.mrf.mxu1 }
 0x12f   : > { %v1011_v34 = vadd.f32 %v1010_v62, %v921_v10  ;;  %v4314_v41 = vpack.c.bf16 %v1920_v14, %v1916_v20 }
 0x130   : > { %v1655_v37 = vmul.f32 %v4072_v54, %v1186_v61  ;;  %1236 = vmatmul.bf16.vlgmr.msrb.gmra.mxu0 %v3838_v45  ;;  %v3440_v61 = vld [vmem:[%s4942_s4 + $0xb0] sm:$0xff] }
 0x131   : > { %1325 = vmatmul.bf16.vlgmr.msrb.gmra.mxu1 %v3841_v47  ;;  %1414 = vmatmul.bf16.vlgmr.msrb.gmra.mxu2 %v3838_v45  ;;  %v1658_v62 = vmul.f32 %v4045_v30, %v1011_v34  ;;  %v3448_v45 = vld [vmem:[%s4942_s4 + $0xf0] sm:$0xff] }
 0x132   : > { %v1793_v31 = vadd.f32 %v4082_v4, %v1655_v37  ;;  %1503 = vmatmul.bf16.vlgmr.msrb.gmra.mxu3 %v3841_v47  ;;  %2491 = vmatpush.bf16.msra.mxu2 %v3440_v61 }
 0x133   : > { %2580 = vmatpush.bf16.msra.mxu3 %v3448_v45  ;;  %v1796_v23 = vadd.f32 %v4052_v36, %v1658_v62 }
 0x134   : > { %v1099_v35 = vpop.f32.mrf.mxu2  ;;  %v1921_v43 = vmax.f32 %v1793_v31, 0.0 }
 0x135   : > { %v1188_v10 = vpop.f32.mrf.mxu3  ;;  %v923_v20 = vpop.f32.mrf.mxu0  ;;  %v1924_v37 = vmax.f32 %v1796_v23, 0.0 }
 0x136   : > { %v1189_v47 = vadd.f32 %v1188_v10, %v1099_v35  ;;  %v1012_v56 = vpop.f32.mrf.mxu1  ;;  %v4333_v50 = vpack.c.bf16 %v1921_v43, %v1917_v39 }
 0x137   : > { %v1013_v5 = vadd.f32 %v1012_v56, %v923_v20 }
 0x138   : > { %v1659_v14 = vmul.f32 %v4072_v54, %v1189_v47 }
 0x139   : > { %v1662_v63 = vmul.f32 %v4045_v30, %v1013_v5 }
 0x13a   : > { %v1797_v61 = vadd.f32 %v4082_v4, %v1659_v14 }
 0x13b   : > { %v1800_v19 = vadd.f32 %v4052_v36, %v1662_v63 }
 0x13c   : > { %v1101_v34 = vpop.f32.mrf.mxu2  ;;  %v1925_v47 = vmax.f32 %v1797_v61, 0.0 }
 0x13d   : > { %v1190_v31 = vpop.f32.mrf.mxu3  ;;  %v926_v39 = vpop.f32.mrf.mxu0  ;;  %v1928_v35 = vmax.f32 %v1800_v19, 0.0 }
 0x13e   : > { %v1191_v43 = vadd.f32 %v1190_v31, %v1101_v34  ;;  %v1015_v10 = vpop.f32.mrf.mxu1 }
 0x13f   : > { %v1016_v20 = vadd.f32 %v1015_v10, %v926_v39  ;;  %v4342_v62 = vpack.c.bf16 %v1928_v35, %v1924_v37 }
 0x140   : > { %v1663_v44 = vmul.f32 %v4072_v54, %v1191_v43  ;;  %1241 = vmatmul.bf16.gmra.mxu0 %v3875_v2 }
 0x141   : > { %1330 = vmatmul.bf16.gmra.mxu1 %v3877_v3  ;;  %1419 = vmatmul.bf16.gmra.mxu2 %v3875_v2  ;;  %v1666_v23 = vmul.f32 %v4045_v30, %v1016_v20 }
 0x142   : > { %v1801_v45 = vadd.f32 %v4082_v4, %v1663_v44  ;;  %1508 = vmatmul.bf16.gmra.mxu3 %v3877_v3 }
 0x143   : > { %v1804_v31 = vadd.f32 %v4052_v36, %v1666_v23 }
 0x144   : > { %v1104_v56 = vpop.f32.mrf.mxu2  ;;  %v1929_v5 = vmax.f32 %v1801_v45, 0.0 }
 0x145   : > { %v1193_v63 = vpop.f32.mrf.mxu3  ;;  %v928_v19 = vpop.f32.mrf.mxu0  ;;  %v1932_v43 = vmax.f32 %v1804_v31, 0.0 }
 0x146   : > { %v1194_v14 = vadd.f32 %v1193_v63, %v1104_v56  ;;  %v1017_v34 = vpop.f32.mrf.mxu1  ;;  %v4352_v25 = vpack.c.bf16 %v1929_v5, %v1925_v47 }
 0x147   : > { %v1018_v37 = vadd.f32 %v1017_v34, %v928_v19 }
 0x148   : > { %v1667_v3 = vmul.f32 %v4072_v54, %v1194_v14 }
 0x149   : > { %v1670_v2 = vmul.f32 %v4045_v30, %v1018_v37 }
 0x14a   : > { %v1805_v47 = vadd.f32 %v4082_v4, %v1667_v3  ;;  %v3423_v3 = vld [vmem:[%s4942_s4 + $0x28] sm:$0xff] }
 0x14b   : > { %v1808_v39 = vadd.f32 %v4052_v36, %v1670_v2  ;;  %2314 = vmatpush.bf16.msra.mxu0 %v3423_v3 }
 0x14c   : > { %v1106_v35 = vpop.f32.mrf.mxu2  ;;  %v1933_v19 = vmax.f32 %v1805_v47, 0.0  ;;  %v3431_v47 = vld [vmem:[%s4942_s4 + $0x68] sm:$0xff] }
 0x14d   : > { %v1195_v10 = vpop.f32.mrf.mxu3  ;;  %v931_v61 = vpop.f32.mrf.mxu0  ;;  %v1936_v20 = vmax.f32 %v1808_v39, 0.0  ;;  %v3439_v39 = vld [vmem:[%s4942_s4 + $0xa8] sm:$0xff]  ;;  %2403 = vmatpush.bf16.msra.mxu1 %v3431_v47 }
 0x14e   : > { %v1196_v44 = vadd.f32 %v1195_v10, %v1106_v35  ;;  %v1020_v45 = vpop.f32.mrf.mxu1  ;;  %2492 = vmatpush.bf16.msra.mxu2 %v3439_v39 }
 0x14f   : > { %v1021_v56 = vadd.f32 %v1020_v45, %v931_v61  ;;  %v4358_v63 = vpack.c.bf16 %v1936_v20, %v1932_v43 }
 0x150   : > { %v1671_v5 = vmul.f32 %v4072_v54, %v1196_v44  ;;  %1246 = vmatmul.bf16.gmra.mxu0 %v3887_v8 }
 0x151   : > { %1335 = vmatmul.bf16.gmra.mxu1 %v3889_v9  ;;  %1424 = vmatmul.bf16.gmra.mxu2 %v3887_v8  ;;  %v1674_v37 = vmul.f32 %v4045_v30, %v1021_v56  ;;  %v3447_v8 = vld [vmem:[%s4942_s4 + $0xe8] sm:$0xff] }
 0x152   : > { %v1809_v23 = vadd.f32 %v4082_v4, %v1671_v5  ;;  %1513 = vmatmul.bf16.gmra.mxu3 %v3889_v9 }
 0x153   : > { %2581 = vmatpush.bf16.msra.mxu3 %v3447_v8  ;;  %v1812_v61 = vadd.f32 %v4052_v36, %v1674_v37 }
 0x154   : > { %v1109_v14 = vpop.f32.mrf.mxu2  ;;  %v1937_v34 = vmax.f32 %v1809_v23, 0.0 }
 0x155   : > { %v1198_v31 = vpop.f32.mrf.mxu3  ;;  %v933_v2 = vpop.f32.mrf.mxu0  ;;  %v1940_v5 = vmax.f32 %v1812_v61, 0.0 }
 0x156   : > { %v1199_v9 = vadd.f32 %v1198_v31, %v1109_v14  ;;  %v1022_v35 = vpop.f32.mrf.mxu1  ;;  %v4377_v43 = vpack.c.bf16 %v1937_v34, %v1933_v19 }
 0x157   : > { %v1023_v10 = vadd.f32 %v1022_v35, %v933_v2 }
 0x158   : > { %v1675_v45 = vmul.f32 %v4072_v54, %v1199_v9 }
 0x159   : > { %v1678_v20 = vmul.f32 %v4045_v30, %v1023_v10 }
 0x15a   : > { %v1813_v39 = vadd.f32 %v4082_v4, %v1675_v45 }
 0x15b   : > { %v1816_v44 = vadd.f32 %v4052_v36, %v1678_v20 }
 0x15c   : > { %v1111_v56 = vpop.f32.mrf.mxu2  ;;  %v1941_v9 = vmax.f32 %v1813_v39, 0.0 }
 0x15d   : > { %v1200_v23 = vpop.f32.mrf.mxu3  ;;  %v936_v19 = vpop.f32.mrf.mxu0  ;;  %v1944_v14 = vmax.f32 %v1816_v44, 0.0 }
 0x15e   : > { %v1201_v34 = vadd.f32 %v1200_v23, %v1111_v56  ;;  %v1025_v31 = vpop.f32.mrf.mxu1 }
 0x15f   : > { %v1026_v2 = vadd.f32 %v1025_v31, %v936_v19  ;;  %v4386_v37 = vpack.c.bf16 %v1944_v14, %v1940_v5 }
 0x160   : > { %v1679_v3 = vmul.f32 %v4072_v54, %v1201_v34  ;;  %1251 = vmatmul.bf16.gmra.mxu0 %v3923_v26 }
 0x161   : > { %1340 = vmatmul.bf16.gmra.mxu1 %v3925_v27  ;;  %1429 = vmatmul.bf16.gmra.mxu2 %v3923_v26  ;;  %v1682_v61 = vmul.f32 %v4045_v30, %v1026_v2 }
 0x162   : > { %v1817_v8 = vadd.f32 %v4082_v4, %v1679_v3  ;;  %1518 = vmatmul.bf16.gmra.mxu3 %v3925_v27 }
 0x163   : > { %v1820_v23 = vadd.f32 %v4052_v36, %v1682_v61 }
 0x164   : > { %v1114_v35 = vpop.f32.mrf.mxu2  ;;  %v1945_v10 = vmax.f32 %v1817_v8, 0.0 }
 0x165   : > { %v1203_v20 = vpop.f32.mrf.mxu3  ;;  %v938_v44 = vpop.f32.mrf.mxu0  ;;  %v1948_v34 = vmax.f32 %v1820_v23, 0.0 }
 0x166   : > { %v1204_v45 = vadd.f32 %v1203_v20, %v1114_v35  ;;  %v1027_v56 = vpop.f32.mrf.mxu1  ;;  %v4396_v47 = vpack.c.bf16 %v1945_v10, %v1941_v9 }
 0x167   : > { %v1028_v5 = vadd.f32 %v1027_v56, %v938_v44 }
 0x168   : > { %v1683_v27 = vmul.f32 %v4072_v54, %v1204_v45 }
 0x169   : > { %v1686_v26 = vmul.f32 %v4045_v30, %v1028_v5 }
 0x16a   : > { %v1821_v9 = vadd.f32 %v4082_v4, %v1683_v27  ;;  %v3422_v27 = vld [vmem:[%s4942_s4 + $0x20] sm:$0xff] }
 0x16b   : > { %v1824_v19 = vadd.f32 %v4052_v36, %v1686_v26  ;;  %2315 = vmatpush.bf16.msra.mxu0 %v3422_v27 }
 0x16c   : > { %v1116_v14 = vpop.f32.mrf.mxu2  ;;  %v1949_v44 = vmax.f32 %v1821_v9, 0.0  ;;  %v3430_v9 = vld [vmem:[%s4942_s4 + $0x60] sm:$0xff] }
 0x16d   : > { %v1205_v31 = vpop.f32.mrf.mxu3  ;;  %v941_v39 = vpop.f32.mrf.mxu0  ;;  %v1952_v2 = vmax.f32 %v1824_v19, 0.0  ;;  %v3438_v19 = vld [vmem:[%s4942_s4 + $0xa0] sm:$0xff]  ;;  %2404 = vmatpush.bf16.msra.mxu1 %v3430_v9 }
 0x16e   : > { %v1206_v3 = vadd.f32 %v1205_v31, %v1116_v14  ;;  %v1030_v8 = vpop.f32.mrf.mxu1  ;;  %2493 = vmatpush.bf16.msra.mxu2 %v3438_v19 }
 0x16f   : > { %v1031_v35 = vadd.f32 %v1030_v8, %v941_v39  ;;  %v4402_v20 = vpack.c.bf16 %v1952_v2, %v1948_v34 }
 0x170   : > { %v1687_v10 = vmul.f32 %v4072_v54, %v1206_v3  ;;  %1256 = vmatmul.bf16.gmra.mxu0 %v3935_v32 }
 0x171   : > { %1345 = vmatmul.bf16.gmra.mxu1 %v3937_v33  ;;  %1434 = vmatmul.bf16.gmra.mxu2 %v3935_v32  ;;  %v1690_v5 = vmul.f32 %v4045_v30, %v1031_v35  ;;  %v3446_v32 = vld [vmem:[%s4942_s4 + $0xe0] sm:$0xff] }
 0x172   : > { %v1825_v61 = vadd.f32 %v4082_v4, %v1687_v10  ;;  %1523 = vmatmul.bf16.gmra.mxu3 %v3937_v33 }
 0x173   : > { %2582 = vmatpush.bf16.msra.mxu3 %v3446_v32  ;;  %v1828_v39 = vadd.f32 %v4052_v36, %v1690_v5 }
 0x174   : > { %v1119_v45 = vpop.f32.mrf.mxu2  ;;  %v1953_v56 = vmax.f32 %v1825_v61, 0.0 }
 0x175   : > { %v1208_v23 = vpop.f32.mrf.mxu3  ;;  %v943_v26 = vpop.f32.mrf.mxu0  ;;  %v1956_v10 = vmax.f32 %v1828_v39, 0.0 }
 0x176   : > { %v1209_v33 = vadd.f32 %v1208_v23, %v1119_v45  ;;  %v1032_v14 = vpop.f32.mrf.mxu1  ;;  %v4421_v34 = vpack.c.bf16 %v1953_v56, %v1949_v44 }
 0x177   : > { %v1033_v31 = vadd.f32 %v1032_v14, %v943_v26 }
 0x178   : > { %v1691_v8 = vmul.f32 %v4072_v54, %v1209_v33 }
 0x179   : > { %v1694_v2 = vmul.f32 %v4045_v30, %v1033_v31 }
 0x17a   : > { %v1829_v19 = vadd.f32 %v4082_v4, %v1691_v8 }
 0x17b   : > { %v1832_v3 = vadd.f32 %v4052_v36, %v1694_v2 }
 0x17c   : > { %v1121_v35 = vpop.f32.mrf.mxu2  ;;  %v1957_v33 = vmax.f32 %v1829_v19, 0.0 }
 0x17d   : > { %v1210_v61 = vpop.f32.mrf.mxu3  ;;  %v946_v44 = vpop.f32.mrf.mxu0  ;;  %v1960_v45 = vmax.f32 %v1832_v3, 0.0 }
 0x17e   : > { %v1211_v56 = vadd.f32 %v1210_v61, %v1121_v35  ;;  %v1035_v23 = vpop.f32.mrf.mxu1 }
 0x17f   : > { %v1036_v26 = vadd.f32 %v1035_v23, %v946_v44  ;;  %v4430_v5 = vpack.c.bf16 %v1960_v45, %v1956_v10 }
 0x180   : > { %v1695_v27 = vmul.f32 %v4072_v54, %v1211_v56  ;;  %1261 = vmatmul.bf16.gmra.mxu0 %v3971_v52 }
 0x181   : > { %1350 = vmatmul.bf16.gmra.mxu1 %v3973_v53  ;;  %1439 = vmatmul.bf16.gmra.mxu2 %v3971_v52  ;;  %v1698_v39 = vmul.f32 %v4045_v30, %v1036_v26 }
 0x182   : > { %v1833_v32 = vadd.f32 %v4082_v4, %v1695_v27  ;;  %1528 = vmatmul.bf16.gmra.mxu3 %v3973_v53 }
 0x183   : > { %v1836_v61 = vadd.f32 %v4052_v36, %v1698_v39 }
 0x184   : > { %v1124_v14 = vpop.f32.mrf.mxu2  ;;  %v1961_v31 = vmax.f32 %v1833_v32, 0.0 }
 0x185   : > { %v1213_v2 = vpop.f32.mrf.mxu3  ;;  %v948_v3 = vpop.f32.mrf.mxu0  ;;  %v1964_v56 = vmax.f32 %v1836_v61, 0.0 }
 0x186   : > { %v1214_v8 = vadd.f32 %v1213_v2, %v1124_v14  ;;  %v1037_v35 = vpop.f32.mrf.mxu1  ;;  %v4440_v9 = vpack.c.bf16 %v1961_v31, %v1957_v33 }
 0x187   : > { %v1038_v10 = vadd.f32 %v1037_v35, %v948_v3 }
 0x188   : > { %v1699_v53 = vmul.f32 %v4072_v54, %v1214_v8 }
 0x189   : > { %v1702_v52 = vmul.f32 %v4045_v30, %v1038_v10 }
 0x18a   : > { %v1837_v33 = vadd.f32 %v4082_v4, %v1699_v53  ;;  %v3421_v53 = vld [vmem:[%s4942_s4 + $0x18] sm:$0xff] }
 0x18b   : > { %v1840_v44 = vadd.f32 %v4052_v36, %v1702_v52  ;;  %2316 = vmatpush.bf16.msra.mxu0 %v3421_v53 }
 0x18c   : > { %v1126_v45 = vpop.f32.mrf.mxu2  ;;  %v1965_v3 = vmax.f32 %v1837_v33, 0.0  ;;  %v3429_v33 = vld [vmem:[%s4942_s4 + $0x58] sm:$0xff] }
 0x18d   : > { %v1215_v23 = vpop.f32.mrf.mxu3  ;;  %v951_v19 = vpop.f32.mrf.mxu0  ;;  %v1968_v26 = vmax.f32 %v1840_v44, 0.0  ;;  %v3437_v44 = vld [vmem:[%s4942_s4 + $0x98] sm:$0xff]  ;;  %2405 = vmatpush.bf16.msra.mxu1 %v3429_v33 }
 0x18e   : > { %v1216_v27 = vadd.f32 %v1215_v23, %v1126_v45  ;;  %v1040_v32 = vpop.f32.mrf.mxu1  ;;  %2494 = vmatpush.bf16.msra.mxu2 %v3437_v44 }
 0x18f   : > { %v1041_v14 = vadd.f32 %v1040_v32, %v951_v19  ;;  %v4446_v2 = vpack.c.bf16 %v1968_v26, %v1964_v56 }
 0x190   : > { %v1703_v31 = vmul.f32 %v4072_v54, %v1216_v27  ;;  %1266 = vmatmul.bf16.gmra.mxu0 %v3983_v58 }
 0x191   : > { %1355 = vmatmul.bf16.gmra.mxu1 %v3985_v59  ;;  %1444 = vmatmul.bf16.gmra.mxu2 %v3983_v58  ;;  %v1706_v10 = vmul.f32 %v4045_v30, %v1041_v14  ;;  %v3445_v58 = vld [vmem:[%s4942_s4 + $0xd8] sm:$0xff] }
 0x192   : > { %v1841_v39 = vadd.f32 %v4082_v4, %v1703_v31  ;;  %1533 = vmatmul.bf16.gmra.mxu3 %v3985_v59 }
 0x193   : > { %2583 = vmatpush.bf16.msra.mxu3 %v3445_v58  ;;  %v1844_v19 = vadd.f32 %v4052_v36, %v1706_v10 }
 0x194   : > { %v1129_v8 = vpop.f32.mrf.mxu2  ;;  %v1969_v35 = vmax.f32 %v1841_v39, 0.0 }
 0x195   : > { %v1218_v61 = vpop.f32.mrf.mxu3  ;;  %v953_v52 = vpop.f32.mrf.mxu0  ;;  %v1972_v31 = vmax.f32 %v1844_v19, 0.0 }
 0x196   : > { %v1219_v59 = vadd.f32 %v1218_v61, %v1129_v8  ;;  %v1042_v45 = vpop.f32.mrf.mxu1  ;;  %v4465_v56 = vpack.c.bf16 %v1969_v35, %v1965_v3 }
 0x197   : > { %v1043_v23 = vadd.f32 %v1042_v45, %v953_v52 }
 0x198   : > { %v1707_v32 = vmul.f32 %v4072_v54, %v1219_v59 }
 0x199   : > { %v1710_v26 = vmul.f32 %v4045_v30, %v1043_v23 }
 0x19a   : > { %v1845_v44 = vadd.f32 %v4082_v4, %v1707_v32 }
 0x19b   : > { %v1848_v27 = vadd.f32 %v4052_v36, %v1710_v26 }
 0x19c   : > { %v1131_v14 = vpop.f32.mrf.mxu2  ;;  %v1973_v59 = vmax.f32 %v1845_v44, 0.0 }
 0x19d   : > { %v1220_v39 = vpop.f32.mrf.mxu3  ;;  %v956_v3 = vpop.f32.mrf.mxu0  ;;  %v1976_v8 = vmax.f32 %v1848_v27, 0.0 }
 0x19e   : > { %v1221_v35 = vadd.f32 %v1220_v39, %v1131_v14  ;;  %v1045_v61 = vpop.f32.mrf.mxu1 }
 0x19f   : > { %v1046_v52 = vadd.f32 %v1045_v61, %v956_v3  ;;  %v4474_v10 = vpack.c.bf16 %v1976_v8, %v1972_v31 }
 0x1a0   : > { %v1711_v53 = vmul.f32 %v4072_v54, %v1221_v35  ;;  %1271 = vmatmul.bf16.gmra.mxu0 %v4013_v13 }
 0x1a1   : > { %1360 = vmatmul.bf16.gmra.mxu1 %v4021_v16  ;;  %1449 = vmatmul.bf16.gmra.mxu2 %v4013_v13  ;;  %v1714_v19 = vmul.f32 %v4045_v30, %v1046_v52 }
 0x1a2   : > { %v1849_v58 = vadd.f32 %v4082_v4, %v1711_v53  ;;  %1538 = vmatmul.bf16.gmra.mxu3 %v4021_v16 }
 0x1a3   : > { %v1852_v39 = vadd.f32 %v4052_v36, %v1714_v19 }
 0x1a4   : > { %v1134_v45 = vpop.f32.mrf.mxu2  ;;  %v1977_v23 = vmax.f32 %v1849_v58, 0.0 }
 0x1a5   : > { %v1223_v26 = vpop.f32.mrf.mxu3  ;;  %v958_v27 = vpop.f32.mrf.mxu0  ;;  %v1980_v35 = vmax.f32 %v1852_v39, 0.0 }
 0x1a6   : > { %v1224_v32 = vadd.f32 %v1223_v26, %v1134_v45  ;;  %v1047_v14 = vpop.f32.mrf.mxu1  ;;  %v4484_v33 = vpack.c.bf16 %v1977_v23, %v1973_v59 }
 0x1a7   : > { %v1048_v31 = vadd.f32 %v1047_v14, %v958_v27 }
 0x1a8   : > { %v1715_v16 = vmul.f32 %v4072_v54, %v1224_v32 }
 0x1a9   : > { %v1718_v13 = vmul.f32 %v4045_v30, %v1048_v31  ;;  %v3491_v30 = vld [vmem:[%s4940_s2] sm:$0xf] }
 0x1aa   : > { %v1853_v23 = vadd.f32 %v4082_v4, %v1715_v16  ;;  %v3492_v31 = vld [vmem:[%s4042_s19] sm:$0xf]  ;;  %v3436_v16 = vld [vmem:[%s4942_s4 + $0x90] sm:$0xff] }
 0x1ab   : > { %v1856_v3 = vadd.f32 %v4052_v36, %v1718_v13  ;;  %v4498_v36 = vperm.slane %v3491_v30, 2  ;;  %v4506_v39 = vperm.slane %v3492_v31, 2  ;;  %2495 = vmatpush.bf16.msra.mxu2 %v3436_v16 }
 0x1ac   : > { %v1136_v8 = vpop.f32.mrf.mxu2  ;;  %v1981_v27 = vmax.f32 %v1853_v23, 0.0  ;;  %v4525_v23 = vperm.slane %v3492_v31, 3 }
 0x1ad   : > { %v1225_v61 = vpop.f32.mrf.mxu3  ;;  %v1237_v44 = vpop.f32.mrf.mxu0  ;;  %v1984_v52 = vmax.f32 %v1856_v3, 0.0 }
 0x1ae   : > { %v1226_v53 = vadd.f32 %v1225_v61, %v1136_v8  ;;  %v1326_v58 = vpop.f32.mrf.mxu1 }
 0x1af   : > { %v1327_v45 = vadd.f32 %v1326_v58, %v1237_v44  ;;  %v4490_v59 = vpack.c.bf16 %v1984_v52, %v1980_v35  ;;  %v4519_v44 = vperm.slane %v3491_v30, 3 }
 0x1b0   : > { %v1719_v19 = vmul.f32 %v4072_v54, %v1226_v53  ;;  %1276 = vmatmul.bf16.gmra.mxu0 %v4032_v22 }
 0x1b1   : > { %1365 = vmatmul.bf16.gmra.mxu1 %v4034_v24  ;;  %1454 = vmatmul.bf16.gmra.mxu2 %v4032_v22  ;;  %v1596_v54 = vmul.f32 %v4498_v36, %v1327_v45  ;;  %v3420_v22 = vld [vmem:[%s4942_s4 + $0x10] sm:$0xff] }
 0x1b2   : > { %v1857_v26 = vadd.f32 %v4082_v4, %v1719_v19  ;;  %1543 = vmatmul.bf16.gmra.mxu3 %v4034_v24  ;;  %v3444_v24 = vld [vmem:[%s4942_s4 + $0xd0] sm:$0xff]  ;;  %2317 = vmatpush.bf16.msra.mxu0 %v3420_v22 }
 0x1b3   : > { %2584 = vmatpush.bf16.msra.mxu3 %v3444_v24  ;;  %v1734_v52 = vadd.f32 %v4506_v39, %v1596_v54 }
 0x1b4   : > { %v1415_v32 = vpop.f32.mrf.mxu2  ;;  %v1985_v14 = vmax.f32 %v1857_v26, 0.0  ;;  %v3428_v26 = vld [vmem:[%s4942_s4 + $0x50] sm:$0xff] }
 0x1b5   : > { %v1504_v13 = vpop.f32.mrf.mxu3  ;;  %v1239_v3 = vpop.f32.mrf.mxu0  ;;  %2406 = vmatpush.bf16.msra.mxu1 %v3428_v26 }
 0x1b6   : > { %v1505_v4 = vadd.f32 %v1504_v13, %v1415_v32  ;;  %v1328_v8 = vpop.f32.mrf.mxu1  ;;  %v4517_v35 = vpack.c.bf16 %v1985_v14, %v1981_v27  ;;  %v1862_v27 = vmax.f32 %v1734_v52, 0.0 }
 0x1b7   : > { %v1329_v61 = vadd.f32 %v1328_v8, %v1239_v3 }
 0x1b8   : > { %v1597_v45 = vmul.f32 %v4519_v44, %v1505_v4 }
 0x1b9   : > { %v1600_v53 = vmul.f32 %v4498_v36, %v1329_v61 }
 0x1ba   : > { %v1735_v22 = vadd.f32 %v4525_v23, %v1597_v45 }
 0x1bb   : > { %v1738_v58 = vadd.f32 %v4506_v39, %v1600_v53 }
 0x1bc   : > { %v1417_v19 = vpop.f32.mrf.mxu2  ;;  %v1863_v4 = vmax.f32 %v1735_v22, 0.0 }
 0x1bd   : > { %v1866_v32 = vmax.f32 %v1738_v58, 0.0  ;;  %v1506_v30 = vpop.f32.mrf.mxu3  ;;  %v1242_v14 = vpop.f32.mrf.mxu0 }
 0x1be   : > { %v1507_v13 = vadd.f32 %v1506_v30, %v1417_v19  ;;  %v1331_v3 = vpop.f32.mrf.mxu1 }
 0x1bf   : > { %v4530_v54 = vpack.c.bf16 %v1866_v32, %v1862_v27  ;;  %v1332_v16 = vadd.f32 %v1331_v3, %v1242_v14 }
 0x1c0   : > { %v1601_v31 = vmul.f32 %v4519_v44, %v1507_v13  ;;  %1281 = vmatmul.bf16.gmra.mxu0 %v4084_v6 }
 0x1c1   : > { %1370 = vmatmul.bf16.gmra.mxu1 %v4092_v17  ;;  %1459 = vmatmul.bf16.gmra.mxu2 %v4084_v6  ;;  %v1604_v52 = vmul.f32 %v4498_v36, %v1332_v16 }
 0x1c2   : > { %v1739_v24 = vadd.f32 %v4525_v23, %v1601_v31  ;;  %1548 = vmatmul.bf16.gmra.mxu3 %v4092_v17 }
 0x1c3   : > { %v1742_v32 = vadd.f32 %v4506_v39, %v1604_v52 }
 0x1c4   : > { %v1867_v8 = vmax.f32 %v1739_v24, 0.0  ;;  %v1420_v61 = vpop.f32.mrf.mxu2 }
 0x1c5   : > { %v1509_v53 = vpop.f32.mrf.mxu3  ;;  %v1244_v58 = vpop.f32.mrf.mxu0  ;;  %v1870_v13 = vmax.f32 %v1742_v32, 0.0 }
 0x1c6   : > { %v4540_v45 = vpack.c.bf16 %v1867_v8, %v1863_v4  ;;  %v1510_v19 = vadd.f32 %v1509_v53, %v1420_v61  ;;  %v1333_v26 = vpop.f32.mrf.mxu1 }
 0x1c7   : > { %v1334_v27 = vadd.f32 %v1333_v26, %v1244_v58 }
 0x1c8   : > { %v1605_v17 = vmul.f32 %v4519_v44, %v1510_v19 }
 0x1c9   : > { %v1608_v6 = vmul.f32 %v4498_v36, %v1334_v27 }
 0x1ca   : > { %v1743_v61 = vadd.f32 %v4525_v23, %v1605_v17  ;;  %v3419_v17 = vld [vmem:[%s4942_s4 + $0x8] sm:$0xff] }
 0x1cb   : > { %v1746_v30 = vadd.f32 %v4506_v39, %v1608_v6  ;;  %2318 = vmatpush.bf16.msra.mxu0 %v3419_v17 }
 0x1cc   : > { %v1422_v14 = vpop.f32.mrf.mxu2  ;;  %v1871_v58 = vmax.f32 %v1743_v61, 0.0  ;;  %v3427_v61 = vld [vmem:[%s4942_s4 + $0x48] sm:$0xff] }
 0x1cd   : > { %v1511_v3 = vpop.f32.mrf.mxu3  ;;  %v1247_v22 = vpop.f32.mrf.mxu0  ;;  %v1874_v16 = vmax.f32 %v1746_v30, 0.0  ;;  %v3435_v30 = vld [vmem:[%s4942_s4 + $0x88] sm:$0xff]  ;;  %2407 = vmatpush.bf16.msra.mxu1 %v3427_v61 }
 0x1ce   : > { %v1512_v31 = vadd.f32 %v1511_v3, %v1422_v14  ;;  %v1336_v24 = vpop.f32.mrf.mxu1  ;;  %2496 = vmatpush.bf16.msra.mxu2 %v3435_v30 }
 0x1cf   : > { %v1337_v4 = vadd.f32 %v1336_v24, %v1247_v22  ;;  %v4546_v8 = vpack.c.bf16 %v1874_v16, %v1870_v13 }
 0x1d0   : > { %v1609_v52 = vmul.f32 %v4519_v44, %v1512_v31  ;;  %1286 = vmatmul.bf16.gmra.mxu0 %v4114_v60 }
 0x1d1   : > { %1375 = vmatmul.bf16.gmra.mxu1 %v4116_v0  ;;  %1464 = vmatmul.bf16.gmra.mxu2 %v4114_v60  ;;  %v1612_v27 = vmul.f32 %v4498_v36, %v1337_v4  ;;  %v3443_v60 = vld [vmem:[%s4942_s4 + $0xc8] sm:$0xff] }
 0x1d2   : > { %v1747_v53 = vadd.f32 %v4525_v23, %v1609_v52  ;;  %1553 = vmatmul.bf16.gmra.mxu3 %v4116_v0 }
 0x1d3   : > { %2585 = vmatpush.bf16.msra.mxu3 %v3443_v60  ;;  %v1750_v22 = vadd.f32 %v4506_v39, %v1612_v27 }
 0x1d4   : > { %v1425_v19 = vpop.f32.mrf.mxu2  ;;  %v1875_v26 = vmax.f32 %v1747_v53, 0.0 }
 0x1d5   : > { %v1514_v32 = vpop.f32.mrf.mxu3  ;;  %v1249_v6 = vpop.f32.mrf.mxu0  ;;  %v1878_v52 = vmax.f32 %v1750_v22, 0.0 }
 0x1d6   : > { %v1515_v0 = vadd.f32 %v1514_v32, %v1425_v19  ;;  %v1338_v14 = vpop.f32.mrf.mxu1  ;;  %v4565_v13 = vpack.c.bf16 %v1875_v26, %v1871_v58 }
 0x1d7   : > { %v1339_v3 = vadd.f32 %v1338_v14, %v1249_v6 }
 0x1d8   : > { %v1613_v24 = vmul.f32 %v4519_v44, %v1515_v0 }
 0x1d9   : > { %v1616_v16 = vmul.f32 %v4498_v36, %v1339_v3 }
 0x1da   : > { %v1751_v30 = vadd.f32 %v4525_v23, %v1613_v24 }
 0x1db   : > { %v1754_v31 = vadd.f32 %v4506_v39, %v1616_v16 }
 0x1dc   : > { %v1427_v4 = vpop.f32.mrf.mxu2  ;;  %v1879_v0 = vmax.f32 %v1751_v30, 0.0 }
 0x1dd   : > { %v1516_v53 = vpop.f32.mrf.mxu3  ;;  %v1252_v58 = vpop.f32.mrf.mxu0  ;;  %v1882_v19 = vmax.f32 %v1754_v31, 0.0 }
 0x1de   : > { %v1517_v26 = vadd.f32 %v1516_v53, %v1427_v4  ;;  %v1341_v32 = vpop.f32.mrf.mxu1 }
 0x1df   : > { %v1342_v6 = vadd.f32 %v1341_v32, %v1252_v58  ;;  %v4574_v27 = vpack.c.bf16 %v1882_v19, %v1878_v52 }
 0x1e0   : > { %v1617_v17 = vmul.f32 %v4519_v44, %v1517_v26  ;;  %1291 = vmatmul.bf16.gmra.mxu0 %v4156_v1 }
 0x1e1   : > { %1380 = vmatmul.bf16.gmra.mxu1 %v4164_v15  ;;  %1469 = vmatmul.bf16.gmra.mxu2 %v4156_v1  ;;  %v1620_v22 = vmul.f32 %v4498_v36, %v1342_v6 }
 0x1e2   : > { %v1755_v60 = vadd.f32 %v4525_v23, %v1617_v17  ;;  %1558 = vmatmul.bf16.gmra.mxu3 %v4164_v15 }
 0x1e3   : > { %v1758_v53 = vadd.f32 %v4506_v39, %v1620_v22 }
 0x1e4   : > { %v1430_v14 = vpop.f32.mrf.mxu2  ;;  %v1883_v3 = vmax.f32 %v1755_v60, 0.0 }
 0x1e5   : > { %v1519_v16 = vpop.f32.mrf.mxu3  ;;  %v1254_v31 = vpop.f32.mrf.mxu0  ;;  %v1886_v26 = vmax.f32 %v1758_v53, 0.0 }
 0x1e6   : > { %v1520_v24 = vadd.f32 %v1519_v16, %v1430_v14  ;;  %v1343_v4 = vpop.f32.mrf.mxu1  ;;  %v4584_v61 = vpack.c.bf16 %v1883_v3, %v1879_v0 }
 0x1e7   : > { %v1344_v52 = vadd.f32 %v1343_v4, %v1254_v31 }
 0x1e8   : > { %v1621_v15 = vmul.f32 %v4519_v44, %v1520_v24 }
 0x1e9   : > { %v1624_v1 = vmul.f32 %v4498_v36, %v1344_v52 }
 0x1ea   : > { %v1759_v0 = vadd.f32 %v4525_v23, %v1621_v15  ;;  %v3418_v15 = vld [vmem:[%s4942_s4] sm:$0xff] }
 0x1eb   : > { %v1762_v58 = vadd.f32 %v4506_v39, %v1624_v1  ;;  %2319 = vmatpush.bf16.msra.mxu0 %v3418_v15 }
 0x1ec   : > { %v1432_v19 = vpop.f32.mrf.mxu2  ;;  %v1887_v31 = vmax.f32 %v1759_v0, 0.0  ;;  %v3426_v0 = vld [vmem:[%s4942_s4 + $0x40] sm:$0xff] }
 0x1ed   : > { %v1521_v32 = vpop.f32.mrf.mxu3  ;;  %v1257_v30 = vpop.f32.mrf.mxu0  ;;  %v1890_v6 = vmax.f32 %v1762_v58, 0.0  ;;  %v3434_v58 = vld [vmem:[%s4942_s4 + $0x80] sm:$0xff]  ;;  %2408 = vmatpush.bf16.msra.mxu1 %v3426_v0 }
 0x1ee   : > { %v1522_v17 = vadd.f32 %v1521_v32, %v1432_v19  ;;  %v1346_v60 = vpop.f32.mrf.mxu1  ;;  %2497 = vmatpush.bf16.msra.mxu2 %v3434_v58 }
 0x1ef   : > { %v1347_v14 = vadd.f32 %v1346_v60, %v1257_v30  ;;  %v4590_v16 = vpack.c.bf16 %v1890_v6, %v1886_v26 }
 0x1f0   : > { %v1625_v3 = vmul.f32 %v4519_v44, %v1522_v17  ;;  %1296 = vmatmul.bf16.gmra.mxu0 %v4186_v7 }
 0x1f1   : > { %1385 = vmatmul.bf16.gmra.mxu1 %v4188_v18  ;;  %1474 = vmatmul.bf16.gmra.mxu2 %v4186_v7  ;;  %v1628_v52 = vmul.f32 %v4498_v36, %v1347_v14  ;;  %v3442_v7 = vld [vmem:[%s4942_s4 + $0xc0] sm:$0xff] }
 0x1f2   : > { %v1763_v22 = vadd.f32 %v4525_v23, %v1625_v3  ;;  %1563 = vmatmul.bf16.gmra.mxu3 %v4188_v18 }
 0x1f3   : > { %2586 = vmatpush.bf16.msra.mxu3 %v3442_v7  ;;  %v1766_v30 = vadd.f32 %v4506_v39, %v1628_v52 }
 0x1f4   : > { %v1435_v24 = vpop.f32.mrf.mxu2  ;;  %v1891_v4 = vmax.f32 %v1763_v22, 0.0 }
 0x1f5   : > { %v1524_v53 = vpop.f32.mrf.mxu3  ;;  %v1259_v1 = vpop.f32.mrf.mxu0  ;;  %v1894_v3 = vmax.f32 %v1766_v30, 0.0 }
 0x1f6   : > { %v1525_v18 = vadd.f32 %v1524_v53, %v1435_v24  ;;  %v1348_v19 = vpop.f32.mrf.mxu1  ;;  %v4609_v26 = vpack.c.bf16 %v1891_v4, %v1887_v31 }
 0x1f7   : > { %v1349_v32 = vadd.f32 %v1348_v19, %v1259_v1 }
 0x1f8   : > { %v1629_v60 = vmul.f32 %v4519_v44, %v1525_v18 }
 0x1f9   : > { %v1632_v6 = vmul.f32 %v4498_v36, %v1349_v32 }
 0x1fa   : > { %v1767_v58 = vadd.f32 %v4525_v23, %v1629_v60 }
 0x1fb   : > { %v1770_v17 = vadd.f32 %v4506_v39, %v1632_v6 }
 0x1fc   : > { %v1437_v14 = vpop.f32.mrf.mxu2  ;;  %v1895_v18 = vmax.f32 %v1767_v58, 0.0 }
 0x1fd   : > { %v1526_v22 = vpop.f32.mrf.mxu3  ;;  %v1262_v31 = vpop.f32.mrf.mxu0  ;;  %v1898_v24 = vmax.f32 %v1770_v17, 0.0 }
 0x1fe   : > { %v1527_v4 = vadd.f32 %v1526_v22, %v1437_v14  ;;  %v1351_v53 = vpop.f32.mrf.mxu1 }
 0x1ff   : > { %v1352_v1 = vadd.f32 %v1351_v53, %v1262_v31  ;;  %v4618_v52 = vpack.c.bf16 %v1898_v24, %v1894_v3 }
 0x200   : > { %v1633_v15 = vmul.f32 %v4519_v44, %v1527_v4  ;;  %1301 = vmatmul.bf16.gmra.mxu0 %v4228_v38 }
 0x201   : > { %1390 = vmatmul.bf16.gmra.mxu1 %v4236_v49  ;;  %1479 = vmatmul.bf16.gmra.mxu2 %v4228_v38  ;;  %v1636_v30 = vmul.f32 %v4498_v36, %v1352_v1 }
 0x202   : > { %v1771_v7 = vadd.f32 %v4525_v23, %v1633_v15  ;;  %1568 = vmatmul.bf16.gmra.mxu3 %v4236_v49 }
 0x203   : > { %v1774_v22 = vadd.f32 %v4506_v39, %v1636_v30 }
 0x204   : > { %v1440_v19 = vpop.f32.mrf.mxu2  ;;  %v1899_v32 = vmax.f32 %v1771_v7, 0.0 }
 0x205   : > { %v1529_v6 = vpop.f32.mrf.mxu3  ;;  %v1264_v17 = vpop.f32.mrf.mxu0  ;;  %v1902_v4 = vmax.f32 %v1774_v22, 0.0 }
 0x206   : > { %v1530_v60 = vadd.f32 %v1529_v6, %v1440_v19  ;;  %v1353_v14 = vpop.f32.mrf.mxu1  ;;  %v4628_v0 = vpack.c.bf16 %v1899_v32, %v1895_v18 }
 0x207   : > { %v1354_v3 = vadd.f32 %v1353_v14, %v1264_v17 }
 0x208   : > { %v1637_v49 = vmul.f32 %v4519_v44, %v1530_v60 }
 0x209   : > { %v1640_v38 = vmul.f32 %v4498_v36, %v1354_v3 }
 0x20a   : > { %v1775_v18 = vadd.f32 %v4525_v23, %v1637_v49 }
 0x20b   : > { %v1778_v31 = vadd.f32 %v4506_v39, %v1640_v38 }
 0x20c   : > { %v1442_v24 = vpop.f32.mrf.mxu2  ;;  %v1903_v17 = vmax.f32 %v1775_v18, 0.0 }
 0x20d   : > { %v1531_v53 = vpop.f32.mrf.mxu3  ;;  %v1267_v58 = vpop.f32.mrf.mxu0  ;;  %v1906_v1 = vmax.f32 %v1778_v31, 0.0 }
 0x20e   : > { %v1532_v15 = vadd.f32 %v1531_v53, %v1442_v24  ;;  %v1356_v7 = vpop.f32.mrf.mxu1 }
 0x20f   : > { %v1357_v19 = vadd.f32 %v1356_v7, %v1267_v58  ;;  %v4634_v6 = vpack.c.bf16 %v1906_v1, %v1902_v4 }
 0x210   : > { %v1641_v32 = vmul.f32 %v4519_v44, %v1532_v15  ;;  %1306 = vmatmul.bf16.gmra.mxu0 %v4258_v57 }
 0x211   : > { %1395 = vmatmul.bf16.gmra.mxu1 %v4260_v12  ;;  %1484 = vmatmul.bf16.gmra.mxu2 %v4258_v57  ;;  %v1644_v3 = vmul.f32 %v4498_v36, %v1357_v19 }
 0x212   : > { %v1779_v30 = vadd.f32 %v4525_v23, %v1641_v32  ;;  %1573 = vmatmul.bf16.gmra.mxu3 %v4260_v12 }
 0x213   : > { %v1782_v53 = vadd.f32 %v4506_v39, %v1644_v3 }
 0x214   : > { %v1445_v60 = vpop.f32.mrf.mxu2  ;;  %v1907_v14 = vmax.f32 %v1779_v30, 0.0 }
 0x215   : > { %v1534_v22 = vpop.f32.mrf.mxu3  ;;  %v1269_v38 = vpop.f32.mrf.mxu0  ;;  %v1910_v15 = vmax.f32 %v1782_v53, 0.0 }
 0x216   : > { %v1535_v31 = vadd.f32 %v1534_v22, %v1445_v60  ;;  %v1358_v49 = vpop.f32.mrf.mxu1  ;;  %v4644_v24 = vpack.c.bf16 %v1907_v14, %v1903_v17 }
 0x217   : > { %v1359_v4 = vadd.f32 %v1358_v49, %v1269_v38 }
 0x218   : > { %v1645_v12 = vmul.f32 %v4519_v44, %v1535_v31 }
 0x219   : > { %v1648_v57 = vmul.f32 %v4498_v36, %v1359_v4 }
 0x21a   : > { %v1783_v17 = vadd.f32 %v4525_v23, %v1645_v12 }
 0x21b   : > { %v1786_v58 = vadd.f32 %v4506_v39, %v1648_v57 }
 0x21c   : > { %v1447_v1 = vpop.f32.mrf.mxu2  ;;  %v1911_v38 = vmax.f32 %v1783_v17, 0.0 }
 0x21d   : > { %v1536_v7 = vpop.f32.mrf.mxu3  ;;  %v1272_v18 = vpop.f32.mrf.mxu0  ;;  %v1914_v19 = vmax.f32 %v1786_v58, 0.0 }
 0x21e   : > { %v1537_v32 = vadd.f32 %v1536_v7, %v1447_v1  ;;  %v1361_v30 = vpop.f32.mrf.mxu1 }
 0x21f   : > { %v1362_v60 = vadd.f32 %v1361_v30, %v1272_v18  ;;  %v4650_v22 = vpack.c.bf16 %v1914_v19, %v1910_v15 }
 0x220   : > { %v1649_v14 = vmul.f32 %v4519_v44, %v1537_v32  ;;  %1311 = vmatmul.bf16.gmra.mxu0 %v4291_v46 }
 0x221   : > { %1400 = vmatmul.bf16.gmra.mxu1 %v4296_v55  ;;  %1489 = vmatmul.bf16.gmra.mxu2 %v4291_v46  ;;  %v1652_v4 = vmul.f32 %v4498_v36, %v1362_v60 }
 0x222   : > { %v1787_v3 = vadd.f32 %v4525_v23, %v1649_v14  ;;  %1578 = vmatmul.bf16.gmra.mxu3 %v4296_v55 }
 0x223   : > { %v1790_v7 = vadd.f32 %v4506_v39, %v1652_v4 }
 0x224   : > { %v1450_v31 = vpop.f32.mrf.mxu2  ;;  %v1915_v49 = vmax.f32 %v1787_v3, 0.0 }
 0x225   : > { %v1539_v53 = vpop.f32.mrf.mxu3  ;;  %v1274_v57 = vpop.f32.mrf.mxu0  ;;  %v1918_v32 = vmax.f32 %v1790_v7, 0.0 }
 0x226   : > { %v1540_v58 = vadd.f32 %v1539_v53, %v1450_v31  ;;  %v1363_v12 = vpop.f32.mrf.mxu1  ;;  %v4660_v1 = vpack.c.bf16 %v1915_v49, %v1911_v38 }
 0x227   : > { %v1364_v15 = vadd.f32 %v1363_v12, %v1274_v57 }
 0x228   : > { %v1653_v55 = vmul.f32 %v4519_v44, %v1540_v58 }
 0x229   : > { %v1656_v46 = vmul.f32 %v4498_v36, %v1364_v15 }
 0x22a   : > { %v1791_v38 = vadd.f32 %v4525_v23, %v1653_v55 }
 0x22b   : > { %v1794_v18 = vadd.f32 %v4506_v39, %v1656_v46 }
 0x22c   : > { %v1452_v19 = vpop.f32.mrf.mxu2  ;;  %v1919_v57 = vmax.f32 %v1791_v38, 0.0 }
 0x22d   : > { %v1541_v30 = vpop.f32.mrf.mxu3  ;;  %v1277_v17 = vpop.f32.mrf.mxu0  ;;  %v1922_v60 = vmax.f32 %v1794_v18, 0.0 }
 0x22e   : > { %v1542_v14 = vadd.f32 %v1541_v30, %v1452_v19  ;;  %v1366_v3 = vpop.f32.mrf.mxu1 }
 0x22f   : > { %v1367_v31 = vadd.f32 %v1366_v3, %v1277_v17  ;;  %v4666_v53 = vpack.c.bf16 %v1922_v60, %v1918_v32 }
 0x230   : > { %v1657_v49 = vmul.f32 %v4519_v44, %v1542_v14  ;;  %2320 = vmatmul.bf16.vlgmr.msra.gmra.mxu0 %v4094_v21 }
 0x231   : > { %2409 = vmatmul.bf16.vlgmr.msra.gmra.mxu1 %v4104_v40  ;;  %2498 = vmatmul.bf16.vlgmr.msra.gmra.mxu2 %v4530_v54  ;;  %v1660_v15 = vmul.f32 %v4498_v36, %v1367_v31 }
 0x232   : > { %v1795_v4 = vadd.f32 %v4525_v23, %v1657_v49  ;;  %2587 = vmatmul.bf16.vlgmr.msra.gmra.mxu3 %v4540_v45 }
 0x233   : > { %v1798_v40 = vadd.f32 %v4506_v39, %v1660_v15 }
 0x234   : > { %v1455_v58 = vpop.f32.mrf.mxu2  ;;  %v1923_v12 = vmax.f32 %v1795_v4, 0.0 }
 0x235   : > { %v1544_v7 = vpop.f32.mrf.mxu3  ;;  %v1279_v46 = vpop.f32.mrf.mxu0  ;;  %v1926_v17 = vmax.f32 %v1798_v40, 0.0 }
 0x236   : > { %v1545_v18 = vadd.f32 %v1544_v7, %v1455_v58  ;;  %v1368_v55 = vpop.f32.mrf.mxu1  ;;  %v4676_v19 = vpack.c.bf16 %v1923_v12, %v1919_v57 }
 0x237   : > { %v1369_v21 = vadd.f32 %v1368_v55, %v1279_v46 }
 0x238   : > { %v1661_v45 = vmul.f32 %v4519_v44, %v1545_v18 }
 0x239   : > { %v1664_v54 = vmul.f32 %v4498_v36, %v1369_v21 }
 0x23a   : > { %v1799_v57 = vadd.f32 %v4525_v23, %v1661_v45 }
 0x23b   : > { %v1802_v32 = vadd.f32 %v4506_v39, %v1664_v54 }
 0x23c   : > { %v1457_v30 = vpop.f32.mrf.mxu2  ;;  %v1927_v15 = vmax.f32 %v1799_v57, 0.0 }
 0x23d   : > { %v1546_v60 = vpop.f32.mrf.mxu3  ;;  %v1282_v14 = vpop.f32.mrf.mxu0  ;;  %v1930_v3 = vmax.f32 %v1802_v32, 0.0 }
 0x23e   : > { %v1547_v31 = vadd.f32 %v1546_v60, %v1457_v30  ;;  %v1371_v38 = vpop.f32.mrf.mxu1 }
 0x23f   : > { %v1372_v49 = vadd.f32 %v1371_v38, %v1282_v14  ;;  %v4682_v4 = vpack.c.bf16 %v1930_v3, %v1926_v17 }
 0x240   : > { %v1665_v58 = vmul.f32 %v4519_v44, %v1547_v31  ;;  %2325 = vmatmul.bf16.gmra.mxu0 %v4118_v11 }
 0x241   : > { %2414 = vmatmul.bf16.gmra.mxu1 %v4143_v42  ;;  %2503 = vmatmul.bf16.gmra.mxu2 %v4546_v8  ;;  %v1668_v18 = vmul.f32 %v4498_v36, %v1372_v49 }
 0x242   : > { %v1803_v12 = vadd.f32 %v4525_v23, %v1665_v58  ;;  %2592 = vmatmul.bf16.gmra.mxu3 %v4565_v13 }
 0x243   : > { %v1806_v42 = vadd.f32 %v4506_v39, %v1668_v18 }
 0x244   : > { %v1460_v7 = vpop.f32.mrf.mxu2  ;;  %v1931_v46 = vmax.f32 %v1803_v12, 0.0 }
 0x245   : > { %v1549_v55 = vpop.f32.mrf.mxu3  ;;  %v1284_v21 = vpop.f32.mrf.mxu0  ;;  %v1934_v17 = vmax.f32 %v1806_v42, 0.0 }
 0x246   : > { %v1550_v40 = vadd.f32 %v1549_v55, %v1460_v7  ;;  %v1373_v54 = vpop.f32.mrf.mxu1  ;;  %v4692_v32 = vpack.c.bf16 %v1931_v46, %v1927_v15 }
 0x247   : > { %v1374_v11 = vadd.f32 %v1373_v54, %v1284_v21 }
 0x248   : > { %v1669_v13 = vmul.f32 %v4519_v44, %v1550_v40 }
 0x249   : > { %v1672_v8 = vmul.f32 %v4498_v36, %v1374_v11 }
 0x24a   : > { %v1807_v58 = vadd.f32 %v4525_v23, %v1669_v13 }
 0x24b   : > { %v1810_v45 = vadd.f32 %v4506_v39, %v1672_v8 }
 0x24c   : > { %v1462_v30 = vpop.f32.mrf.mxu2  ;;  %v1935_v7 = vmax.f32 %v1807_v58, 0.0 }
 0x24d   : > { %v1551_v60 = vpop.f32.mrf.mxu3  ;;  %v1287_v14 = vpop.f32.mrf.mxu0  ;;  %v1938_v3 = vmax.f32 %v1810_v45, 0.0 }
 0x24e   : > { %v1552_v31 = vadd.f32 %v1551_v60, %v1462_v30  ;;  %v1376_v38 = vpop.f32.mrf.mxu1 }
 0x24f   : > { %v1377_v49 = vadd.f32 %v1376_v38, %v1287_v14  ;;  %v4698_v57 = vpack.c.bf16 %v1938_v3, %v1934_v17 }
 0x250   : > { %v1673_v12 = vmul.f32 %v4519_v44, %v1552_v31  ;;  %2330 = vmatmul.bf16.gmra.mxu0 %v4166_v28 }
 0x251   : > { %2419 = vmatmul.bf16.gmra.mxu1 %v4176_v48  ;;  %2508 = vmatmul.bf16.gmra.mxu2 %v4574_v27  ;;  %v1676_v55 = vmul.f32 %v4498_v36, %v1377_v49 }
 0x252   : > { %v1811_v15 = vadd.f32 %v4525_v23, %v1673_v12  ;;  %2597 = vmatmul.bf16.gmra.mxu3 %v4584_v61  ;;  %v4951_v12 = vld [vmem:[#allocation2_spill] sm:$0xff] }
 0x253   : > { %v1814_v48 = vadd.f32 %v4506_v39, %v1676_v55 }
 0x254   : > { %v1465_v46 = vpop.f32.mrf.mxu2  ;;  %v1939_v18 = vmax.f32 %v1811_v15, 0.0 }
 0x255   : > { %v1554_v21 = vpop.f32.mrf.mxu3  ;;  %v1289_v40 = vpop.f32.mrf.mxu0  ;;  %v1942_v13 = vmax.f32 %v1814_v48, 0.0 }
 0x256   : > { %v1555_v54 = vadd.f32 %v1554_v21, %v1465_v46  ;;  %v1378_v11 = vpop.f32.mrf.mxu1  ;;  %v4708_v42 = vpack.c.bf16 %v1939_v18, %v1935_v7 }
 0x257   : > { %v1379_v28 = vadd.f32 %v1378_v11, %v1289_v40 }
 0x258   : > { %v1677_v61 = vmul.f32 %v4519_v44, %v1555_v54 }
 0x259   : > { %v1680_v27 = vmul.f32 %v4498_v36, %v1379_v28 }
 0x25a   : > { %v1815_v49 = vadd.f32 %v4525_v23, %v1677_v61 }
 0x25b   : > { %v1818_v8 = vadd.f32 %v4506_v39, %v1680_v27 }
 0x25c   : > { %v1467_v45 = vpop.f32.mrf.mxu2  ;;  %v1943_v7 = vmax.f32 %v1815_v49, 0.0 }
 0x25d   : > { %v1556_v30 = vpop.f32.mrf.mxu3  ;;  %v1292_v17 = vpop.f32.mrf.mxu0  ;;  %v1946_v60 = vmax.f32 %v1818_v8, 0.0 }
 0x25e   : > { %v1557_v14 = vadd.f32 %v1556_v30, %v1467_v45  ;;  %v1381_v3 = vpop.f32.mrf.mxu1 }
 0x25f   : > { %v1382_v31 = vadd.f32 %v1381_v3, %v1292_v17  ;;  %v4714_v38 = vpack.c.bf16 %v1946_v60, %v1942_v13 }
 0x260   : > { %v1681_v58 = vmul.f32 %v4519_v44, %v1557_v14  ;;  %2335 = vmatmul.bf16.gmra.mxu0 %v4190_v29 }
 0x261   : > { %2424 = vmatmul.bf16.gmra.mxu1 %v4951_v12  ;;  %2513 = vmatmul.bf16.gmra.mxu2 %v4590_v16  ;;  %v1684_v55 = vmul.f32 %v4498_v36, %v1382_v31  ;;  %v4953_v12 = vld [vmem:[#allocation4_spill] sm:$0xff] }
 0x262   : > { %v1819_v15 = vadd.f32 %v4525_v23, %v1681_v58  ;;  %2602 = vmatmul.bf16.gmra.mxu3 %v4609_v26  ;;  %v4952_v58 = vld [vmem:[#allocation3_spill] sm:$0xff] }
 0x263   : > { %v1822_v48 = vadd.f32 %v4506_v39, %v1684_v55 }
 0x264   : > { %v1470_v46 = vpop.f32.mrf.mxu2  ;;  %v1947_v18 = vmax.f32 %v1819_v15, 0.0 }
 0x265   : > { %v1559_v21 = vpop.f32.mrf.mxu3  ;;  %v1294_v40 = vpop.f32.mrf.mxu0  ;;  %v1950_v61 = vmax.f32 %v1822_v48, 0.0 }
 0x266   : > { %v1560_v54 = vadd.f32 %v1559_v21, %v1470_v46  ;;  %v1383_v11 = vpop.f32.mrf.mxu1  ;;  %v4724_v28 = vpack.c.bf16 %v1947_v18, %v1943_v7 }
 0x267   : > { %v1384_v29 = vadd.f32 %v1383_v11, %v1294_v40 }
 0x268   : > { %v1685_v26 = vmul.f32 %v4519_v44, %v1560_v54 }
 0x269   : > { %v1688_v16 = vmul.f32 %v4498_v36, %v1384_v29 }
 0x26a   : > { %v1823_v31 = vadd.f32 %v4525_v23, %v1685_v26 }
 0x26b   : > { %v1826_v27 = vadd.f32 %v4506_v39, %v1688_v16 }
 0x26c   : > { %v1472_v8 = vpop.f32.mrf.mxu2  ;;  %v1951_v7 = vmax.f32 %v1823_v31, 0.0 }
 0x26d   : > { %v1561_v45 = vpop.f32.mrf.mxu3  ;;  %v1297_v13 = vpop.f32.mrf.mxu0  ;;  %v1954_v30 = vmax.f32 %v1826_v27, 0.0 }
 0x26e   : > { %v1562_v17 = vadd.f32 %v1561_v45, %v1472_v8  ;;  %v1386_v60 = vpop.f32.mrf.mxu1 }
 0x26f   : > { %v1387_v14 = vadd.f32 %v1386_v60, %v1297_v13  ;;  %v4730_v3 = vpack.c.bf16 %v1954_v30, %v1950_v61 }
 0x270   : > { %v1689_v49 = vmul.f32 %v4519_v44, %v1562_v17  ;;  %2340 = vmatmul.bf16.gmra.mxu0 %v4952_v58  ;;  %v4954_v58 = vld [vmem:[#allocation5_spill] sm:$0xff] }
 0x271   : > { %2429 = vmatmul.bf16.gmra.mxu1 %v4953_v12  ;;  %2518 = vmatmul.bf16.gmra.mxu2 %v4618_v52  ;;  %v1692_v55 = vmul.f32 %v4498_v36, %v1387_v14  ;;  %v4955_v12 = vld [vmem:[#allocation6_spill] sm:$0xff] }
 0x272   : > { %v1827_v15 = vadd.f32 %v4525_v23, %v1689_v49  ;;  %2607 = vmatmul.bf16.gmra.mxu3 %v4628_v0 }
 0x273   : > { %v1830_v16 = vadd.f32 %v4506_v39, %v1692_v55 }
 0x274   : > { %v1475_v46 = vpop.f32.mrf.mxu2  ;;  %v1955_v18 = vmax.f32 %v1827_v15, 0.0 }
 0x275   : > { %v1564_v21 = vpop.f32.mrf.mxu3  ;;  %v1299_v40 = vpop.f32.mrf.mxu0  ;;  %v1958_v8 = vmax.f32 %v1830_v16, 0.0 }
 0x276   : > { %v1565_v54 = vadd.f32 %v1564_v21, %v1475_v46  ;;  %v1388_v11 = vpop.f32.mrf.mxu1  ;;  %v4740_v29 = vpack.c.bf16 %v1955_v18, %v1951_v7 }
 0x277   : > { %v1389_v48 = vadd.f32 %v1388_v11, %v1299_v40 }
 0x278   : > { %v1693_v0 = vmul.f32 %v4519_v44, %v1565_v54 }
 0x279   : > { %v1696_v52 = vmul.f32 %v4498_v36, %v1389_v48 }
 0x27a   : > { %v1831_v31 = vadd.f32 %v4525_v23, %v1693_v0 }
 0x27b   : > { %v1834_v27 = vadd.f32 %v4506_v39, %v1696_v52 }
 0x27c   : > { %v1477_v26 = vpop.f32.mrf.mxu2  ;;  %v1959_v7 = vmax.f32 %v1831_v31, 0.0 }
 0x27d   : > { %v1566_v61 = vpop.f32.mrf.mxu3  ;;  %v1302_v45 = vpop.f32.mrf.mxu0  ;;  %v1962_v13 = vmax.f32 %v1834_v27, 0.0 }
 0x27e   : > { %v1567_v30 = vadd.f32 %v1566_v61, %v1477_v26  ;;  %v1391_v17 = vpop.f32.mrf.mxu1 }
 0x27f   : > { %v1392_v60 = vadd.f32 %v1391_v17, %v1302_v45  ;;  %v4746_v14 = vpack.c.bf16 %v1962_v13, %v1958_v8 }
 0x280   : > { %v1697_v49 = vmul.f32 %v4519_v44, %v1567_v30  ;;  %2345 = vmatmul.bf16.gmra.mxu0 %v4954_v58  ;;  %v4956_v58 = vld [vmem:[#allocation7_spill] sm:$0xff] }
 0x281   : > { %2434 = vmatmul.bf16.gmra.mxu1 %v4955_v12  ;;  %2523 = vmatmul.bf16.gmra.mxu2 %v4634_v6  ;;  %v1700_v55 = vmul.f32 %v4498_v36, %v1392_v60 }
 0x282   : > { %v1835_v15 = vadd.f32 %v4525_v23, %v1697_v49  ;;  %2612 = vmatmul.bf16.gmra.mxu3 %v4644_v24 }
 0x283   : > { %v1838_v52 = vadd.f32 %v4506_v39, %v1700_v55 }
 0x284   : > { %v1480_v46 = vpop.f32.mrf.mxu2  ;;  %v1963_v18 = vmax.f32 %v1835_v15, 0.0 }
 0x285   : > { %v1569_v21 = vpop.f32.mrf.mxu3  ;;  %v1304_v40 = vpop.f32.mrf.mxu0  ;;  %v1966_v26 = vmax.f32 %v1838_v52, 0.0 }
 0x286   : > { %v1570_v54 = vadd.f32 %v1569_v21, %v1480_v46  ;;  %v1393_v11 = vpop.f32.mrf.mxu1  ;;  %v4756_v48 = vpack.c.bf16 %v1963_v18, %v1959_v7 }
 0x287   : > { %v1394_v16 = vadd.f32 %v1393_v11, %v1304_v40 }
 0x288   : > { %v1701_v24 = vmul.f32 %v4519_v44, %v1570_v54 }
 0x289   : > { %v1704_v6 = vmul.f32 %v4498_v36, %v1394_v16 }
 0x28a   : > { %v1839_v31 = vadd.f32 %v4525_v23, %v1701_v24 }
 0x28b   : > { %v1842_v27 = vadd.f32 %v4506_v39, %v1704_v6 }
 0x28c   : > { %v1482_v0 = vpop.f32.mrf.mxu2  ;;  %v1967_v15 = vmax.f32 %v1839_v31, 0.0 }
 0x28d   : > { %v1571_v8 = vpop.f32.mrf.mxu3  ;;  %v1307_v61 = vpop.f32.mrf.mxu0  ;;  %v1970_v45 = vmax.f32 %v1842_v27, 0.0 }
 0x28e   : > { %v1572_v13 = vadd.f32 %v1571_v8, %v1482_v0  ;;  %v1396_v30 = vpop.f32.mrf.mxu1 }
 0x28f   : > { %v1397_v17 = vadd.f32 %v1396_v30, %v1307_v61  ;;  %v4762_v60 = vpack.c.bf16 %v1970_v45, %v1966_v26 }
 0x290   : > { %v1705_v49 = vmul.f32 %v4519_v44, %v1572_v13  ;;  %2350 = vmatmul.bf16.gmra.mxu0 %v4956_v58 }
 0x291   : > { %2439 = vmatmul.bf16.gmra.mxu1 %v4308_v51  ;;  %2528 = vmatmul.bf16.gmra.mxu2 %v4650_v22  ;;  %v1708_v18 = vmul.f32 %v4498_v36, %v1397_v17 }
 0x292   : > { %v1843_v12 = vadd.f32 %v4525_v23, %v1705_v49  ;;  %2617 = vmatmul.bf16.gmra.mxu3 %v4660_v1 }
 0x293   : > { %v1846_v51 = vadd.f32 %v4506_v39, %v1708_v18 }
 0x294   : > { %v1485_v7 = vpop.f32.mrf.mxu2  ;;  %v1971_v46 = vmax.f32 %v1843_v12, 0.0 }
 0x295   : > { %v1574_v55 = vpop.f32.mrf.mxu3  ;;  %v1309_v21 = vpop.f32.mrf.mxu0  ;;  %v1974_v27 = vmax.f32 %v1846_v51, 0.0 }
 0x296   : > { %v1575_v40 = vadd.f32 %v1574_v55, %v1485_v7  ;;  %v1398_v54 = vpop.f32.mrf.mxu1  ;;  %v4772_v11 = vpack.c.bf16 %v1971_v46, %v1967_v15 }
 0x297   : > { %v1399_v16 = vadd.f32 %v1398_v54, %v1309_v21 }
 0x298   : > { %v1709_v1 = vmul.f32 %v4519_v44, %v1575_v40 }
 0x299   : > { %v1712_v22 = vmul.f32 %v4498_v36, %v1399_v16 }
 0x29a   : > { %v1847_v30 = vadd.f32 %v4525_v23, %v1709_v1 }
 0x29b   : > { %v1850_v52 = vadd.f32 %v4506_v39, %v1712_v22 }
 0x29c   : > { %v1487_v6 = vpop.f32.mrf.mxu2  ;;  %v1975_v49 = vmax.f32 %v1847_v30, 0.0 }
 0x29d   : > { %v1576_v24 = vpop.f32.mrf.mxu3  ;;  %v1312_v0 = vpop.f32.mrf.mxu0  ;;  %v1978_v26 = vmax.f32 %v1850_v52, 0.0 }
 0x29e   : > { %v1577_v8 = vadd.f32 %v1576_v24, %v1487_v6  ;;  %v1401_v61 = vpop.f32.mrf.mxu1 }
 0x29f   : > { %v1402_v45 = vadd.f32 %v1401_v61, %v1312_v0  ;;  %v4778_v13 = vpack.c.bf16 %v1978_v26, %v1974_v27 }
 0x2a0   : > { %v1713_v17 = vmul.f32 %v4519_v44, %v1577_v8  ;;  %2355 = vmatmul.bf16.gmra.mxu0 %v4314_v41 }
 0x2a1   : > { %2444 = vmatmul.bf16.gmra.mxu1 %v4333_v50  ;;  %2533 = vmatmul.bf16.gmra.mxu2 %v4666_v53  ;;  %v1716_v15 = vmul.f32 %v4498_v36, %v1402_v45 }
 0x2a2   : > { %v1851_v31 = vadd.f32 %v4525_v23, %v1713_v17  ;;  %2622 = vmatmul.bf16.gmra.mxu3 %v4676_v19  ;;  %v4795_v19 = vld [vmem:[%s4943_s5] ss:$0 sm:$0xff] }
 0x2a3   : > { %v1854_v50 = vadd.f32 %v4506_v39, %v1716_v15 }
 0x2a4   : > { %v1490_v58 = vpop.f32.mrf.mxu2  ;;  %v1979_v12 = vmax.f32 %v1851_v31, 0.0 }
 0x2a5   : > { %v1579_v7 = vpop.f32.mrf.mxu3  ;;  %v1314_v46 = vpop.f32.mrf.mxu0  ;;  %v1982_v51 = vmax.f32 %v1854_v50, 0.0 }
 0x2a6   : > { %v1580_v18 = vadd.f32 %v1579_v7, %v1490_v58  ;;  %v1403_v55 = vpop.f32.mrf.mxu1  ;;  %v4788_v21 = vpack.c.bf16 %v1979_v12, %v1975_v49 }
 0x2a7   : > { %v1404_v41 = vadd.f32 %v1403_v55, %v1314_v46 }
 0x2a8   : > { %v1717_v54 = vmul.f32 %v4519_v44, %v1580_v18 }
 0x2a9   : > { %v1720_v53 = vmul.f32 %v4498_v36, %v1404_v41 }
 0x2aa   : > { %v1855_v36 = vadd.f32 %v4525_v23, %v1717_v54 }
 0x2ab   : > { %v1858_v40 = vadd.f32 %v4506_v39, %v1720_v53 }
 0x2ac   : > { %v1492_v16 = vpop.f32.mrf.mxu2  ;;  %v1983_v61 = vmax.f32 %v1855_v36, 0.0 }
 0x2ad   : > { %v1581_v22 = vpop.f32.mrf.mxu3  ;;  %v2321_v52 = vpop.f32.mrf.mxu0  ;;  %v1986_v1 = vmax.f32 %v1858_v40, 0.0 }
 0x2ae   : > { %v1582_v6 = vadd.f32 %v1581_v22, %v1492_v16  ;;  %v2322_v27 = vadd.f32 %v4795_v19, %v2321_v52  ;;  %v2410_v24 = vpop.f32.mrf.mxu1 }
 0x2af   : > { %v4800_v0 = vpack.c.bf16 %v1986_v1, %v1982_v51 }
 0x2b0   : > { %v1721_v26 = vmul.f32 %v4519_v44, %v1582_v6  ;;  %v2411_v8 = vadd.f32 %v2410_v24, %v2322_v27  ;;  %2360 = vmatmul.bf16.gmra.mxu0 %v4342_v62 }
 0x2b1   : > { %2449 = vmatmul.bf16.gmra.mxu1 %v4352_v25  ;;  %2538 = vmatmul.bf16.gmra.mxu2 %v4682_v4 }
 0x2b2   : > { %v1859_v39 = vadd.f32 %v4525_v23, %v1721_v26  ;;  %2627 = vmatmul.bf16.gmra.mxu3 %v4692_v32 }
 0x2b4   : > { %v2499_v45 = vpop.f32.mrf.mxu2  ;;  %v1987_v30 = vmax.f32 %v1859_v39, 0.0 }
 0x2b5   : > { %v2500_v17 = vadd.f32 %v2499_v45, %v2411_v8  ;;  %v2588_v31 = vpop.f32.mrf.mxu3  ;;  %v2323_v49 = vpop.f32.mrf.mxu0 }
 0x2b6   : > { %v2324_v58 = vadd.f32 %v4795_v19, %v2323_v49  ;;  %v2412_v44 = vpop.f32.mrf.mxu1  ;;  %v4810_v12 = vpack.c.bf16 %v1987_v30, %v1983_v61 }
 0x2b7   : > { %v4812_v62 = vadd.f32 %v2588_v31, %v2500_v17 }
 0x2b8   : > { %v2413_v25 = vadd.f32 %v2412_v44, %v2324_v58 }
 0x2bc   : > { %v2501_v15 = vpop.f32.mrf.mxu2 }
 0x2bd   : > { %v2502_v4 = vadd.f32 %v2501_v15, %v2413_v25  ;;  %v2590_v7 = vpop.f32.mrf.mxu3  ;;  %v2326_v23 = vpop.f32.mrf.mxu0 }
 0x2be   : > { %v2327_v32 = vadd.f32 %v4795_v19, %v2326_v23  ;;  %v2415_v46 = vpop.f32.mrf.mxu1 }
 0x2bf   : > { %v4815_v18 = vadd.f32 %v2590_v7, %v2502_v4 }
 0x2c0   : > { %v2416_v55 = vadd.f32 %v2415_v46, %v2327_v32  ;;  %2365 = vmatmul.bf16.gmra.mxu0 %v4358_v63 }
 0x2c1   : > { %2454 = vmatmul.bf16.gmra.mxu1 %v4377_v43  ;;  %2543 = vmatmul.bf16.gmra.mxu2 %v4698_v57 }
 0x2c2   : > { %2632 = vmatmul.bf16.gmra.mxu3 %v4708_v42 }
 0x2c4   : > { %v2504_v41 = vpop.f32.mrf.mxu2 }
 0x2c5   : > { %v2505_v50 = vadd.f32 %v2504_v41, %v2416_v55  ;;  %v2593_v53 = vpop.f32.mrf.mxu3  ;;  %v2328_v40 = vpop.f32.mrf.mxu0 }
 0x2c6   : > { %v2329_v54 = vadd.f32 %v4795_v19, %v2328_v40  ;;  %v2417_v16 = vpop.f32.mrf.mxu1 }
 0x2c7   : > { %v4822_v51 = vadd.f32 %v2593_v53, %v2505_v50 }
 0x2c8   : > { %v2418_v22 = vadd.f32 %v2417_v16, %v2329_v54 }
 0x2cc   : > { %v2506_v52 = vpop.f32.mrf.mxu2 }
 0x2cd   : > { %v2507_v1 = vadd.f32 %v2506_v52, %v2418_v22  ;;  %v2595_v6 = vpop.f32.mrf.mxu3  ;;  %v2331_v63 = vpop.f32.mrf.mxu0 }
 0x2ce   : > { %v2332_v43 = vadd.f32 %v4795_v19, %v2331_v63  ;;  %v2420_v27 = vpop.f32.mrf.mxu1 }
 0x2cf   : > { %v4825_v57 = vadd.f32 %v2595_v6, %v2507_v1 }
 0x2d0   : > { %v2421_v42 = vadd.f32 %v2420_v27, %v2332_v43  ;;  %2370 = vmatmul.bf16.gmra.mxu0 %v4386_v37 }
 0x2d1   : > { %2459 = vmatmul.bf16.gmra.mxu1 %v4396_v47  ;;  %2548 = vmatmul.bf16.gmra.mxu2 %v4714_v38 }
 0x2d2   : > { %2637 = vmatmul.bf16.gmra.mxu3 %v4724_v28 }
 0x2d4   : > { %v2509_v24 = vpop.f32.mrf.mxu2 }
 0x2d5   : > { %v2510_v36 = vadd.f32 %v2509_v24, %v2421_v42  ;;  %v2598_v26 = vpop.f32.mrf.mxu3  ;;  %v2333_v8 = vpop.f32.mrf.mxu0 }
 0x2d6   : > { %v2334_v39 = vadd.f32 %v4795_v19, %v2333_v8  ;;  %v2422_v61 = vpop.f32.mrf.mxu1 }
 0x2d7   : > { %v2599_v45 = vadd.f32 %v2598_v26, %v2510_v36 }
 0x2d8   : > { %v2423_v30 = vadd.f32 %v2422_v61, %v2334_v39 }
 0x2d9   : > { %v2668_v17 = vmax.f32 %v4812_v62, %v2599_v45 }
 0x2dc   : > { %v2511_v31 = vpop.f32.mrf.mxu2 }
 0x2dd   : > { %v2512_v49 = vadd.f32 %v2511_v31, %v2423_v30  ;;  %v2600_v37 = vpop.f32.mrf.mxu3  ;;  %v2336_v58 = vpop.f32.mrf.mxu0 }
 0x2de   : > { %v2337_v47 = vadd.f32 %v4795_v19, %v2336_v58  ;;  %v2425_v38 = vpop.f32.mrf.mxu1 }
 0x2df   : > { %v2601_v44 = vadd.f32 %v2600_v37, %v2512_v49 }
 0x2e0   : > { %v2426_v28 = vadd.f32 %v2425_v38, %v2337_v47  ;;  %2375 = vmatmul.bf16.gmra.mxu0 %v4402_v20 }
 0x2e1   : > { %v2669_v25 = vmax.f32 %v4815_v18, %v2601_v44  ;;  %2464 = vmatmul.bf16.gmra.mxu1 %v4421_v34  ;;  %2553 = vmatmul.bf16.gmra.mxu2 %v4730_v3 }
 0x2e2   : > { %2642 = vmatmul.bf16.gmra.mxu3 %v4740_v29 }
 0x2e4   : > { %v2514_v62 = vpop.f32.mrf.mxu2 }
 0x2e5   : > { %v2515_v15 = vadd.f32 %v2514_v62, %v2426_v28  ;;  %v2603_v4 = vpop.f32.mrf.mxu3  ;;  %v2338_v7 = vpop.f32.mrf.mxu0 }
 0x2e6   : > { %v2339_v23 = vadd.f32 %v4795_v19, %v2338_v7  ;;  %v2427_v32 = vpop.f32.mrf.mxu1 }
 0x2e7   : > { %v2604_v46 = vadd.f32 %v2603_v4, %v2515_v15 }
 0x2e8   : > { %v2428_v55 = vadd.f32 %v2427_v32, %v2339_v23 }
 0x2e9   : > { %v2670_v41 = vmax.f32 %v4822_v51, %v2604_v46 }
 0x2ec   : > { %v2516_v20 = vpop.f32.mrf.mxu2 }
 0x2ed   : > { %v2517_v50 = vadd.f32 %v2516_v20, %v2428_v55  ;;  %v2605_v18 = vpop.f32.mrf.mxu3  ;;  %v2341_v53 = vpop.f32.mrf.mxu0 }
 0x2ee   : > { %v2342_v34 = vadd.f32 %v4795_v19, %v2341_v53  ;;  %v2430_v3 = vpop.f32.mrf.mxu1 }
 0x2ef   : > { %v2606_v40 = vadd.f32 %v2605_v18, %v2517_v50 }
 0x2f0   : > { %v2431_v29 = vadd.f32 %v2430_v3, %v2342_v34  ;;  %2380 = vmatmul.bf16.gmra.mxu0 %v4430_v5 }
 0x2f1   : > { %v2671_v54 = vmax.f32 %v4825_v57, %v2606_v40  ;;  %2469 = vmatmul.bf16.gmra.mxu1 %v4440_v9  ;;  %2558 = vmatmul.bf16.gmra.mxu2 %v4746_v14 }
 0x2f2   : > { %2647 = vmatmul.bf16.gmra.mxu3 %v4756_v48 }
 0x2f4   : > { %v2519_v16 = vpop.f32.mrf.mxu2 }
 0x2f5   : > { %v2520_v51 = vadd.f32 %v2519_v16, %v2431_v29  ;;  %v2608_v22 = vpop.f32.mrf.mxu3  ;;  %v2343_v52 = vpop.f32.mrf.mxu0 }
 0x2f6   : > { %v2344_v1 = vadd.f32 %v4795_v19, %v2343_v52  ;;  %v2432_v6 = vpop.f32.mrf.mxu1 }
 0x2f7   : > { %v2609_v63 = vadd.f32 %v2608_v22, %v2520_v51 }
 0x2f8   : > { %v2433_v43 = vadd.f32 %v2432_v6, %v2344_v1 }
 0x2f9   : > { %v4848_v27 = vmax.f32 %v2668_v17, %v2609_v63 }
 0x2fc   : > { %v2521_v5 = vpop.f32.mrf.mxu2 }
 0x2fd   : > { %v2522_v42 = vadd.f32 %v2521_v5, %v2433_v43  ;;  %v2610_v57 = vpop.f32.mrf.mxu3  ;;  %v2346_v24 = vpop.f32.mrf.mxu0 }
 0x2fe   : > { %v2347_v9 = vadd.f32 %v4795_v19, %v2346_v24  ;;  %v2435_v14 = vpop.f32.mrf.mxu1 }
 0x2ff   : > { %v2611_v36 = vadd.f32 %v2610_v57, %v2522_v42 }
 0x300   : > { %v2436_v48 = vadd.f32 %v2435_v14, %v2347_v9  ;;  %2385 = vmatmul.bf16.gmra.mxu0 %v4446_v2 }
 0x301   : > { %v4852_v26 = vmax.f32 %v2669_v25, %v2611_v36  ;;  %2474 = vmatmul.bf16.gmra.mxu1 %v4465_v56  ;;  %2563 = vmatmul.bf16.gmra.mxu2 %v4762_v60 }
 0x302   : > { %2652 = vmatmul.bf16.gmra.mxu3 %v4772_v11 }
 0x304   : > { %v2524_v8 = vpop.f32.mrf.mxu2 }
 0x305   : > { %v2525_v39 = vadd.f32 %v2524_v8, %v2436_v48  ;;  %v2613_v61 = vpop.f32.mrf.mxu3  ;;  %v2348_v45 = vpop.f32.mrf.mxu0 }
 0x306   : > { %v2349_v30 = vadd.f32 %v4795_v19, %v2348_v45  ;;  %v2437_v17 = vpop.f32.mrf.mxu1 }
 0x307   : > { %v2614_v31 = vadd.f32 %v2613_v61, %v2525_v39 }
 0x308   : > { %v2438_v49 = vadd.f32 %v2437_v17, %v2349_v30 }
 0x309   : > { %v4858_v37 = vmax.f32 %v2670_v41, %v2614_v31 }
 0x30c   : > { %v2526_v2 = vpop.f32.mrf.mxu2 }
 0x30d   : > { %v2527_v58 = vadd.f32 %v2526_v2, %v2438_v49  ;;  %v2615_v47 = vpop.f32.mrf.mxu3  ;;  %v2351_v38 = vpop.f32.mrf.mxu0 }
 0x30e   : > { %v2352_v56 = vadd.f32 %v4795_v19, %v2351_v38  ;;  %v2440_v60 = vpop.f32.mrf.mxu1 }
 0x30f   : > { %v2616_v44 = vadd.f32 %v2615_v47, %v2527_v58 }
 0x310   : > { %v2441_v11 = vadd.f32 %v2440_v60, %v2352_v56  ;;  %2390 = vmatmul.bf16.gmra.mxu0 %v4474_v10 }
 0x311   : > { %v4862_v28 = vmax.f32 %v2671_v54, %v2616_v44  ;;  %2479 = vmatmul.bf16.gmra.mxu1 %v4484_v33  ;;  %2568 = vmatmul.bf16.gmra.mxu2 %v4778_v13 }
 0x312   : > { %2657 = vmatmul.bf16.gmra.mxu3 %v4788_v21 }
 0x314   : > { %v2529_v25 = vpop.f32.mrf.mxu2 }
 0x315   : > { %v2530_v62 = vadd.f32 %v2529_v25, %v2441_v11  ;;  %v2618_v15 = vpop.f32.mrf.mxu3  ;;  %v2353_v4 = vpop.f32.mrf.mxu0 }
 0x316   : > { %v2354_v7 = vadd.f32 %v4795_v19, %v2353_v4  ;;  %v2442_v23 = vpop.f32.mrf.mxu1 }
 0x317   : > { %v2619_v32 = vadd.f32 %v2618_v15, %v2530_v62 }
 0x318   : > { %v2443_v46 = vadd.f32 %v2442_v23, %v2354_v7 }
 0x319   : > { %v2676_v55 = vmax.f32 %v4848_v27, %v2619_v32 }
 0x31c   : > { %v2531_v10 = vpop.f32.mrf.mxu2 }
 0x31d   : > { %v2532_v41 = vadd.f32 %v2531_v10, %v2443_v46  ;;  %v2620_v20 = vpop.f32.mrf.mxu3  ;;  %v2356_v50 = vpop.f32.mrf.mxu0 }
 0x31e   : > { %v2357_v33 = vadd.f32 %v4795_v19, %v2356_v50  ;;  %v2445_v13 = vpop.f32.mrf.mxu1 }
 0x31f   : > { %v2621_v18 = vadd.f32 %v2620_v20, %v2532_v41 }
 0x320   : > { %v2446_v21 = vadd.f32 %v2445_v13, %v2357_v33  ;;  %2395 = vmatmul.bf16.gmra.mxu0 %v4490_v59 }
 0x321   : > { %v2677_v53 = vmax.f32 %v4852_v26, %v2621_v18  ;;  %2484 = vmatmul.bf16.gmra.mxu1 %v4517_v35  ;;  %2573 = vmatmul.bf16.gmra.mxu2 %v4800_v0 }
 0x322   : > { %2662 = vmatmul.bf16.gmra.mxu3 %v4810_v12 }
 0x324   : > { %v2534_v34 = vpop.f32.mrf.mxu2 }
 0x325   : > { %v2535_v3 = vadd.f32 %v2534_v34, %v2446_v21  ;;  %v2623_v40 = vpop.f32.mrf.mxu3  ;;  %v2358_v29 = vpop.f32.mrf.mxu0 }
 0x326   : > { %v2359_v54 = vadd.f32 %v4795_v19, %v2358_v29  ;;  %v2447_v16 = vpop.f32.mrf.mxu1 }
 0x327   : > { %v2624_v51 = vadd.f32 %v2623_v40, %v2535_v3 }
 0x328   : > { %v2448_v22 = vadd.f32 %v2447_v16, %v2359_v54 }
 0x329   : > { %v2678_v52 = vmax.f32 %v4858_v37, %v2624_v51 }
 0x32c   : > { %v2536_v59 = vpop.f32.mrf.mxu2 }
 0x32d   : > { %v2537_v1 = vadd.f32 %v2536_v59, %v2448_v22  ;;  %v2625_v6 = vpop.f32.mrf.mxu3  ;;  %v2361_v63 = vpop.f32.mrf.mxu0 }
 0x32e   : > { %v2362_v35 = vadd.f32 %v4795_v19, %v2361_v63  ;;  %v2450_v0 = vpop.f32.mrf.mxu1 }
 0x32f   : > { %v2626_v43 = vadd.f32 %v2625_v6, %v2537_v1 }
 0x330   : > { %v2451_v12 = vadd.f32 %v2450_v0, %v2362_v35 }
 0x331   : > { %v2679_v27 = vmax.f32 %v4862_v28, %v2626_v43 }
 0x334   : > { %v2539_v5 = vpop.f32.mrf.mxu2 }
 0x335   : > { %v2540_v42 = vadd.f32 %v2539_v5, %v2451_v12  ;;  %v2628_v57 = vpop.f32.mrf.mxu3  ;;  %v2363_v24 = vpop.f32.mrf.mxu0 }
 0x336   : > { %v2364_v9 = vadd.f32 %v4795_v19, %v2363_v24  ;;  %v2452_v14 = vpop.f32.mrf.mxu1 }
 0x337   : > { %v2629_v36 = vadd.f32 %v2628_v57, %v2540_v42 }
 0x338   : > { %v2453_v48 = vadd.f32 %v2452_v14, %v2364_v9 }
 0x339   : > { %v4880_v26 = vmax.f32 %v2676_v55, %v2629_v36 }
 0x33c   : > { %v2541_v8 = vpop.f32.mrf.mxu2 }
 0x33d   : > { %v2542_v39 = vadd.f32 %v2541_v8, %v2453_v48  ;;  %v2630_v61 = vpop.f32.mrf.mxu3  ;;  %v2366_v45 = vpop.f32.mrf.mxu0 }
 0x33e   : > { %v2367_v30 = vadd.f32 %v4795_v19, %v2366_v45  ;;  %v2455_v17 = vpop.f32.mrf.mxu1 }
 0x33f   : > { %v2631_v31 = vadd.f32 %v2630_v61, %v2542_v39 }
 0x340   : > { %v2456_v49 = vadd.f32 %v2455_v17, %v2367_v30 }
 0x341   : > { %v4883_v37 = vmax.f32 %v2677_v53, %v2631_v31 }
 0x344   : > { %v2544_v2 = vpop.f32.mrf.mxu2 }
 0x345   : > { %v2545_v58 = vadd.f32 %v2544_v2, %v2456_v49  ;;  %v2633_v47 = vpop.f32.mrf.mxu3  ;;  %v2368_v38 = vpop.f32.mrf.mxu0 }
 0x346   : > { %v2369_v56 = vadd.f32 %v4795_v19, %v2368_v38  ;;  %v2457_v60 = vpop.f32.mrf.mxu1 }
 0x347   : > { %v2634_v44 = vadd.f32 %v2633_v47, %v2545_v58 }
 0x348   : > { %v2458_v11 = vadd.f32 %v2457_v60, %v2369_v56 }
 0x349   : > { %v4886_v28 = vmax.f32 %v2678_v52, %v2634_v44 }
 0x34c   : > { %v2546_v25 = vpop.f32.mrf.mxu2 }
 0x34d   : > { %v2547_v62 = vadd.f32 %v2546_v25, %v2458_v11  ;;  %v2635_v15 = vpop.f32.mrf.mxu3  ;;  %v2371_v4 = vpop.f32.mrf.mxu0 }
 0x34e   : > { %v2372_v7 = vadd.f32 %v4795_v19, %v2371_v4  ;;  %v2460_v23 = vpop.f32.mrf.mxu1 }
 0x34f   : > { %v2636_v32 = vadd.f32 %v2635_v15, %v2547_v62 }
 0x350   : > { %v2461_v46 = vadd.f32 %v2460_v23, %v2372_v7 }
 0x351   : > { %v4889_v55 = vmax.f32 %v2679_v27, %v2636_v32 }
 0x354   : > { %v2549_v10 = vpop.f32.mrf.mxu2 }
 0x355   : > { %v2550_v41 = vadd.f32 %v2549_v10, %v2461_v46  ;;  %v2638_v20 = vpop.f32.mrf.mxu3  ;;  %v2373_v50 = vpop.f32.mrf.mxu0 }
 0x356   : > { %v2374_v33 = vadd.f32 %v4795_v19, %v2373_v50  ;;  %v2462_v13 = vpop.f32.mrf.mxu1 }
 0x357   : > { %v4892_v18 = vadd.f32 %v2638_v20, %v2550_v41 }
 0x358   : > { %v2463_v21 = vadd.f32 %v2462_v13, %v2374_v33 }
 0x359   : > { %v2684_v53 = vmax.f32 %v4880_v26, %v4892_v18 }
 0x35c   : > { %v2551_v34 = vpop.f32.mrf.mxu2 }
 0x35d   : > { %v2552_v3 = vadd.f32 %v2551_v34, %v2463_v21  ;;  %v2640_v40 = vpop.f32.mrf.mxu3  ;;  %v2376_v29 = vpop.f32.mrf.mxu0 }
 0x35e   : > { %v2377_v54 = vadd.f32 %v4795_v19, %v2376_v29  ;;  %v2465_v16 = vpop.f32.mrf.mxu1 }
 0x35f   : > { %v2641_v51 = vadd.f32 %v2640_v40, %v2552_v3 }
 0x360   : > { %v2466_v22 = vadd.f32 %v2465_v16, %v2377_v54 }
 0x361   : > { %v2685_v52 = vmax.f32 %v4883_v37, %v2641_v51 }
 0x364   : > { %v2554_v59 = vpop.f32.mrf.mxu2 }
 0x365   : > { %v2555_v1 = vadd.f32 %v2554_v59, %v2466_v22  ;;  %v2643_v6 = vpop.f32.mrf.mxu3  ;;  %v2378_v63 = vpop.f32.mrf.mxu0 }
 0x366   : > { %v2467_v35 = vpop.f32.mrf.mxu1  ;;  %v2379_v18 = vadd.f32 %v4795_v19, %v2378_v63 }
 0x367   : > { %v4898_v0 = vadd.f32 %v2643_v6, %v2555_v1 }
 0x368   : > { %v2468_v22 = vadd.f32 %v2467_v35, %v2379_v18 }
 0x369   : > { %v2686_v43 = vmax.f32 %v4886_v28, %v4898_v0 }
 0x36c   : > { %v2556_v12 = vpop.f32.mrf.mxu2 }
 0x36d   : > { %v4902_v27 = vpop.f32.mrf.mxu3  ;;  %v2381_v5 = vpop.f32.mrf.mxu0 }
 0x36e   : > { %v2470_v42 = vpop.f32.mrf.mxu1  ;;  %v2382_v2 = vadd.f32 %v4795_v19, %v2381_v5  ;;  %v2557_v5 = vadd.f32 %v2556_v12, %v2468_v22 }
 0x370   : > { %v2471_v56 = vadd.f32 %v2470_v42, %v2382_v2 }
 0x374   : > { %v2559_v57 = vpop.f32.mrf.mxu2 }
 0x375   : > { %v2648_v24 = vpop.f32.mrf.mxu3  ;;  %v2383_v9 = vpop.f32.mrf.mxu0  ;;  %v2560_v62 = vadd.f32 %v2559_v57, %v2471_v56 }
 0x376   : > { %v2472_v14 = vpop.f32.mrf.mxu1  ;;  %v2384_v58 = vadd.f32 %v4795_v19, %v2383_v9 }
 0x377   : > { %v2649_v32 = vadd.f32 %v2648_v24, %v2560_v62 }
 0x378   : > { %v2473_v60 = vadd.f32 %v2472_v14, %v2384_v58 }
 0x379   : > { %v2688_v21 = vmax.f32 %v2684_v53, %v2649_v32 }
 0x37c   : > { %v2561_v36 = vpop.f32.mrf.mxu2 }
 0x37d   : > { %v2650_v48 = vpop.f32.mrf.mxu3  ;;  %v2386_v26 = vpop.f32.mrf.mxu0  ;;  %v2562_v15 = vadd.f32 %v2561_v36, %v2473_v60  ;;  %v2646_v36 = vadd.f32 %v4902_v27, %v2557_v5 }
 0x37e   : > { %v2475_v8 = vpop.f32.mrf.mxu1  ;;  %v2387_v29 = vadd.f32 %v4795_v19, %v2386_v26 }
 0x37f   : > { %v2651_v46 = vadd.f32 %v2650_v48, %v2562_v15  ;;  %v2687_v2 = vmax.f32 %v4889_v55, %v2646_v36 }
 0x380   : > { %v2476_v42 = vadd.f32 %v2475_v8, %v2387_v29 }
 0x381   : > { %v2689_v34 = vmax.f32 %v2685_v52, %v2651_v46 }
 0x384   : > { %v2564_v39 = vpop.f32.mrf.mxu2 }
 0x385   : > { %v2653_v61 = vpop.f32.mrf.mxu3  ;;  %v2388_v45 = vpop.f32.mrf.mxu0  ;;  %v2565_v53 = vadd.f32 %v2564_v39, %v2476_v42 }
 0x386   : > { %v2477_v30 = vpop.f32.mrf.mxu1  ;;  %v2389_v54 = vadd.f32 %v4795_v19, %v2388_v45 }
 0x387   : > { %v2654_v45 = vadd.f32 %v2653_v61, %v2565_v53 }
 0x388   : > { %v2478_v57 = vadd.f32 %v2477_v30, %v2389_v54 }
 0x389   : > { %v2690_v39 = vmax.f32 %v2686_v43, %v2654_v45 }
 0x38c   : > { %v2566_v17 = vpop.f32.mrf.mxu2 }
 0x38d   : > { %v2655_v31 = vpop.f32.mrf.mxu3  ;;  %v2391_v49 = vpop.f32.mrf.mxu0  ;;  %v2567_v52 = vadd.f32 %v2566_v17, %v2478_v57 }
 0x38e   : > { %v2480_v37 = vpop.f32.mrf.mxu1  ;;  %v2392_v47 = vadd.f32 %v4795_v19, %v2391_v49 }
 0x38f   : > { %v2656_v35 = vadd.f32 %v2655_v31, %v2567_v52 }
 0x390   : > { %v2481_v4 = vadd.f32 %v2480_v37, %v2392_v47 }
 0x391   : > { %v2691_v17 = vmax.f32 %v2687_v2, %v2656_v35 }
 0x394   : > { %v2569_v38 = vpop.f32.mrf.mxu2 }
 0x395   : > { %v2658_v44 = vpop.f32.mrf.mxu3  ;;  %v2393_v11 = vpop.f32.mrf.mxu0  ;;  %v2570_v23 = vadd.f32 %v2569_v38, %v2481_v4 }
 0x396   : > { %v2482_v25 = vpop.f32.mrf.mxu1  ;;  %v2394_v7 = vadd.f32 %v4795_v19, %v2393_v11 }
 0x397   : > { %v2659_v20 = vadd.f32 %v2658_v44, %v2570_v23 }
 0x398   : > { %v2483_v10 = vadd.f32 %v2482_v25, %v2394_v7 }
 0x399   : > { %v2692_v16 = vmax.f32 %v2688_v21, %v2659_v20 }
 0x39c   : > { %v2571_v41 = vpop.f32.mrf.mxu2 }
 0x39d   : > { %v2572_v50 = vadd.f32 %v2571_v41, %v2483_v10  ;;  %v2660_v33 = vpop.f32.mrf.mxu3  ;;  %v2396_v13 = vpop.f32.mrf.mxu0 }
 0x39e   : > { %v2485_v40 = vpop.f32.mrf.mxu1  ;;  %v2397_v1 = vadd.f32 %v4795_v19, %v2396_v13 }
 0x39f   : > { %v2661_v3 = vadd.f32 %v2660_v33, %v2572_v50 }
 0x3a0   : > { %v2486_v9 = vadd.f32 %v2485_v40, %v2397_v1 }
 0x3a1   : > { %v2693_v51 = vmax.f32 %v2689_v34, %v2661_v3 }
 0x3a3   : > { %v2696_v59 = vmax.f32 %v2692_v16, %v2693_v51 }
 0x3a4   : > { %v2574_v6 = vpop.f32.mrf.mxu2 }
 0x3a5   : > { %v2663_v24 = vpop.f32.mrf.mxu3  ;;  %v2398_v63 = vpop.f32.mrf.mxu0  ;;  %v2575_v48 = vadd.f32 %v2574_v6, %v2486_v9 }
 0x3a6   : > { %v2399_v14 = vadd.f32 %v4795_v19, %v2398_v63  ;;  %v2487_v26 = vpop.f32.mrf.mxu1 }
 0x3a7   : > { %v2664_v12 = vadd.f32 %v2663_v24, %v2575_v48 }
 0x3a8   : > { %v2488_v49 = vadd.f32 %v2487_v26, %v2399_v14 }
 0x3a9   : > { %v2694_v19 = vmax.f32 %v2690_v39, %v2664_v12 }
 0x3ac   : > { %v2576_v37 = vpop.f32.mrf.mxu2 }
 0x3ad   : > { %v2577_v8 = vadd.f32 %v2576_v37, %v2488_v49  ;;  %v2665_v30 = vpop.f32.mrf.mxu3 }
 0x3af   : > { %v2666_v58 = vadd.f32 %v2665_v30, %v2577_v8 }
 0x3b1   : > { %v2695_v47 = vmax.f32 %v2691_v17, %v2666_v58 }
 0x3b3   : > { %v2697_v27 = vmax.f32 %v2694_v19, %v2695_v47 }
 0x3b5   : > { %v2698_v38 = vmax.f32 %v2696_v59, %v2697_v27 }
 0x3b7   : > { %v2699_v56 = vrot.slane %v2698_v38, 4 }
 0x3b9   : > { %v2700_v61 = vmax.f32 %v2698_v38, %v2699_v56 }
 0x3bb   : > { %v2701_v31 = vrot.slane %v2700_v61, 2 }
 0x3bd   : > { %v2702_v60 = vmax.f32 %v2700_v61, %v2701_v31  ;;  %2708 = sbr.rel (%p3318_p7) target bundleno = 964 (0x3c4), region = 48 }
 0x3bf   : > { %v2703_v44 = vrot.slane %v2702_v60, 1 }
 0x3c1   : > { %v2704_v11 = vmax.f32 %v2702_v60, %v2703_v44 }
 0x3c3   : > { %2709 = vst [vmem:[%s3804_s18] sm:$0x1] %v2704_v11 }
 0x3c4 PF: > { %p3319_p8 = scmp.le.s32.totalorder %s3515_s21, 0 }
 0x3c6   : > { %2713 = sbr.rel (%p3319_p8) target bundleno = 975 (0x3cf), region = 52 }
 0x3cb   : > { %v2714_v28 = vld [vmem:[%s3804_s18] sm:$0x1] }
 0x3cc   : > { %v2715_v55 = vmax.f32 %v2714_v28, %v2704_v11 }
 0x3ce   : > { %2716 = vst [vmem:[%s3804_s18] sm:$0x1] %v2715_v55 }
 0x3cf PF: > { %s16_s25 = sadd.s32 1, %s3531_s25   ;;  %s4957_s21 = smov %s3523_s23 }
 0x3d0   : > { %p13_p9 = scmp.ge.s32.totalorder %s16_s25, 6   ;;  %s4958_s22 = smov %s3527_s24 }
 0x3d1   : > { %s4959_s23 = smov %s4962_s26  ;;  %s4960_s24 = smov %s4966_s27 }
 0x3d2   :  { %15 = sbr.rel (!%p13_p9) target bundleno = 3 (0x3), region = 85 }

</bundles_post_ra>
